<compile_context>
chip_gen: v5e
topology: v5e:2x2
jax: 0.10.0
libtpu: 0.0.40
codegen_flags: <defaults>
</compile_context>

<pallas_src>
import functools
import numpy as np
import jax
import jax.numpy as jnp
from jax.experimental import pallas as pl
from jax.experimental.pallas import tpu as pltpu


# ----------------------------- bilinear helpers ------------------------------

def bilinear_kernel(in_channels, out_channels, kernel_size):
    """PyTorch-spec bilinear ConvTranspose2d init (kept for documentation).

    The weight is channel-diagonal and separable (outer(g, g) per channel),
    which is what lets each deconv be lowered to a single spatial matmul.
    """
    factor = (kernel_size + 1) // 2
    center = factor - 1 if kernel_size % 2 == 1 else factor - 0.5
    og = np.ogrid[:kernel_size, :kernel_size]
    filt = (1 - abs(og[0] - center) / factor) * (1 - abs(og[1] - center) / factor)
    weight = np.zeros((in_channels, out_channels, kernel_size, kernel_size),
                      dtype='float32')
    weight[range(in_channels), range(out_channels), :, :] = filt
    return jnp.asarray(weight)


def _bilinear_1d(k):
    factor = (k + 1) // 2
    center = factor - 1 if k % 2 == 1 else factor - 0.5
    return np.array([1.0 - abs(i - center) / factor for i in range(k)],
                    dtype=np.float32)


def _upsample_matrix(out_size, in_size, k, stride, pad):
    """Dense (out_size, in_size) matrix of the 1-D bilinear transposed conv."""
    g = _bilinear_1d(k)
    u = np.zeros((out_size, in_size), dtype=np.float32)
    for o in range(out_size):
        for t in range(k):
            if (o + pad - t) % stride == 0:
                i = (o + pad - t) // stride
                if 0 <= i < in_size:
                    u[o, i] += g[t]
    return u


# ------------------------------- fused kernel --------------------------------

def _fcn_fused_kernel(xp_ref, w1_ref, b1_ref,
                      p2_ref, w2_ref, b2_ref,
                      p3_ref, w3_ref, b3_ref,
                      wc1_ref, bc1_ref, wc2_ref, bc2_ref, wc3_ref, bc3_ref,
                      m2_ref, m4_ref, m8_ref,
                      o_ref, *, num_classes):
    """Whole MyFCN forward for one image, channel-major (C, H*W) everywhere."""
    f32 = jnp.float32
    bf16 = jnp.bfloat16

    def mm(a, b):
        return jnp.dot(a, b, preferred_element_type=f32)

    # stage1: 8x8 stride-8 conv == one matmul on pre-extracted patches
    s1 = jnp.maximum(mm(w1_ref[...], xp_ref[0]) + b1_ref[...], 0.0)   # (128, sp1)
    s1b = s1.astype(bf16)

    def strided_conv(xb, p_ref, w_ref, b_ref):
        # kernel==stride conv: per-tap spatial selection (right matmul) +
        # per-tap channel mixing (left matmul), accumulated over the 4 taps.
        acc = None
        for t in range(p_ref.shape[0]):
            g = mm(xb, p_ref[t]).astype(bf16)
            term = mm(w_ref[t], g)
            acc = term if acc is None else acc + term
        return jnp.maximum(acc + b_ref[...], 0.0)

    s2 = strided_conv(s1b, p2_ref, w2_ref, b2_ref)      # (256, sp2)
    s2b = s2.astype(bf16)
    s3 = strided_conv(s2b, p3_ref, w3_ref, b3_ref)      # (512, sp3 padded to >=8)
    s3b = s3.astype(bf16)

    # classifier 1x1 convs + bilinear upsamples (channel-diagonal -> right mm)
    c1 = mm(wc1_ref[...], s3b) + bc1_ref[...]            # conv1(s3)         (128, sp3p)
    u2 = mm(c1.astype(bf16), m2_ref[...])                # deconv2(.)        (128, sp2)
    a2 = mm(wc2_ref[...], s2b) + bc2_ref[...] + u2       # conv2(s2) + u2    (128, sp2)
    u4 = mm(a2.astype(bf16), m4_ref[...])                # deconv4(.)        (128, sp1)
    a3 = mm(wc3_ref[...], s1b) + bc3_ref[...] + u4       # conv3(s1) + u4    (128, sp1)

    # deconv8 (x8 bilinear) straight into NCHW layout: rows = classes.
    o_ref[0] = mm(a3[:num_classes].astype(bf16), m8_ref[...])   # (nc, H*W)


def _fcn_head_call(xp, consts, num_classes, out_hw):
    n = xp.shape[0]

    def const_spec(a):
        nd = a.ndim
        return pl.BlockSpec(a.shape, lambda b, _nd=nd: (0,) * _nd)

    in_specs = [pl.BlockSpec((1,) + xp.shape[1:], lambda b: (b, 0, 0))]
    in_specs += [const_spec(c) for c in consts]

    return pl.pallas_call(
        functools.partial(_fcn_fused_kernel, num_classes=num_classes),
        out_shape=jax.ShapeDtypeStruct((n, num_classes, out_hw), jnp.float32),
        grid_spec=pltpu.PrefetchScalarGridSpec(
            num_scalar_prefetch=0,
            grid=(n,),
            in_specs=in_specs,
            out_specs=pl.BlockSpec((1, num_classes, out_hw),
                                   lambda b: (b, 0, 0)),
        ),
        compiler_params=pltpu.CompilerParams(
            dimension_semantics=("parallel",)),
    )(xp, *consts)


# --------------------- one-time parameter / constant packing -----------------

def pack_constants(params, num_classes, height, width):
    """Hoisted weight repacking: transposes, zero pads, bf16 casts, and the
    structured spatial matrices (tap selection / bilinear upsampling) are all
    built once here, never inside the forward pass."""
    assert height % 32 == 0 and width % 32 == 0
    nc = num_classes
    assert nc <= 128
    NCP = 128                                   # classifier channels padded to 128 lanes
    h1, w1 = height // 8, width // 8
    h2, w2 = h1 // 2, w1 // 2
    h3, w3 = h2 // 2, w2 // 2
    sp1, sp2, sp3 = h1 * w1, h2 * w2, h3 * w3
    sp3p = max(8, sp3)                          # keep every contraction dim >= 8
    assert sp1 >= 8 and sp2 >= 8
    bf16, f32 = jnp.bfloat16, jnp.float32

    # stage1 weight: channel-major lhs (Cout, KH*KW*CIp), input channels padded 3->4
    s1w = params['stage1_w']
    cin = s1w.shape[1]
    w1t = jnp.pad(s1w, ((0, 0), (0, 4 - cin), (0, 0), (0, 0)))
    w1t = jnp.transpose(w1t, (0, 2, 3, 1)).reshape(128, 8 * 8 * 4).astype(bf16)
    b1 = params['stage1_b'].reshape(-1, 1).astype(f32)

    # stage2/3: per-tap channel mixers + spatial tap-selection matrices
    def taps(w):
        return jnp.stack([w[:, :, di, dj]
                          for di in range(2) for dj in range(2)]).astype(bf16)

    w2t = taps(params['stage2_w'])                           # (4, 256, 128)
    w3t = taps(params['stage3_w'])                           # (4, 512, 256)
    b2 = params['stage2_b'].reshape(-1, 1).astype(f32)
    b3 = params['stage3_b'].reshape(-1, 1).astype(f32)

    def tap_select(oh, ow, ih, iw, pad_rows):
        mats = []
        for di in range(2):
            for dj in range(2):
                m = np.zeros((pad_rows, ih * iw), np.float32)
                for i in range(oh):
                    for j in range(ow):
                        m[i * ow + j, (2 * i + di) * iw + (2 * j + dj)] = 1.0
                mats.append(m.T)                              # (in_sp, out_sp)
        return jnp.asarray(np.stack(mats), dtype=bf16)

    p2t = tap_select(h2, w2, h1, w1, sp2)                     # (4, sp1, sp2)
    p3t = tap_select(h3, w3, h2, w2, sp3p)                    # (4, sp2, sp3p)

    # 1x1 classifier convs, output channels zero-padded to 128 sublanes
    def cls(wname, bname, cin_):
        w = params[wname].reshape(nc, cin_)
        w = jnp.pad(w, ((0, NCP - nc), (0, 0))).astype(bf16)
        b = jnp.pad(params[bname], (0, NCP - nc)).reshape(-1, 1).astype(f32)
        return w, b

    wc1t, bc1 = cls('conv1_w', 'conv1_b', 512)
    wc2t, bc2 = cls('conv2_w', 'conv2_b', 256)
    wc3t, bc3 = cls('conv3_w', 'conv3_b', 128)

    # bilinear ConvTranspose2d layers as (in_sp, out_sp) right-multipliers.
    # Exact because bilinear_kernel() is channel-diagonal and separable.
    def upsample_mat(ih, iw, oh, ow, k, stride, pad, in_rows):
        uy = _upsample_matrix(oh, ih, k, stride, pad)
        ux = _upsample_matrix(ow, iw, k, stride, pad)
        m = np.kron(uy, ux)                                   # (oh*ow, ih*iw)
        mt = np.zeros((in_rows, oh * ow), np.float32)
        mt[: ih * iw, :] = m.T
        return jnp.asarray(mt, dtype=bf16)

    m2t = upsample_mat(h3, w3, h2, w2, 4, 2, 1, sp3p)         # deconv2
    m4t = upsample_mat(h2, w2, h1, w1, 4, 2, 1, sp2)          # deconv4
    m8t = upsample_mat(h1, w1, height, width, 16, 8, 4, sp1)  # deconv8

    return (w1t, b1, p2t, w2t, b2, p3t, w3t, b3,
            wc1t, bc1, wc2t, bc2, wc3t, bc3, m2t, m4t, m8t)


# ------------------------------ parameter init -------------------------------

def _conv_init(key, cout, cin, k):
    wkey, bkey = jax.random.split(key)
    bound = 1.0 / np.sqrt(cin * k * k)
    w = jax.random.uniform(wkey, (cout, cin, k, k), jnp.float32, -bound, bound)
    b = jax.random.uniform(bkey, (cout,), jnp.float32, -bound, bound)
    return w, b


def init_params(num_classes, key):
    keys = jax.random.split(key, 6)
    p = {}
    # TODO(synk): `pretrained_model` backbone is an unspecified external argument;
    # stage1/stage2/stage3 are stand-in strided conv + ReLU stages with the
    # channel counts / strides the FCN head implies (128 @ /8, 256 @ /16, 512 @ /32).
    p['stage1_w'], p['stage1_b'] = _conv_init(keys[0], 128, 3, 8)
    p['stage2_w'], p['stage2_b'] = _conv_init(keys[1], 256, 128, 2)
    p['stage3_w'], p['stage3_b'] = _conv_init(keys[2], 512, 256, 2)
    p['conv1_w'], p['conv1_b'] = _conv_init(keys[3], num_classes, 512, 1)
    p['conv2_w'], p['conv2_b'] = _conv_init(keys[4], num_classes, 256, 1)
    p['conv3_w'], p['conv3_b'] = _conv_init(keys[5], num_classes, 128, 1)
    return p


# --------------------------------- forward -----------------------------------

def myfcn_forward(consts, x_nchw, num_classes):
    n, cin, h, w = x_nchw.shape
    h1, w1 = h // 8, w // 8
    # stage1 (8x8 / stride-8) patch extraction, channel-major: (N, 8*8*4, sp1)
    xp = jnp.pad(x_nchw, ((0, 0), (0, 4 - cin), (0, 0), (0, 0)))
    xp = xp.reshape(n, 4, h1, 8, w1, 8)                        # (n, ci, i, dy, j, dx)
    xp = jnp.transpose(xp, (0, 3, 5, 1, 2, 4)).reshape(n, 8 * 8 * 4, h1 * w1)
    xp = xp.astype(jnp.bfloat16)

    out = _fcn_head_call(xp, consts, num_classes, h * w)       # (N, nc, H*W), NCHW order
    return out.reshape(n, num_classes, h, w)


if __name__ == "__main__":
    num_classes = 8
    H = W = 64
    key = jax.random.PRNGKey(0)
    xkey, pkey = jax.random.split(key)
    x = jax.random.normal(xkey, (2, 3, H, W), jnp.float32)     # NCHW, like PyTorch
    params = init_params(num_classes, pkey)
    consts = pack_constants(params, num_classes, H, W)         # hoisted: runs once

    fwd = jax.jit(myfcn_forward, static_argnums=(2,))
    out = jax.block_until_ready(fwd(consts, x, num_classes))

    assert out.shape == (2, num_classes, H, W), out.shape
    assert bool(jnp.all(jnp.isfinite(out)))
    print("KERNEL_OK")
</pallas_src>

<mosaic_0001>
module attributes {stable_mosaic.version = 11 : i64} {
  func.func @_fcn_fused_kernel(%arg0: i32, %arg1: memref<1x256x64xbf16, #tpu.memory_space<vmem>>, %arg2: memref<128x256xbf16, #tpu.memory_space<vmem>>, %arg3: memref<128x1xf32, #tpu.memory_space<vmem>>, %arg4: memref<4x64x16xbf16, #tpu.memory_space<vmem>>, %arg5: memref<4x256x128xbf16, #tpu.memory_space<vmem>>, %arg6: memref<256x1xf32, #tpu.memory_space<vmem>>, %arg7: memref<4x16x8xbf16, #tpu.memory_space<vmem>>, %arg8: memref<4x512x256xbf16, #tpu.memory_space<vmem>>, %arg9: memref<512x1xf32, #tpu.memory_space<vmem>>, %arg10: memref<128x512xbf16, #tpu.memory_space<vmem>>, %arg11: memref<128x1xf32, #tpu.memory_space<vmem>>, %arg12: memref<128x256xbf16, #tpu.memory_space<vmem>>, %arg13: memref<128x1xf32, #tpu.memory_space<vmem>>, %arg14: memref<128x128xbf16, #tpu.memory_space<vmem>>, %arg15: memref<128x1xf32, #tpu.memory_space<vmem>>, %arg16: memref<8x16xbf16, #tpu.memory_space<vmem>>, %arg17: memref<16x64xbf16, #tpu.memory_space<vmem>>, %arg18: memref<64x4096xbf16, #tpu.memory_space<vmem>>, %arg19: memref<1x8x4096xf32, #tpu.memory_space<vmem>>) attributes {dimension_semantics = [#tpu.dimension_semantics<parallel>], iteration_bounds = array<i64: 2>, scalar_prefetch = 0 : i64, scratch_operands = 0 : i64, tpu.core_type = #tpu.core_type<tc>, window_params = [{transform_indices = @transform_0, window_bounds = array<i64: 1, 256, 64>}, {pipeline_mode = #tpu.pipeline_mode<synchronous>, transform_indices = @transform_1, window_bounds = array<i64: 128, 256>}, {pipeline_mode = #tpu.pipeline_mode<synchronous>, transform_indices = @transform_2, window_bounds = array<i64: 128, 1>}, {pipeline_mode = #tpu.pipeline_mode<synchronous>, transform_indices = @transform_3, window_bounds = array<i64: 4, 64, 16>}, {pipeline_mode = #tpu.pipeline_mode<synchronous>, transform_indices = @transform_4, window_bounds = array<i64: 4, 256, 128>}, {pipeline_mode = #tpu.pipeline_mode<synchronous>, transform_indices = @transform_5, window_bounds = array<i64: 256, 1>}, {pipeline_mode = #tpu.pipeline_mode<synchronous>, transform_indices = @transform_6, window_bounds = array<i64: 4, 16, 8>}, {pipeline_mode = #tpu.pipeline_mode<synchronous>, transform_indices = @transform_7, window_bounds = array<i64: 4, 512, 256>}, {pipeline_mode = #tpu.pipeline_mode<synchronous>, transform_indices = @transform_8, window_bounds = array<i64: 512, 1>}, {pipeline_mode = #tpu.pipeline_mode<synchronous>, transform_indices = @transform_9, window_bounds = array<i64: 128, 512>}, {pipeline_mode = #tpu.pipeline_mode<synchronous>, transform_indices = @transform_10, window_bounds = array<i64: 128, 1>}, {pipeline_mode = #tpu.pipeline_mode<synchronous>, transform_indices = @transform_11, window_bounds = array<i64: 128, 256>}, {pipeline_mode = #tpu.pipeline_mode<synchronous>, transform_indices = @transform_12, window_bounds = array<i64: 128, 1>}, {pipeline_mode = #tpu.pipeline_mode<synchronous>, transform_indices = @transform_13, window_bounds = array<i64: 128, 128>}, {pipeline_mode = #tpu.pipeline_mode<synchronous>, transform_indices = @transform_14, window_bounds = array<i64: 128, 1>}, {pipeline_mode = #tpu.pipeline_mode<synchronous>, transform_indices = @transform_15, window_bounds = array<i64: 8, 16>}, {pipeline_mode = #tpu.pipeline_mode<synchronous>, transform_indices = @transform_16, window_bounds = array<i64: 16, 64>}, {pipeline_mode = #tpu.pipeline_mode<synchronous>, transform_indices = @transform_17, window_bounds = array<i64: 64, 4096>}, {transform_indices = @transform_18, window_bounds = array<i64: 1, 8, 4096>}]} {
    %c0 = arith.constant 0 : index
    %c0_0 = arith.constant 0 : index
    %0 = vector.load %arg2[%c0, %c0_0] : memref<128x256xbf16, #tpu.memory_space<vmem>>, vector<128x256xbf16>
    %c0_1 = arith.constant 0 : index
    %c0_2 = arith.constant 0 : index
    %c0_3 = arith.constant 0 : index
    %1 = vector.load %arg1[%c0_1, %c0_2, %c0_3] : memref<1x256x64xbf16, #tpu.memory_space<vmem>>, vector<1x256x64xbf16>
    %2 = vector.shape_cast %1 : vector<1x256x64xbf16> to vector<256x64xbf16>
    %cst = arith.constant dense<0.000000e+00> : vector<128x64xf32>
    %3 = tpu.matmul %0, %2, %cst {dimension_numbers = #tpu.dot_dimension_numbers<[1], [0], [0], [1], [0, 0, 1, 1], [], []>} : vector<128x256xbf16>, vector<256x64xbf16>, vector<128x64xf32> -> vector<128x64xf32>
    %c0_4 = arith.constant 0 : index
    %c0_5 = arith.constant 0 : index
    %4 = vector.load %arg3[%c0_4, %c0_5] : memref<128x1xf32, #tpu.memory_space<vmem>>, vector<128x1xf32>
    %5 = vector.broadcast %4 : vector<128x1xf32> to vector<128x64xf32>
    %6 = arith.addf %3, %5 : vector<128x64xf32>
    %cst_6 = arith.constant 0.000000e+00 : f32
    %7 = vector.broadcast %cst_6 : f32 to vector<128x64xf32>
    %8 = arith.maximumf %6, %7 : vector<128x64xf32>
    %9 = arith.truncf %8 : vector<128x64xf32> to vector<128x64xbf16>
    %c0_7 = arith.constant 0 : index
    %c0_8 = arith.constant 0 : index
    %c0_9 = arith.constant 0 : index
    %10 = vector.load %arg4[%c0_7, %c0_8, %c0_9] : memref<4x64x16xbf16, #tpu.memory_space<vmem>>, vector<1x64x16xbf16>
    %11 = vector.shape_cast %10 : vector<1x64x16xbf16> to vector<64x16xbf16>
    %cst_10 = arith.constant dense<0.000000e+00> : vector<128x16xf32>
    %12 = tpu.matmul %9, %11, %cst_10 {dimension_numbers = #tpu.dot_dimension_numbers<[1], [0], [0], [1], [0, 0, 1, 1], [], []>} : vector<128x64xbf16>, vector<64x16xbf16>, vector<128x16xf32> -> vector<128x16xf32>
    %13 = arith.truncf %12 : vector<128x16xf32> to vector<128x16xbf16>
    %c0_11 = arith.constant 0 : index
    %c0_12 = arith.constant 0 : index
    %c0_13 = arith.constant 0 : index
    %14 = vector.load %arg5[%c0_11, %c0_12, %c0_13] : memref<4x256x128xbf16, #tpu.memory_space<vmem>>, vector<1x256x128xbf16>
    %15 = vector.shape_cast %14 : vector<1x256x128xbf16> to vector<256x128xbf16>
    %cst_14 = arith.constant dense<0.000000e+00> : vector<256x16xf32>
    %16 = tpu.matmul %15, %13, %cst_14 {dimension_numbers = #tpu.dot_dimension_numbers<[1], [0], [0], [1], [0, 0, 1, 1], [], []>} : vector<256x128xbf16>, vector<128x16xbf16>, vector<256x16xf32> -> vector<256x16xf32>
    %c1 = arith.constant 1 : index
    %c0_15 = arith.constant 0 : index
    %c0_16 = arith.constant 0 : index
    %17 = vector.load %arg4[%c1, %c0_15, %c0_16] : memref<4x64x16xbf16, #tpu.memory_space<vmem>>, vector<1x64x16xbf16>
    %18 = vector.shape_cast %17 : vector<1x64x16xbf16> to vector<64x16xbf16>
    %cst_17 = arith.constant dense<0.000000e+00> : vector<128x16xf32>
    %19 = tpu.matmul %9, %18, %cst_17 {dimension_numbers = #tpu.dot_dimension_numbers<[1], [0], [0], [1], [0, 0, 1, 1], [], []>} : vector<128x64xbf16>, vector<64x16xbf16>, vector<128x16xf32> -> vector<128x16xf32>
    %20 = arith.truncf %19 : vector<128x16xf32> to vector<128x16xbf16>
    %c1_18 = arith.constant 1 : index
    %c0_19 = arith.constant 0 : index
    %c0_20 = arith.constant 0 : index
    %21 = vector.load %arg5[%c1_18, %c0_19, %c0_20] : memref<4x256x128xbf16, #tpu.memory_space<vmem>>, vector<1x256x128xbf16>
    %22 = vector.shape_cast %21 : vector<1x256x128xbf16> to vector<256x128xbf16>
    %cst_21 = arith.constant dense<0.000000e+00> : vector<256x16xf32>
    %23 = tpu.matmul %22, %20, %cst_21 {dimension_numbers = #tpu.dot_dimension_numbers<[1], [0], [0], [1], [0, 0, 1, 1], [], []>} : vector<256x128xbf16>, vector<128x16xbf16>, vector<256x16xf32> -> vector<256x16xf32>
    %24 = arith.addf %16, %23 : vector<256x16xf32>
    %c2 = arith.constant 2 : index
    %c0_22 = arith.constant 0 : index
    %c0_23 = arith.constant 0 : index
    %25 = vector.load %arg4[%c2, %c0_22, %c0_23] : memref<4x64x16xbf16, #tpu.memory_space<vmem>>, vector<1x64x16xbf16>
    %26 = vector.shape_cast %25 : vector<1x64x16xbf16> to vector<64x16xbf16>
    %cst_24 = arith.constant dense<0.000000e+00> : vector<128x16xf32>
    %27 = tpu.matmul %9, %26, %cst_24 {dimension_numbers = #tpu.dot_dimension_numbers<[1], [0], [0], [1], [0, 0, 1, 1], [], []>} : vector<128x64xbf16>, vector<64x16xbf16>, vector<128x16xf32> -> vector<128x16xf32>
    %28 = arith.truncf %27 : vector<128x16xf32> to vector<128x16xbf16>
    %c2_25 = arith.constant 2 : index
    %c0_26 = arith.constant 0 : index
    %c0_27 = arith.constant 0 : index
    %29 = vector.load %arg5[%c2_25, %c0_26, %c0_27] : memref<4x256x128xbf16, #tpu.memory_space<vmem>>, vector<1x256x128xbf16>
    %30 = vector.shape_cast %29 : vector<1x256x128xbf16> to vector<256x128xbf16>
    %cst_28 = arith.constant dense<0.000000e+00> : vector<256x16xf32>
    %31 = tpu.matmul %30, %28, %cst_28 {dimension_numbers = #tpu.dot_dimension_numbers<[1], [0], [0], [1], [0, 0, 1, 1], [], []>} : vector<256x128xbf16>, vector<128x16xbf16>, vector<256x16xf32> -> vector<256x16xf32>
    %32 = arith.addf %24, %31 : vector<256x16xf32>
    %c3 = arith.constant 3 : index
    %c0_29 = arith.constant 0 : index
    %c0_30 = arith.constant 0 : index
    %33 = vector.load %arg4[%c3, %c0_29, %c0_30] : memref<4x64x16xbf16, #tpu.memory_space<vmem>>, vector<1x64x16xbf16>
    %34 = vector.shape_cast %33 : vector<1x64x16xbf16> to vector<64x16xbf16>
    %cst_31 = arith.constant dense<0.000000e+00> : vector<128x16xf32>
    %35 = tpu.matmul %9, %34, %cst_31 {dimension_numbers = #tpu.dot_dimension_numbers<[1], [0], [0], [1], [0, 0, 1, 1], [], []>} : vector<128x64xbf16>, vector<64x16xbf16>, vector<128x16xf32> -> vector<128x16xf32>
    %36 = arith.truncf %35 : vector<128x16xf32> to vector<128x16xbf16>
    %c3_32 = arith.constant 3 : index
    %c0_33 = arith.constant 0 : index
    %c0_34 = arith.constant 0 : index
    %37 = vector.load %arg5[%c3_32, %c0_33, %c0_34] : memref<4x256x128xbf16, #tpu.memory_space<vmem>>, vector<1x256x128xbf16>
    %38 = vector.shape_cast %37 : vector<1x256x128xbf16> to vector<256x128xbf16>
    %cst_35 = arith.constant dense<0.000000e+00> : vector<256x16xf32>
    %39 = tpu.matmul %38, %36, %cst_35 {dimension_numbers = #tpu.dot_dimension_numbers<[1], [0], [0], [1], [0, 0, 1, 1], [], []>} : vector<256x128xbf16>, vector<128x16xbf16>, vector<256x16xf32> -> vector<256x16xf32>
    %40 = arith.addf %32, %39 : vector<256x16xf32>
    %c0_36 = arith.constant 0 : index
    %c0_37 = arith.constant 0 : index
    %41 = vector.load %arg6[%c0_36, %c0_37] : memref<256x1xf32, #tpu.memory_space<vmem>>, vector<256x1xf32>
    %42 = vector.broadcast %41 : vector<256x1xf32> to vector<256x16xf32>
    %43 = arith.addf %40, %42 : vector<256x16xf32>
    %cst_38 = arith.constant 0.000000e+00 : f32
    %44 = vector.broadcast %cst_38 : f32 to vector<256x16xf32>
    %45 = arith.maximumf %43, %44 : vector<256x16xf32>
    %46 = arith.truncf %45 : vector<256x16xf32> to vector<256x16xbf16>
    %c0_39 = arith.constant 0 : index
    %c0_40 = arith.constant 0 : index
    %c0_41 = arith.constant 0 : index
    %47 = vector.load %arg7[%c0_39, %c0_40, %c0_41] : memref<4x16x8xbf16, #tpu.memory_space<vmem>>, vector<1x16x8xbf16>
    %48 = vector.shape_cast %47 : vector<1x16x8xbf16> to vector<16x8xbf16>
    %cst_42 = arith.constant dense<0.000000e+00> : vector<256x8xf32>
    %49 = tpu.matmul %46, %48, %cst_42 {dimension_numbers = #tpu.dot_dimension_numbers<[1], [0], [0], [1], [0, 0, 1, 1], [], []>} : vector<256x16xbf16>, vector<16x8xbf16>, vector<256x8xf32> -> vector<256x8xf32>
    %50 = arith.truncf %49 : vector<256x8xf32> to vector<256x8xbf16>
    %c0_43 = arith.constant 0 : index
    %c0_44 = arith.constant 0 : index
    %c0_45 = arith.constant 0 : index
    %51 = vector.load %arg8[%c0_43, %c0_44, %c0_45] : memref<4x512x256xbf16, #tpu.memory_space<vmem>>, vector<1x512x256xbf16>
    %52 = vector.shape_cast %51 : vector<1x512x256xbf16> to vector<512x256xbf16>
    %cst_46 = arith.constant dense<0.000000e+00> : vector<512x8xf32>
    %53 = tpu.matmul %52, %50, %cst_46 {dimension_numbers = #tpu.dot_dimension_numbers<[1], [0], [0], [1], [0, 0, 1, 1], [], []>} : vector<512x256xbf16>, vector<256x8xbf16>, vector<512x8xf32> -> vector<512x8xf32>
    %c1_47 = arith.constant 1 : index
    %c0_48 = arith.constant 0 : index
    %c0_49 = arith.constant 0 : index
    %54 = vector.load %arg7[%c1_47, %c0_48, %c0_49] : memref<4x16x8xbf16, #tpu.memory_space<vmem>>, vector<1x16x8xbf16>
    %55 = vector.shape_cast %54 : vector<1x16x8xbf16> to vector<16x8xbf16>
    %cst_50 = arith.constant dense<0.000000e+00> : vector<256x8xf32>
    %56 = tpu.matmul %46, %55, %cst_50 {dimension_numbers = #tpu.dot_dimension_numbers<[1], [0], [0], [1], [0, 0, 1, 1], [], []>} : vector<256x16xbf16>, vector<16x8xbf16>, vector<256x8xf32> -> vector<256x8xf32>
    %57 = arith.truncf %56 : vector<256x8xf32> to vector<256x8xbf16>
    %c1_51 = arith.constant 1 : index
    %c0_52 = arith.constant 0 : index
    %c0_53 = arith.constant 0 : index
    %58 = vector.load %arg8[%c1_51, %c0_52, %c0_53] : memref<4x512x256xbf16, #tpu.memory_space<vmem>>, vector<1x512x256xbf16>
    %59 = vector.shape_cast %58 : vector<1x512x256xbf16> to vector<512x256xbf16>
    %cst_54 = arith.constant dense<0.000000e+00> : vector<512x8xf32>
    %60 = tpu.matmul %59, %57, %cst_54 {dimension_numbers = #tpu.dot_dimension_numbers<[1], [0], [0], [1], [0, 0, 1, 1], [], []>} : vector<512x256xbf16>, vector<256x8xbf16>, vector<512x8xf32> -> vector<512x8xf32>
    %61 = arith.addf %53, %60 : vector<512x8xf32>
    %c2_55 = arith.constant 2 : index
    %c0_56 = arith.constant 0 : index
    %c0_57 = arith.constant 0 : index
    %62 = vector.load %arg7[%c2_55, %c0_56, %c0_57] : memref<4x16x8xbf16, #tpu.memory_space<vmem>>, vector<1x16x8xbf16>
    %63 = vector.shape_cast %62 : vector<1x16x8xbf16> to vector<16x8xbf16>
    %cst_58 = arith.constant dense<0.000000e+00> : vector<256x8xf32>
    %64 = tpu.matmul %46, %63, %cst_58 {dimension_numbers = #tpu.dot_dimension_numbers<[1], [0], [0], [1], [0, 0, 1, 1], [], []>} : vector<256x16xbf16>, vector<16x8xbf16>, vector<256x8xf32> -> vector<256x8xf32>
    %65 = arith.truncf %64 : vector<256x8xf32> to vector<256x8xbf16>
    %c2_59 = arith.constant 2 : index
    %c0_60 = arith.constant 0 : index
    %c0_61 = arith.constant 0 : index
    %66 = vector.load %arg8[%c2_59, %c0_60, %c0_61] : memref<4x512x256xbf16, #tpu.memory_space<vmem>>, vector<1x512x256xbf16>
    %67 = vector.shape_cast %66 : vector<1x512x256xbf16> to vector<512x256xbf16>
    %cst_62 = arith.constant dense<0.000000e+00> : vector<512x8xf32>
    %68 = tpu.matmul %67, %65, %cst_62 {dimension_numbers = #tpu.dot_dimension_numbers<[1], [0], [0], [1], [0, 0, 1, 1], [], []>} : vector<512x256xbf16>, vector<256x8xbf16>, vector<512x8xf32> -> vector<512x8xf32>
    %69 = arith.addf %61, %68 : vector<512x8xf32>
    %c3_63 = arith.constant 3 : index
    %c0_64 = arith.constant 0 : index
    %c0_65 = arith.constant 0 : index
    %70 = vector.load %arg7[%c3_63, %c0_64, %c0_65] : memref<4x16x8xbf16, #tpu.memory_space<vmem>>, vector<1x16x8xbf16>
    %71 = vector.shape_cast %70 : vector<1x16x8xbf16> to vector<16x8xbf16>
    %cst_66 = arith.constant dense<0.000000e+00> : vector<256x8xf32>
    %72 = tpu.matmul %46, %71, %cst_66 {dimension_numbers = #tpu.dot_dimension_numbers<[1], [0], [0], [1], [0, 0, 1, 1], [], []>} : vector<256x16xbf16>, vector<16x8xbf16>, vector<256x8xf32> -> vector<256x8xf32>
    %73 = arith.truncf %72 : vector<256x8xf32> to vector<256x8xbf16>
    %c3_67 = arith.constant 3 : index
    %c0_68 = arith.constant 0 : index
    %c0_69 = arith.constant 0 : index
    %74 = vector.load %arg8[%c3_67, %c0_68, %c0_69] : memref<4x512x256xbf16, #tpu.memory_space<vmem>>, vector<1x512x256xbf16>
    %75 = vector.shape_cast %74 : vector<1x512x256xbf16> to vector<512x256xbf16>
    %cst_70 = arith.constant dense<0.000000e+00> : vector<512x8xf32>
    %76 = tpu.matmul %75, %73, %cst_70 {dimension_numbers = #tpu.dot_dimension_numbers<[1], [0], [0], [1], [0, 0, 1, 1], [], []>} : vector<512x256xbf16>, vector<256x8xbf16>, vector<512x8xf32> -> vector<512x8xf32>
    %77 = arith.addf %69, %76 : vector<512x8xf32>
    %c0_71 = arith.constant 0 : index
    %c0_72 = arith.constant 0 : index
    %78 = vector.load %arg9[%c0_71, %c0_72] : memref<512x1xf32, #tpu.memory_space<vmem>>, vector<512x1xf32>
    %79 = vector.broadcast %78 : vector<512x1xf32> to vector<512x8xf32>
    %80 = arith.addf %77, %79 : vector<512x8xf32>
    %cst_73 = arith.constant 0.000000e+00 : f32
    %81 = vector.broadcast %cst_73 : f32 to vector<512x8xf32>
    %82 = arith.maximumf %80, %81 : vector<512x8xf32>
    %83 = arith.truncf %82 : vector<512x8xf32> to vector<512x8xbf16>
    %c0_74 = arith.constant 0 : index
    %c0_75 = arith.constant 0 : index
    %84 = vector.load %arg10[%c0_74, %c0_75] : memref<128x512xbf16, #tpu.memory_space<vmem>>, vector<128x512xbf16>
    %cst_76 = arith.constant dense<0.000000e+00> : vector<128x8xf32>
    %85 = tpu.matmul %84, %83, %cst_76 {dimension_numbers = #tpu.dot_dimension_numbers<[1], [0], [0], [1], [0, 0, 1, 1], [], []>} : vector<128x512xbf16>, vector<512x8xbf16>, vector<128x8xf32> -> vector<128x8xf32>
    %c0_77 = arith.constant 0 : index
    %c0_78 = arith.constant 0 : index
    %86 = vector.load %arg11[%c0_77, %c0_78] : memref<128x1xf32, #tpu.memory_space<vmem>>, vector<128x1xf32>
    %87 = vector.broadcast %86 : vector<128x1xf32> to vector<128x8xf32>
    %88 = arith.addf %85, %87 : vector<128x8xf32>
    %89 = arith.truncf %88 : vector<128x8xf32> to vector<128x8xbf16>
    %c0_79 = arith.constant 0 : index
    %c0_80 = arith.constant 0 : index
    %90 = vector.load %arg16[%c0_79, %c0_80] : memref<8x16xbf16, #tpu.memory_space<vmem>>, vector<8x16xbf16>
    %cst_81 = arith.constant dense<0.000000e+00> : vector<128x16xf32>
    %91 = tpu.matmul %89, %90, %cst_81 {dimension_numbers = #tpu.dot_dimension_numbers<[1], [0], [0], [1], [0, 0, 1, 1], [], []>} : vector<128x8xbf16>, vector<8x16xbf16>, vector<128x16xf32> -> vector<128x16xf32>
    %c0_82 = arith.constant 0 : index
    %c0_83 = arith.constant 0 : index
    %92 = vector.load %arg12[%c0_82, %c0_83] : memref<128x256xbf16, #tpu.memory_space<vmem>>, vector<128x256xbf16>
    %cst_84 = arith.constant dense<0.000000e+00> : vector<128x16xf32>
    %93 = tpu.matmul %92, %46, %cst_84 {dimension_numbers = #tpu.dot_dimension_numbers<[1], [0], [0], [1], [0, 0, 1, 1], [], []>} : vector<128x256xbf16>, vector<256x16xbf16>, vector<128x16xf32> -> vector<128x16xf32>
    %c0_85 = arith.constant 0 : index
    %c0_86 = arith.constant 0 : index
    %94 = vector.load %arg13[%c0_85, %c0_86] : memref<128x1xf32, #tpu.memory_space<vmem>>, vector<128x1xf32>
    %95 = vector.broadcast %94 : vector<128x1xf32> to vector<128x16xf32>
    %96 = arith.addf %93, %95 : vector<128x16xf32>
    %97 = arith.addf %96, %91 : vector<128x16xf32>
    %98 = arith.truncf %97 : vector<128x16xf32> to vector<128x16xbf16>
    %c0_87 = arith.constant 0 : index
    %c0_88 = arith.constant 0 : index
    %99 = vector.load %arg17[%c0_87, %c0_88] : memref<16x64xbf16, #tpu.memory_space<vmem>>, vector<16x64xbf16>
    %cst_89 = arith.constant dense<0.000000e+00> : vector<128x64xf32>
    %100 = tpu.matmul %98, %99, %cst_89 {dimension_numbers = #tpu.dot_dimension_numbers<[1], [0], [0], [1], [0, 0, 1, 1], [], []>} : vector<128x16xbf16>, vector<16x64xbf16>, vector<128x64xf32> -> vector<128x64xf32>
    %c0_90 = arith.constant 0 : index
    %c0_91 = arith.constant 0 : index
    %101 = vector.load %arg14[%c0_90, %c0_91] : memref<128x128xbf16, #tpu.memory_space<vmem>>, vector<128x128xbf16>
    %cst_92 = arith.constant dense<0.000000e+00> : vector<128x64xf32>
    %102 = tpu.matmul %101, %9, %cst_92 {dimension_numbers = #tpu.dot_dimension_numbers<[1], [0], [0], [1], [0, 0, 1, 1], [], []>} : vector<128x128xbf16>, vector<128x64xbf16>, vector<128x64xf32> -> vector<128x64xf32>
    %c0_93 = arith.constant 0 : index
    %c0_94 = arith.constant 0 : index
    %103 = vector.load %arg15[%c0_93, %c0_94] : memref<128x1xf32, #tpu.memory_space<vmem>>, vector<128x1xf32>
    %104 = vector.broadcast %103 : vector<128x1xf32> to vector<128x64xf32>
    %105 = arith.addf %102, %104 : vector<128x64xf32>
    %106 = arith.addf %105, %100 : vector<128x64xf32>
    %107 = vector.extract_strided_slice %106 {offsets = [0, 0], sizes = [8, 64], strides = [1, 1]} : vector<128x64xf32> to vector<8x64xf32>
    %108 = arith.truncf %107 : vector<8x64xf32> to vector<8x64xbf16>
    %c0_95 = arith.constant 0 : index
    %c0_96 = arith.constant 0 : index
    %109 = vector.load %arg18[%c0_95, %c0_96] : memref<64x4096xbf16, #tpu.memory_space<vmem>>, vector<64x4096xbf16>
    %cst_97 = arith.constant dense<0.000000e+00> : vector<8x4096xf32>
    %110 = tpu.matmul %108, %109, %cst_97 {dimension_numbers = #tpu.dot_dimension_numbers<[1], [0], [0], [1], [0, 0, 1, 1], [], []>} : vector<8x64xbf16>, vector<64x4096xbf16>, vector<8x4096xf32> -> vector<8x4096xf32>
    %c0_98 = arith.constant 0 : index
    %c0_99 = arith.constant 0 : index
    %c0_100 = arith.constant 0 : index
    %111 = vector.load %arg19[%c0_98, %c0_99, %c0_100] : memref<1x8x4096xf32, #tpu.memory_space<vmem>>, vector<1x8x4096xf32>
    %112 = vector.shape_cast %111 : vector<1x8x4096xf32> to vector<8x4096xf32>
    %113 = vector.shape_cast %110 : vector<8x4096xf32> to vector<1x8x4096xf32>
    tpu.vector_store %arg19[%c0_98, %c0_99, %c0_100], %113 {strides = array<i32>} : memref<1x8x4096xf32, #tpu.memory_space<vmem>>, vector<1x8x4096xf32>,
    return
  }
  func.func @transform_0(%arg0: i32) -> (i32, i32, i32) {
    %c0_i32 = arith.constant 0 : i32
    %c0_i32_0 = arith.constant 0 : i32
    %c0_i32_1 = arith.constant 0 : i32
    return %arg0, %c0_i32, %c0_i32_0 : i32, i32, i32
  }
  func.func @transform_1(%arg0: i32) -> (i32, i32) {
    %c0_i32 = arith.constant 0 : i32
    %c0_i32_0 = arith.constant 0 : i32
    %c0_i32_1 = arith.constant 0 : i32
    return %c0_i32, %c0_i32_0 : i32, i32
  }
  func.func @transform_2(%arg0: i32) -> (i32, i32) {
    %c0_i32 = arith.constant 0 : i32
    %c0_i32_0 = arith.constant 0 : i32
    %c0_i32_1 = arith.constant 0 : i32
    return %c0_i32, %c0_i32_0 : i32, i32
  }
  func.func @transform_3(%arg0: i32) -> (i32, i32, i32) {
    %c0_i32 = arith.constant 0 : i32
    %c0_i32_0 = arith.constant 0 : i32
    %c0_i32_1 = arith.constant 0 : i32
    %c0_i32_2 = arith.constant 0 : i32
    return %c0_i32, %c0_i32_0, %c0_i32_1 : i32, i32, i32
  }
  func.func @transform_4(%arg0: i32) -> (i32, i32, i32) {
    %c0_i32 = arith.constant 0 : i32
    %c0_i32_0 = arith.constant 0 : i32
    %c0_i32_1 = arith.constant 0 : i32
    %c0_i32_2 = arith.constant 0 : i32
    return %c0_i32, %c0_i32_0, %c0_i32_1 : i32, i32, i32
  }
  func.func @transform_5(%arg0: i32) -> (i32, i32) {
    %c0_i32 = arith.constant 0 : i32
    %c0_i32_0 = arith.constant 0 : i32
    %c0_i32_1 = arith.constant 0 : i32
    return %c0_i32, %c0_i32_0 : i32, i32
  }
  func.func @transform_6(%arg0: i32) -> (i32, i32, i32) {
    %c0_i32 = arith.constant 0 : i32
    %c0_i32_0 = arith.constant 0 : i32
    %c0_i32_1 = arith.constant 0 : i32
    %c0_i32_2 = arith.constant 0 : i32
    return %c0_i32, %c0_i32_0, %c0_i32_1 : i32, i32, i32
  }
  func.func @transform_7(%arg0: i32) -> (i32, i32, i32) {
    %c0_i32 = arith.constant 0 : i32
    %c0_i32_0 = arith.constant 0 : i32
    %c0_i32_1 = arith.constant 0 : i32
    %c0_i32_2 = arith.constant 0 : i32
    return %c0_i32, %c0_i32_0, %c0_i32_1 : i32, i32, i32
  }
  func.func @transform_8(%arg0: i32) -> (i32, i32) {
    %c0_i32 = arith.constant 0 : i32
    %c0_i32_0 = arith.constant 0 : i32
    %c0_i32_1 = arith.constant 0 : i32
    return %c0_i32, %c0_i32_0 : i32, i32
  }
  func.func @transform_9(%arg0: i32) -> (i32, i32) {
    %c0_i32 = arith.constant 0 : i32
    %c0_i32_0 = arith.constant 0 : i32
    %c0_i32_1 = arith.constant 0 : i32
    return %c0_i32, %c0_i32_0 : i32, i32
  }
  func.func @transform_10(%arg0: i32) -> (i32, i32) {
    %c0_i32 = arith.constant 0 : i32
    %c0_i32_0 = arith.constant 0 : i32
    %c0_i32_1 = arith.constant 0 : i32
    return %c0_i32, %c0_i32_0 : i32, i32
  }
  func.func @transform_11(%arg0: i32) -> (i32, i32) {
    %c0_i32 = arith.constant 0 : i32
    %c0_i32_0 = arith.constant 0 : i32
    %c0_i32_1 = arith.constant 0 : i32
    return %c0_i32, %c0_i32_0 : i32, i32
  }
  func.func @transform_12(%arg0: i32) -> (i32, i32) {
    %c0_i32 = arith.constant 0 : i32
    %c0_i32_0 = arith.constant 0 : i32
    %c0_i32_1 = arith.constant 0 : i32
    return %c0_i32, %c0_i32_0 : i32, i32
  }
  func.func @transform_13(%arg0: i32) -> (i32, i32) {
    %c0_i32 = arith.constant 0 : i32
    %c0_i32_0 = arith.constant 0 : i32
    %c0_i32_1 = arith.constant 0 : i32
    return %c0_i32, %c0_i32_0 : i32, i32
  }
  func.func @transform_14(%arg0: i32) -> (i32, i32) {
    %c0_i32 = arith.constant 0 : i32
    %c0_i32_0 = arith.constant 0 : i32
    %c0_i32_1 = arith.constant 0 : i32
    return %c0_i32, %c0_i32_0 : i32, i32
  }
  func.func @transform_15(%arg0: i32) -> (i32, i32) {
    %c0_i32 = arith.constant 0 : i32
    %c0_i32_0 = arith.constant 0 : i32
    %c0_i32_1 = arith.constant 0 : i32
    return %c0_i32, %c0_i32_0 : i32, i32
  }
  func.func @transform_16(%arg0: i32) -> (i32, i32) {
    %c0_i32 = arith.constant 0 : i32
    %c0_i32_0 = arith.constant 0 : i32
    %c0_i32_1 = arith.constant 0 : i32
    return %c0_i32, %c0_i32_0 : i32, i32
  }
  func.func @transform_17(%arg0: i32) -> (i32, i32) {
    %c0_i32 = arith.constant 0 : i32
    %c0_i32_0 = arith.constant 0 : i32
    %c0_i32_1 = arith.constant 0 : i32
    return %c0_i32, %c0_i32_0 : i32, i32
  }
  func.func @transform_18(%arg0: i32) -> (i32, i32, i32) {
    %c0_i32 = arith.constant 0 : i32
    %c0_i32_0 = arith.constant 0 : i32
    %c0_i32_1 = arith.constant 0 : i32
    return %arg0, %c0_i32, %c0_i32_0 : i32, i32, i32
  }
}

</mosaic_0001>

<bundles_post_ra>
// kernel: myfcn_forward.1
= control target key start
LH: loop header
LB: loop body
LE: loop exit
PB: predicated region body
PF: predicated region fallthrough
CT: control target
= control target key end

     0   :  { %s12459_s27 = smov 0   ;;  %s18008_s0 = inlined_call_operand.vmem [shape: bf16[2,256,64], index: 0, kind: input, shape index: {}]   ;;  %s18009_s1 = inlined_call_operand.vmem [shape: bf16[128,256], index: 1, kind: input, shape index: {}]   ;;  %s18010_s2 = inlined_call_operand.vmem [shape: f32[128,1], index: 2, kind: input, shape index: {}]   ;;  %s18011_s3 = inlined_call_operand.vmem [shape: bf16[4,64,16], index: 3, kind: input, shape index: {}]   ;;  %s18012_s4 = inlined_call_operand.vmem [shape: bf16[4,256,128], index: 4, kind: input, shape index: {}]   ;;  %s18013_s5 = inlined_call_operand.vmem [shape: f32[256,1], index: 5, kind: input, shape index: {}]   ;;  %s18014_s6 = inlined_call_operand.vmem [shape: bf16[4,16,8], index: 6, kind: input, shape index: {}]   ;;  %s18015_s7 = inlined_call_operand.vmem [shape: bf16[4,512,256], index: 7, kind: input, shape index: {}]   ;;  %s18016_s8 = inlined_call_operand.vmem [shape: f32[512,1], index: 8, kind: input, shape index: {}]   ;;  %s18017_s9 = inlined_call_operand.vmem [shape: bf16[128,512], index: 9, kind: input, shape index: {}]   ;;  %s18018_s10 = inlined_call_operand.vmem [shape: f32[128,1], index: 10, kind: input, shape index: {}]   ;;  %s18019_s11 = inlined_call_operand.vmem [shape: bf16[128,256], index: 11, kind: input, shape index: {}]   ;;  %s18020_s12 = inlined_call_operand.vmem [shape: f32[128,1], index: 12, kind: input, shape index: {}]   ;;  %s18021_s13 = inlined_call_operand.vmem [shape: bf16[128,128], index: 13, kind: input, shape index: {}]   ;;  %s18022_s14 = inlined_call_operand.vmem [shape: f32[128,1], index: 14, kind: input, shape index: {}]   ;;  %s18023_s15 = inlined_call_operand.vmem [shape: bf16[8,16], index: 15, kind: input, shape index: {}]   ;;  %s18024_s16 = inlined_call_operand.vmem [shape: bf16[16,64], index: 16, kind: input, shape index: {}]   ;;  %s18025_s17 = inlined_call_operand.vmem [shape: bf16[64,4096], index: 17, kind: input, shape index: {}]   ;;  %s18026_s18 = inlined_call_operand.vmem [shape: f32[2,8,4096], index: 18, kind: output, shape index: {}]  }
   0x1   :  { %18053 = sst [smem:[#allocation110_spill]] %s18008_s0 }
   0x2   :  { %18054 = sst [smem:[#allocation111_spill]] %s18009_s1 }
   0x3   :  { %18055 = sst [smem:[#allocation112_spill]] %s18010_s2 }
   0x4   :  { %18056 = sst [smem:[#allocation113_spill]] %s18026_s18 }
   0x5 LB: > { %18057 = sst [smem:[#allocation2_spill]] %s12361_s27  ;;  %s9083_s28 = sadd.s32 4294967295, %s12361_s27   ;;  %s12361_s27 = sphi %s12459_s27, %s28_s27  }
   0x6   : > { %p9087_p0 = scmp.ge.s32.totalorder %s12361_s27, 1  ;;  %p512_p1 = scmp.lt.s32.totalorder %s12361_s27, 3 }
   0x8   : > { %p513_p2 = pnand %p9087_p0, %p512_p1 }
   0xa   : > { %516 = sbr.rel (%p513_p2) target bundleno = 3655 (0xe47), region = 92 }
   0xf   : > { %s18058_s0 = sld [smem:[#allocation112_spill]]  ;;  %p566_p3 = scmp.lt.s32.totalorder %s9083_s28, 1  ;;  %v12363_v3 = vmov 0   ;;  %v2339_v38 = vld [vmem:[%s18013_s5 + $0x8] sm:$0xff]  ;;  %v2338_v39 = vld [vmem:[%s18013_s5] sm:$0xff]  ;;  %v2341_v42 = vld [vmem:[%s18013_s5 + $0x18] sm:$0xff] }
  0x10   : > { %12354 = vset.pattern.permute.xlu2 %v12363_v3  ;;  %12353 = vset.pattern.permute.xlu1 %v12363_v3  ;;  %s18059_s24 = sld [smem:[#allocation110_spill]]  ;;  %v2342_v41 = vld [vmem:[%s18013_s5 + $0x20] sm:$0xff]  ;;  %v2340_v43 = vld [vmem:[%s18013_s5 + $0x10] sm:$0xff]  ;;  %v2345_v50 = vld [vmem:[%s18013_s5 + $0x38] sm:$0xff]  ;;  %vm1051_vm0 = vcmask 523264   ;;  %vm2618_vm1 = vcmask 130048  }
  0x11   : > { %12352 = vset.pattern.permute.xlu0 %v12363_v3  ;;  %s18358_s28 = smov (!%p566_p3, %s9083_s28), 1  ;;  %s18060_s1 = sld [smem:[#allocation111_spill]]  ;;  %v2344_v51 = vld [vmem:[%s18013_s5 + $0x30] sm:$0xff]  ;;  %v2343_v52 = vld [vmem:[%s18013_s5 + $0x28] sm:$0xff]  ;;  %v2346_v55 = vld [vmem:[%s18013_s5 + $0x40] sm:$0xff]  ;;  %vm7195_vm2 = vcmask 1043456  }
  0x12   : > { %s11784_s22 = sshll.u32 %s18358_s28, 7  ;;  %v2348_v53 = vld [vmem:[%s18013_s5 + $0x50] sm:$0xff]  ;;  %v2347_v54 = vld [vmem:[%s18013_s5 + $0x48] sm:$0xff]  ;;  %v2350_v63 = vld [vmem:[%s18013_s5 + $0x60] sm:$0xff]  ;;  %vm7170_vm3 = vcmask 64512   ;;  %s11785_s21 = sshll.u32 %s18358_s28, 8 }
  0x13   : > { %v2351_v62 = vld [vmem:[%s18013_s5 + $0x68] sm:$0xff]  ;;  %v2352_v3 = vld [vmem:[%s18013_s5 + $0x70] sm:$0xff] }
  0x15   : > { %v629_v0 = vld [vmem:[%s18058_s0 + $0x20] sm:$0xff]  ;;  %v627_v1 = vld [vmem:[%s18058_s0 + $0x10] sm:$0xff]  ;;  %v630_v6 = vld [vmem:[%s18058_s0 + $0x28] sm:$0xff] }
  0x16   : > { %v625_v2 = vld [vmem:[%s18058_s0] sm:$0xff]  ;;  %663 = vperm.xlu2 %12354, %v629_v0   ;;  %653 = vperm.xlu1 %12353, %v627_v1   ;;  %s12482_s25 = scalar_lea.vmem %s18059_s24, %s11784_s22  ;;  %v628_v7 = vld [vmem:[%s18058_s0 + $0x18] sm:$0xff]  ;;  %v626_v8 = vld [vmem:[%s18058_s0 + $0x8] sm:$0xff] }
  0x17   : > { %643 = vperm.xlu0 %12352, %v625_v2   ;;  %v11809_v4 = vld [vmem:[%s12482_s25 + $0x38] sm:$0xff]  ;;  %v11808_v9 = vld [vmem:[%s12482_s25 + $0x30] sm:$0xff]  ;;  %v11807_v11 = vld [vmem:[%s12482_s25 + $0x28] sm:$0xff] }
  0x18   : > { %v11817_v5 = vld [vmem:[%s12482_s25 + $0x78] sm:$0xff]  ;;  %897 = vmatpush.bf16.msra.mxu0 %v11809_v4  ;;  %v11816_v10 = vld [vmem:[%s12482_s25 + $0x70] sm:$0xff]  ;;  %v11815_v12 = vld [vmem:[%s12482_s25 + $0x68] sm:$0xff] }
  0x19   : > { %946 = vmatpush.bf16.msra.mxu1 %v11817_v5  ;;  %v633_v13 = vld [vmem:[%s18058_s0 + $0x40] sm:$0xff]  ;;  %v632_v14 = vld [vmem:[%s18058_s0 + $0x38] sm:$0xff]  ;;  %v631_v15 = vld [vmem:[%s18058_s0 + $0x30] sm:$0xff] }
  0x1a   : > { %v11806_v16 = vld [vmem:[%s12482_s25 + $0x20] sm:$0xff]  ;;  %v11805_v18 = vld [vmem:[%s12482_s25 + $0x18] sm:$0xff]  ;;  %v635_v21 = vld [vmem:[%s18058_s0 + $0x50] sm:$0xff] }
  0x1b   : > { %v11814_v17 = vld [vmem:[%s12482_s25 + $0x60] sm:$0xff]  ;;  %v11813_v19 = vld [vmem:[%s12482_s25 + $0x58] sm:$0xff]  ;;  %v634_v22 = vld [vmem:[%s18058_s0 + $0x48] sm:$0xff] }
  0x1c   : > { %898 = vmatpush.bf16.msra.mxu0 %v11808_v9  ;;  %v636_v20 = vld [vmem:[%s18058_s0 + $0x58] sm:$0xff]  ;;  %v11804_v23 = vld [vmem:[%s12482_s25 + $0x10] sm:$0xff]  ;;  %v11803_v25 = vld [vmem:[%s12482_s25 + $0x8] sm:$0xff] }
  0x1d   : > { %947 = vmatpush.bf16.msra.mxu1 %v11816_v10  ;;  %v11812_v24 = vld [vmem:[%s12482_s25 + $0x50] sm:$0xff]  ;;  %v11811_v26 = vld [vmem:[%s12482_s25 + $0x48] sm:$0xff]  ;;  %v637_v29 = vld [vmem:[%s18058_s0 + $0x60] sm:$0xff] }
  0x1e   : > { %668 = vperm.xlu2 %12354, %v630_v6   ;;  %658 = vperm.xlu1 %12353, %v628_v7   ;;  %v639_v27 = vld [vmem:[%s18058_s0 + $0x70] sm:$0xff]  ;;  %v638_v28 = vld [vmem:[%s18058_s0 + $0x68] sm:$0xff]  ;;  %v9094_v30 = vld [vmem:[%s18060_s1] sm:$0xf] }
  0x1f   : > { %648 = vperm.xlu0 %12352, %v626_v8   ;;  %v11787_v31 = vld [vmem:[%s18060_s1 + $0x4] sm:$0xf0]  ;;  %v11786_v32 = vld [vmem:[%s18060_s1 + $0x4] sm:$0xf]  ;;  %v9096_v35 = vld [vmem:[%s18060_s1 + $0x8] sm:$0xf0] }
  0x20   : > { %899 = vmatpush.bf16.msra.mxu0 %v11807_v11  ;;  %v11802_v33 = vld [vmem:[%s12482_s25] sm:$0xff]  ;;  %v9095_v36 = vor.u32 %v11787_v31, %v9094_v30  ;;  %v9099_v37 = vor.u32 %v11786_v32, %v9096_v35  ;;  %v640_v40 = vld [vmem:[%s18058_s0 + $0x78] sm:$0xff]  ;;  %v9102_v44 = vld [vmem:[%s18060_s1 + $0x10] sm:$0xf] }
  0x21   : > { %948 = vmatpush.bf16.msra.mxu1 %v11815_v12  ;;  %v11810_v34 = vld [vmem:[%s12482_s25 + $0x40] sm:$0xff]  ;;  %v11789_v45 = vld [vmem:[%s18060_s1 + $0x14] sm:$0xf0]  ;;  %v11788_v46 = vld [vmem:[%s18060_s1 + $0x14] sm:$0xf]  ;;  %s18355_s25 = sld [smem:[#allocation113_spill]] }
  0x22   : > { %v9104_v47 = vld [vmem:[%s18060_s1 + $0x18] sm:$0xf0]  ;;  %v9103_v48 = vor.u32 %v11789_v45, %v9102_v44  ;;  %v9110_v56 = vld [vmem:[%s18060_s1 + $0x20] sm:$0xf]  ;;  %v11791_v57 = vld [vmem:[%s18060_s1 + $0x24] sm:$0xf0] }
  0x23   : > { %v9107_v49 = vor.u32 %v11788_v46, %v9104_v47  ;;  %v11790_v58 = vld [vmem:[%s18060_s1 + $0x24] sm:$0xf]  ;;  %v9112_v59 = vld [vmem:[%s18060_s1 + $0x28] sm:$0xf0]  ;;  %v9111_v60 = vor.u32 %v11791_v57, %v9110_v56  ;;  %v2349_v0 = vld [vmem:[%s18013_s5 + $0x58] sm:$0xff] }
  0x24   : > { %900 = vmatpush.bf16.msra.mxu0 %v11806_v16  ;;  %v9115_v61 = vor.u32 %v11790_v58, %v9112_v59  ;;  %v2354_v1 = vld [vmem:[%s18013_s5 + $0x80] sm:$0xff]  ;;  %v2353_v2 = vld [vmem:[%s18013_s5 + $0x78] sm:$0xff]  ;;  %v9118_v4 = vld [vmem:[%s18060_s1 + $0x30] sm:$0xf] }
  0x25   : > { %949 = vmatpush.bf16.msra.mxu1 %v11814_v17  ;;  %v11793_v5 = vld [vmem:[%s18060_s1 + $0x34] sm:$0xf0]  ;;  %v11792_v6 = vld [vmem:[%s18060_s1 + $0x34] sm:$0xf]  ;;  %v9120_v7 = vld [vmem:[%s18060_s1 + $0x38] sm:$0xf0] }
  0x26   : > { %683 = vperm.xlu2 %12354, %v633_v13   ;;  %678 = vperm.xlu1 %12353, %v632_v14   ;;  %v9119_v8 = vor.u32 %v11793_v5, %v9118_v4  ;;  %v9123_v9 = vor.u32 %v11792_v6, %v9120_v7  ;;  %v2357_v10 = vld [vmem:[%s18013_s5 + $0x98] sm:$0xff]  ;;  %v2356_v11 = vld [vmem:[%s18013_s5 + $0x90] sm:$0xff]  ;;  %v2355_v12 = vld [vmem:[%s18013_s5 + $0x88] sm:$0xff] }
  0x27   : > { %673 = vperm.xlu0 %12352, %v631_v15   ;;  %v2360_v13 = vld [vmem:[%s18013_s5 + $0xb0] sm:$0xff]  ;;  %v2359_v14 = vld [vmem:[%s18013_s5 + $0xa8] sm:$0xff]  ;;  %v2358_v15 = vld [vmem:[%s18013_s5 + $0xa0] sm:$0xff]  ;;  %s17869_s26 = scalar_lea.vmem %s18355_s25, %s11785_s21 }
  0x28   : > { %901 = vmatpush.bf16.msra.mxu0 %v11805_v18  ;;  %v9126_v16 = vld [vmem:[%s18060_s1 + $0x40] sm:$0xf]  ;;  %v11795_v17 = vld [vmem:[%s18060_s1 + $0x44] sm:$0xf0]  ;;  %v11794_v18 = vld [vmem:[%s18060_s1 + $0x44] sm:$0xf] }
  0x29   : > { %950 = vmatpush.bf16.msra.mxu1 %v11813_v19  ;;  %v9128_v19 = vld [vmem:[%s18060_s1 + $0x48] sm:$0xf0]  ;;  %v11796_v30 = vld [vmem:[%s18060_s1 + $0x54] sm:$0xf]  ;;  %v9136_v31 = vld [vmem:[%s18060_s1 + $0x58] sm:$0xf0] }
  0x2a   : > { %v2368_v35 = vld [vmem:[%s18013_s5 + $0xf0] sm:$0xff]  ;;  %v11821_v46 = vld [vmem:[%s18011_s3 + $0x18] sm:$0xff]  ;;  %v11819_v56 = vld [vmem:[%s18011_s3 + $0x8] sm:$0xff] }
  0x2b   : > { %v11841_v47 = vld [vmem:[%s18011_s3 + $0x38] sm:$0xff]  ;;  %1080 = vmatpush.bf16.msra.mxu2 %v11821_v46  ;;  %v11839_v57 = vld [vmem:[%s18011_s3 + $0x28] sm:$0xff]  ;;  %v6137_v7 = vld [vmem:[%s18016_s8 + $0x20] sm:$0xff] }
  0x2c   : > { %902 = vmatpush.bf16.msra.mxu0 %v11804_v23  ;;  %v2362_v23 = vld [vmem:[%s18013_s5 + $0xc0] sm:$0xff]  ;;  %1202 = vmatpush.bf16.msra.mxu3 %v11841_v47  ;;  %v11859_v58 = vld [vmem:[%s18011_s3 + $0x48] sm:$0xff]  ;;  %v6179_v46 = vld [vmem:[%s18016_s8 + $0x170] sm:$0xff] }
  0x2d   : > { %951 = vmatpush.bf16.msra.mxu1 %v11812_v24  ;;  %v2361_v24 = vld [vmem:[%s18013_s5 + $0xb8] sm:$0xff]  ;;  %v6142_v59 = vld [vmem:[%s18016_s8 + $0x48] sm:$0xff] }
  0x2e   : > { %698 = vperm.xlu2 %12354, %v636_v20   ;;  %693 = vperm.xlu1 %12353, %v635_v21   ;;  %v9127_v20 = vor.u32 %v11795_v17, %v9126_v16  ;;  %v9131_v21 = vor.u32 %v11794_v18, %v9128_v19  ;;  %v6138_v6 = vld [vmem:[%s18016_s8 + $0x28] sm:$0xff]  ;;  %v6163_v16 = vld [vmem:[%s18016_s8 + $0xf0] sm:$0xff] }
  0x2f   : > { %688 = vperm.xlu0 %12352, %v634_v22   ;;  %v2363_v22 = vld [vmem:[%s18013_s5 + $0xc8] sm:$0xff] }
  0x30   : > { %903 = vmatpush.bf16.msra.mxu0 %v11803_v25  ;;  %v2366_v25 = vld [vmem:[%s18013_s5 + $0xe0] sm:$0xff]  ;;  %v6134_v17 = vld [vmem:[%s18016_s8 + $0x8] sm:$0xff] }
  0x31   : > { %952 = vmatpush.bf16.msra.mxu1 %v11811_v26  ;;  %v2365_v26 = vld [vmem:[%s18013_s5 + $0xd8] sm:$0xff] }
  0x34   : > { %904 = vmatpush.bf16.msra.mxu0 %v11802_v33  ;;  %v9139_v33 = vor.u32 %v11796_v30, %v9136_v31 }
  0x35   : > { %953 = vmatpush.bf16.msra.mxu1 %v11810_v34  ;;  %v2369_v34 = vld [vmem:[%s18013_s5 + $0xf8] sm:$0xff] }
  0x36   : > { %713 = vperm.xlu2 %12354, %v639_v27   ;;  %708 = vperm.xlu1 %12353, %v638_v28   ;;  %v2364_v27 = vld [vmem:[%s18013_s5 + $0xd0] sm:$0xff] }
  0x37   : > { %703 = vperm.xlu0 %12352, %v637_v29   ;;  %905 = vmatmul.bf16.vlgmr.msra.gmra.mxu0 %v9095_v36  ;;  %v9134_v28 = vld [vmem:[%s18060_s1 + $0x50] sm:$0xf]  ;;  %v11797_v29 = vld [vmem:[%s18060_s1 + $0x54] sm:$0xf0]  ;;  %v2367_v36 = vld [vmem:[%s18013_s5 + $0xe8] sm:$0xff] }
  0x38   : > { %954 = vmatmul.bf16.vlgmr.msra.gmra.mxu1 %v9099_v37  ;;  %v9135_v32 = vor.u32 %v11797_v29, %v9134_v28  ;;  %v6145_v37 = vld [vmem:[%s18016_s8 + $0x60] sm:$0xff] }
  0x3e   : > { %2377 = vperm.xlu2 %12354, %v2339_v38   ;;  %2372 = vperm.xlu1 %12353, %v2338_v39   ;;  %v6148_v38 = vld [vmem:[%s18016_s8 + $0x78] sm:$0xff]  ;;  %v6147_v39 = vld [vmem:[%s18016_s8 + $0x70] sm:$0xff] }
  0x3f   : > { %718 = vperm.xlu0 %12352, %v640_v40   ;;  %v9142_v40 = vld [vmem:[%s18060_s1 + $0x60] sm:$0xf] }
  0x46   : > { %2392 = vperm.xlu2 %12354, %v2342_v41   ;;  %2387 = vperm.xlu1 %12353, %v2341_v42   ;;  %v11799_v41 = vld [vmem:[%s18060_s1 + $0x64] sm:$0xf0]  ;;  %v11798_v42 = vld [vmem:[%s18060_s1 + $0x64] sm:$0xf] }
  0x47   : > { %2382 = vperm.xlu0 %12352, %v2340_v43   ;;  %910 = vmatmul.bf16.gmra.mxu0 %v9103_v48  ;;  %v9144_v43 = vld [vmem:[%s18060_s1 + $0x68] sm:$0xf0]  ;;  %v9143_v44 = vor.u32 %v11799_v41, %v9142_v40  ;;  %v11861_v48 = vld [vmem:[%s18011_s3 + $0x58] sm:$0xff] }
  0x48   : > { %959 = vmatmul.bf16.gmra.mxu1 %v9107_v49  ;;  %v9147_v45 = vor.u32 %v11798_v42, %v9144_v43  ;;  %v6144_v49 = vld [vmem:[%s18016_s8 + $0x58] sm:$0xff]  ;;  %1695 = vmatpush.bf16.msrb.mxu0 %v11861_v48 }
  0x4e   : > { %2407 = vperm.xlu2 %12354, %v2345_v50   ;;  %2402 = vperm.xlu1 %12353, %v2344_v51   ;;  %v6143_v50 = vld [vmem:[%s18016_s8 + $0x50] sm:$0xff]  ;;  %v6146_v51 = vld [vmem:[%s18016_s8 + $0x68] sm:$0xff] }
  0x4f   : > { %2397 = vperm.xlu0 %12352, %v2343_v52   ;;  %v11820_v52 = vld [vmem:[%s18011_s3 + $0x10] sm:$0xff] }
  0x50   : > { %1081 = vmatpush.bf16.msra.mxu2 %v11820_v52 }
  0x54   : > { %1082 = vmatpush.bf16.msra.mxu2 %v11819_v56 }
  0x56   : > { %2422 = vperm.xlu2 %12354, %v2348_v53   ;;  %2417 = vperm.xlu1 %12353, %v2347_v54   ;;  %v11840_v53 = vld [vmem:[%s18011_s3 + $0x30] sm:$0xff] }
  0x57   : > { %2412 = vperm.xlu0 %12352, %v2346_v55   ;;  %915 = vmatmul.bf16.gmra.mxu0 %v9111_v60  ;;  %v11860_v54 = vld [vmem:[%s18011_s3 + $0x50] sm:$0xff]  ;;  %v6141_v60 = vld [vmem:[%s18016_s8 + $0x40] sm:$0xff] }
  0x58   : > { %964 = vmatmul.bf16.gmra.mxu1 %v9115_v61  ;;  %1203 = vmatpush.bf16.msra.mxu3 %v11840_v53  ;;  %v6139_v55 = vld [vmem:[%s18016_s8 + $0x30] sm:$0xff]  ;;  %v6158_v53 = vld [vmem:[%s18016_s8 + $0xc8] sm:$0xff] }
  0x59   : > { %1696 = vmatpush.bf16.msrb.mxu0 %v11860_v54  ;;  %v9150_v61 = vld [vmem:[%s18060_s1 + $0x70] sm:$0xf]  ;;  %v6157_v54 = vld [vmem:[%s18016_s8 + $0xc0] sm:$0xff] }
  0x5c   : > { %1204 = vmatpush.bf16.msra.mxu3 %v11839_v57 }
  0x5d   : > { %1697 = vmatpush.bf16.msrb.mxu0 %v11859_v58 }
  0x5e   : > { %2437 = vperm.xlu2 %12354, %v2351_v62   ;;  %2432 = vperm.xlu1 %12353, %v2350_v63   ;;  %v11801_v62 = vld [vmem:[%s18060_s1 + $0x74] sm:$0xf0]  ;;  %v11800_v63 = vld [vmem:[%s18060_s1 + $0x74] sm:$0xf] }
  0x5f   : > { %2427 = vperm.xlu0 %12352, %v2349_v0   ;;  %v9152_v0 = vld [vmem:[%s18060_s1 + $0x78] sm:$0xf0]  ;;  %v9151_v4 = vor.u32 %v11801_v62, %v9150_v61 }
  0x60   : > { %v9155_v5 = vor.u32 %v11800_v63, %v9152_v0  ;;  %v6191_v63 = vld [vmem:[%s18016_s8 + $0x1d0] sm:$0xff]  ;;  %v6178_v0 = vld [vmem:[%s18016_s8 + $0x168] sm:$0xff] }
  0x66   : > { %2452 = vperm.xlu2 %12354, %v2354_v1   ;;  %2447 = vperm.xlu1 %12353, %v2353_v2   ;;  %v11818_v1 = vld [vmem:[%s18011_s3] sm:$0xff] }
  0x67   : > { %2442 = vperm.xlu0 %12352, %v2352_v3   ;;  %920 = vmatmul.bf16.gmra.mxu0 %v9119_v8  ;;  %v11838_v2 = vld [vmem:[%s18011_s3 + $0x20] sm:$0xff]  ;;  %v6140_v8 = vld [vmem:[%s18016_s8 + $0x38] sm:$0xff] }
  0x68   : > { %969 = vmatmul.bf16.gmra.mxu1 %v9123_v9  ;;  %v11858_v3 = vld [vmem:[%s18011_s3 + $0x40] sm:$0xff]  ;;  %1083 = vmatpush.bf16.msra.mxu2 %v11818_v1 }
  0x69   : > { %1205 = vmatpush.bf16.msra.mxu3 %v11838_v2  ;;  %1698 = vmatpush.bf16.msrb.mxu0 %v11858_v3  ;;  %v6133_v9 = vld [vmem:[%s18016_s8] sm:$0xff] }
  0x6a   : > { %v6177_v1 = vld [vmem:[%s18016_s8 + $0x160] sm:$0xff] }
  0x6e   : > { %2467 = vperm.xlu2 %12354, %v2357_v10   ;;  %2462 = vperm.xlu1 %12353, %v2356_v11   ;;  %v6136_v10 = vld [vmem:[%s18016_s8 + $0x18] sm:$0xff]  ;;  %v6135_v11 = vld [vmem:[%s18016_s8 + $0x10] sm:$0xff] }
  0x6f   : > { %2457 = vperm.xlu0 %12352, %v2355_v12  }
  0x76   : > { %2482 = vperm.xlu2 %12354, %v2360_v13   ;;  %2477 = vperm.xlu1 %12353, %v2359_v14  }
  0x77   : > { %2472 = vperm.xlu0 %12352, %v2358_v15   ;;  %925 = vmatmul.bf16.gmra.mxu0 %v9127_v20  ;;  %v6164_v15 = vld [vmem:[%s18016_s8 + $0xf8] sm:$0xff] }
  0x78   : > { %974 = vmatmul.bf16.gmra.mxu1 %v9131_v21 }
  0x7e   : > { %2497 = vperm.xlu2 %12354, %v2363_v22   ;;  %2492 = vperm.xlu1 %12353, %v2362_v23  }
  0x7f   : > { %2487 = vperm.xlu0 %12352, %v2361_v24  }
  0x86   : > { %2512 = vperm.xlu2 %12354, %v2366_v25   ;;  %2507 = vperm.xlu1 %12353, %v2365_v26   ;;  %v6195_v25 = vld [vmem:[%s18016_s8 + $0x1f0] sm:$0xff]  ;;  %v6162_v26 = vld [vmem:[%s18016_s8 + $0xe8] sm:$0xff] }
  0x87   : > { %2502 = vperm.xlu0 %12352, %v2364_v27   ;;  %930 = vmatmul.bf16.gmra.mxu0 %v9135_v32  ;;  %v6161_v27 = vld [vmem:[%s18016_s8 + $0xe0] sm:$0xff] }
  0x88   : > { %979 = vmatmul.bf16.gmra.mxu1 %v9139_v33  ;;  %v654_v30 = vpop.permute.xlu1 %653 }
  0x89   : > { %v644_v12 = vpop.permute.xlu0 %643 }
  0x8e   : > { %2527 = vperm.xlu2 %12354, %v2369_v34   ;;  %2522 = vperm.xlu1 %12353, %v2368_v35   ;;  %v6160_v34 = vld [vmem:[%s18016_s8 + $0xd8] sm:$0xff]  ;;  %v6159_v35 = vld [vmem:[%s18016_s8 + $0xd0] sm:$0xff] }
  0x8f   : > { %2517 = vperm.xlu0 %12352, %v2367_v36   ;;  %v6196_v36 = vld [vmem:[%s18016_s8 + $0x1f8] sm:$0xff] }
  0x91   : > { %v649_v19 = vpop.permute.xlu0 %648 }
  0x96   : > { %6259 = vperm.xlu2 %12354, %v6145_v37   ;;  %6274 = vperm.xlu1 %12353, %v6148_v38   ;;  %v659_v38 = vpop.permute.xlu1 %658 }
  0x97   : > { %6269 = vperm.xlu0 %12352, %v6147_v39   ;;  %935 = vmatmul.bf16.gmra.mxu0 %v9143_v44  ;;  %v6193_v44 = vld [vmem:[%s18016_s8 + $0x1e0] sm:$0xff] }
  0x98   : > { %984 = vmatmul.bf16.gmra.mxu1 %v9147_v45  ;;  %v6180_v45 = vld [vmem:[%s18016_s8 + $0x178] sm:$0xff] }
  0x9e   : > { %6254 = vperm.xlu2 %12354, %v6144_v49   ;;  %6249 = vperm.xlu1 %12353, %v6143_v50   ;;  %v664_v49 = vpop.permute.xlu2 %663 }
  0x9f   : > { %6264 = vperm.xlu0 %12352, %v6146_v51  }
  0xa6   : > { %6229 = vperm.xlu2 %12354, %v6139_v55   ;;  %6244 = vperm.xlu1 %12353, %v6142_v59   ;;  %v6194_v55 = vld [vmem:[%s18016_s8 + $0x1e8] sm:$0xff]  ;;  %v669_v57 = vpop.permute.xlu2 %668 }
  0xa7   : > { %6239 = vperm.xlu0 %12352, %v6141_v60   ;;  %940 = vmatmul.bf16.gmra.mxu0 %v9151_v4 }
  0xa8   : > { %989 = vmatmul.bf16.gmra.mxu1 %v9155_v5 }
  0xae   : > { %6224 = vperm.xlu2 %12354, %v6138_v6   ;;  %6219 = vperm.xlu1 %12353, %v6137_v7   ;;  %v6156_v7 = vld [vmem:[%s18016_s8 + $0xb8] sm:$0xff] }
  0xaf   : > { %6234 = vperm.xlu0 %12352, %v6140_v8   ;;  %v674_v8 = vpop.permute.xlu0 %673 }
  0xb4   : > { %v906_v13 = vpop.f32.mrf.mxu0 }
  0xb5   : > { %v955_v14 = vpop.f32.mrf.mxu1  ;;  %v907_v18 = vadd.f32 %v906_v13, %v644_v12  ;;  %v679_v12 = vpop.permute.xlu1 %678 }
  0xb6   : > { %6199 = vperm.xlu2 %12354, %v6133_v9   ;;  %6214 = vperm.xlu1 %12353, %v6136_v10   ;;  %v6155_v9 = vld [vmem:[%s18016_s8 + $0xb0] sm:$0xff]  ;;  %v6192_v10 = vld [vmem:[%s18016_s8 + $0x1d8] sm:$0xff] }
  0xb7   : > { %6209 = vperm.xlu0 %12352, %v6135_v11   ;;  %v956_v21 = vadd.f32 %v955_v14, %v907_v18  ;;  %v6189_v18 = vld [vmem:[%s18016_s8 + $0x1c0] sm:$0xff] }
  0xb9   : > { %v995_v28 = vmax.f32 %v956_v21, 0.0 }
  0xbc   : > { %v908_v20 = vpop.f32.mrf.mxu0 }
  0xbd   : > { %v909_v22 = vadd.f32 %v908_v20, %v649_v19  ;;  %v957_v23 = vpop.f32.mrf.mxu1  ;;  %v6176_v19 = vld [vmem:[%s18016_s8 + $0x158] sm:$0xff]  ;;  %v6175_v20 = vld [vmem:[%s18016_s8 + $0x150] sm:$0xff] }
  0xbe   : > { %6354 = vperm.xlu2 %12354, %v6164_v15   ;;  %6349 = vperm.xlu1 %12353, %v6163_v16  }
  0xbf   : > { %6204 = vperm.xlu0 %12352, %v6134_v17   ;;  %v958_v24 = vadd.f32 %v957_v23, %v909_v22 }
  0xc1   : > { %v996_v29 = vmax.f32 %v958_v24, 0.0 }
  0xc3   : > { %v12830_v31 = vpack.c.bf16 %v996_v29, %v995_v28  ;;  %v6153_v28 = vld [vmem:[%s18016_s8 + $0xa0] sm:$0xff]  ;;  %v6190_v29 = vld [vmem:[%s18016_s8 + $0x1c8] sm:$0xff] }
  0xc4   : > { %v911_v32 = vpop.f32.mrf.mxu0 }
  0xc5   : > { %18061 = vst [vmem:[#allocation3_spill] sm:$0xff] %v12830_v31  ;;  %9236 = vmatmul.msk.bf16.vlgmr.msra.gmra.mxu2 %vm1051_vm0, %v12830_v31  ;;  %9268 = vmatmul.msk.bf16.vlgmr.msra.gmra.mxu3 %vm1051_vm0, %v12830_v31  ;;  %v960_v33 = vpop.f32.mrf.mxu1  ;;  %v912_v37 = vadd.f32 %v911_v32, %v654_v30  ;;  %v689_v32 = vpop.permute.xlu0 %688 }
  0xc6   : > { %6509 = vperm.xlu2 %12354, %v6195_v25   ;;  %6344 = vperm.xlu1 %12353, %v6162_v26   ;;  %v6154_v26 = vld [vmem:[%s18016_s8 + $0xa8] sm:$0xff] }
  0xc7   : > { %6339 = vperm.xlu0 %12352, %v6161_v27   ;;  %9460 = vmatmul.msk.bf16.vlgmr.msrb.gmra.mxu0 %vm1051_vm0, %v12830_v31  ;;  %v961_v40 = vadd.f32 %v960_v33, %v912_v37  ;;  %v684_v27 = vpop.permute.xlu2 %683 }
  0xc9   : > { %v997_v47 = vmax.f32 %v961_v40, 0.0  ;;  %v6173_v40 = vld [vmem:[%s18016_s8 + $0x140] sm:$0xff] }
  0xcc   : > { %v913_v39 = vpop.f32.mrf.mxu0 }
  0xcd   : > { %v914_v41 = vadd.f32 %v913_v39, %v659_v38  ;;  %v962_v42 = vpop.f32.mrf.mxu1  ;;  %v6187_v38 = vld [vmem:[%s18016_s8 + $0x1b0] sm:$0xff]  ;;  %v6174_v39 = vld [vmem:[%s18016_s8 + $0x148] sm:$0xff] }
  0xce   : > { %6334 = vperm.xlu2 %12354, %v6160_v34   ;;  %6329 = vperm.xlu1 %12353, %v6159_v35  }
  0xcf   : > { %6514 = vperm.xlu0 %12352, %v6196_v36   ;;  %v963_v43 = vadd.f32 %v962_v42, %v914_v41 }
  0xd1   : > { %v998_v48 = vmax.f32 %v963_v43, 0.0 }
  0xd3   : > { %v12856_v50 = vpack.c.bf16 %v998_v48, %v997_v47  ;;  %v694_v47 = vpop.permute.xlu1 %693  ;;  %v6151_v48 = vld [vmem:[%s18016_s8 + $0x90] sm:$0xff] }
  0xd4   : > { %v916_v51 = vpop.f32.mrf.mxu0 }
  0xd5   : > { %18062 = vst [vmem:[#allocation4_spill] sm:$0xff] %v12856_v50  ;;  %9237 = vmatmul.msk.bf16.gmra.mxu2 %vm1051_vm0, %v12856_v50  ;;  %9269 = vmatmul.msk.bf16.gmra.mxu3 %vm1051_vm0, %v12856_v50  ;;  %v965_v52 = vpop.f32.mrf.mxu1  ;;  %v917_v56 = vadd.f32 %v916_v51, %v664_v49  ;;  %v6188_v49 = vld [vmem:[%s18016_s8 + $0x1b8] sm:$0xff] }
  0xd6   : > { %6499 = vperm.xlu2 %12354, %v6193_v44   ;;  %6434 = vperm.xlu1 %12353, %v6180_v45  }
  0xd7   : > { %6429 = vperm.xlu0 %12352, %v6179_v46   ;;  %9461 = vmatmul.msk.bf16.gmra.mxu0 %vm1051_vm0, %v12856_v50  ;;  %v966_v59 = vadd.f32 %v965_v52, %v917_v56  ;;  %v6152_v46 = vld [vmem:[%s18016_s8 + $0x98] sm:$0xff]  ;;  %v699_v52 = vpop.permute.xlu2 %698 }
  0xd9   : > { %v999_v2 = vmax.f32 %v966_v59, 0.0  ;;  %v6172_v59 = vld [vmem:[%s18016_s8 + $0x138] sm:$0xff] }
  0xdc   : > { %v918_v58 = vpop.f32.mrf.mxu0 }
  0xdd   : > { %v919_v60 = vadd.f32 %v918_v58, %v669_v57  ;;  %v967_v61 = vpop.f32.mrf.mxu1  ;;  %v6185_v58 = vld [vmem:[%s18016_s8 + $0x1a0] sm:$0xff] }
  0xde   : > { %6324 = vperm.xlu2 %12354, %v6158_v53   ;;  %6319 = vperm.xlu1 %12353, %v6157_v54  }
  0xdf   : > { %6504 = vperm.xlu0 %12352, %v6194_v55   ;;  %v968_v62 = vadd.f32 %v967_v61, %v919_v60  ;;  %v6171_v60 = vld [vmem:[%s18016_s8 + $0x130] sm:$0xff] }
  0xe1   : > { %v1000_v3 = vmax.f32 %v968_v62, 0.0 }
  0xe3   : > { %v12882_v4 = vpack.c.bf16 %v1000_v3, %v999_v2  ;;  %v11881_v2 = vld [vmem:[%s18011_s3 + $0x78] sm:$0xff]  ;;  %v6150_v3 = vld [vmem:[%s18016_s8 + $0x88] sm:$0xff] }
  0xe4   : > { %v921_v5 = vpop.f32.mrf.mxu0  ;;  %2035 = vmatpush.bf16.msra.mxu0 %v11881_v2  ;;  %v6717_v2 = vld [vmem:[%s18018_s10 + $0x40] sm:$0xff] }
  0xe5   : > { %18063 = vst [vmem:[#allocation5_spill] sm:$0xff] %v12882_v4  ;;  %9238 = vmatmul.msk.bf16.gmra.mxu2 %vm1051_vm0, %v12882_v4  ;;  %9270 = vmatmul.msk.bf16.gmra.mxu3 %vm1051_vm0, %v12882_v4  ;;  %v970_v6 = vpop.f32.mrf.mxu1  ;;  %v922_v11 = vadd.f32 %v921_v5, %v674_v8  ;;  %v704_v5 = vpop.permute.xlu0 %703 }
  0xe6   : > { %6489 = vperm.xlu2 %12354, %v6191_v63   ;;  %6424 = vperm.xlu1 %12353, %v6178_v0  }
  0xe7   : > { %6419 = vperm.xlu0 %12352, %v6177_v1   ;;  %9462 = vmatmul.msk.bf16.gmra.mxu0 %vm1051_vm0, %v12882_v4  ;;  %v971_v14 = vadd.f32 %v970_v6, %v922_v11  ;;  %v6149_v6 = vld [vmem:[%s18016_s8 + $0x80] sm:$0xff] }
  0xe9   : > { %v1001_v21 = vmax.f32 %v971_v14, 0.0  ;;  %v11879_v14 = vld [vmem:[%s18011_s3 + $0x68] sm:$0xff] }
  0xec   : > { %v923_v13 = vpop.f32.mrf.mxu0 }
  0xed   : > { %v924_v15 = vadd.f32 %v923_v13, %v679_v12  ;;  %v972_v16 = vpop.f32.mrf.mxu1 }
  0xee   : > { %6314 = vperm.xlu2 %12354, %v6156_v7   ;;  %6309 = vperm.xlu1 %12353, %v6155_v9   ;;  %v6186_v7 = vld [vmem:[%s18016_s8 + $0x1a8] sm:$0xff]  ;;  %v11880_v9 = vld [vmem:[%s18011_s3 + $0x70] sm:$0xff] }
  0xef   : > { %6494 = vperm.xlu0 %12352, %v6192_v10   ;;  %v973_v17 = vadd.f32 %v972_v16, %v924_v15  ;;  %v709_v10 = vpop.permute.xlu1 %708  ;;  %2036 = vmatpush.bf16.msra.mxu0 %v11880_v9  ;;  %v6720_v9 = vld [vmem:[%s18018_s10 + $0x58] sm:$0xff] }
  0xf1   : > { %v1002_v22 = vmax.f32 %v973_v17, 0.0  ;;  %v6183_v17 = vld [vmem:[%s18016_s8 + $0x190] sm:$0xff] }
  0xf3   : > { %v12908_v23 = vpack.c.bf16 %v1002_v22, %v1001_v21  ;;  %2037 = vmatpush.bf16.msra.mxu0 %v11879_v14  ;;  %v11878_v22 = vld [vmem:[%s18011_s3 + $0x60] sm:$0xff] }
  0xf4   : > { %v926_v24 = vpop.f32.mrf.mxu0 }
  0xf5   : > { %18064 = vst [vmem:[#allocation6_spill] sm:$0xff] %v12908_v23  ;;  %9239 = vmatmul.msk.bf16.gmra.mxu2 %vm1051_vm0, %v12908_v23  ;;  %9271 = vmatmul.msk.bf16.gmra.mxu3 %vm1051_vm0, %v12908_v23  ;;  %v975_v25 = vpop.f32.mrf.mxu1  ;;  %v927_v30 = vadd.f32 %v926_v24, %v684_v27  ;;  %v6168_v27 = vld [vmem:[%s18016_s8 + $0x118] sm:$0xff] }
  0xf6   : > { %6479 = vperm.xlu2 %12354, %v6189_v18   ;;  %6414 = vperm.xlu1 %12353, %v6176_v19   ;;  %v6170_v18 = vld [vmem:[%s18016_s8 + $0x128] sm:$0xff]  ;;  %v6169_v19 = vld [vmem:[%s18016_s8 + $0x120] sm:$0xff] }
  0xf7   : > { %6409 = vperm.xlu0 %12352, %v6175_v20   ;;  %9463 = vmatmul.msk.bf16.gmra.mxu0 %vm1051_vm0, %v12908_v23  ;;  %v976_v34 = vadd.f32 %v975_v25, %v927_v30  ;;  %v6184_v30 = vld [vmem:[%s18016_s8 + $0x198] sm:$0xff] }
  0xf8   : > { %2038 = vmatpush.bf16.msra.mxu0 %v11878_v22  ;;  %v7265_v22 = vld [vmem:[%s18020_s12 + $0x8] sm:$0xff] }
  0xf9   : > { %v1003_v41 = vmax.f32 %v976_v34, 0.0 }
  0xfc   : > { %v928_v33 = vpop.f32.mrf.mxu0 }
  0xfd   : > { %v929_v35 = vadd.f32 %v928_v33, %v689_v32  ;;  %v977_v36 = vpop.f32.mrf.mxu1  ;;  %v719_v33 = vpop.permute.xlu0 %718 }
  0xfe   : > { %6304 = vperm.xlu2 %12354, %v6154_v26   ;;  %6299 = vperm.xlu1 %12353, %v6153_v28   ;;  %v714_v28 = vpop.permute.xlu2 %713 }
  0xff   : > { %6484 = vperm.xlu0 %12352, %v6190_v29   ;;  %v978_v37 = vadd.f32 %v977_v36, %v929_v35  ;;  %v6167_v29 = vld [vmem:[%s18016_s8 + $0x110] sm:$0xff] }
 0x101   : > { %v1004_v42 = vmax.f32 %v978_v37, 0.0 }
 0x103   : > { %v12934_v43 = vpack.c.bf16 %v1004_v42, %v1003_v41  ;;  %v6181_v41 = vld [vmem:[%s18016_s8 + $0x180] sm:$0xff] }
 0x104   : > { %v931_v44 = vpop.f32.mrf.mxu0 }
 0x105   : > { %18065 = vst [vmem:[#allocation7_spill] sm:$0xff] %v12934_v43  ;;  %9240 = vmatmul.msk.bf16.gmra.mxu2 %vm1051_vm0, %v12934_v43  ;;  %9272 = vmatmul.msk.bf16.gmra.mxu3 %vm1051_vm0, %v12934_v43  ;;  %v980_v45 = vpop.f32.mrf.mxu1  ;;  %v932_v51 = vadd.f32 %v931_v44, %v694_v47  ;;  %v6709_v47 = vld [vmem:[%s18018_s10] sm:$0xff] }
 0x106   : > { %6469 = vperm.xlu2 %12354, %v6187_v38   ;;  %6404 = vperm.xlu1 %12353, %v6174_v39   ;;  %v6165_v39 = vld [vmem:[%s18016_s8 + $0x100] sm:$0xff] }
 0x107   : > { %6399 = vperm.xlu0 %12352, %v6173_v40   ;;  %9464 = vmatmul.msk.bf16.gmra.mxu0 %vm1051_vm0, %v12934_v43  ;;  %v981_v54 = vadd.f32 %v980_v45, %v932_v51  ;;  %v6182_v40 = vld [vmem:[%s18016_s8 + $0x188] sm:$0xff]  ;;  %v6712_v51 = vld [vmem:[%s18018_s10 + $0x18] sm:$0xff] }
 0x109   : > { %v1005_v61 = vmax.f32 %v981_v54, 0.0  ;;  %v6716_v54 = vld [vmem:[%s18018_s10 + $0x38] sm:$0xff] }
 0x10c   : > { %v933_v53 = vpop.f32.mrf.mxu0 }
 0x10d   : > { %v934_v55 = vadd.f32 %v933_v53, %v699_v52  ;;  %v982_v56 = vpop.f32.mrf.mxu1  ;;  %v6711_v52 = vld [vmem:[%s18018_s10 + $0x10] sm:$0xff] }
 0x10e   : > { %6294 = vperm.xlu2 %12354, %v6152_v46   ;;  %6289 = vperm.xlu1 %12353, %v6151_v48   ;;  %v6710_v46 = vld [vmem:[%s18018_s10 + $0x8] sm:$0xff] }
 0x10f   : > { %6474 = vperm.xlu0 %12352, %v6188_v49   ;;  %v983_v57 = vadd.f32 %v982_v56, %v934_v55  ;;  %v6166_v48 = vld [vmem:[%s18016_s8 + $0x108] sm:$0xff]  ;;  %v6713_v49 = vld [vmem:[%s18018_s10 + $0x20] sm:$0xff] }
 0x111   : > { %v1006_v62 = vmax.f32 %v983_v57, 0.0  ;;  %v6715_v57 = vld [vmem:[%s18018_s10 + $0x30] sm:$0xff] }
 0x113   : > { %v12960_v63 = vpack.c.bf16 %v1006_v62, %v1005_v61  ;;  %v6719_v61 = vld [vmem:[%s18018_s10 + $0x50] sm:$0xff] }
 0x114   : > { %v936_v0 = vpop.f32.mrf.mxu0 }
 0x115   : > { %18066 = vst [vmem:[#allocation8_spill] sm:$0xff] %v12960_v63  ;;  %9241 = vmatmul.msk.bf16.gmra.mxu2 %vm1051_vm0, %v12960_v63  ;;  %9273 = vmatmul.msk.bf16.gmra.mxu3 %vm1051_vm0, %v12960_v63  ;;  %v985_v1 = vpop.f32.mrf.mxu1  ;;  %v937_v8 = vadd.f32 %v936_v0, %v704_v5  ;;  %v6722_v5 = vld [vmem:[%s18018_s10 + $0x68] sm:$0xff] }
 0x116   : > { %6459 = vperm.xlu2 %12354, %v6185_v58   ;;  %6394 = vperm.xlu1 %12353, %v6172_v59   ;;  %v6714_v58 = vld [vmem:[%s18018_s10 + $0x28] sm:$0xff] }
 0x117   : > { %6389 = vperm.xlu0 %12352, %v6171_v60   ;;  %9465 = vmatmul.msk.bf16.gmra.mxu0 %vm1051_vm0, %v12960_v63  ;;  %v986_v12 = vadd.f32 %v985_v1, %v937_v8  ;;  %v6718_v1 = vld [vmem:[%s18018_s10 + $0x48] sm:$0xff]  ;;  %v6721_v8 = vld [vmem:[%s18018_s10 + $0x60] sm:$0xff] }
 0x119   : > { %v1007_v20 = vmax.f32 %v986_v12, 0.0  ;;  %v7264_v12 = vld [vmem:[%s18020_s12] sm:$0xff] }
 0x11c   : > { %v938_v11 = vpop.f32.mrf.mxu0 }
 0x11d   : > { %v939_v13 = vadd.f32 %v938_v11, %v709_v10  ;;  %v987_v15 = vpop.f32.mrf.mxu1 }
 0x11e   : > { %6284 = vperm.xlu2 %12354, %v6150_v3   ;;  %6279 = vperm.xlu1 %12353, %v6149_v6  }
 0x11f   : > { %6464 = vperm.xlu0 %12352, %v6186_v7   ;;  %v988_v16 = vadd.f32 %v987_v15, %v939_v13  ;;  %v6724_v15 = vld [vmem:[%s18018_s10 + $0x78] sm:$0xff] }
 0x121   : > { %v1008_v21 = vmax.f32 %v988_v16, 0.0  ;;  %v6723_v16 = vld [vmem:[%s18018_s10 + $0x70] sm:$0xff] }
 0x123   : > { %v12998_v24 = vpack.c.bf16 %v1008_v21, %v1007_v20  ;;  %v7644_v21 = vld [vmem:[%s18022_s14] sm:$0xff] }
 0x124   : > { %v941_v25 = vpop.f32.mrf.mxu0 }
 0x125   : > { %18067 = vst [vmem:[#allocation9_spill] sm:$0xff] %v12998_v24  ;;  %9242 = vmatmul.msk.bf16.gmra.mxu2 %vm1051_vm0, %v12998_v24  ;;  %9274 = vmatmul.msk.bf16.gmra.mxu3 %vm1051_vm0, %v12998_v24  ;;  %v990_v26 = vpop.f32.mrf.mxu1  ;;  %v942_v32 = vadd.f32 %v941_v25, %v714_v28 }
 0x126   : > { %6449 = vperm.xlu2 %12354, %v6183_v17   ;;  %6384 = vperm.xlu1 %12353, %v6170_v18   ;;  %v7266_v18 = vld [vmem:[%s18020_s12 + $0x10] sm:$0xff] }
 0x127   : > { %6379 = vperm.xlu0 %12352, %v6169_v19   ;;  %9466 = vmatmul.msk.bf16.gmra.mxu0 %vm1051_vm0, %v12998_v24  ;;  %v991_v35 = vadd.f32 %v990_v26, %v942_v32  ;;  %v7267_v32 = vld [vmem:[%s18020_s12 + $0x18] sm:$0xff] }
 0x129   : > { %v1009_v42 = vmax.f32 %v991_v35, 0.0 }
 0x12c   : > { %v943_v34 = vpop.f32.mrf.mxu0 }
 0x12d   : > { %v944_v36 = vadd.f32 %v943_v34, %v719_v33  ;;  %v992_v37 = vpop.f32.mrf.mxu1  ;;  %v7272_v34 = vld [vmem:[%s18020_s12 + $0x40] sm:$0xff] }
 0x12e   : > { %6374 = vperm.xlu2 %12354, %v6168_v27   ;;  %6369 = vperm.xlu1 %12353, %v6167_v29   ;;  %v7269_v27 = vld [vmem:[%s18020_s12 + $0x28] sm:$0xff] }
 0x12f   : > { %6454 = vperm.xlu0 %12352, %v6184_v30   ;;  %v993_v38 = vadd.f32 %v992_v37, %v944_v36  ;;  %v7268_v30 = vld [vmem:[%s18020_s12 + $0x20] sm:$0xff]  ;;  %v7271_v37 = vld [vmem:[%s18020_s12 + $0x38] sm:$0xff] }
 0x131   : > { %v1010_v44 = vmax.f32 %v993_v38, 0.0  ;;  %v7270_v38 = vld [vmem:[%s18020_s12 + $0x30] sm:$0xff] }
 0x133   : > { %v13024_v45 = vpack.c.bf16 %v1010_v44, %v1009_v42 }
 0x135   : > { %9243 = vmatmul.msk.bf16.gmra.mxu2 %vm1051_vm0, %v13024_v45  ;;  %9275 = vmatmul.msk.bf16.gmra.mxu3 %vm1051_vm0, %v13024_v45 }
 0x136   : > { %6359 = vperm.xlu2 %12354, %v6165_v39   ;;  %6444 = vperm.xlu1 %12353, %v6182_v40  }
 0x137   : > { %6439 = vperm.xlu0 %12352, %v6181_v41   ;;  %9467 = vmatmul.msk.bf16.gmra.mxu0 %vm1051_vm0, %v13024_v45  ;;  %v7275_v41 = vld [vmem:[%s18020_s12 + $0x58] sm:$0xff] }
 0x13e   : > { %6732 = vperm.xlu2 %12354, %v6710_v46   ;;  %6727 = vperm.xlu1 %12353, %v6709_v47   ;;  %v7274_v46 = vld [vmem:[%s18020_s12 + $0x50] sm:$0xff]  ;;  %v7273_v47 = vld [vmem:[%s18020_s12 + $0x48] sm:$0xff] }
 0x13f   : > { %6364 = vperm.xlu0 %12352, %v6166_v48  }
 0x144   : > { %v13050_v53 = vpop.f32.mrf.mxu0 }
 0x146   : > { %6747 = vperm.xlu2 %12354, %v6713_v49   ;;  %6742 = vperm.xlu1 %12353, %v6712_v51   ;;  %v7278_v49 = vld [vmem:[%s18020_s12 + $0x70] sm:$0xff] }
 0x147   : > { %6737 = vperm.xlu0 %12352, %v6711_v52   ;;  %9588 = vmatmul.msk.bf16.vlgmr.msra.gmra.mxu0 %vm1051_vm0, %v12830_v31 }
 0x148   : > { %v13057_v55 = vpop.f32.mrf.mxu2  ;;  %v13059_v56 = vpop.f32.mrf.mxu3 }
 0x14c   : > { %v13067_v59 = vpop.f32.mrf.mxu0 }
 0x14e   : > { %6762 = vperm.xlu2 %12354, %v6716_v54   ;;  %6757 = vperm.xlu1 %12353, %v6715_v57   ;;  %v7277_v54 = vld [vmem:[%s18020_s12 + $0x68] sm:$0xff]  ;;  %v7276_v57 = vld [vmem:[%s18020_s12 + $0x60] sm:$0xff] }
 0x14f   : > { %6752 = vperm.xlu0 %12352, %v6714_v58  }
 0x150   : > { %v13074_v62 = vpop.f32.mrf.mxu2  ;;  %v13076_v0 = vpop.f32.mrf.mxu3 }
 0x154   : > { %v13084_v3 = vpop.f32.mrf.mxu0 }
 0x156   : > { %6777 = vperm.xlu2 %12354, %v6719_v61   ;;  %6772 = vperm.xlu1 %12353, %v6718_v1  }
 0x157   : > { %6767 = vperm.xlu0 %12352, %v6717_v2   ;;  %9589 = vmatmul.msk.bf16.gmra.mxu0 %vm1051_vm0, %v12856_v50  ;;  %v7279_v2 = vld [vmem:[%s18020_s12 + $0x78] sm:$0xff] }
 0x158   : > { %v13091_v6 = vpop.f32.mrf.mxu2  ;;  %v13093_v7 = vpop.f32.mrf.mxu3 }
 0x15c   : > { %v13101_v10 = vpop.f32.mrf.mxu0 }
 0x15e   : > { %6792 = vperm.xlu2 %12354, %v6722_v5   ;;  %6787 = vperm.xlu1 %12353, %v6721_v8  }
 0x15f   : > { %6782 = vperm.xlu0 %12352, %v6720_v9  }
 0x160   : > { %v13108_v13 = vpop.f32.mrf.mxu2  ;;  %v13110_v14 = vpop.f32.mrf.mxu3 }
 0x164   : > { %v13118_v17 = vpop.f32.mrf.mxu0 }
 0x166   : > { %7282 = vperm.xlu2 %12354, %v7264_v12   ;;  %6802 = vperm.xlu1 %12353, %v6724_v15  }
 0x167   : > { %6797 = vperm.xlu0 %12352, %v6723_v16   ;;  %9590 = vmatmul.msk.bf16.gmra.mxu0 %vm1051_vm0, %v12882_v4 }
 0x168   : > { %v13125_v19 = vpop.f32.mrf.mxu2  ;;  %v13127_v20 = vpop.f32.mrf.mxu3 }
 0x16c   : > { %v13135_v25 = vpop.f32.mrf.mxu0 }
 0x16e   : > { %7292 = vperm.xlu2 %12354, %v7266_v18   ;;  %7662 = vperm.xlu1 %12353, %v7644_v21  }
 0x16f   : > { %7287 = vperm.xlu0 %12352, %v7265_v22  }
 0x170   : > { %v13142_v28 = vpop.f32.mrf.mxu2  ;;  %v13144_v29 = vpop.f32.mrf.mxu3 }
 0x174   : > { %v13152_v33 = vpop.f32.mrf.mxu0 }
 0x176   : > { %7307 = vperm.xlu2 %12354, %v7269_v27   ;;  %7302 = vperm.xlu1 %12353, %v7268_v30  }
 0x177   : > { %7297 = vperm.xlu0 %12352, %v7267_v32   ;;  %9591 = vmatmul.msk.bf16.gmra.mxu0 %vm1051_vm0, %v12908_v23 }
 0x178   : > { %v13159_v35 = vpop.f32.mrf.mxu2  ;;  %v13161_v36 = vpop.f32.mrf.mxu3 }
 0x17c   : > { %v13169_v39 = vpop.f32.mrf.mxu0 }
 0x17e   : > { %7322 = vperm.xlu2 %12354, %v7272_v34   ;;  %7317 = vperm.xlu1 %12353, %v7271_v37  }
 0x17f   : > { %7312 = vperm.xlu0 %12352, %v7270_v38  }
 0x180   : > { %v13176_v42 = vpop.f32.mrf.mxu2  ;;  %v13178_v44 = vpop.f32.mrf.mxu3 }
 0x184   : > { %v1720_v48 = vpop.f32.mrf.mxu0 }
 0x186   : > { %7337 = vperm.xlu2 %12354, %v7275_v41   ;;  %7332 = vperm.xlu1 %12353, %v7274_v46  }
 0x187   : > { %7327 = vperm.xlu0 %12352, %v7273_v47   ;;  %9592 = vmatmul.msk.bf16.gmra.mxu0 %vm1051_vm0, %v12934_v43 }
 0x188   : > { %v1105_v51 = vpop.f32.mrf.mxu2  ;;  %v1227_v52 = vpop.f32.mrf.mxu3 }
 0x18c   : > { %v1722_v58 = vpop.f32.mrf.mxu0 }
 0x18d   : > { %v1744_v31 = vpack.c.bf16 %v1722_v58, %v1720_v48  ;;  %v11845_v48 = vld [vmem:[%s18012_s4 + $0x98] sm:$0xff]  ;;  %v11866_v58 = vld [vmem:[%s18012_s4 + $0x120] sm:$0xff] }
 0x18e   : > { %7352 = vperm.xlu2 %12354, %v7278_v49   ;;  %7347 = vperm.xlu1 %12353, %v7277_v54  }
 0x18f   : > { %7342 = vperm.xlu0 %12352, %v7276_v57  }
 0x190   : > { %v1107_v61 = vpop.f32.mrf.mxu2  ;;  %v1229_v1 = vpop.f32.mrf.mxu3 }
 0x194   : > { %v1725_v5 = vpop.f32.mrf.mxu0 }
 0x197   : > { %7357 = vperm.xlu0 %12352, %v7279_v2   ;;  %9593 = vmatmul.msk.bf16.gmra.mxu0 %vm1051_vm0, %v12960_v63 }
 0x198   : > { %v1110_v8 = vpop.f32.mrf.mxu2  ;;  %v1232_v9 = vpop.f32.mrf.mxu3 }
 0x19c   : > { %v1727_v12 = vpop.f32.mrf.mxu0 }
 0x19d   : > { %v1745_v11 = vpack.c.bf16 %v1727_v12, %v1725_v5  ;;  %v11826_v5 = vld [vmem:[%s18012_s4 + $0x20] sm:$0xff] }
 0x1a0   : > { %v1112_v15 = vpop.f32.mrf.mxu2  ;;  %v1234_v16 = vpop.f32.mrf.mxu3 }
 0x1a1   : > { %v1252_v50 = vpack.c.bf16 %v1234_v16, %v1232_v9  ;;  %v11867_v9 = vld [vmem:[%s18012_s4 + $0x128] sm:$0xff] }
 0x1a2   : > { %v11827_v16 = vld [vmem:[%s18012_s4 + $0x28] sm:$0xff] }
 0x1a4   : > { %v1730_v18 = vpop.f32.mrf.mxu0 }
 0x1a7   : > { %9594 = vmatmul.msk.bf16.gmra.mxu0 %vm1051_vm0, %v12998_v24 }
 0x1a8   : > { %v1115_v21 = vpop.f32.mrf.mxu2  ;;  %v1237_v22 = vpop.f32.mrf.mxu3 }
 0x1ac   : > { %v1732_v27 = vpop.f32.mrf.mxu0 }
 0x1ad   : > { %v1746_v54 = vpack.c.bf16 %v1732_v27, %v1730_v18  ;;  %v1251_v18 = vpack.c.bf16 %v1229_v1, %v1227_v52  ;;  %v1129_v27 = vpack.c.bf16 %v1107_v61, %v1105_v51  ;;  %v11825_v51 = vld [vmem:[%s18012_s4 + $0x18] sm:$0xff]  ;;  %v11846_v1 = vld [vmem:[%s18012_s4 + $0xa0] sm:$0xff] }
 0x1b0   : > { %v1117_v30 = vpop.f32.mrf.mxu2  ;;  %v1239_v32 = vpop.f32.mrf.mxu3 }
 0x1b1   : > { %v1253_v26 = vpack.c.bf16 %v1239_v32, %v1237_v22  ;;  %v1131_v40 = vpack.c.bf16 %v1117_v30, %v1115_v21  ;;  %v11868_v22 = vld [vmem:[%s18012_s4 + $0x130] sm:$0xff] }
 0x1b4   : > { %v1735_v34 = vpop.f32.mrf.mxu0 }
 0x1b7   : > { %9595 = vmatmul.msk.bf16.gmra.mxu0 %vm1051_vm0, %v13024_v45 }
 0x1b8   : > { %v1120_v37 = vpop.f32.mrf.mxu2  ;;  %v1242_v38 = vpop.f32.mrf.mxu3 }
 0x1bc   : > { %v1737_v41 = vpop.f32.mrf.mxu0 }
 0x1bd   : > { %v1747_v46 = vpack.c.bf16 %v1737_v41, %v1735_v34  ;;  %v1130_v34 = vpack.c.bf16 %v1112_v15, %v1110_v8  ;;  %v11847_v15 = vld [vmem:[%s18012_s4 + $0xa8] sm:$0xff] }
 0x1bf   : > { %1877 = vmatpush.bf16.msrb.mxu1 %v1747_v46  ;;  %v11848_v46 = vld [vmem:[%s18012_s4 + $0xb0] sm:$0xff] }
 0x1c0   : > { %v1122_v47 = vpop.f32.mrf.mxu2  ;;  %v1244_v49 = vpop.f32.mrf.mxu3 }
 0x1c1   : > { %v1254_v57 = vpack.c.bf16 %v1244_v49, %v1242_v38  ;;  %v1132_v2 = vpack.c.bf16 %v1122_v47, %v1120_v37  ;;  %v18068_v37 = vpack.c.bf16 %v13169_v39, %v13152_v33  ;;  %v1249_v33 = vpack.c.bf16 %v13144_v29, %v13127_v20  ;;  %v11824_v29 = vld [vmem:[%s18012_s4 + $0x10] sm:$0xff] }
 0x1c2   : > { %v1127_v39 = vpack.c.bf16 %v13142_v28, %v13125_v19  ;;  %v18071_v20 = vpack.c.bf16 %v13067_v59, %v13050_v53  ;;  %v11822_v53 = vld [vmem:[%s18012_s4] sm:$0xff]  ;;  %v11844_v28 = vld [vmem:[%s18012_s4 + $0x90] sm:$0xff] }
 0x1c3   : > { %1878 = vmatpush.bf16.msrb.mxu1 %v1746_v54  ;;  %1384 = vmatpush.bf16.msrb.mxu2 %v1254_v57  ;;  %v11828_v38 = vld [vmem:[%s18012_s4 + $0x30] sm:$0xff]  ;;  %v11869_v57 = vld [vmem:[%s18012_s4 + $0x138] sm:$0xff] }
 0x1c4   : > { %v13206_v60 = vpop.f32.mrf.mxu0  ;;  %1569 = vmatpush.bf16.msrb.mxu3 %v1132_v2 }
 0x1c7   : > { %1879 = vmatpush.bf16.msrb.mxu1 %v1745_v11  ;;  %1385 = vmatpush.bf16.msrb.mxu2 %v1253_v26  ;;  %v1250_v11 = vpack.c.bf16 %v13178_v44, %v13161_v36  ;;  %v1128_v26 = vpack.c.bf16 %v13176_v42, %v13159_v35  ;;  %v18070_v36 = vpack.c.bf16 %v13101_v10, %v13084_v3  ;;  %v11862_v35 = vld [vmem:[%s18012_s4 + $0x100] sm:$0xff]  ;;  %v11865_v42 = vld [vmem:[%s18012_s4 + $0x118] sm:$0xff] }
 0x1c8   : > { %1570 = vmatpush.bf16.msrb.mxu3 %v1131_v40  ;;  %v1247_v3 = vpack.c.bf16 %v13076_v0, %v13059_v56  ;;  %v11863_v56 = vld [vmem:[%s18012_s4 + $0x108] sm:$0xff] }
 0x1c9   : > { %v11823_v0 = vld [vmem:[%s18012_s4 + $0x8] sm:$0xff] }
 0x1cb   : > { %1880 = vmatpush.bf16.msrb.mxu1 %v1744_v31  ;;  %1386 = vmatpush.bf16.msrb.mxu2 %v1252_v50  ;;  %v18069_v31 = vpack.c.bf16 %v13135_v25, %v13118_v17  ;;  %v1248_v17 = vpack.c.bf16 %v13110_v14, %v13093_v7  ;;  %v1126_v25 = vpack.c.bf16 %v13108_v13, %v13091_v6  ;;  %v11842_v6 = vld [vmem:[%s18012_s4 + $0x80] sm:$0xff]  ;;  %v11864_v13 = vld [vmem:[%s18012_s4 + $0x110] sm:$0xff] }
 0x1cc   : > { %v13208_v41 = vpop.f32.mrf.mxu0  ;;  %1571 = vmatpush.bf16.msrb.mxu3 %v1130_v34  ;;  %v1125_v7 = vpack.c.bf16 %v13074_v62, %v13057_v55  ;;  %v11843_v62 = vld [vmem:[%s18012_s4 + $0x88] sm:$0xff]  ;;  %v11829_v34 = vld [vmem:[%s18012_s4 + $0x38] sm:$0xff] }
 0x1cf   : > { %1881 = vmatpush.bf16.msrb.mxu1 %v18068_v37  ;;  %1387 = vmatpush.bf16.msrb.mxu2 %v1251_v18  ;;  %v11849_v18 = vld [vmem:[%s18012_s4 + $0xb8] sm:$0xff] }
 0x1d0   : > { %1572 = vmatpush.bf16.msrb.mxu3 %v1129_v27 }
 0x1d3   : > { %1882 = vmatpush.bf16.msrb.mxu1 %v18069_v31  ;;  %1388 = vmatpush.bf16.msrb.mxu2 %v1250_v11  ;;  %v2080_v11 = vpack.c.bf16 %v13208_v41, %v13206_v60 }
 0x1d4   : > { %v13220_v50 = vpop.f32.mrf.mxu0  ;;  %1573 = vmatpush.bf16.msrb.mxu3 %v1128_v26  ;;  %v11870_v26 = vld [vmem:[%s18012_s4 + $0x140] sm:$0xff] }
 0x1d7   : > { %1883 = vmatpush.bf16.msrb.mxu1 %v18070_v36  ;;  %1389 = vmatpush.bf16.msrb.mxu2 %v1249_v33  ;;  %v11830_v33 = vld [vmem:[%s18012_s4 + $0x40] sm:$0xff] }
 0x1d8   : > { %1574 = vmatpush.bf16.msrb.mxu3 %v1127_v39  ;;  %v11850_v39 = vld [vmem:[%s18012_s4 + $0xc0] sm:$0xff] }
 0x1db   : > { %1884 = vmatpush.bf16.msrb.mxu1 %v18071_v20  ;;  %1390 = vmatpush.bf16.msrb.mxu2 %v1248_v17 }
 0x1dc   : > { %v13239_v19 = vpop.f32.mrf.mxu0  ;;  %1575 = vmatpush.bf16.msrb.mxu3 %v1126_v25  ;;  %v11871_v25 = vld [vmem:[%s18012_s4 + $0x148] sm:$0xff] }
 0x1dd   : > { %v2081_v37 = vpack.c.bf16 %v13239_v19, %v13220_v50 }
 0x1de   : > { %1885 = vmatmul.bf16.vlgmr.msrb.gmra.mxu1 %v11862_v35 }
 0x1df   : > { %1391 = vmatpush.bf16.msrb.mxu2 %v1247_v3 }
 0x1e0   : > { %1576 = vmatpush.bf16.msrb.mxu3 %v1125_v7  ;;  %v11831_v7 = vld [vmem:[%s18012_s4 + $0x48] sm:$0xff] }
 0x1e2   : > { %1392 = vmatmul.bf16.vlgmr.msrb.gmra.mxu2 %v11842_v6  ;;  %v11851_v6 = vld [vmem:[%s18012_s4 + $0xc8] sm:$0xff] }
 0x1e3   : > { %1577 = vmatmul.bf16.vlgmr.msrb.gmra.mxu3 %v11822_v53 }
 0x1e4   : > { %v13251_v59 = vpop.f32.mrf.mxu0 }
 0x1ec   : > { %v2052_v55 = vpop.f32.mrf.mxu0 }
 0x1ed   : > { %v2082_v27 = vpack.c.bf16 %v2052_v55, %v13251_v59 }
 0x1ee   : > { %1890 = vmatmul.bf16.gmra.mxu1 %v11863_v56 }
 0x1f2   : > { %1397 = vmatmul.bf16.gmra.mxu2 %v11843_v62 }
 0x1f3   : > { %1582 = vmatmul.bf16.gmra.mxu3 %v11823_v0 }
 0x1f4   : > { %v2055_v10 = vpop.f32.mrf.mxu0 }
 0x1fc   : > { %v2057_v14 = vpop.f32.mrf.mxu0 }
 0x1fd   : > { %v2083_v2 = vpack.c.bf16 %v2057_v14, %v2055_v10  ;;  %v11872_v10 = vld [vmem:[%s18012_s4 + $0x150] sm:$0xff] }
 0x1fe   : > { %1895 = vmatmul.bf16.gmra.mxu1 %v11864_v13 }
 0x202   : > { %1402 = vmatmul.bf16.gmra.mxu2 %v11844_v28 }
 0x203   : > { %1587 = vmatmul.bf16.gmra.mxu3 %v11824_v29  ;;  %v11832_v29 = vld [vmem:[%s18012_s4 + $0x50] sm:$0xff] }
 0x204   : > { %v2060_v40 = vpop.f32.mrf.mxu0 }
 0x20c   : > { %v2062_v44 = vpop.f32.mrf.mxu0 }
 0x20d   : > { %v2084_v54 = vpack.c.bf16 %v2062_v44, %v2060_v40 }
 0x20e   : > { %1900 = vmatmul.bf16.gmra.mxu1 %v11865_v42  ;;  %v11852_v42 = vld [vmem:[%s18012_s4 + $0xd0] sm:$0xff] }
 0x212   : > { %1407 = vmatmul.bf16.gmra.mxu2 %v11845_v48 }
 0x213   : > { %1592 = vmatmul.bf16.gmra.mxu3 %v11825_v51 }
 0x214   : > { %v2065_v52 = vpop.f32.mrf.mxu0 }
 0x21c   : > { %v2067_v61 = vpop.f32.mrf.mxu0 }
 0x21d   : > { %v2085_v49 = vpack.c.bf16 %v2067_v61, %v2065_v52 }
 0x21e   : > { %1905 = vmatmul.bf16.gmra.mxu1 %v11866_v58 }
 0x222   : > { %1412 = vmatmul.bf16.gmra.mxu2 %v11846_v1  ;;  %v11873_v1 = vld [vmem:[%s18012_s4 + $0x158] sm:$0xff] }
 0x223   : > { %1597 = vmatmul.bf16.gmra.mxu3 %v11826_v5 }
 0x224   : > { %v2070_v8 = vpop.f32.mrf.mxu0 }
 0x22c   : > { %v2072_v12 = vpop.f32.mrf.mxu0 }
 0x22d   : > { %v2086_v47 = vpack.c.bf16 %v2072_v12, %v2070_v8  ;;  %v11833_v12 = vld [vmem:[%s18012_s4 + $0x58] sm:$0xff] }
 0x22e   : > { %1910 = vmatmul.bf16.gmra.mxu1 %v11867_v9 }
 0x232   : > { %1417 = vmatmul.bf16.gmra.mxu2 %v11847_v15  ;;  %v11853_v15 = vld [vmem:[%s18012_s4 + $0xd8] sm:$0xff] }
 0x233   : > { %1602 = vmatmul.bf16.gmra.mxu3 %v11827_v16 }
 0x234   : > { %v2075_v21 = vpop.f32.mrf.mxu0 }
 0x23c   : > { %v2077_v30 = vpop.f32.mrf.mxu0 }
 0x23d   : > { %v2087_v32 = vpack.c.bf16 %v2077_v30, %v2075_v21 }
 0x23e   : > { %1915 = vmatmul.bf16.gmra.mxu1 %v11868_v22 }
 0x23f   : > { %2217 = vmatpush.bf16.msra.mxu2 %v2087_v32 }
 0x242   : > { %1422 = vmatmul.bf16.gmra.mxu2 %v11848_v46  ;;  %v11874_v46 = vld [vmem:[%s18012_s4 + $0x160] sm:$0xff] }
 0x243   : > { %2218 = vmatpush.bf16.msra.mxu2 %v2086_v47  ;;  %1607 = vmatmul.bf16.gmra.mxu3 %v11828_v38 }
 0x247   : > { %2219 = vmatpush.bf16.msra.mxu2 %v2085_v49 }
 0x24b   : > { %2220 = vmatpush.bf16.msra.mxu2 %v2084_v54 }
 0x24e   : > { %1920 = vmatmul.bf16.gmra.mxu1 %v11869_v57 }
 0x24f   : > { %2221 = vmatpush.bf16.msra.mxu2 %v2083_v2  ;;  %v11834_v2 = vld [vmem:[%s18012_s4 + $0x60] sm:$0xff] }
 0x252   : > { %1427 = vmatmul.bf16.gmra.mxu2 %v11849_v18 }
 0x253   : > { %2222 = vmatpush.bf16.msra.mxu2 %v2082_v27  ;;  %1612 = vmatmul.bf16.gmra.mxu3 %v11829_v34  ;;  %v11854_v34 = vld [vmem:[%s18012_s4 + $0xe0] sm:$0xff] }
 0x257   : > { %2223 = vmatpush.bf16.msra.mxu2 %v2081_v37 }
 0x25b   : > { %2224 = vmatpush.bf16.msra.mxu2 %v2080_v11  ;;  %v1886_v31 = vpop.f32.mrf.mxu1 }
 0x25e   : > { %1925 = vmatmul.bf16.gmra.mxu1 %v11870_v26  ;;  %v11875_v26 = vld [vmem:[%s18012_s4 + $0x168] sm:$0xff] }
 0x262   : > { %1432 = vmatmul.bf16.gmra.mxu2 %v11850_v39  ;;  %v11835_v39 = vld [vmem:[%s18012_s4 + $0x68] sm:$0xff] }
 0x263   : > { %1617 = vmatmul.bf16.gmra.mxu3 %v11830_v33  ;;  %v1888_v50 = vpop.f32.mrf.mxu1 }
 0x265   : > { %v1393_v36 = vpop.f32.mrf.mxu2 }
 0x266   : > { %v1578_v60 = vpop.f32.mrf.mxu3 }
 0x267   : > { %v1579_v41 = vadd.f32 %v1578_v60, %v1393_v36 }
 0x269   : > { %v13330_v17 = vadd.f32 %v1886_v31, %v1579_v41 }
 0x26b   : > { %v1891_v35 = vpop.f32.mrf.mxu1 }
 0x26d   : > { %v1395_v20 = vpop.f32.mrf.mxu2 }
 0x26e   : > { %v1580_v19 = vpop.f32.mrf.mxu3  ;;  %1930 = vmatmul.bf16.gmra.mxu1 %v11871_v25  ;;  %v11876_v25 = vld [vmem:[%s18012_s4 + $0x170] sm:$0xff] }
 0x26f   : > { %v1581_v3 = vadd.f32 %v1580_v19, %v1395_v20  ;;  %v11836_v19 = vld [vmem:[%s18012_s4 + $0x70] sm:$0xff] }
 0x271   : > { %v13341_v53 = vadd.f32 %v1888_v50, %v1581_v3  ;;  %v11855_v50 = vld [vmem:[%s18012_s4 + $0xe8] sm:$0xff]  ;;  %v11856_v3 = vld [vmem:[%s18012_s4 + $0xf0] sm:$0xff] }
 0x272   : > { %1437 = vmatmul.bf16.gmra.mxu2 %v11851_v6 }
 0x273   : > { %1622 = vmatmul.bf16.gmra.mxu3 %v11831_v7  ;;  %v1893_v59 = vpop.f32.mrf.mxu1 }
 0x275   : > { %v1398_v56 = vpop.f32.mrf.mxu2 }
 0x276   : > { %v1583_v55 = vpop.f32.mrf.mxu3 }
 0x277   : > { %v1584_v62 = vadd.f32 %v1583_v55, %v1398_v56  ;;  %v11877_v56 = vld [vmem:[%s18012_s4 + $0x178] sm:$0xff] }
 0x279   : > { %v13343_v0 = vadd.f32 %v1891_v35, %v1584_v62 }
 0x27b   : > { %v1896_v40 = vpop.f32.mrf.mxu1 }
 0x27d   : > { %v1400_v13 = vpop.f32.mrf.mxu2 }
 0x27e   : > { %v1585_v14 = vpop.f32.mrf.mxu3  ;;  %1935 = vmatmul.bf16.gmra.mxu1 %v11872_v10  ;;  %v11837_v10 = vld [vmem:[%s18012_s4 + $0x78] sm:$0xff] }
 0x27f   : > { %v1586_v28 = vadd.f32 %v1585_v14, %v1400_v13  ;;  %v11857_v13 = vld [vmem:[%s18012_s4 + $0xf8] sm:$0xff] }
 0x281   : > { %v13354_v44 = vadd.f32 %v1893_v59, %v1586_v28 }
 0x282   : > { %1442 = vmatmul.bf16.gmra.mxu2 %v11852_v42 }
 0x283   : > { %1627 = vmatmul.bf16.gmra.mxu3 %v11832_v29  ;;  %v1898_v61 = vpop.f32.mrf.mxu1 }
 0x285   : > { %v1403_v48 = vpop.f32.mrf.mxu2 }
 0x286   : > { %v1588_v51 = vpop.f32.mrf.mxu3 }
 0x287   : > { %v1589_v52 = vadd.f32 %v1588_v51, %v1403_v48  ;;  %v11882_v48 = vld [vmem:[%s18012_s4 + $0x180] sm:$0xff] }
 0x289   : > { %v13356_v58 = vadd.f32 %v1896_v40, %v1589_v52 }
 0x28b   : > { %v1901_v21 = vpop.f32.mrf.mxu1 }
 0x28d   : > { %v1405_v5 = vpop.f32.mrf.mxu2 }
 0x28e   : > { %v1590_v8 = vpop.f32.mrf.mxu3  ;;  %1940 = vmatmul.bf16.gmra.mxu1 %v11873_v1 }
 0x28f   : > { %v1591_v9 = vadd.f32 %v1590_v8, %v1405_v5  ;;  %v11883_v8 = vld [vmem:[%s18012_s4 + $0x188] sm:$0xff] }
 0x291   : > { %v13367_v16 = vadd.f32 %v1898_v61, %v1591_v9 }
 0x292   : > { %1447 = vmatmul.bf16.gmra.mxu2 %v11853_v15 }
 0x293   : > { %1632 = vmatmul.bf16.gmra.mxu3 %v11833_v12  ;;  %v1903_v47 = vpop.f32.mrf.mxu1 }
 0x295   : > { %v1408_v22 = vpop.f32.mrf.mxu2 }
 0x296   : > { %v1593_v30 = vpop.f32.mrf.mxu3 }
 0x297   : > { %v1594_v32 = vadd.f32 %v1593_v30, %v1408_v22  ;;  %v11884_v30 = vld [vmem:[%s18012_s4 + $0x190] sm:$0xff] }
 0x299   : > { %v13369_v38 = vadd.f32 %v1901_v21, %v1594_v32 }
 0x29d   : > { %v1410_v49 = vpop.f32.mrf.mxu2 }
 0x29e   : > { %v1595_v54 = vpop.f32.mrf.mxu3  ;;  %1945 = vmatmul.bf16.gmra.mxu1 %v11874_v46 }
 0x29f   : > { %v1596_v57 = vadd.f32 %v1595_v54, %v1410_v49 }
 0x2a1   : > { %v13380_v18 = vadd.f32 %v1903_v47, %v1596_v57  ;;  %v11885_v57 = vld [vmem:[%s18012_s4 + $0x198] sm:$0xff] }
 0x2a2   : > { %1452 = vmatmul.bf16.gmra.mxu2 %v11854_v34 }
 0x2a3   : > { %1637 = vmatmul.bf16.gmra.mxu3 %v11834_v2 }
 0x2a5   : > { %v1413_v27 = vpop.f32.mrf.mxu2 }
 0x2a6   : > { %v1598_v37 = vpop.f32.mrf.mxu3 }
 0x2a7   : > { %v13382_v11 = vadd.f32 %v1598_v37, %v1413_v27 }
 0x2ad   : > { %v13387_v31 = vpop.f32.mrf.mxu2 }
 0x2ae   : > { %v13389_v33 = vpop.f32.mrf.mxu3  ;;  %1950 = vmatmul.bf16.gmra.mxu1 %v11875_v26 }
 0x2b2   : > { %1457 = vmatmul.bf16.gmra.mxu2 %v11855_v50 }
 0x2b3   : > { %1642 = vmatmul.bf16.gmra.mxu3 %v11835_v39  ;;  %v11886_v39 = vld [vmem:[%s18012_s4 + $0x1a0] sm:$0xff] }
 0x2b5   : > { %v1418_v36 = vpop.f32.mrf.mxu2 }
 0x2b6   : > { %v1603_v60 = vpop.f32.mrf.mxu3 }
 0x2b7   : > { %v13397_v41 = vadd.f32 %v1603_v60, %v1418_v36 }
 0x2bd   : > { %v13402_v35 = vpop.f32.mrf.mxu2 }
 0x2be   : > { %v13404_v20 = vpop.f32.mrf.mxu3  ;;  %1955 = vmatmul.bf16.gmra.mxu1 %v11876_v25 }
 0x2c2   : > { %1462 = vmatmul.bf16.gmra.mxu2 %v11856_v3  ;;  %v11887_v3 = vld [vmem:[%s18012_s4 + $0x1a8] sm:$0xff] }
 0x2c3   : > { %1647 = vmatmul.bf16.gmra.mxu3 %v11836_v19 }
 0x2c5   : > { %v1423_v6 = vpop.f32.mrf.mxu2 }
 0x2c6   : > { %v1608_v7 = vpop.f32.mrf.mxu3 }
 0x2c7   : > { %v13412_v59 = vadd.f32 %v1608_v7, %v1423_v6 }
 0x2cd   : > { %v13419_v62 = vpop.f32.mrf.mxu2 }
 0x2ce   : > { %v13417_v55 = vpop.f32.mrf.mxu3  ;;  %1960 = vmatmul.bf16.gmra.mxu1 %v11877_v56 }
 0x2d2   : > { %1467 = vmatmul.bf16.gmra.mxu2 %v11857_v13 }
 0x2d3   : > { %1652 = vmatmul.bf16.gmra.mxu3 %v11837_v10 }
 0x2d5   : > { %v1428_v28 = vpop.f32.mrf.mxu2 }
 0x2d6   : > { %v1613_v14 = vpop.f32.mrf.mxu3 }
 0x2d7   : > { %v13427_v29 = vadd.f32 %v1613_v14, %v1428_v28  ;;  %v11888_v14 = vld [vmem:[%s18012_s4 + $0x1b0] sm:$0xff] }
 0x2dd   : > { %v13431_v42 = vpop.f32.mrf.mxu2 }
 0x2de   : > { %v13429_v40 = vpop.f32.mrf.mxu3 }
 0x2e2   : > { %2225 = vmatmul.bf16.vlgmr.msra.gmra.mxu2 %v11882_v48 }
 0x2e5   : > { %v1433_v52 = vpop.f32.mrf.mxu2 }
 0x2e6   : > { %v1618_v51 = vpop.f32.mrf.mxu3 }
 0x2e7   : > { %v13436_v61 = vadd.f32 %v1618_v51, %v1433_v52 }
 0x2ed   : > { %v13440_v5 = vpop.f32.mrf.mxu2 }
 0x2ee   : > { %v13438_v1 = vpop.f32.mrf.mxu3 }
 0x2f2   : > { %2230 = vmatmul.bf16.gmra.mxu2 %v11883_v8 }
 0x2f5   : > { %v1438_v12 = vpop.f32.mrf.mxu2 }
 0x2f6   : > { %v1623_v9 = vpop.f32.mrf.mxu3 }
 0x2f7   : > { %v13445_v15 = vadd.f32 %v1623_v9, %v1438_v12  ;;  %v11889_v9 = vld [vmem:[%s18012_s4 + $0x1b8] sm:$0xff]  ;;  %v11898_v12 = vld [vmem:[%s18014_s6] sm:$0xff] }
 0x2f8   : > { %2674 = vmatpush.bf16.msra.mxu3 %v11898_v12 }
 0x2fd   : > { %v13449_v22 = vpop.f32.mrf.mxu2 }
 0x2fe   : > { %v13447_v21 = vpop.f32.mrf.mxu3 }
 0x302   : > { %2235 = vmatmul.bf16.gmra.mxu2 %v11884_v30  ;;  %v11963_v30 = vld [vmem:[%s18014_s6 + $0x8] sm:$0xff] }
 0x303   : > { %2852 = vmatpush.bf16.msrb.mxu0 %v11963_v30  ;;  %v1906_v30 = vpop.f32.mrf.mxu1 }
 0x305   : > { %v1443_v46 = vpop.f32.mrf.mxu2 }
 0x306   : > { %v1628_v32 = vpop.f32.mrf.mxu3 }
 0x307   : > { %v13454_v47 = vadd.f32 %v1628_v32, %v1443_v46 }
 0x30d   : > { %v13458_v54 = vpop.f32.mrf.mxu2 }
 0x30e   : > { %v13456_v49 = vpop.f32.mrf.mxu3 }
 0x312   : > { %2240 = vmatmul.bf16.gmra.mxu2 %v11885_v57 }
 0x315   : > { %v1448_v34 = vpop.f32.mrf.mxu2 }
 0x316   : > { %v1633_v2 = vpop.f32.mrf.mxu3 }
 0x317   : > { %v13463_v27 = vadd.f32 %v1633_v2, %v1448_v34  ;;  %v11890_v34 = vld [vmem:[%s18012_s4 + $0x1c0] sm:$0xff] }
 0x31d   : > { %v13467_v26 = vpop.f32.mrf.mxu2 }
 0x31e   : > { %v13465_v37 = vpop.f32.mrf.mxu3 }
 0x322   : > { %2245 = vmatmul.bf16.gmra.mxu2 %v11886_v39 }
 0x325   : > { %v1453_v36 = vpop.f32.mrf.mxu2 }
 0x326   : > { %v1638_v50 = vpop.f32.mrf.mxu3 }
 0x327   : > { %v13472_v60 = vadd.f32 %v1638_v50, %v1453_v36  ;;  %v2373_v36 = vpop.permute.xlu1 %2372 }
 0x32d   : > { %v13476_v19 = vpop.f32.mrf.mxu2 }
 0x32e   : > { %v13474_v25 = vpop.f32.mrf.mxu3 }
 0x332   : > { %2250 = vmatmul.bf16.gmra.mxu2 %v11887_v3 }
 0x335   : > { %v1458_v6 = vpop.f32.mrf.mxu2 }
 0x336   : > { %v1643_v7 = vpop.f32.mrf.mxu3 }
 0x337   : > { %v13481_v56 = vadd.f32 %v1643_v7, %v1458_v6 }
 0x33d   : > { %v13485_v13 = vpop.f32.mrf.mxu2 }
 0x33e   : > { %v13483_v10 = vpop.f32.mrf.mxu3 }
 0x342   : > { %2255 = vmatmul.bf16.gmra.mxu2 %v11888_v14  ;;  %v11891_v14 = vld [vmem:[%s18012_s4 + $0x1c8] sm:$0xff] }
 0x345   : > { %v1463_v48 = vpop.f32.mrf.mxu2 }
 0x346   : > { %v1648_v28 = vpop.f32.mrf.mxu3 }
 0x347   : > { %v13490_v51 = vadd.f32 %v1648_v28, %v1463_v48  ;;  %v2378_v28 = vpop.permute.xlu2 %2377 }
 0x34d   : > { %v13494_v8 = vpop.f32.mrf.mxu2 }
 0x34e   : > { %v13492_v52 = vpop.f32.mrf.mxu3 }
 0x352   : > { %2260 = vmatmul.bf16.gmra.mxu2 %v11889_v9 }
 0x355   : > { %v1468_v46 = vpop.f32.mrf.mxu2 }
 0x356   : > { %v1653_v32 = vpop.f32.mrf.mxu3 }
 0x357   : > { %v13505_v57 = vadd.f32 %v1653_v32, %v1468_v46 }
 0x35d   : > { %v13507_v2 = vpop.f32.mrf.mxu2 }
 0x362   : > { %2265 = vmatmul.bf16.gmra.mxu2 %v11890_v34  ;;  %v1908_v34 = vpop.f32.mrf.mxu1 }
 0x365   : > { %v2226_v39 = vpop.f32.mrf.mxu2 }
 0x366   : > { %v2306_v50 = vadd.f32 %v2226_v39, %v13330_v17 }
 0x368   : > { %v2530_v7 = vadd.f32 %v2373_v36, %v2306_v50 }
 0x36a   : > { %v2562_v9 = vmax.f32 %v2530_v7, 0.0  ;;  %v2388_v7 = vpop.permute.xlu1 %2387 }
 0x36d   : > { %v2228_v3 = vpop.f32.mrf.mxu2 }
 0x36e   : > { %v2307_v6 = vadd.f32 %v2228_v3, %v13341_v53  ;;  %v2383_v53 = vpop.permute.xlu0 %2382  ;;  %v11892_v3 = vld [vmem:[%s18012_s4 + $0x1d0] sm:$0xff] }
 0x370   : > { %v2531_v48 = vadd.f32 %v2378_v28, %v2307_v6 }
 0x372   : > { %v2563_v12 = vmax.f32 %v2531_v48, 0.0  ;;  %2270 = vmatmul.bf16.gmra.mxu2 %v11891_v14 }
 0x374   : > { %v13517_v32 = vpack.c.bf16 %v2563_v12, %v2562_v9  ;;  %v2393_v12 = vpop.permute.xlu2 %2392 }
 0x375   : > { %v2231_v46 = vpop.f32.mrf.mxu2 }
 0x376   : > { %18072 = vst [vmem:[#allocation10_spill] sm:$0xff] %v13517_v32  ;;  %9696 = vmatmul.msk.bf16.vlgmr.msra.gmra.mxu3 %vm2618_vm1, %v13517_v32  ;;  %9718 = vmatmul.msk.bf16.vlgmr.msrb.gmra.mxu0 %vm2618_vm1, %v13517_v32  ;;  %v2308_v17 = vadd.f32 %v2231_v46, %v13343_v0  ;;  %v1911_v0 = vpop.f32.mrf.mxu1 }
 0x378   : > { %v2532_v50 = vadd.f32 %v2383_v53, %v2308_v17 }
 0x37a   : > { %v2564_v14 = vmax.f32 %v2532_v50, 0.0  ;;  %v2398_v50 = vpop.permute.xlu0 %2397 }
 0x37d   : > { %v2233_v39 = vpop.f32.mrf.mxu2 }
 0x37e   : > { %v2309_v36 = vadd.f32 %v2233_v39, %v13354_v44  ;;  %v11893_v39 = vld [vmem:[%s18012_s4 + $0x1d8] sm:$0xff] }
 0x380   : > { %v2533_v6 = vadd.f32 %v2388_v7, %v2309_v36 }
 0x382   : > { %v2565_v28 = vmax.f32 %v2533_v6, 0.0  ;;  %2275 = vmatmul.bf16.gmra.mxu2 %v11892_v3  ;;  %v1913_v3 = vpop.f32.mrf.mxu1 }
 0x384   : > { %v13528_v48 = vpack.c.bf16 %v2565_v28, %v2564_v14 }
 0x385   : > { %v2236_v9 = vpop.f32.mrf.mxu2 }
 0x386   : > { %18073 = vst [vmem:[#allocation11_spill] sm:$0xff] %v13528_v48  ;;  %9697 = vmatmul.msk.bf16.gmra.mxu3 %vm2618_vm1, %v13528_v48  ;;  %9719 = vmatmul.msk.bf16.gmra.mxu0 %vm2618_vm1, %v13528_v48  ;;  %v2310_v44 = vadd.f32 %v2236_v9, %v13356_v58  ;;  %v2403_v9 = vpop.permute.xlu1 %2402 }
 0x388   : > { %v2534_v17 = vadd.f32 %v2393_v12, %v2310_v44 }
 0x38a   : > { %v2566_v7 = vmax.f32 %v2534_v17, 0.0  ;;  %v11894_v17 = vld [vmem:[%s18012_s4 + $0x1e0] sm:$0xff] }
 0x38d   : > { %v2238_v46 = vpop.f32.mrf.mxu2 }
 0x38e   : > { %v2311_v53 = vadd.f32 %v2238_v46, %v13367_v16  ;;  %v1916_v16 = vpop.f32.mrf.mxu1 }
 0x390   : > { %v2535_v36 = vadd.f32 %v2398_v50, %v2311_v53  ;;  %v2408_v53 = vpop.permute.xlu2 %2407 }
 0x392   : > { %v2567_v6 = vmax.f32 %v2535_v36, 0.0  ;;  %2280 = vmatmul.bf16.gmra.mxu2 %v11893_v39 }
 0x394   : > { %v13539_v14 = vpack.c.bf16 %v2567_v6, %v2566_v7 }
 0x395   : > { %v2241_v28 = vpop.f32.mrf.mxu2 }
 0x396   : > { %18074 = vst [vmem:[#allocation12_spill] sm:$0xff] %v13539_v14  ;;  %9698 = vmatmul.msk.bf16.gmra.mxu3 %vm2618_vm1, %v13539_v14  ;;  %9720 = vmatmul.msk.bf16.gmra.mxu0 %vm2618_vm1, %v13539_v14  ;;  %v2312_v58 = vadd.f32 %v2241_v28, %v13369_v38  ;;  %v1918_v6 = vpop.f32.mrf.mxu1  ;;  %v1974_v38 = vadd.f32 %v1906_v30, %v13382_v11 }
 0x398   : > { %v2536_v12 = vadd.f32 %v2403_v9, %v2312_v58  ;;  %v2413_v9 = vpop.permute.xlu0 %2412 }
 0x39a   : > { %v2568_v50 = vmax.f32 %v2536_v12, 0.0 }
 0x39d   : > { %v2243_v44 = vpop.f32.mrf.mxu2 }
 0x39e   : > { %v2313_v46 = vadd.f32 %v2243_v44, %v13380_v18  ;;  %v1601_v18 = vadd.f32 %v13389_v33, %v13387_v31  ;;  %v1606_v31 = vadd.f32 %v13404_v20, %v13402_v35  ;;  %v1978_v20 = vadd.f32 %v1916_v16, %v13412_v59 }
 0x3a0   : > { %v2537_v39 = vadd.f32 %v2408_v53, %v2313_v46  ;;  %v1975_v58 = vadd.f32 %v1908_v34, %v1601_v18  ;;  %v2418_v53 = vpop.permute.xlu1 %2417  ;;  %v2423_v18 = vpop.permute.xlu2 %2422 }
 0x3a2   : > { %v2569_v36 = vmax.f32 %v2537_v39, 0.0  ;;  %2285 = vmatmul.bf16.gmra.mxu2 %v11894_v17  ;;  %v11895_v17 = vld [vmem:[%s18012_s4 + $0x1e8] sm:$0xff]  ;;  %v1921_v39 = vpop.f32.mrf.mxu1 }
 0x3a4   : > { %v13550_v7 = vpack.c.bf16 %v2569_v36, %v2568_v50 }
 0x3a5   : > { %v2246_v4 = vpop.f32.mrf.mxu2 }
 0x3a6   : > { %18075 = vst [vmem:[#allocation13_spill] sm:$0xff] %v13550_v7  ;;  %9699 = vmatmul.msk.bf16.gmra.mxu3 %vm2618_vm1, %v13550_v7  ;;  %9721 = vmatmul.msk.bf16.gmra.mxu0 %vm2618_vm1, %v13550_v7  ;;  %v2314_v28 = vadd.f32 %v2246_v4, %v1974_v38  ;;  %v1976_v4 = vadd.f32 %v1911_v0, %v13397_v41 }
 0x3a7   : > { %v1977_v38 = vadd.f32 %v1913_v3, %v1606_v31  ;;  %v1611_v3 = vadd.f32 %v13417_v55, %v13419_v62  ;;  %v1980_v62 = vadd.f32 %v1921_v39, %v13427_v29 }
 0x3a8   : > { %v2538_v12 = vadd.f32 %v2413_v9, %v2314_v28  ;;  %v11896_v9 = vld [vmem:[%s18012_s4 + $0x1f0] sm:$0xff] }
 0x3aa   : > { %v2570_v36 = vmax.f32 %v2538_v12, 0.0  ;;  %v1923_v33 = vpop.f32.mrf.mxu1 }
 0x3ad   : > { %v2248_v44 = vpop.f32.mrf.mxu2 }
 0x3ae   : > { %v2315_v46 = vadd.f32 %v2248_v44, %v1975_v58  ;;  %v2428_v44 = vpop.permute.xlu0 %2427 }
 0x3b0   : > { %v2539_v50 = vadd.f32 %v2418_v53, %v2315_v46 }
 0x3b2   : > { %v2571_v23 = vmax.f32 %v2539_v50, 0.0  ;;  %2290 = vmatmul.bf16.gmra.mxu2 %v11895_v17  ;;  %v1926_v41 = vpop.f32.mrf.mxu1  ;;  %v2433_v50 = vpop.permute.xlu1 %2432 }
 0x3b3   : > { %v1982_v29 = vadd.f32 %v1926_v41, %v13436_v61 }
 0x3b4   : > { %v13562_v11 = vpack.c.bf16 %v2571_v23, %v2570_v36  ;;  %v1979_v36 = vadd.f32 %v1918_v6, %v1611_v3  ;;  %v1616_v6 = vadd.f32 %v13429_v40, %v13431_v42  ;;  %v1621_v40 = vadd.f32 %v13438_v1, %v13440_v5 }
 0x3b5   : > { %v2251_v30 = vpop.f32.mrf.mxu2  ;;  %v1626_v5 = vadd.f32 %v13447_v21, %v13449_v22 }
 0x3b6   : > { %18076 = vst [vmem:[#allocation14_spill] sm:$0xff] %v13562_v11  ;;  %9700 = vmatmul.msk.bf16.gmra.mxu3 %vm2618_vm1, %v13562_v11  ;;  %9722 = vmatmul.msk.bf16.gmra.mxu0 %vm2618_vm1, %v13562_v11  ;;  %v2316_v34 = vadd.f32 %v2251_v30, %v1976_v4 }
 0x3b8   : > { %v2540_v58 = vadd.f32 %v2423_v18, %v2316_v34  ;;  %v2438_v18 = vpop.permute.xlu2 %2437 }
 0x3ba   : > { %v2572_v46 = vmax.f32 %v2540_v58, 0.0  ;;  %v1928_v30 = vpop.f32.mrf.mxu1 }
 0x3bd   : > { %v2253_v28 = vpop.f32.mrf.mxu2 }
 0x3be   : > { %v2317_v23 = vadd.f32 %v2253_v28, %v1977_v38  ;;  %v11897_v38 = vld [vmem:[%s18012_s4 + $0x1f8] sm:$0xff] }
 0x3c0   : > { %v2541_v12 = vadd.f32 %v2428_v44, %v2317_v23  ;;  %v1981_v44 = vadd.f32 %v1923_v33, %v1616_v6  ;;  %v1983_v33 = vadd.f32 %v1928_v30, %v1621_v40 }
 0x3c2   : > { %v2573_v17 = vmax.f32 %v2541_v12, 0.0  ;;  %2295 = vmatmul.bf16.gmra.mxu2 %v11896_v9  ;;  %v1931_v55 = vpop.f32.mrf.mxu1  ;;  %v2443_v12 = vpop.permute.xlu0 %2442 }
 0x3c3   : > { %v1984_v1 = vadd.f32 %v1931_v55, %v13445_v15 }
 0x3c4   : > { %v13574_v0 = vpack.c.bf16 %v2573_v17, %v2572_v46 }
 0x3c5   : > { %v2256_v35 = vpop.f32.mrf.mxu2 }
 0x3c6   : > { %18077 = vst [vmem:[#allocation15_spill] sm:$0xff] %v13574_v0  ;;  %9701 = vmatmul.msk.bf16.gmra.mxu3 %vm2618_vm1, %v13574_v0  ;;  %9723 = vmatmul.msk.bf16.gmra.mxu0 %vm2618_vm1, %v13574_v0  ;;  %v2318_v53 = vadd.f32 %v2256_v35, %v1978_v20  ;;  %v2448_v20 = vpop.permute.xlu1 %2447 }
 0x3c8   : > { %v2542_v31 = vadd.f32 %v2433_v50, %v2318_v53 }
 0x3ca   : > { %v2574_v58 = vmax.f32 %v2542_v31, 0.0  ;;  %v1933_v53 = vpop.f32.mrf.mxu1 }
 0x3cd   : > { %v2258_v4 = vpop.f32.mrf.mxu2 }
 0x3ce   : > { %v2319_v34 = vadd.f32 %v2258_v4, %v1979_v36 }
 0x3d0   : > { %v2543_v28 = vadd.f32 %v2438_v18, %v2319_v34  ;;  %v2453_v34 = vpop.permute.xlu2 %2452 }
 0x3d2   : > { %v2575_v23 = vmax.f32 %v2543_v28, 0.0  ;;  %2300 = vmatmul.bf16.gmra.mxu2 %v11897_v38  ;;  %v1936_v39 = vpop.f32.mrf.mxu1 }
 0x3d4   : > { %v13586_v59 = vpack.c.bf16 %v2575_v23, %v2574_v58  ;;  %v2458_v58 = vpop.permute.xlu0 %2457 }
 0x3d5   : > { %v2261_v16 = vpop.f32.mrf.mxu2 }
 0x3d6   : > { %18078 = vst [vmem:[#allocation16_spill] sm:$0xff] %v13586_v59  ;;  %9702 = vmatmul.msk.bf16.gmra.mxu3 %vm2618_vm1, %v13586_v59  ;;  %9724 = vmatmul.msk.bf16.gmra.mxu0 %vm2618_vm1, %v13586_v59  ;;  %v2320_v9 = vadd.f32 %v2261_v16, %v1980_v62  ;;  %v13604_v16 = vpop.f32.mrf.mxu3 }
 0x3d8   : > { %v2544_v17 = vadd.f32 %v2443_v12, %v2320_v9 }
 0x3da   : > { %v2576_v50 = vmax.f32 %v2544_v17, 0.0  ;;  %v1938_v61 = vpop.f32.mrf.mxu1  ;;  %v1985_v17 = vadd.f32 %v1933_v53, %v1626_v5 }
 0x3dd   : > { %v2263_v46 = vpop.f32.mrf.mxu2 }
 0x3de   : > { %v2321_v35 = vadd.f32 %v2263_v46, %v1981_v44 }
 0x3e0   : > { %v2545_v3 = vadd.f32 %v2448_v20, %v2321_v35  ;;  %v2463_v20 = vpop.permute.xlu1 %2462 }
 0x3e2   : > { %v2577_v36 = vmax.f32 %v2545_v3, 0.0 }
 0x3e4   : > { %v13595_v4 = vpack.c.bf16 %v2577_v36, %v2576_v50 }
 0x3e5   : > { %v2266_v31 = vpop.f32.mrf.mxu2 }
 0x3e6   : > { %18079 = vst [vmem:[#allocation17_spill] sm:$0xff] %v13595_v4  ;;  %9703 = vmatmul.msk.bf16.gmra.mxu3 %vm2618_vm1, %v13595_v4  ;;  %9725 = vmatmul.msk.bf16.gmra.mxu0 %vm2618_vm1, %v13595_v4  ;;  %v2322_v42 = vadd.f32 %v2266_v31, %v1982_v29  ;;  %v2468_v31 = vpop.permute.xlu2 %2467  ;;  %v1941_v29 = vpop.f32.mrf.mxu1 }
 0x3e8   : > { %v2546_v18 = vadd.f32 %v2453_v34, %v2322_v42  ;;  %v1986_v34 = vadd.f32 %v1936_v39, %v13454_v47 }
 0x3ea   : > { %v2578_v62 = vmax.f32 %v2546_v18, 0.0 }
 0x3ed   : > { %v2268_v38 = vpop.f32.mrf.mxu2 }
 0x3ee   : > { %v2323_v28 = vadd.f32 %v2268_v38, %v1983_v33  ;;  %v1631_v38 = vadd.f32 %v13456_v49, %v13458_v54  ;;  %v1943_v18 = vpop.f32.mrf.mxu1 }
 0x3f0   : > { %v2547_v23 = vadd.f32 %v2458_v58, %v2323_v28 }
 0x3f2   : > { %v2579_v6 = vmax.f32 %v2547_v23, 0.0 }
 0x3f3   : > { %v13606_v9 = vpop.f32.mrf.mxu0 }
 0x3f4   : > { %v13608_v44 = vpack.c.bf16 %v2579_v6, %v2578_v62  ;;  %v1987_v62 = vadd.f32 %v1938_v61, %v1631_v38 }
 0x3f5   : > { %v2271_v41 = vpop.f32.mrf.mxu2 }
 0x3f6   : > { %18080 = vst [vmem:[#allocation18_spill] sm:$0xff] %v13608_v44  ;;  %9704 = vmatmul.msk.bf16.gmra.mxu3 %vm2618_vm1, %v13608_v44  ;;  %9726 = vmatmul.msk.bf16.gmra.mxu0 %vm2618_vm1, %v13608_v44  ;;  %v2324_v12 = vadd.f32 %v2271_v41, %v1984_v1  ;;  %v2473_v41 = vpop.permute.xlu0 %2472 }
 0x3f8   : > { %v2548_v50 = vadd.f32 %v2463_v20, %v2324_v12 }
 0x3f9   : > { %v13617_v30 = vpop.f32.mrf.mxu3 }
 0x3fa   : > { %v2580_v55 = vmax.f32 %v2548_v50, 0.0 }
 0x3fb   : > { %v13619_v46 = vpop.f32.mrf.mxu0 }
 0x3fd   : > { %v2273_v3 = vpop.f32.mrf.mxu2 }
 0x3fe   : > { %v2325_v36 = vadd.f32 %v2273_v3, %v1985_v17  ;;  %v2478_v17 = vpop.permute.xlu1 %2477  ;;  %v1946_v3 = vpop.f32.mrf.mxu1 }
 0x400   : > { %v2549_v40 = vadd.f32 %v2468_v31, %v2325_v36  ;;  %v1988_v31 = vadd.f32 %v1941_v29, %v13463_v27 }
 0x401   : > { %v13623_v15 = vpop.f32.mrf.mxu3 }
 0x402   : > { %v2581_v21 = vmax.f32 %v2549_v40, 0.0  ;;  %v1636_v40 = vadd.f32 %v13465_v37, %v13467_v26 }
 0x403   : > { %v13627_v42 = vpop.f32.mrf.mxu0 }
 0x404   : > { %v13629_v53 = vpack.c.bf16 %v2581_v21, %v2580_v55  ;;  %v1989_v38 = vadd.f32 %v1943_v18, %v1636_v40 }
 0x405   : > { %v2276_v33 = vpop.f32.mrf.mxu2 }
 0x406   : > { %18081 = vst [vmem:[#allocation19_spill] sm:$0xff] %v13629_v53  ;;  %9705 = vmatmul.msk.bf16.gmra.mxu3 %vm2618_vm1, %v13629_v53  ;;  %9727 = vmatmul.msk.bf16.gmra.mxu0 %vm2618_vm1, %v13629_v53  ;;  %v2326_v58 = vadd.f32 %v2276_v33, %v1986_v34  ;;  %v2483_v34 = vpop.permute.xlu2 %2482 }
 0x408   : > { %v2550_v5 = vadd.f32 %v2473_v41, %v2326_v58 }
 0x409   : > { %v13638_v28 = vpop.f32.mrf.mxu3 }
 0x40a   : > { %v2582_v39 = vmax.f32 %v2550_v5, 0.0 }
 0x40b   : > { %v13640_v23 = vpop.f32.mrf.mxu0 }
 0x40d   : > { %v2278_v1 = vpop.f32.mrf.mxu2 }
 0x40e   : > { %v2327_v12 = vadd.f32 %v2278_v1, %v1987_v62  ;;  %v1948_v62 = vpop.f32.mrf.mxu1 }
 0x410   : > { %v2551_v20 = vadd.f32 %v2478_v17, %v2327_v12  ;;  %v2488_v12 = vpop.permute.xlu0 %2487 }
 0x411   : > { %v13644_v47 = vpop.f32.mrf.mxu3 }
 0x412   : > { %v2583_v49 = vmax.f32 %v2551_v20, 0.0 }
 0x413   : > { %v13648_v50 = vpop.f32.mrf.mxu0 }
 0x414   : > { %v13650_v61 = vpack.c.bf16 %v2583_v49, %v2582_v39 }
 0x415   : > { %v2281_v36 = vpop.f32.mrf.mxu2 }
 0x416   : > { %18082 = vst [vmem:[#allocation20_spill] sm:$0xff] %v13650_v61  ;;  %9706 = vmatmul.msk.bf16.gmra.mxu3 %vm2618_vm1, %v13650_v61  ;;  %9728 = vmatmul.msk.bf16.gmra.mxu0 %vm2618_vm1, %v13650_v61  ;;  %v2328_v21 = vadd.f32 %v2281_v36, %v1988_v31  ;;  %v1951_v49 = vpop.f32.mrf.mxu1  ;;  %v1990_v36 = vadd.f32 %v1946_v3, %v13472_v60 }
 0x417   : > { %v1641_v31 = vadd.f32 %v13474_v25, %v13476_v19 }
 0x418   : > { %v2552_v1 = vadd.f32 %v2483_v34, %v2328_v21 }
 0x419   : > { %v13659_v55 = vpop.f32.mrf.mxu3 }
 0x41a   : > { %v2584_v29 = vmax.f32 %v2552_v1, 0.0  ;;  %v2493_v1 = vpop.permute.xlu1 %2492 }
 0x41b   : > { %v13661_v33 = vpop.f32.mrf.mxu0 }
 0x41d   : > { %v2283_v41 = vpop.f32.mrf.mxu2 }
 0x41e   : > { %v2329_v5 = vadd.f32 %v2283_v41, %v1989_v38  ;;  %v1991_v38 = vadd.f32 %v1948_v62, %v1641_v31  ;;  %v1953_v22 = vpop.f32.mrf.mxu1  ;;  %v1992_v31 = vadd.f32 %v1951_v49, %v13481_v56 }
 0x420   : > { %v2553_v17 = vadd.f32 %v2488_v12, %v2329_v5 }
 0x421   : > { %v13665_v27 = vpop.f32.mrf.mxu3 }
 0x422   : > { %v2585_v37 = vmax.f32 %v2553_v17, 0.0  ;;  %v2508_v54 = vpop.permute.xlu1 %2507 }
 0x423   : > { %v13669_v20 = vpop.f32.mrf.mxu0 }
 0x424   : > { %v13671_v39 = vpack.c.bf16 %v2585_v37, %v2584_v29  ;;  %v2498_v29 = vpop.permute.xlu2 %2497 }
 0x425   : > { %v2286_v18 = vpop.f32.mrf.mxu2 }
 0x426   : > { %18083 = vst [vmem:[#allocation21_spill] sm:$0xff] %v13671_v39  ;;  %9707 = vmatmul.msk.bf16.gmra.mxu3 %vm2618_vm1, %v13671_v39  ;;  %9729 = vmatmul.msk.bf16.gmra.mxu0 %vm2618_vm1, %v13671_v39  ;;  %v2330_v21 = vadd.f32 %v2286_v18, %v1990_v36 }
 0x428   : > { %v2554_v12 = vadd.f32 %v2493_v1, %v2330_v21  ;;  %v1646_v21 = vadd.f32 %v13483_v10, %v13485_v13 }
 0x429   : > { %v13680_v40 = vpop.f32.mrf.mxu3 }
 0x42a   : > { %v2586_v3 = vmax.f32 %v2554_v12, 0.0 }
 0x42b   : > { %v13682_v34 = vpop.f32.mrf.mxu0 }
 0x42d   : > { %v2288_v5 = vpop.f32.mrf.mxu2 }
 0x42e   : > { %v2331_v17 = vadd.f32 %v2288_v5, %v1991_v38  ;;  %v1956_v5 = vpop.f32.mrf.mxu1 }
 0x430   : > { %v2555_v37 = vadd.f32 %v2498_v29, %v2331_v17  ;;  %v1993_v17 = vadd.f32 %v1953_v22, %v1646_v21  ;;  %v2503_v29 = vpop.permute.xlu0 %2502  ;;  %v1994_v22 = vadd.f32 %v1956_v5, %v13490_v51 }
 0x431   : > { %v13686_v60 = vpop.f32.mrf.mxu3 }
 0x432   : > { %v2587_v25 = vmax.f32 %v2555_v37, 0.0 }
 0x433   : > { %v13690_v18 = vpop.f32.mrf.mxu0 }
 0x434   : > { %v13692_v62 = vpack.c.bf16 %v2587_v25, %v2586_v3 }
 0x435   : > { %v2291_v36 = vpop.f32.mrf.mxu2 }
 0x436   : > { %18084 = vst [vmem:[#allocation22_spill] sm:$0xff] %v13692_v62  ;;  %9708 = vmatmul.msk.bf16.gmra.mxu3 %vm2618_vm1, %v13692_v62  ;;  %9730 = vmatmul.msk.bf16.gmra.mxu0 %vm2618_vm1, %v13692_v62  ;;  %v2332_v1 = vadd.f32 %v2291_v36, %v1992_v31  ;;  %v1958_v10 = vpop.f32.mrf.mxu1 }
 0x438   : > { %v2556_v3 = vadd.f32 %v2503_v29, %v2332_v1  ;;  %v2513_v1 = vpop.permute.xlu2 %2512 }
 0x439   : > { %v13701_v38 = vpop.f32.mrf.mxu3 }
 0x43a   : > { %v2588_v6 = vmax.f32 %v2556_v3, 0.0 }
 0x43b   : > { %v13703_v12 = vpop.f32.mrf.mxu0 }
 0x43d   : > { %v2293_v37 = vpop.f32.mrf.mxu2 }
 0x43e   : > { %v2333_v25 = vadd.f32 %v2293_v37, %v1993_v17  ;;  %v2518_v37 = vpop.permute.xlu0 %2517  ;;  %v1961_v3 = vpop.f32.mrf.mxu1 }
 0x440   : > { %v2557_v35 = vadd.f32 %v2508_v54, %v2333_v25  ;;  %v1651_v54 = vadd.f32 %v13492_v52, %v13494_v8  ;;  %v1996_v52 = vadd.f32 %v1961_v3, %v13505_v57  ;;  %v1656_v8 = vadd.f32 %v13604_v16, %v13507_v2 }
 0x441   : > { %v13705_v26 = vpop.f32.mrf.mxu3 }
 0x442   : > { %v2589_v56 = vmax.f32 %v2557_v35, 0.0  ;;  %v1995_v35 = vadd.f32 %v1958_v10, %v1651_v54 }
 0x443   : > { %v2879_v49 = vpop.f32.mrf.mxu0 }
 0x444   : > { %v13707_v19 = vpack.c.bf16 %v2589_v56, %v2588_v6 }
 0x445   : > { %v2296_v13 = vpop.f32.mrf.mxu2 }
 0x446   : > { %18085 = vst [vmem:[#allocation23_spill] sm:$0xff] %v13707_v19  ;;  %9709 = vmatmul.msk.bf16.gmra.mxu3 %vm2618_vm1, %v13707_v19  ;;  %9731 = vmatmul.msk.bf16.gmra.mxu0 %vm2618_vm1, %v13707_v19  ;;  %v2334_v31 = vadd.f32 %v2296_v13, %v1994_v22  ;;  %v1963_v5 = vpop.f32.mrf.mxu1 }
 0x447   : > { %v1997_v54 = vadd.f32 %v1963_v5, %v1656_v8 }
 0x448   : > { %v2558_v17 = vadd.f32 %v2513_v1, %v2334_v31  ;;  %v2523_v31 = vpop.permute.xlu1 %2522  ;;  %v2528_v1 = vpop.permute.xlu2 %2527 }
 0x449   : > { %v2701_v36 = vpop.f32.mrf.mxu3 }
 0x44a   : > { %v2590_v58 = vmax.f32 %v2558_v17, 0.0 }
 0x44b   : > { %v2881_v21 = vpop.f32.mrf.mxu0 }
 0x44c   : > { %v2939_v5 = vpack.c.bf16 %v2881_v21, %v2879_v49  ;;  %v18088_v49 = vpack.c.bf16 %v13682_v34, %v13669_v20  ;;  %v9800_v20 = vld [vmem:[%s18015_s7 + $0x200] sm:$0xf]  ;;  %v11965_v34 = vld [vmem:[%s18015_s7 + $0x204] sm:$0xf0] }
 0x44d   : > { %v2298_v6 = vpop.f32.mrf.mxu2 }
 0x44e   : > { %v2335_v29 = vadd.f32 %v2298_v6, %v1995_v35 }
 0x450   : > { %v2559_v25 = vadd.f32 %v2518_v37, %v2335_v29 }
 0x451   : > { %v2703_v56 = vpop.f32.mrf.mxu3 }
 0x452   : > { %v2591_v41 = vmax.f32 %v2559_v25, 0.0 }
 0x453   : > { %v2884_v43 = vpop.f32.mrf.mxu0 }
 0x454   : > { %v13716_v63 = vpack.c.bf16 %v2591_v41, %v2590_v58 }
 0x455   : > { %v2301_v51 = vpop.f32.mrf.mxu2 }
 0x456   : > { %18086 = vst [vmem:[#allocation24_spill] sm:$0xff] %v13716_v63  ;;  %9710 = vmatmul.msk.bf16.gmra.mxu3 %vm2618_vm1, %v13716_v63  ;;  %9732 = vmatmul.msk.bf16.gmra.mxu0 %vm2618_vm1, %v13716_v63  ;;  %v2336_v13 = vadd.f32 %v2301_v51, %v1996_v52 }
 0x458   : > { %v2560_v41 = vadd.f32 %v2523_v31, %v2336_v13 }
 0x459   : > { %v2706_v10 = vpop.f32.mrf.mxu3 }
 0x45a   : > { %v2592_v29 = vmax.f32 %v2560_v41, 0.0 }
 0x45b   : > { %v2886_v22 = vpop.f32.mrf.mxu0 }
 0x45c   : > { %v2940_v3 = vpack.c.bf16 %v2886_v22, %v2884_v43  ;;  %v2760_v43 = vpack.c.bf16 %v13705_v26, %v13701_v38  ;;  %v18091_v26 = vpack.c.bf16 %v13640_v23, %v13627_v42  ;;  %v18094_v23 = vpack.c.bf16 %v13644_v47, %v13638_v28  ;;  %v11969_v22 = vld [vmem:[%s18015_s7 + $0x224] sm:$0xf0] }
 0x45d   : > { %v2303_v58 = vpop.f32.mrf.mxu2  ;;  %v18095_v38 = vpack.c.bf16 %v13623_v15, %v13617_v30 }
 0x45e   : > { %v2337_v35 = vadd.f32 %v2303_v58, %v1997_v54  ;;  %v2938_v54 = vpack.c.bf16 %v13703_v12, %v13690_v18  ;;  %v2761_v58 = vpack.c.bf16 %v2703_v56, %v2701_v36  ;;  %v18089_v18 = vpack.c.bf16 %v13661_v33, %v13648_v50 }
 0x45f   : > { %v18090_v36 = vpack.c.bf16 %v13686_v60, %v13680_v40  ;;  %v18092_v50 = vpack.c.bf16 %v13665_v27, %v13659_v55  ;;  %v9801_v40 = vor.u32 %v11965_v34, %v9800_v20  ;;  %v18093_v60 = vpack.c.bf16 %v13619_v46, %v13606_v9  ;;  %v9808_v9 = vld [vmem:[%s18015_s7 + $0x210] sm:$0xf]  ;;  %v11967_v46 = vld [vmem:[%s18015_s7 + $0x214] sm:$0xf0] }
 0x460   : > { %v2561_v6 = vadd.f32 %v2528_v1, %v2337_v35  ;;  %v9809_v28 = vor.u32 %v11967_v46, %v9808_v9 }
 0x461   : > { %v2708_v17 = vpop.f32.mrf.mxu3 }
 0x462   : > { %v2593_v37 = vmax.f32 %v2561_v6, 0.0  ;;  %v2762_v13 = vpack.c.bf16 %v2708_v17, %v2706_v10  ;;  %v9816_v10 = vld [vmem:[%s18015_s7 + $0x220] sm:$0xf] }
 0x463   : > { %v2889_v25 = vpop.f32.mrf.mxu0  ;;  %v9817_v1 = vor.u32 %v11969_v22, %v9816_v10  ;;  %v10056_v10 = vld [vmem:[%s18015_s7] sm:$0xf]  ;;  %v11900_v22 = vld [vmem:[%s18015_s7 + $0x4] sm:$0xf0] }
 0x464   : > { %v13725_v24 = vpack.c.bf16 %v2593_v37, %v2592_v29  ;;  %v9824_v37 = vld [vmem:[%s18015_s7 + $0x230] sm:$0xf] }
 0x466   : > { %18087 = vst [vmem:[#allocation25_spill] sm:$0xff] %v13725_v24  ;;  %9711 = vmatmul.msk.bf16.gmra.mxu3 %vm2618_vm1, %v13725_v24  ;;  %9733 = vmatmul.msk.bf16.gmra.mxu0 %vm2618_vm1, %v13725_v24 }
 0x469   : > { %v2711_v57 = vpop.f32.mrf.mxu3 }
 0x46b   : > { %v2891_v2 = vpop.f32.mrf.mxu0 }
 0x46c   : > { %v2941_v16 = vpack.c.bf16 %v2891_v2, %v2889_v25  ;;  %v11971_v25 = vld [vmem:[%s18015_s7 + $0x234] sm:$0xf0] }
 0x46d   : > { %v9825_v2 = vor.u32 %v11971_v25, %v9824_v37 }
 0x46e   : > { %3335 = vmatpush.bf16.msra.mxu1 %v2941_v16 }
 0x471   : > { %v2713_v51 = vpop.f32.mrf.mxu3 }
 0x472   : > { %v2763_v52 = vpack.c.bf16 %v2713_v51, %v2711_v57  ;;  %3336 = vmatpush.bf16.msra.mxu1 %v2940_v3 }
 0x473   : > { %v13731_v8 = vpop.f32.mrf.mxu0 }
 0x474   : > { %3993 = vmatpush.bf16.msrb.mxu3 %v2763_v52  ;;  %v9832_v52 = vld [vmem:[%s18015_s7 + $0x240] sm:$0xf] }
 0x476   : > { %3337 = vmatpush.bf16.msra.mxu1 %v2939_v5  ;;  %v11973_v5 = vld [vmem:[%s18015_s7 + $0x244] sm:$0xf0] }
 0x478   : > { %3994 = vmatpush.bf16.msrb.mxu3 %v2762_v13 }
 0x479   : > { %v13735_v31 = vpop.f32.mrf.mxu3 }
 0x47a   : > { %3338 = vmatpush.bf16.msra.mxu1 %v2938_v54  ;;  %v9833_v54 = vor.u32 %v11973_v5, %v9832_v52 }
 0x47b   : > { %v13737_v41 = vpop.f32.mrf.mxu0 }
 0x47c   : > { %3995 = vmatpush.bf16.msrb.mxu3 %v2761_v58 }
 0x47e   : > { %3339 = vmatpush.bf16.msra.mxu1 %v18088_v49 }
 0x480   : > { %3996 = vmatpush.bf16.msrb.mxu3 %v2760_v43 }
 0x481   : > { %v13744_v21 = vpop.f32.mrf.mxu3 }
 0x482   : > { %3340 = vmatpush.bf16.msra.mxu1 %v18089_v18  ;;  %v9840_v18 = vld [vmem:[%s18015_s7 + $0x250] sm:$0xf] }
 0x483   : > { %v13749_v12 = vpop.f32.mrf.mxu0 }
 0x484   : > { %3997 = vmatpush.bf16.msrb.mxu3 %v18090_v36  ;;  %v11975_v36 = vld [vmem:[%s18015_s7 + $0x254] sm:$0xf0] }
 0x485   : > { %v9841_v20 = vor.u32 %v11975_v36, %v9840_v18  ;;  %v11979_v18 = vld [vmem:[%s18015_s7 + $0x274] sm:$0xf0] }
 0x486   : > { %3341 = vmatpush.bf16.msra.mxu1 %v18091_v26 }
 0x488   : > { %3998 = vmatpush.bf16.msrb.mxu3 %v18092_v50 }
 0x489   : > { %v13766_v33 = vpop.f32.mrf.mxu3 }
 0x48a   : > { %3342 = vmatpush.bf16.msra.mxu1 %v18093_v60  ;;  %v9848_v60 = vld [vmem:[%s18015_s7 + $0x260] sm:$0xf] }
 0x48b   : > { %v13771_v42 = vpop.f32.mrf.mxu0 }
 0x48c   : > { %3999 = vmatpush.bf16.msrb.mxu3 %v18094_v23  ;;  %v11977_v23 = vld [vmem:[%s18015_s7 + $0x264] sm:$0xf0] }
 0x48d   : > { %3343 = vmatmul.bf16.vlgmr.msra.gmra.mxu1 %v9801_v40  ;;  %v9849_v9 = vor.u32 %v11977_v23, %v9848_v60  ;;  %v9872_v60 = vld [vmem:[%s18015_s7 + $0x290] sm:$0xf]  ;;  %v11983_v23 = vld [vmem:[%s18015_s7 + $0x294] sm:$0xf0] }
 0x490   : > { %4000 = vmatpush.bf16.msrb.mxu3 %v18095_v38 }
 0x491   : > { %v13779_v55 = vpop.f32.mrf.mxu3 }
 0x493   : > { %v13781_v27 = vpop.f32.mrf.mxu0 }
 0x499   : > { %v13789_v56 = vpop.f32.mrf.mxu3 }
 0x49b   : > { %v13791_v47 = vpop.f32.mrf.mxu0 }
 0x49d   : > { %3348 = vmatmul.bf16.gmra.mxu1 %v9809_v28 }
 0x4a1   : > { %v13793_v30 = vpop.f32.mrf.mxu3 }
 0x4a3   : > { %v13795_v15 = vpop.f32.mrf.mxu0 }
 0x4a9   : > { %v13803_v35 = vpop.f32.mrf.mxu3 }
 0x4ab   : > { %v2911_v6 = vpop.f32.mrf.mxu0 }
 0x4ad   : > { %3353 = vmatmul.bf16.gmra.mxu1 %v9817_v1  ;;  %v10057_v1 = vor.u32 %v11900_v22, %v10056_v10  ;;  %v10066_v10 = vld [vmem:[%s18015_s7 + $0x18] sm:$0xf0]  ;;  %v10080_v22 = vld [vmem:[%s18015_s7 + $0x30] sm:$0xf] }
 0x4af   : > { %4001 = vmatmul.bf16.vlgmr.msrb.gmra.mxu3 %v10057_v1  ;;  %v11906_v1 = vld [vmem:[%s18015_s7 + $0x34] sm:$0xf0] }
 0x4b1   : > { %v13805_v17 = vpop.f32.mrf.mxu3 }
 0x4b3   : > { %v2914_v29 = vpop.f32.mrf.mxu0 }
 0x4b9   : > { %v2736_v57 = vpop.f32.mrf.mxu3 }
 0x4bb   : > { %v2916_v16 = vpop.f32.mrf.mxu0 }
 0x4bc   : > { %v2946_v36 = vpack.c.bf16 %v2916_v16, %v2914_v29  ;;  %v2944_v29 = vpack.c.bf16 %v13791_v47, %v13781_v27  ;;  %v9864_v16 = vld [vmem:[%s18015_s7 + $0x280] sm:$0xf]  ;;  %v11981_v27 = vld [vmem:[%s18015_s7 + $0x284] sm:$0xf0]  ;;  %v11964_v47 = vld [vmem:[%s18015_s7 + $0x204] sm:$0xf] }
 0x4bd   : > { %3358 = vmatmul.bf16.gmra.mxu1 %v9825_v2 }
 0x4c1   : > { %v2738_v3 = vpop.f32.mrf.mxu3 }
 0x4c3   : > { %v2919_v51 = vpop.f32.mrf.mxu0 }
 0x4c9   : > { %v2741_v13 = vpop.f32.mrf.mxu3 }
 0x4cb   : > { %v2921_v58 = vpop.f32.mrf.mxu0 }
 0x4cc   : > { %v2947_v52 = vpack.c.bf16 %v2921_v58, %v2919_v51  ;;  %v10064_v51 = vld [vmem:[%s18015_s7 + $0x10] sm:$0xf]  ;;  %v11902_v58 = vld [vmem:[%s18015_s7 + $0x14] sm:$0xf0] }
 0x4cd   : > { %3363 = vmatmul.bf16.gmra.mxu1 %v9833_v54  ;;  %v9856_v54 = vld [vmem:[%s18015_s7 + $0x270] sm:$0xf] }
 0x4d1   : > { %v2743_v43 = vpop.f32.mrf.mxu3 }
 0x4d3   : > { %v2924_v49 = vpop.f32.mrf.mxu0 }
 0x4d9   : > { %v2746_v26 = vpop.f32.mrf.mxu3 }
 0x4db   : > { %v2926_v34 = vpop.f32.mrf.mxu0 }
 0x4dc   : > { %v2948_v37 = vpack.c.bf16 %v2926_v34, %v2924_v49  ;;  %v2769_v49 = vpack.c.bf16 %v2743_v43, %v2741_v13  ;;  %v2945_v34 = vpack.c.bf16 %v2911_v6, %v13795_v15  ;;  %v2767_v15 = vpack.c.bf16 %v13805_v17, %v13803_v35  ;;  %v10058_v13 = vld [vmem:[%s18015_s7 + $0x8] sm:$0xf0] }
 0x4dd   : > { %3368 = vmatmul.bf16.gmra.mxu1 %v9841_v20  ;;  %v9857_v20 = vor.u32 %v11979_v18, %v9856_v54  ;;  %v2943_v6 = vpack.c.bf16 %v13771_v42, %v13749_v12  ;;  %v9802_v12 = vld [vmem:[%s18015_s7 + $0x208] sm:$0xf0]  ;;  %v2942_v42 = vpack.c.bf16 %v13737_v41, %v13731_v8  ;;  %v9865_v35 = vor.u32 %v11981_v27, %v9864_v16  ;;  %v10072_v8 = vld [vmem:[%s18015_s7 + $0x20] sm:$0xf]  ;;  %v11904_v41 = vld [vmem:[%s18015_s7 + $0x24] sm:$0xf0] }
 0x4de   : > { %v9805_v17 = vor.u32 %v11964_v47, %v9802_v12  ;;  %v11968_v54 = vld [vmem:[%s18015_s7 + $0x224] sm:$0xf]  ;;  %v9818_v18 = vld [vmem:[%s18015_s7 + $0x228] sm:$0xf0]  ;;  %v11987_v16 = vld [vmem:[%s18015_s7 + $0x2b4] sm:$0xf0] }
 0x4df   : > { %v9826_v27 = vld [vmem:[%s18015_s7 + $0x238] sm:$0xf0] }
 0x4e1   : > { %v2748_v50 = vpop.f32.mrf.mxu3 }
 0x4e2   : > { %v2770_v5 = vpack.c.bf16 %v2748_v50, %v2746_v26  ;;  %v2768_v26 = vpack.c.bf16 %v2738_v3, %v2736_v57  ;;  %v10065_v50 = vor.u32 %v11902_v58, %v10064_v51  ;;  %v2766_v57 = vpack.c.bf16 %v13793_v30, %v13789_v56  ;;  %v11899_v3 = vld [vmem:[%s18015_s7 + $0x4] sm:$0xf]  ;;  %v10074_v51 = vld [vmem:[%s18015_s7 + $0x28] sm:$0xf0]  ;;  %v10088_v58 = vld [vmem:[%s18015_s7 + $0x40] sm:$0xf] }
 0x4e3   : > { %v2929_v40 = vpop.f32.mrf.mxu0  ;;  %v2765_v56 = vpack.c.bf16 %v13779_v55, %v13766_v33  ;;  %v2764_v33 = vpack.c.bf16 %v13744_v21, %v13735_v31  ;;  %v10073_v55 = vor.u32 %v11904_v41, %v10072_v8  ;;  %v10061_v43 = vor.u32 %v11899_v3, %v10058_v13  ;;  %v9810_v31 = vld [vmem:[%s18015_s7 + $0x218] sm:$0xf0]  ;;  %v11910_v3 = vld [vmem:[%s18015_s7 + $0x54] sm:$0xf0] }
 0x4e4   : > { %4006 = vmatmul.bf16.gmra.mxu3 %v10065_v50  ;;  %v9873_v21 = vor.u32 %v11983_v23, %v9872_v60  ;;  %v9834_v60 = vld [vmem:[%s18015_s7 + $0x248] sm:$0xf0] }
 0x4e9   : > { %v2751_v38 = vpop.f32.mrf.mxu3 }
 0x4eb   : > { %v2931_v46 = vpop.f32.mrf.mxu0 }
 0x4ec   : > { %v2949_v28 = vpack.c.bf16 %v2931_v46, %v2929_v40 }
 0x4ed   : > { %3373 = vmatmul.bf16.gmra.mxu1 %v9849_v9 }
 0x4ee   : > { %3504 = vmatpush.bf16.msrb.mxu2 %v2949_v28  ;;  %v11901_v28 = vld [vmem:[%s18015_s7 + $0x14] sm:$0xf] }
 0x4f1   : > { %v2753_v25 = vpop.f32.mrf.mxu3 }
 0x4f2   : > { %v2771_v2 = vpack.c.bf16 %v2753_v25, %v2751_v38  ;;  %3505 = vmatpush.bf16.msrb.mxu2 %v2948_v37  ;;  %v11966_v38 = vld [vmem:[%s18015_s7 + $0x214] sm:$0xf]  ;;  %v10081_v37 = vor.u32 %v11906_v1, %v10080_v22  ;;  %v10069_v25 = vor.u32 %v11901_v28, %v10066_v10  ;;  %v10104_v28 = vld [vmem:[%s18015_s7 + $0x60] sm:$0xf]  ;;  %v11912_v10 = vld [vmem:[%s18015_s7 + $0x64] sm:$0xf0] }
 0x4f3   : > { %v9813_v9 = vor.u32 %v11966_v38, %v9810_v31  ;;  %v10105_v22 = vor.u32 %v11912_v10, %v10104_v28 }
 0x4f4   : > { %4162 = vmatpush.bf16.msra.mxu0 %v2771_v2  ;;  %4011 = vmatmul.bf16.gmra.mxu3 %v10073_v55  ;;  %v11989_v55 = vld [vmem:[%s18015_s7 + $0x2c4] sm:$0xf0] }
 0x4f6   : > { %3506 = vmatpush.bf16.msrb.mxu2 %v2947_v52  ;;  %v9880_v52 = vld [vmem:[%s18015_s7 + $0x2a0] sm:$0xf] }
 0x4f8   : > { %4163 = vmatpush.bf16.msra.mxu0 %v2770_v5  ;;  %v11985_v5 = vld [vmem:[%s18015_s7 + $0x2a4] sm:$0xf0] }
 0x4fa   : > { %3507 = vmatpush.bf16.msrb.mxu2 %v2946_v36  ;;  %v9881_v36 = vor.u32 %v11985_v5, %v9880_v52  ;;  %v11991_v52 = vld [vmem:[%s18015_s7 + $0x2d4] sm:$0xf0]  ;;  %v11974_v5 = vld [vmem:[%s18015_s7 + $0x254] sm:$0xf] }
 0x4fc   : > { %4164 = vmatpush.bf16.msra.mxu0 %v2769_v49 }
 0x4fd   : > { %3378 = vmatmul.bf16.gmra.mxu1 %v9857_v20  ;;  %v9821_v20 = vor.u32 %v11968_v54, %v9818_v18  ;;  %v9842_v54 = vld [vmem:[%s18015_s7 + $0x258] sm:$0xf0] }
 0x4fe   : > { %3508 = vmatpush.bf16.msrb.mxu2 %v2945_v34  ;;  %v11903_v34 = vld [vmem:[%s18015_s7 + $0x24] sm:$0xf] }
 0x500   : > { %4165 = vmatpush.bf16.msra.mxu0 %v2768_v26  ;;  %v11908_v26 = vld [vmem:[%s18015_s7 + $0x44] sm:$0xf0] }
 0x501   : > { %v10089_v50 = vor.u32 %v11908_v26, %v10088_v58  ;;  %v10112_v58 = vld [vmem:[%s18015_s7 + $0x70] sm:$0xf]  ;;  %v11914_v26 = vld [vmem:[%s18015_s7 + $0x74] sm:$0xf0] }
 0x502   : > { %3509 = vmatpush.bf16.msrb.mxu2 %v2944_v29  ;;  %v10077_v29 = vor.u32 %v11903_v34, %v10074_v51  ;;  %v11909_v34 = vld [vmem:[%s18015_s7 + $0x54] sm:$0xf]  ;;  %v10098_v51 = vld [vmem:[%s18015_s7 + $0x58] sm:$0xf0] }
 0x504   : > { %4166 = vmatpush.bf16.msra.mxu0 %v2767_v15  ;;  %4016 = vmatmul.bf16.gmra.mxu3 %v10081_v37 }
 0x506   : > { %3510 = vmatpush.bf16.msrb.mxu2 %v2943_v6  ;;  %v9888_v6 = vld [vmem:[%s18015_s7 + $0x2b0] sm:$0xf] }
 0x507   : > { %v9889_v47 = vor.u32 %v11987_v16, %v9888_v6  ;;  %v9912_v16 = vld [vmem:[%s18015_s7 + $0x2e0] sm:$0xf] }
 0x508   : > { %4167 = vmatpush.bf16.msra.mxu0 %v2766_v57  ;;  %v11970_v57 = vld [vmem:[%s18015_s7 + $0x234] sm:$0xf] }
 0x509   : > { %v9829_v12 = vor.u32 %v11970_v57, %v9826_v27  ;;  %v11993_v57 = vld [vmem:[%s18015_s7 + $0x2e4] sm:$0xf0]  ;;  %v11976_v27 = vld [vmem:[%s18015_s7 + $0x264] sm:$0xf] }
 0x50a   : > { %v13874_v30 = vpop.f32.mrf.mxu1  ;;  %3511 = vmatpush.bf16.msrb.mxu2 %v2942_v42 }
 0x50c   : > { %4168 = vmatpush.bf16.msra.mxu0 %v2765_v56  ;;  %v10096_v56 = vld [vmem:[%s18015_s7 + $0x50] sm:$0xf] }
 0x50d   : > { %3383 = vmatmul.bf16.gmra.mxu1 %v9865_v35  ;;  %3512 = vmatmul.bf16.vlgmr.msrb.gmra.mxu2 %v9805_v17  ;;  %v11905_v35 = vld [vmem:[%s18015_s7 + $0x34] sm:$0xf]  ;;  %v10082_v17 = vld [vmem:[%s18015_s7 + $0x38] sm:$0xf0]  ;;  %v10097_v13 = vor.u32 %v11910_v3, %v10096_v56  ;;  %v11911_v56 = vld [vmem:[%s18015_s7 + $0x64] sm:$0xf] }
 0x50e   : > { %v10085_v8 = vor.u32 %v11905_v35, %v10082_v17  ;;  %v10106_v3 = vld [vmem:[%s18015_s7 + $0x68] sm:$0xf0] }
 0x510   : > { %4169 = vmatpush.bf16.msra.mxu0 %v2764_v33  ;;  %v9896_v33 = vld [vmem:[%s18015_s7 + $0x2c0] sm:$0xf] }
 0x511   : > { %v9897_v23 = vor.u32 %v11989_v55, %v9896_v33  ;;  %v10109_v55 = vor.u32 %v11911_v56, %v10106_v3  ;;  %v10136_v56 = vld [vmem:[%s18015_s7 + $0xa0] sm:$0xf]  ;;  %v11920_v3 = vld [vmem:[%s18015_s7 + $0xa4] sm:$0xf0] }
 0x512   : > { %v13890_v40 = vpop.f32.mrf.mxu1 }
 0x513   : > { %4170 = vmatmul.bf16.vlgmr.msra.gmra.mxu0 %v10061_v43  ;;  %v11972_v43 = vld [vmem:[%s18015_s7 + $0x244] sm:$0xf] }
 0x514   : > { %4021 = vmatmul.bf16.gmra.mxu3 %v10089_v50  ;;  %v9837_v38 = vor.u32 %v11972_v43, %v9834_v60  ;;  %v10113_v50 = vor.u32 %v11914_v26, %v10112_v58  ;;  %v9928_v58 = vld [vmem:[%s18015_s7 + $0x300] sm:$0xf]  ;;  %v11997_v26 = vld [vmem:[%s18015_s7 + $0x304] sm:$0xf0] }
 0x51a   : > { %v13904_v46 = vpop.f32.mrf.mxu1 }
 0x51d   : > { %3388 = vmatmul.bf16.gmra.mxu1 %v9873_v21  ;;  %3517 = vmatmul.bf16.gmra.mxu2 %v9813_v9  ;;  %v11907_v21 = vld [vmem:[%s18015_s7 + $0x44] sm:$0xf]  ;;  %v10090_v9 = vld [vmem:[%s18015_s7 + $0x48] sm:$0xf0] }
 0x51e   : > { %v10093_v1 = vor.u32 %v11907_v21, %v10090_v9  ;;  %v11978_v21 = vld [vmem:[%s18015_s7 + $0x274] sm:$0xf]  ;;  %v9858_v9 = vld [vmem:[%s18015_s7 + $0x278] sm:$0xf0] }
 0x51f   : > { %v9861_v10 = vor.u32 %v11978_v21, %v9858_v9 }
 0x522   : > { %v13918_v2 = vpop.f32.mrf.mxu1 }
 0x523   : > { %4175 = vmatmul.bf16.gmra.mxu0 %v10069_v25  ;;  %v9904_v25 = vld [vmem:[%s18015_s7 + $0x2d0] sm:$0xf] }
 0x524   : > { %4026 = vmatmul.bf16.gmra.mxu3 %v10097_v13  ;;  %v9905_v18 = vor.u32 %v11991_v52, %v9904_v25  ;;  %v10120_v13 = vld [vmem:[%s18015_s7 + $0x80] sm:$0xf]  ;;  %v11913_v25 = vld [vmem:[%s18015_s7 + $0x74] sm:$0xf]  ;;  %v10114_v52 = vld [vmem:[%s18015_s7 + $0x78] sm:$0xf0] }
 0x52a   : > { %v13932_v49 = vpop.f32.mrf.mxu1 }
 0x52d   : > { %3393 = vmatmul.bf16.gmra.mxu1 %v9881_v36  ;;  %3522 = vmatmul.bf16.gmra.mxu2 %v9821_v20  ;;  %v9845_v36 = vor.u32 %v11974_v5, %v9842_v54  ;;  %v10128_v5 = vld [vmem:[%s18015_s7 + $0x90] sm:$0xf]  ;;  %v11918_v54 = vld [vmem:[%s18015_s7 + $0x94] sm:$0xf0] }
 0x532   : > { %v13946_v15 = vpop.f32.mrf.mxu1  ;;  %v4002_v60 = vpop.f32.mrf.mxu3 }
 0x533   : > { %4180 = vmatmul.bf16.gmra.mxu0 %v10077_v29  ;;  %v10101_v29 = vor.u32 %v11909_v34, %v10098_v51 }
 0x534   : > { %4031 = vmatmul.bf16.gmra.mxu3 %v10105_v22 }
 0x53a   : > { %v13960_v42 = vpop.f32.mrf.mxu1 }
 0x53d   : > { %3398 = vmatmul.bf16.gmra.mxu1 %v9889_v47  ;;  %3527 = vmatmul.bf16.gmra.mxu2 %v9829_v12  ;;  %v9850_v47 = vld [vmem:[%s18015_s7 + $0x268] sm:$0xf0]  ;;  %v9913_v12 = vor.u32 %v11993_v57, %v9912_v16  ;;  %v9929_v16 = vor.u32 %v11997_v26, %v9928_v58 }
 0x53e   : > { %v9853_v35 = vor.u32 %v11976_v27, %v9850_v47 }
 0x542   : > { %v13974_v41 = vpop.f32.mrf.mxu1 }
 0x543   : > { %4185 = vmatmul.bf16.gmra.mxu0 %v10085_v8  ;;  %v11916_v8 = vld [vmem:[%s18015_s7 + $0x84] sm:$0xf0] }
 0x544   : > { %4036 = vmatmul.bf16.gmra.mxu3 %v10113_v50  ;;  %v10121_v33 = vor.u32 %v11916_v8, %v10120_v13  ;;  %v11980_v50 = vld [vmem:[%s18015_s7 + $0x284] sm:$0xf]  ;;  %v10137_v13 = vor.u32 %v11920_v3, %v10136_v56 }
 0x54a   : > { %v13988_v31 = vpop.f32.mrf.mxu1 }
 0x54d   : > { %3403 = vmatmul.bf16.gmra.mxu1 %v9897_v23  ;;  %3532 = vmatmul.bf16.gmra.mxu2 %v9837_v38  ;;  %v9920_v23 = vld [vmem:[%s18015_s7 + $0x2f0] sm:$0xf]  ;;  %v11995_v38 = vld [vmem:[%s18015_s7 + $0x2f4] sm:$0xf0] }
 0x54e   : > { %v9921_v28 = vor.u32 %v11995_v38, %v9920_v23 }
 0x552   : > { %v14002_v37 = vpop.f32.mrf.mxu1 }
 0x553   : > { %4190 = vmatmul.bf16.gmra.mxu0 %v10093_v1  ;;  %v4004_v1 = vpop.f32.mrf.mxu3 }
 0x554   : > { %4041 = vmatmul.bf16.gmra.mxu3 %v10121_v33 }
 0x55a   : > { %v14016_v20 = vpop.f32.mrf.mxu1 }
 0x55d   : > { %3408 = vmatmul.bf16.gmra.mxu1 %v9905_v18  ;;  %3537 = vmatmul.bf16.gmra.mxu2 %v9845_v36  ;;  %v10129_v18 = vor.u32 %v11918_v54, %v10128_v5  ;;  %v10117_v36 = vor.u32 %v11913_v25, %v10114_v52  ;;  %v11999_v25 = vld [vmem:[%s18015_s7 + $0x314] sm:$0xf0]  ;;  %v11982_v52 = vld [vmem:[%s18015_s7 + $0x294] sm:$0xf] }
 0x562   : > { %v14030_v6 = vpop.f32.mrf.mxu1 }
 0x563   : > { %4195 = vmatmul.bf16.gmra.mxu0 %v10101_v29  ;;  %v9866_v29 = vld [vmem:[%s18015_s7 + $0x288] sm:$0xf0] }
 0x564   : > { %4046 = vmatmul.bf16.gmra.mxu3 %v10129_v18  ;;  %v9869_v57 = vor.u32 %v11980_v50, %v9866_v29  ;;  %v11917_v29 = vld [vmem:[%s18015_s7 + $0x94] sm:$0xf] }
 0x567   : > { %v4007_v51 = vpop.f32.mrf.mxu3 }
 0x56a   : > { %v14044_v17 = vpop.f32.mrf.mxu1 }
 0x56d   : > { %3413 = vmatmul.bf16.gmra.mxu1 %v9913_v12  ;;  %3542 = vmatmul.bf16.gmra.mxu2 %v9853_v35  ;;  %v11915_v12 = vld [vmem:[%s18015_s7 + $0x84] sm:$0xf]  ;;  %v10122_v35 = vld [vmem:[%s18015_s7 + $0x88] sm:$0xf0] }
 0x56e   : > { %v10125_v8 = vor.u32 %v11915_v12, %v10122_v35 }
 0x56f   : > { %v4009_v47 = vpop.f32.mrf.mxu3 }
 0x572   : > { %v14058_v43 = vpop.f32.mrf.mxu1 }
 0x573   : > { %4200 = vmatmul.bf16.gmra.mxu0 %v10109_v55 }
 0x574   : > { %4051 = vmatmul.bf16.gmra.mxu3 %v10137_v13 }
 0x577   : > { %v4012_v9 = vpop.f32.mrf.mxu3 }
 0x57a   : > { %v14072_v22 = vpop.f32.mrf.mxu1 }
 0x57d   : > { %3418 = vmatmul.bf16.gmra.mxu1 %v9921_v28  ;;  %3547 = vmatmul.bf16.gmra.mxu2 %v9861_v10  ;;  %v9936_v10 = vld [vmem:[%s18015_s7 + $0x310] sm:$0xf] }
 0x57e   : > { %v9937_v18 = vor.u32 %v11999_v25, %v9936_v10  ;;  %v12001_v10 = vld [vmem:[%s18015_s7 + $0x324] sm:$0xf0]  ;;  %v11984_v25 = vld [vmem:[%s18015_s7 + $0x2a4] sm:$0xf] }
 0x57f   : > { %v4014_v50 = vpop.f32.mrf.mxu3 }
 0x582   : > { %v14086_v34 = vpop.f32.mrf.mxu1 }
 0x583   : > { %4205 = vmatmul.bf16.gmra.mxu0 %v10117_v36 }
 0x58a   : > { %v14100_v27 = vpop.f32.mrf.mxu1 }
 0x58d   : > { %3423 = vmatmul.bf16.gmra.mxu1 %v9929_v16  ;;  %3552 = vmatmul.bf16.gmra.mxu2 %v9869_v57  ;;  %v10130_v16 = vld [vmem:[%s18015_s7 + $0x98] sm:$0xf0] }
 0x58e   : > { %v10133_v35 = vor.u32 %v11917_v29, %v10130_v16  ;;  %v10138_v29 = vld [vmem:[%s18015_s7 + $0xa8] sm:$0xf0] }
 0x590   : > { %v3513_v33 = vpop.f32.mrf.mxu2  ;;  %v4171_v55 = vpop.f32.mrf.mxu0 }
 0x591   : > { %v3514_v23 = vadd.f32 %v3513_v33, %v13874_v30  ;;  %v9874_v30 = vld [vmem:[%s18015_s7 + $0x298] sm:$0xf0] }
 0x592   : > { %v14115_v38 = vpop.f32.mrf.mxu1  ;;  %v9877_v36 = vor.u32 %v11982_v52, %v9874_v30 }
 0x593   : > { %v4003_v21 = vadd.f32 %v4002_v60, %v3514_v23  ;;  %4210 = vmatmul.bf16.gmra.mxu0 %v10125_v8 }
 0x595   : > { %v14117_v28 = vadd.f32 %v4171_v55, %v4003_v21  ;;  %v4017_v55 = vpop.f32.mrf.mxu3  ;;  %v9944_v21 = vld [vmem:[%s18015_s7 + $0x320] sm:$0xf] }
 0x598   : > { %v3515_v60 = vpop.f32.mrf.mxu2  ;;  %v4173_v5 = vpop.f32.mrf.mxu0 }
 0x599   : > { %v3516_v54 = vadd.f32 %v3515_v60, %v13890_v40  ;;  %v10144_v40 = vld [vmem:[%s18015_s7 + $0xb0] sm:$0xf]  ;;  %v9945_v60 = vor.u32 %v12001_v10, %v9944_v21 }
 0x59a   : > { %v14132_v58 = vpop.f32.mrf.mxu1  ;;  %v9952_v10 = vld [vmem:[%s18015_s7 + $0x330] sm:$0xf] }
 0x59b   : > { %v4005_v26 = vadd.f32 %v4004_v1, %v3516_v54  ;;  %v11922_v1 = vld [vmem:[%s18015_s7 + $0xb4] sm:$0xf0] }
 0x59c   : > { %v10145_v12 = vor.u32 %v11922_v1, %v10144_v40 }
 0x59d   : > { %v14140_v57 = vadd.f32 %v4173_v5, %v4005_v26  ;;  %3428 = vmatmul.bf16.gmra.mxu1 %v9937_v18  ;;  %3557 = vmatmul.bf16.gmra.mxu2 %v9877_v36  ;;  %v4019_v36 = vpop.f32.mrf.mxu3  ;;  %v11919_v26 = vld [vmem:[%s18015_s7 + $0xa4] sm:$0xf] }
 0x59e   : > { %4056 = vmatmul.bf16.gmra.mxu3 %v10145_v12  ;;  %v10141_v1 = vor.u32 %v11919_v26, %v10138_v29  ;;  %v11921_v29 = vld [vmem:[%s18015_s7 + $0xb4] sm:$0xf] }
 0x5a0   : > { %v3518_v56 = vpop.f32.mrf.mxu2  ;;  %v4176_v3 = vpop.f32.mrf.mxu0 }
 0x5a1   : > { %v3519_v13 = vadd.f32 %v3518_v56, %v13904_v46  ;;  %v9882_v46 = vld [vmem:[%s18015_s7 + $0x2a8] sm:$0xf0] }
 0x5a2   : > { %v14149_v8 = vpop.f32.mrf.mxu1  ;;  %v9885_v5 = vor.u32 %v11984_v25, %v9882_v46  ;;  %v12003_v25 = vld [vmem:[%s18015_s7 + $0x334] sm:$0xf0]  ;;  %v11986_v46 = vld [vmem:[%s18015_s7 + $0x2b4] sm:$0xf] }
 0x5a3   : > { %v4008_v33 = vadd.f32 %v4007_v51, %v3519_v13  ;;  %4215 = vmatmul.bf16.gmra.mxu0 %v10133_v35 }
 0x5a5   : > { %v14151_v23 = vadd.f32 %v4176_v3, %v4008_v33  ;;  %v4022_v33 = vpop.f32.mrf.mxu3 }
 0x5a8   : > { %v3520_v51 = vpop.f32.mrf.mxu2  ;;  %v4178_v52 = vpop.f32.mrf.mxu0 }
 0x5a9   : > { %v3521_v30 = vadd.f32 %v3520_v51, %v13918_v2  ;;  %v10152_v2 = vld [vmem:[%s18015_s7 + $0xc0] sm:$0xf] }
 0x5aa   : > { %v14166_v54 = vpop.f32.mrf.mxu1 }
 0x5ab   : > { %v4010_v18 = vadd.f32 %v4009_v47, %v3521_v30  ;;  %v11924_v47 = vld [vmem:[%s18015_s7 + $0xc4] sm:$0xf0]  ;;  %v9953_v30 = vor.u32 %v12003_v25, %v9952_v10 }
 0x5ac   : > { %v10153_v40 = vor.u32 %v11924_v47, %v10152_v2  ;;  %v10146_v2 = vld [vmem:[%s18015_s7 + $0xb8] sm:$0xf0] }
 0x5ad   : > { %v14174_v16 = vadd.f32 %v4178_v52, %v4010_v18  ;;  %3433 = vmatmul.bf16.gmra.mxu1 %v9945_v60  ;;  %3562 = vmatmul.bf16.gmra.mxu2 %v9885_v5  ;;  %v4024_v26 = vpop.f32.mrf.mxu3 }
 0x5ae   : > { %4061 = vmatmul.bf16.gmra.mxu3 %v10153_v40 }
 0x5b0   : > { %v3523_v12 = vpop.f32.mrf.mxu2  ;;  %v4181_v35 = vpop.f32.mrf.mxu0 }
 0x5b1   : > { %v3524_v56 = vadd.f32 %v3523_v12, %v13932_v49  ;;  %v9890_v49 = vld [vmem:[%s18015_s7 + $0x2b8] sm:$0xf0] }
 0x5b2   : > { %v14183_v3 = vpop.f32.mrf.mxu1  ;;  %v9893_v60 = vor.u32 %v11986_v46, %v9890_v49  ;;  %v9960_v49 = vld [vmem:[%s18015_s7 + $0x340] sm:$0xf] }
 0x5b3   : > { %v4013_v13 = vadd.f32 %v4012_v9, %v3524_v56  ;;  %4220 = vmatmul.bf16.gmra.mxu0 %v10141_v1  ;;  %v10149_v1 = vor.u32 %v11921_v29, %v10146_v2 }
 0x5b5   : > { %v14185_v21 = vadd.f32 %v4181_v35, %v4013_v13  ;;  %v4027_v25 = vpop.f32.mrf.mxu3 }
 0x5b8   : > { %v3525_v9 = vpop.f32.mrf.mxu2  ;;  %v4183_v51 = vpop.f32.mrf.mxu0 }
 0x5b9   : > { %v3526_v52 = vadd.f32 %v3525_v9, %v13946_v15  ;;  %v10160_v15 = vld [vmem:[%s18015_s7 + $0xd0] sm:$0xf]  ;;  %v12005_v9 = vld [vmem:[%s18015_s7 + $0x344] sm:$0xf0] }
 0x5ba   : > { %v14200_v5 = vpop.f32.mrf.mxu1 }
 0x5bb   : > { %v4015_v18 = vadd.f32 %v4014_v50, %v3526_v52  ;;  %v11926_v50 = vld [vmem:[%s18015_s7 + $0xd4] sm:$0xf0] }
 0x5bc   : > { %v10161_v40 = vor.u32 %v11926_v50, %v10160_v15  ;;  %v11923_v50 = vld [vmem:[%s18015_s7 + $0xc4] sm:$0xf] }
 0x5bd   : > { %v14208_v47 = vadd.f32 %v4183_v51, %v4015_v18  ;;  %3438 = vmatmul.bf16.gmra.mxu1 %v9953_v30  ;;  %3567 = vmatmul.bf16.gmra.mxu2 %v9893_v60  ;;  %v11988_v51 = vld [vmem:[%s18015_s7 + $0x2c4] sm:$0xf]  ;;  %v9961_v60 = vor.u32 %v12005_v9, %v9960_v49  ;;  %v4029_v15 = vpop.f32.mrf.mxu3 }
 0x5be   : > { %4066 = vmatmul.bf16.gmra.mxu3 %v10161_v40  ;;  %v10154_v40 = vld [vmem:[%s18015_s7 + $0xc8] sm:$0xf0] }
 0x5c0   : > { %v3528_v12 = vpop.f32.mrf.mxu2  ;;  %v4186_v35 = vpop.f32.mrf.mxu0 }
 0x5c1   : > { %v3529_v56 = vadd.f32 %v3528_v12, %v13960_v42  ;;  %v9898_v42 = vld [vmem:[%s18015_s7 + $0x2c8] sm:$0xf0] }
 0x5c2   : > { %v14217_v13 = vpop.f32.mrf.mxu1  ;;  %v9901_v18 = vor.u32 %v11988_v51, %v9898_v42 }
 0x5c3   : > { %v4018_v10 = vadd.f32 %v4017_v55, %v3529_v56  ;;  %4225 = vmatmul.bf16.gmra.mxu0 %v10149_v1 }
 0x5c5   : > { %v14219_v46 = vadd.f32 %v4186_v35, %v4018_v10  ;;  %v10157_v35 = vor.u32 %v11923_v50, %v10154_v40  ;;  %v4032_v42 = vpop.f32.mrf.mxu3 }
 0x5c8   : > { %v3530_v55 = vpop.f32.mrf.mxu2  ;;  %v4188_v52 = vpop.f32.mrf.mxu0 }
 0x5c9   : > { %v3531_v30 = vadd.f32 %v3530_v55, %v13974_v41  ;;  %v10168_v41 = vld [vmem:[%s18015_s7 + $0xe0] sm:$0xf] }
 0x5ca   : > { %v14234_v29 = vpop.f32.mrf.mxu1 }
 0x5cb   : > { %v4020_v2 = vadd.f32 %v4019_v36, %v3531_v30  ;;  %v11928_v36 = vld [vmem:[%s18015_s7 + $0xe4] sm:$0xf0]  ;;  %v12007_v30 = vld [vmem:[%s18015_s7 + $0x354] sm:$0xf0] }
 0x5cc   : > { %v10169_v12 = vor.u32 %v11928_v36, %v10168_v41 }
 0x5cd   : > { %v14242_v1 = vadd.f32 %v4188_v52, %v4020_v2  ;;  %3443 = vmatmul.bf16.gmra.mxu1 %v9961_v60  ;;  %3572 = vmatmul.bf16.gmra.mxu2 %v9901_v18  ;;  %v9968_v52 = vld [vmem:[%s18015_s7 + $0x350] sm:$0xf]  ;;  %v11990_v60 = vld [vmem:[%s18015_s7 + $0x2d4] sm:$0xf] }
 0x5ce   : > { %4071 = vmatmul.bf16.gmra.mxu3 %v10169_v12  ;;  %v9969_v50 = vor.u32 %v12007_v30, %v9968_v52  ;;  %v4034_v12 = vpop.f32.mrf.mxu3 }
 0x5d0   : > { %v3533_v56 = vpop.f32.mrf.mxu2  ;;  %v4191_v10 = vpop.f32.mrf.mxu0 }
 0x5d1   : > { %v3534_v49 = vadd.f32 %v3533_v56, %v13988_v31  ;;  %v9906_v31 = vld [vmem:[%s18015_s7 + $0x2d8] sm:$0xf0] }
 0x5d2   : > { %v14251_v9 = vpop.f32.mrf.mxu1  ;;  %v9909_v40 = vor.u32 %v11990_v60, %v9906_v31  ;;  %v10162_v56 = vld [vmem:[%s18015_s7 + $0xd8] sm:$0xf0] }
 0x5d3   : > { %v4023_v51 = vadd.f32 %v4022_v33, %v3534_v49  ;;  %4230 = vmatmul.bf16.gmra.mxu0 %v10157_v35  ;;  %v11925_v35 = vld [vmem:[%s18015_s7 + $0xd4] sm:$0xf] }
 0x5d5   : > { %v14253_v55 = vadd.f32 %v4191_v10, %v4023_v51  ;;  %v10165_v51 = vor.u32 %v11925_v35, %v10162_v56 }
 0x5d8   : > { %v3535_v33 = vpop.f32.mrf.mxu2  ;;  %v4193_v18 = vpop.f32.mrf.mxu0 }
 0x5d9   : > { %v3536_v2 = vadd.f32 %v3535_v33, %v14002_v37  ;;  %v10176_v37 = vld [vmem:[%s18015_s7 + $0xf0] sm:$0xf] }
 0x5da   : > { %v14268_v41 = vpop.f32.mrf.mxu1 }
 0x5db   : > { %v4025_v36 = vadd.f32 %v4024_v26, %v3536_v2  ;;  %v11930_v26 = vld [vmem:[%s18015_s7 + $0xf4] sm:$0xf0] }
 0x5dc   : > { %v10177_v49 = vor.u32 %v11930_v26, %v10176_v37 }
 0x5dd   : > { %v14276_v10 = vadd.f32 %v4193_v18, %v4025_v36  ;;  %3448 = vmatmul.bf16.gmra.mxu1 %v9969_v50  ;;  %3577 = vmatmul.bf16.gmra.mxu2 %v9909_v40  ;;  %v4037_v18 = vpop.f32.mrf.mxu3  ;;  %v9976_v50 = vld [vmem:[%s18015_s7 + $0x360] sm:$0xf]  ;;  %v12009_v40 = vld [vmem:[%s18015_s7 + $0x364] sm:$0xf0]  ;;  %v11992_v36 = vld [vmem:[%s18015_s7 + $0x2e4] sm:$0xf] }
 0x5de   : > { %4076 = vmatmul.bf16.gmra.mxu3 %v10177_v49  ;;  %v9977_v37 = vor.u32 %v12009_v40, %v9976_v50 }
 0x5e0   : > { %v3538_v52 = vpop.f32.mrf.mxu2  ;;  %v4196_v30 = vpop.f32.mrf.mxu0 }
 0x5e1   : > { %v3539_v60 = vadd.f32 %v3538_v52, %v14016_v20  ;;  %v9914_v20 = vld [vmem:[%s18015_s7 + $0x2e8] sm:$0xf0] }
 0x5e2   : > { %v14285_v31 = vpop.f32.mrf.mxu1  ;;  %v9917_v26 = vor.u32 %v11992_v36, %v9914_v20 }
 0x5e3   : > { %v4028_v33 = vadd.f32 %v4027_v25, %v3539_v60  ;;  %4235 = vmatmul.bf16.gmra.mxu0 %v10165_v51  ;;  %v10170_v60 = vld [vmem:[%s18015_s7 + $0xe8] sm:$0xf0] }
 0x5e5   : > { %v14287_v2 = vadd.f32 %v4196_v30, %v4028_v33  ;;  %v4039_v52 = vpop.f32.mrf.mxu3  ;;  %v11927_v30 = vld [vmem:[%s18015_s7 + $0xe4] sm:$0xf] }
 0x5e6   : > { %v10173_v40 = vor.u32 %v11927_v30, %v10170_v60  ;;  %v12011_v30 = vld [vmem:[%s18015_s7 + $0x374] sm:$0xf0]  ;;  %v11994_v60 = vld [vmem:[%s18015_s7 + $0x2f4] sm:$0xf] }
 0x5e8   : > { %v3540_v25 = vpop.f32.mrf.mxu2  ;;  %v4198_v35 = vpop.f32.mrf.mxu0 }
 0x5e9   : > { %v3541_v56 = vadd.f32 %v3540_v25, %v14030_v6  ;;  %v10184_v6 = vld [vmem:[%s18015_s7 + $0x100] sm:$0xf] }
 0x5ea   : > { %v14302_v49 = vpop.f32.mrf.mxu1 }
 0x5eb   : > { %v4030_v51 = vadd.f32 %v4029_v15, %v3541_v56  ;;  %v11932_v15 = vld [vmem:[%s18015_s7 + $0x104] sm:$0xf0] }
 0x5ec   : > { %v10185_v50 = vor.u32 %v11932_v15, %v10184_v6 }
 0x5ed   : > { %v14310_v33 = vadd.f32 %v4198_v35, %v4030_v51  ;;  %3453 = vmatmul.bf16.gmra.mxu1 %v9977_v37  ;;  %3582 = vmatmul.bf16.gmra.mxu2 %v9917_v26  ;;  %v4042_v37 = vpop.f32.mrf.mxu3  ;;  %v9984_v51 = vld [vmem:[%s18015_s7 + $0x370] sm:$0xf] }
 0x5ee   : > { %4081 = vmatmul.bf16.gmra.mxu3 %v10185_v50  ;;  %v9985_v50 = vor.u32 %v12011_v30, %v9984_v51 }
 0x5ef   : > { %18096 = vst [vmem:[#allocation26_spill] sm:$0xff] %v14310_v33 }
 0x5f0   : > { %v3543_v36 = vpop.f32.mrf.mxu2  ;;  %v4201_v20 = vpop.f32.mrf.mxu0 }
 0x5f1   : > { %v3544_v25 = vadd.f32 %v3543_v36, %v14044_v17  ;;  %v9922_v17 = vld [vmem:[%s18015_s7 + $0x2f8] sm:$0xf0] }
 0x5f2   : > { %v14319_v56 = vpop.f32.mrf.mxu1 }
 0x5f3   : > { %v4033_v35 = vadd.f32 %v4032_v42, %v3544_v25  ;;  %4240 = vmatmul.bf16.gmra.mxu0 %v10173_v40  ;;  %v9925_v40 = vor.u32 %v11994_v60, %v9922_v17 }
 0x5f5   : > { %v14321_v26 = vadd.f32 %v4201_v20, %v4033_v35  ;;  %v4044_v25 = vpop.f32.mrf.mxu3  ;;  %v11929_v35 = vld [vmem:[%s18015_s7 + $0xf4] sm:$0xf] }
 0x5f7   : > { %18097 = vst [vmem:[#allocation27_spill] sm:$0xff] %v14321_v26  ;;  %v10178_v26 = vld [vmem:[%s18015_s7 + $0xf8] sm:$0xf0] }
 0x5f8   : > { %v3545_v42 = vpop.f32.mrf.mxu2  ;;  %v4203_v6 = vpop.f32.mrf.mxu0  ;;  %v10181_v30 = vor.u32 %v11929_v35, %v10178_v26  ;;  %v12013_v26 = vld [vmem:[%s18015_s7 + $0x384] sm:$0xf0]  ;;  %v11996_v35 = vld [vmem:[%s18015_s7 + $0x304] sm:$0xf] }
 0x5f9   : > { %v3546_v15 = vadd.f32 %v3545_v42, %v14058_v43  ;;  %v10192_v43 = vld [vmem:[%s18015_s7 + $0x110] sm:$0xf] }
 0x5fa   : > { %v14336_v36 = vpop.f32.mrf.mxu1 }
 0x5fb   : > { %v4035_v20 = vadd.f32 %v4034_v12, %v3546_v15  ;;  %v11934_v12 = vld [vmem:[%s18015_s7 + $0x114] sm:$0xf0] }
 0x5fc   : > { %v10193_v51 = vor.u32 %v11934_v12, %v10192_v43 }
 0x5fd   : > { %v14344_v33 = vadd.f32 %v4203_v6, %v4035_v20  ;;  %3458 = vmatmul.bf16.gmra.mxu1 %v9985_v50  ;;  %3587 = vmatmul.bf16.gmra.mxu2 %v9925_v40  ;;  %v4047_v50 = vpop.f32.mrf.mxu3  ;;  %v9992_v20 = vld [vmem:[%s18015_s7 + $0x380] sm:$0xf] }
 0x5fe   : > { %4086 = vmatmul.bf16.gmra.mxu3 %v10193_v51  ;;  %v9993_v51 = vor.u32 %v12013_v26, %v9992_v20 }
 0x5ff   : > { %18098 = vst [vmem:[#allocation28_spill] sm:$0xff] %v14344_v33 }
 0x600   : > { %v3548_v60 = vpop.f32.mrf.mxu2  ;;  %v4206_v17 = vpop.f32.mrf.mxu0 }
 0x601   : > { %v3549_v42 = vadd.f32 %v3548_v60, %v14072_v22  ;;  %v9930_v22 = vld [vmem:[%s18015_s7 + $0x308] sm:$0xf0] }
 0x602   : > { %v14353_v15 = vpop.f32.mrf.mxu1 }
 0x603   : > { %v4038_v6 = vadd.f32 %v4037_v18, %v3549_v42  ;;  %4245 = vmatmul.bf16.gmra.mxu0 %v10181_v30  ;;  %v9933_v30 = vor.u32 %v11996_v35, %v9930_v22 }
 0x605   : > { %v14355_v40 = vadd.f32 %v4206_v17, %v4038_v6  ;;  %v4049_v42 = vpop.f32.mrf.mxu3  ;;  %v11931_v6 = vld [vmem:[%s18015_s7 + $0x104] sm:$0xf] }
 0x607   : > { %18099 = vst [vmem:[#allocation29_spill] sm:$0xff] %v14355_v40  ;;  %v10186_v40 = vld [vmem:[%s18015_s7 + $0x108] sm:$0xf0] }
 0x608   : > { %v3550_v18 = vpop.f32.mrf.mxu2  ;;  %v4208_v43 = vpop.f32.mrf.mxu0  ;;  %v10189_v26 = vor.u32 %v11931_v6, %v10186_v40  ;;  %v12015_v40 = vld [vmem:[%s18015_s7 + $0x394] sm:$0xf0]  ;;  %v11998_v6 = vld [vmem:[%s18015_s7 + $0x314] sm:$0xf] }
 0x609   : > { %v3551_v12 = vadd.f32 %v3550_v18, %v14086_v34  ;;  %v10200_v34 = vld [vmem:[%s18015_s7 + $0x120] sm:$0xf] }
 0x60a   : > { %v14370_v60 = vpop.f32.mrf.mxu1 }
 0x60b   : > { %v4040_v17 = vadd.f32 %v4039_v52, %v3551_v12  ;;  %v11936_v52 = vld [vmem:[%s18015_s7 + $0x124] sm:$0xf0] }
 0x60c   : > { %v10201_v20 = vor.u32 %v11936_v52, %v10200_v34 }
 0x60d   : > { %v14378_v33 = vadd.f32 %v4208_v43, %v4040_v17  ;;  %3463 = vmatmul.bf16.gmra.mxu1 %v9993_v51  ;;  %3592 = vmatmul.bf16.gmra.mxu2 %v9933_v30  ;;  %v4052_v51 = vpop.f32.mrf.mxu3  ;;  %v10000_v17 = vld [vmem:[%s18015_s7 + $0x390] sm:$0xf] }
 0x60e   : > { %4091 = vmatmul.bf16.gmra.mxu3 %v10201_v20  ;;  %v10001_v20 = vor.u32 %v12015_v40, %v10000_v17 }
 0x60f   : > { %18100 = vst [vmem:[#allocation30_spill] sm:$0xff] %v14378_v33 }
 0x610   : > { %v3553_v35 = vpop.f32.mrf.mxu2  ;;  %v4211_v22 = vpop.f32.mrf.mxu0 }
 0x611   : > { %v3554_v18 = vadd.f32 %v3553_v35, %v14100_v27  ;;  %v9938_v27 = vld [vmem:[%s18015_s7 + $0x318] sm:$0xf0] }
 0x612   : > { %v14387_v12 = vpop.f32.mrf.mxu1 }
 0x613   : > { %v4043_v43 = vadd.f32 %v4042_v37, %v3554_v18  ;;  %4250 = vmatmul.bf16.gmra.mxu0 %v10189_v26  ;;  %v9941_v26 = vor.u32 %v11998_v6, %v9938_v27 }
 0x615   : > { %v14389_v30 = vadd.f32 %v4211_v22, %v4043_v43  ;;  %v4054_v18 = vpop.f32.mrf.mxu3  ;;  %v11933_v43 = vld [vmem:[%s18015_s7 + $0x114] sm:$0xf] }
 0x617   : > { %18101 = vst [vmem:[#allocation31_spill] sm:$0xff] %v14389_v30  ;;  %v10194_v30 = vld [vmem:[%s18015_s7 + $0x118] sm:$0xf0] }
 0x618   : > { %v3555_v37 = vpop.f32.mrf.mxu2  ;;  %v4213_v34 = vpop.f32.mrf.mxu0  ;;  %v10197_v40 = vor.u32 %v11933_v43, %v10194_v30  ;;  %v12017_v30 = vld [vmem:[%s18015_s7 + $0x3a4] sm:$0xf0]  ;;  %v12000_v43 = vld [vmem:[%s18015_s7 + $0x324] sm:$0xf] }
 0x619   : > { %v3556_v52 = vadd.f32 %v3555_v37, %v14115_v38  ;;  %v10208_v38 = vld [vmem:[%s18015_s7 + $0x130] sm:$0xf] }
 0x61a   : > { %v14404_v35 = vpop.f32.mrf.mxu1 }
 0x61b   : > { %v4045_v22 = vadd.f32 %v4044_v25, %v3556_v52  ;;  %v11938_v25 = vld [vmem:[%s18015_s7 + $0x134] sm:$0xf0] }
 0x61c   : > { %v10209_v17 = vor.u32 %v11938_v25, %v10208_v38 }
 0x61d   : > { %v14412_v33 = vadd.f32 %v4213_v34, %v4045_v22  ;;  %3468 = vmatmul.bf16.gmra.mxu1 %v10001_v20  ;;  %3597 = vmatmul.bf16.gmra.mxu2 %v9941_v26  ;;  %v10008_v22 = vld [vmem:[%s18015_s7 + $0x3a0] sm:$0xf] }
 0x61e   : > { %4096 = vmatmul.bf16.gmra.mxu3 %v10209_v17  ;;  %v10009_v17 = vor.u32 %v12017_v30, %v10008_v22 }
 0x61f   : > { %18102 = vst [vmem:[#allocation32_spill] sm:$0xff] %v14412_v33 }
 0x620   : > { %v3558_v6 = vpop.f32.mrf.mxu2  ;;  %v4216_v27 = vpop.f32.mrf.mxu0 }
 0x621   : > { %v3559_v37 = vadd.f32 %v3558_v6, %v14132_v58  ;;  %v4057_v20 = vpop.f32.mrf.mxu3  ;;  %v9946_v58 = vld [vmem:[%s18015_s7 + $0x328] sm:$0xf0] }
 0x622   : > { %v14421_v52 = vpop.f32.mrf.mxu1 }
 0x623   : > { %v4048_v34 = vadd.f32 %v4047_v50, %v3559_v37  ;;  %4255 = vmatmul.bf16.gmra.mxu0 %v10197_v40  ;;  %v9949_v40 = vor.u32 %v12000_v43, %v9946_v58 }
 0x625   : > { %v14423_v26 = vadd.f32 %v4216_v27, %v4048_v34  ;;  %v11935_v34 = vld [vmem:[%s18015_s7 + $0x124] sm:$0xf] }
 0x627   : > { %18103 = vst [vmem:[#allocation33_spill] sm:$0xff] %v14423_v26  ;;  %v10202_v26 = vld [vmem:[%s18015_s7 + $0x128] sm:$0xf0] }
 0x628   : > { %v3560_v50 = vpop.f32.mrf.mxu2  ;;  %v4218_v38 = vpop.f32.mrf.mxu0  ;;  %v10205_v30 = vor.u32 %v11935_v34, %v10202_v26  ;;  %v12019_v26 = vld [vmem:[%s18015_s7 + $0x3b4] sm:$0xf0]  ;;  %v12002_v34 = vld [vmem:[%s18015_s7 + $0x334] sm:$0xf] }
 0x629   : > { %v3561_v25 = vadd.f32 %v3560_v50, %v14149_v8  ;;  %v4059_v37 = vpop.f32.mrf.mxu3  ;;  %v10216_v8 = vld [vmem:[%s18015_s7 + $0x140] sm:$0xf] }
 0x62a   : > { %v14438_v6 = vpop.f32.mrf.mxu1 }
 0x62b   : > { %v4050_v27 = vadd.f32 %v4049_v42, %v3561_v25  ;;  %v11940_v42 = vld [vmem:[%s18015_s7 + $0x144] sm:$0xf0] }
 0x62c   : > { %v10217_v22 = vor.u32 %v11940_v42, %v10216_v8 }
 0x62d   : > { %v14446_v33 = vadd.f32 %v4218_v38, %v4050_v27  ;;  %3473 = vmatmul.bf16.gmra.mxu1 %v10009_v17  ;;  %3602 = vmatmul.bf16.gmra.mxu2 %v9949_v40  ;;  %v10016_v27 = vld [vmem:[%s18015_s7 + $0x3b0] sm:$0xf] }
 0x62e   : > { %4101 = vmatmul.bf16.gmra.mxu3 %v10217_v22  ;;  %v10017_v22 = vor.u32 %v12019_v26, %v10016_v27 }
 0x62f   : > { %18104 = vst [vmem:[#allocation34_spill] sm:$0xff] %v14446_v33 }
 0x630   : > { %v3563_v43 = vpop.f32.mrf.mxu2  ;;  %v4221_v58 = vpop.f32.mrf.mxu0 }
 0x631   : > { %v3564_v50 = vadd.f32 %v3563_v43, %v14166_v54  ;;  %v4062_v17 = vpop.f32.mrf.mxu3  ;;  %v9954_v54 = vld [vmem:[%s18015_s7 + $0x338] sm:$0xf0] }
 0x632   : > { %v14455_v25 = vpop.f32.mrf.mxu1 }
 0x633   : > { %v4053_v38 = vadd.f32 %v4052_v51, %v3564_v50  ;;  %4260 = vmatmul.bf16.gmra.mxu0 %v10205_v30  ;;  %v9957_v30 = vor.u32 %v12002_v34, %v9954_v54 }
 0x635   : > { %v14457_v40 = vadd.f32 %v4221_v58, %v4053_v38  ;;  %v11937_v38 = vld [vmem:[%s18015_s7 + $0x134] sm:$0xf] }
 0x637   : > { %18105 = vst [vmem:[#allocation35_spill] sm:$0xff] %v14457_v40  ;;  %v10210_v40 = vld [vmem:[%s18015_s7 + $0x138] sm:$0xf0] }
 0x638   : > { %v3565_v51 = vpop.f32.mrf.mxu2  ;;  %v4223_v8 = vpop.f32.mrf.mxu0  ;;  %v10213_v26 = vor.u32 %v11937_v38, %v10210_v40  ;;  %v12021_v40 = vld [vmem:[%s18015_s7 + $0x3c4] sm:$0xf0]  ;;  %v12004_v38 = vld [vmem:[%s18015_s7 + $0x344] sm:$0xf] }
 0x639   : > { %v3566_v42 = vadd.f32 %v3565_v51, %v14183_v3  ;;  %v14474_v50 = vpop.f32.mrf.mxu3  ;;  %v10224_v3 = vld [vmem:[%s18015_s7 + $0x150] sm:$0xf] }
 0x63a   : > { %v14472_v43 = vpop.f32.mrf.mxu1 }
 0x63b   : > { %v4055_v58 = vadd.f32 %v4054_v18, %v3566_v42  ;;  %v11942_v18 = vld [vmem:[%s18015_s7 + $0x154] sm:$0xf0] }
 0x63c   : > { %v10225_v27 = vor.u32 %v11942_v18, %v10224_v3 }
 0x63d   : > { %v14482_v33 = vadd.f32 %v4223_v8, %v4055_v58  ;;  %3478 = vmatmul.bf16.gmra.mxu1 %v10017_v22  ;;  %3607 = vmatmul.bf16.gmra.mxu2 %v9957_v30  ;;  %v10024_v58 = vld [vmem:[%s18015_s7 + $0x3c0] sm:$0xf] }
 0x63e   : > { %4106 = vmatmul.bf16.gmra.mxu3 %v10225_v27  ;;  %v10025_v27 = vor.u32 %v12021_v40, %v10024_v58  ;;  %v11944_v58 = vld [vmem:[%s18015_s7 + $0x164] sm:$0xf0] }
 0x63f   : > { %18106 = vst [vmem:[#allocation36_spill] sm:$0xff] %v14482_v33 }
 0x640   : > { %v3568_v34 = vpop.f32.mrf.mxu2  ;;  %v4226_v54 = vpop.f32.mrf.mxu0 }
 0x641   : > { %v3569_v51 = vadd.f32 %v3568_v34, %v14200_v5  ;;  %v4067_v22 = vpop.f32.mrf.mxu3  ;;  %v9962_v5 = vld [vmem:[%s18015_s7 + $0x348] sm:$0xf0] }
 0x642   : > { %v14491_v42 = vpop.f32.mrf.mxu1 }
 0x643   : > { %v4058_v8 = vadd.f32 %v4057_v20, %v3569_v51  ;;  %4265 = vmatmul.bf16.gmra.mxu0 %v10213_v26  ;;  %v9965_v26 = vor.u32 %v12004_v38, %v9962_v5 }
 0x645   : > { %v14493_v30 = vadd.f32 %v4226_v54, %v4058_v8  ;;  %v11939_v8 = vld [vmem:[%s18015_s7 + $0x144] sm:$0xf] }
 0x647   : > { %18107 = vst [vmem:[#allocation37_spill] sm:$0xff] %v14493_v30  ;;  %v10218_v30 = vld [vmem:[%s18015_s7 + $0x148] sm:$0xf0] }
 0x648   : > { %v3570_v20 = vpop.f32.mrf.mxu2  ;;  %v4228_v3 = vpop.f32.mrf.mxu0  ;;  %v10221_v38 = vor.u32 %v11939_v8, %v10218_v30  ;;  %v12093_v30 = vld [vmem:[%s18014_s6 + $0x18] sm:$0xff] }
 0x649   : > { %v3571_v18 = vadd.f32 %v3570_v20, %v14217_v13  ;;  %v14510_v51 = vpop.f32.mrf.mxu3  ;;  %v12028_v13 = vld [vmem:[%s18014_s6 + $0x10] sm:$0xff]  ;;  %v12023_v8 = vld [vmem:[%s18015_s7 + $0x3d4] sm:$0xf0]  ;;  %5248 = vmatpush.bf16.msrb.mxu0 %v12093_v30 }
 0x64a   : > { %v14508_v34 = vpop.f32.mrf.mxu1  ;;  %4347 = vmatpush.bf16.msrb.mxu1 %v12028_v13 }
 0x64b   : > { %v4060_v54 = vadd.f32 %v4059_v37, %v3571_v18  ;;  %v10232_v37 = vld [vmem:[%s18015_s7 + $0x160] sm:$0xf] }
 0x64c   : > { %v10233_v40 = vor.u32 %v11944_v58, %v10232_v37 }
 0x64d   : > { %v14518_v33 = vadd.f32 %v4228_v3, %v4060_v54  ;;  %3483 = vmatmul.bf16.gmra.mxu1 %v10025_v27  ;;  %3612 = vmatmul.bf16.gmra.mxu2 %v9965_v26 }
 0x64e   : > { %4111 = vmatmul.bf16.gmra.mxu3 %v10233_v40 }
 0x64f   : > { %18108 = vst [vmem:[#allocation38_spill] sm:$0xff] %v14518_v33  ;;  %v10032_v33 = vld [vmem:[%s18015_s7 + $0x3d0] sm:$0xf] }
 0x650   : > { %v3573_v5 = vpop.f32.mrf.mxu2  ;;  %v4231_v20 = vpop.f32.mrf.mxu0  ;;  %v10033_v40 = vor.u32 %v12023_v8, %v10032_v33  ;;  %v11946_v33 = vld [vmem:[%s18015_s7 + $0x174] sm:$0xf0] }
 0x651   : > { %v3574_v3 = vadd.f32 %v3573_v5, %v14234_v29  ;;  %v4072_v26 = vpop.f32.mrf.mxu3  ;;  %v12006_v29 = vld [vmem:[%s18015_s7 + $0x354] sm:$0xf] }
 0x652   : > { %v14530_v18 = vpop.f32.mrf.mxu1 }
 0x653   : > { %18109 = vst [vmem:[#allocation39_spill] sm:$0xff] %v14530_v18  ;;  %v4063_v27 = vadd.f32 %v4062_v17, %v3574_v3  ;;  %4270 = vmatmul.bf16.gmra.mxu0 %v10221_v38  ;;  %v9970_v17 = vld [vmem:[%s18015_s7 + $0x358] sm:$0xf0] }
 0x654   : > { %v9973_v38 = vor.u32 %v12006_v29, %v9970_v17  ;;  %v10226_v18 = vld [vmem:[%s18015_s7 + $0x158] sm:$0xf0] }
 0x655   : > { %v14532_v54 = vadd.f32 %v4231_v20, %v4063_v27  ;;  %v11941_v27 = vld [vmem:[%s18015_s7 + $0x154] sm:$0xf] }
 0x656   : > { %v10229_v8 = vor.u32 %v11941_v27, %v10226_v18  ;;  %v12025_v18 = vld [vmem:[%s18015_s7 + $0x3e4] sm:$0xf0]  ;;  %v12008_v27 = vld [vmem:[%s18015_s7 + $0x364] sm:$0xf] }
 0x658   : > { %v3575_v13 = vpop.f32.mrf.mxu2  ;;  %v4233_v37 = vpop.f32.mrf.mxu0 }
 0x659   : > { %v3576_v58 = vadd.f32 %v3575_v13, %v14251_v9  ;;  %v4074_v3 = vpop.f32.mrf.mxu3  ;;  %v10240_v9 = vld [vmem:[%s18015_s7 + $0x170] sm:$0xf] }
 0x65a   : > { %v14550_v5 = vpop.f32.mrf.mxu1 }
 0x65b   : > { %v4065_v20 = vadd.f32 %v14474_v50, %v3576_v58  ;;  %v10241_v50 = vor.u32 %v11946_v33, %v10240_v9 }
 0x65d   : > { %v14559_v30 = vadd.f32 %v4233_v37, %v4065_v20  ;;  %3488 = vmatmul.bf16.gmra.mxu1 %v10033_v40  ;;  %3617 = vmatmul.bf16.gmra.mxu2 %v9973_v38  ;;  %v10040_v20 = vld [vmem:[%s18015_s7 + $0x3e0] sm:$0xf] }
 0x65e   : > { %4116 = vmatmul.bf16.gmra.mxu3 %v10241_v50  ;;  %v10041_v50 = vor.u32 %v12025_v18, %v10040_v20 }
 0x660   : > { %v3578_v29 = vpop.f32.mrf.mxu2  ;;  %v4236_v17 = vpop.f32.mrf.mxu0 }
 0x661   : > { %v3579_v13 = vadd.f32 %v3578_v29, %v14268_v41  ;;  %v4077_v40 = vpop.f32.mrf.mxu3  ;;  %v9978_v41 = vld [vmem:[%s18015_s7 + $0x368] sm:$0xf0] }
 0x662   : > { %v14568_v58 = vpop.f32.mrf.mxu1 }
 0x663   : > { %18110 = vst [vmem:[#allocation40_spill] sm:$0xff] %v14568_v58  ;;  %v4068_v37 = vadd.f32 %v4067_v22, %v3579_v13  ;;  %4275 = vmatmul.bf16.gmra.mxu0 %v10229_v8  ;;  %v9981_v8 = vor.u32 %v12008_v27, %v9978_v41  ;;  %v10234_v58 = vld [vmem:[%s18015_s7 + $0x168] sm:$0xf0] }
 0x665   : > { %v14570_v38 = vadd.f32 %v4236_v17, %v4068_v37  ;;  %v11943_v37 = vld [vmem:[%s18015_s7 + $0x164] sm:$0xf] }
 0x666   : > { %v10237_v18 = vor.u32 %v11943_v37, %v10234_v58  ;;  %v12027_v58 = vld [vmem:[%s18015_s7 + $0x3f4] sm:$0xf0]  ;;  %v12010_v37 = vld [vmem:[%s18015_s7 + $0x374] sm:$0xf] }
 0x667   : > { %18111 = vst [vmem:[#allocation41_spill] sm:$0xff] %v14570_v38 }
 0x668   : > { %v3580_v22 = vpop.f32.mrf.mxu2  ;;  %v4238_v9 = vpop.f32.mrf.mxu0 }
 0x669   : > { %v3581_v33 = vadd.f32 %v3580_v22, %v14285_v31  ;;  %v4079_v13 = vpop.f32.mrf.mxu3  ;;  %v10248_v31 = vld [vmem:[%s18015_s7 + $0x180] sm:$0xf] }
 0x66a   : > { %v14585_v29 = vpop.f32.mrf.mxu1 }
 0x66b   : > { %v4070_v17 = vadd.f32 %v14510_v51, %v3581_v33  ;;  %v11948_v51 = vld [vmem:[%s18015_s7 + $0x184] sm:$0xf0] }
 0x66c   : > { %v10249_v20 = vor.u32 %v11948_v51, %v10248_v31 }
 0x66d   : > { %v14594_v38 = vadd.f32 %v4238_v9, %v4070_v17  ;;  %3493 = vmatmul.bf16.gmra.mxu1 %v10041_v50  ;;  %3622 = vmatmul.bf16.gmra.mxu2 %v9981_v8  ;;  %v10048_v17 = vld [vmem:[%s18015_s7 + $0x3f0] sm:$0xf] }
 0x66e   : > { %4121 = vmatmul.bf16.gmra.mxu3 %v10249_v20  ;;  %v10049_v20 = vor.u32 %v12027_v58, %v10048_v17 }
 0x670   : > { %v3583_v27 = vpop.f32.mrf.mxu2  ;;  %v4241_v41 = vpop.f32.mrf.mxu0 }
 0x671   : > { %v3584_v22 = vadd.f32 %v3583_v27, %v14302_v49  ;;  %v4082_v50 = vpop.f32.mrf.mxu3  ;;  %v9986_v49 = vld [vmem:[%s18015_s7 + $0x378] sm:$0xf0] }
 0x672   : > { %v14603_v33 = vpop.f32.mrf.mxu1 }
 0x673   : > { %18112 = vst [vmem:[#allocation42_spill] sm:$0xff] %v14603_v33  ;;  %v4073_v9 = vadd.f32 %v4072_v26, %v3584_v22  ;;  %4280 = vmatmul.bf16.gmra.mxu0 %v10237_v18  ;;  %v9989_v18 = vor.u32 %v12010_v37, %v9986_v49  ;;  %v10242_v33 = vld [vmem:[%s18015_s7 + $0x178] sm:$0xf0] }
 0x675   : > { %v14605_v8 = vadd.f32 %v4241_v41, %v4073_v9  ;;  %v11945_v9 = vld [vmem:[%s18015_s7 + $0x174] sm:$0xf] }
 0x676   : > { %v10245_v58 = vor.u32 %v11945_v9, %v10242_v33  ;;  %v9994_v33 = vld [vmem:[%s18015_s7 + $0x388] sm:$0xf0] }
 0x677   : > { %18113 = vst [vmem:[#allocation43_spill] sm:$0xff] %v14605_v8 }
 0x678   : > { %v3585_v26 = vpop.f32.mrf.mxu2  ;;  %v4243_v31 = vpop.f32.mrf.mxu0 }
 0x679   : > { %v3586_v51 = vadd.f32 %v3585_v26, %v14319_v56  ;;  %v4084_v22 = vpop.f32.mrf.mxu3  ;;  %v10256_v56 = vld [vmem:[%s18015_s7 + $0x190] sm:$0xf] }
 0x67a   : > { %v14620_v27 = vpop.f32.mrf.mxu1 }
 0x67b   : > { %v4075_v41 = vadd.f32 %v4074_v3, %v3586_v51  ;;  %v11950_v3 = vld [vmem:[%s18015_s7 + $0x194] sm:$0xf0] }
 0x67c   : > { %v10257_v17 = vor.u32 %v11950_v3, %v10256_v56 }
 0x67d   : > { %v14628_v8 = vadd.f32 %v4243_v31, %v4075_v41  ;;  %3498 = vmatmul.bf16.gmra.mxu1 %v10049_v20  ;;  %3627 = vmatmul.bf16.gmra.mxu2 %v9989_v18  ;;  %v12012_v41 = vld [vmem:[%s18015_s7 + $0x384] sm:$0xf] }
 0x67e   : > { %4126 = vmatmul.bf16.gmra.mxu3 %v10257_v17 }
 0x680   : > { %v3588_v37 = vpop.f32.mrf.mxu2  ;;  %v4246_v49 = vpop.f32.mrf.mxu0 }
 0x681   : > { %v3589_v26 = vadd.f32 %v3588_v37, %v14336_v36  ;;  %v4087_v20 = vpop.f32.mrf.mxu3  ;;  %v9997_v36 = vor.u32 %v12012_v41, %v9994_v33  ;;  %v11947_v37 = vld [vmem:[%s18015_s7 + $0x184] sm:$0xf] }
 0x682   : > { %v14637_v51 = vpop.f32.mrf.mxu1 }
 0x683   : > { %18114 = vst [vmem:[#allocation44_spill] sm:$0xff] %v14637_v51  ;;  %v4078_v31 = vadd.f32 %v4077_v40, %v3589_v26  ;;  %4285 = vmatmul.bf16.gmra.mxu0 %v10245_v58 }
 0x685   : > { %v14639_v18 = vadd.f32 %v4246_v49, %v4078_v31  ;;  %v10250_v49 = vld [vmem:[%s18015_s7 + $0x188] sm:$0xf0] }
 0x686   : > { %v10253_v41 = vor.u32 %v11947_v37, %v10250_v49  ;;  %v10002_v37 = vld [vmem:[%s18015_s7 + $0x398] sm:$0xf0] }
 0x688   : > { %v3590_v9 = vpop.f32.mrf.mxu2  ;;  %v4248_v56 = vpop.f32.mrf.mxu0 }
 0x689   : > { %v3591_v3 = vadd.f32 %v3590_v9, %v14353_v15  ;;  %v4089_v58 = vpop.f32.mrf.mxu3  ;;  %v10264_v15 = vld [vmem:[%s18015_s7 + $0x1a0] sm:$0xf] }
 0x68a   : > { %v14648_v17 = vpop.f32.mrf.mxu1 }
 0x68b   : > { %v4080_v40 = vadd.f32 %v4079_v13, %v3591_v3  ;;  %v11952_v13 = vld [vmem:[%s18015_s7 + $0x1a4] sm:$0xf0] }
 0x68c   : > { %v10265_v31 = vor.u32 %v11952_v13, %v10264_v15 }
 0x68d   : > { %v14656_v26 = vadd.f32 %v4248_v56, %v4080_v40  ;;  %3632 = vmatmul.bf16.gmra.mxu2 %v9997_v36  ;;  %10316 = vmatmul.msk.bf16.vlgmr.msrb.gmra.mxu1 %vm2618_vm1, %v13517_v32 }
 0x68e   : > { %4131 = vmatmul.bf16.gmra.mxu3 %v10265_v31 }
 0x68f   : > { %18115 = vst [vmem:[#allocation45_spill] sm:$0xff] %v14656_v26  ;;  %v12014_v26 = vld [vmem:[%s18015_s7 + $0x394] sm:$0xf] }
 0x690   : > { %v3593_v33 = vpop.f32.mrf.mxu2  ;;  %v4251_v9 = vpop.f32.mrf.mxu0 }
 0x691   : > { %v3594_v56 = vadd.f32 %v3593_v33, %v14370_v60  ;;  %v4092_v40 = vpop.f32.mrf.mxu3  ;;  %v10005_v60 = vor.u32 %v12014_v26, %v10002_v37  ;;  %v11949_v33 = vld [vmem:[%s18015_s7 + $0x194] sm:$0xf] }
 0x692   : > { %v14667_v3 = vpop.f32.mrf.mxu1 }
 0x693   : > { %18116 = vst [vmem:[#allocation46_spill] sm:$0xff] %v14667_v3  ;;  %v4083_v36 = vadd.f32 %v4082_v50, %v3594_v56  ;;  %4290 = vmatmul.bf16.gmra.mxu0 %v10253_v41 }
 0x695   : > { %v14669_v51 = vadd.f32 %v4251_v9, %v4083_v36  ;;  %v10258_v9 = vld [vmem:[%s18015_s7 + $0x198] sm:$0xf0] }
 0x696   : > { %v10261_v36 = vor.u32 %v11949_v33, %v10258_v9  ;;  %v10010_v33 = vld [vmem:[%s18015_s7 + $0x3a8] sm:$0xf0] }
 0x697   : > { %18117 = vst [vmem:[#allocation47_spill] sm:$0xff] %v14669_v51 }
 0x698   : > { %v3595_v49 = vpop.f32.mrf.mxu2  ;;  %v4253_v15 = vpop.f32.mrf.mxu0 }
 0x699   : > { %v3596_v13 = vadd.f32 %v3595_v49, %v14387_v12  ;;  %v4094_v41 = vpop.f32.mrf.mxu3  ;;  %v10272_v12 = vld [vmem:[%s18015_s7 + $0x1b0] sm:$0xf] }
 0x69a   : > { %v14678_v31 = vpop.f32.mrf.mxu1 }
 0x69b   : > { %v4085_v50 = vadd.f32 %v4084_v22, %v3596_v13  ;;  %v11954_v22 = vld [vmem:[%s18015_s7 + $0x1b4] sm:$0xf0] }
 0x69c   : > { %v10273_v26 = vor.u32 %v11954_v22, %v10272_v12 }
 0x69d   : > { %v14686_v56 = vadd.f32 %v4253_v15, %v4085_v50  ;;  %3637 = vmatmul.bf16.gmra.mxu2 %v10005_v60  ;;  %10317 = vmatmul.msk.bf16.gmra.mxu1 %vm2618_vm1, %v13528_v48 }
 0x69e   : > { %4136 = vmatmul.bf16.gmra.mxu3 %v10273_v26 }
 0x69f   : > { %18118 = vst [vmem:[#allocation48_spill] sm:$0xff] %v14686_v56  ;;  %v12016_v56 = vld [vmem:[%s18015_s7 + $0x3a4] sm:$0xf] }
 0x6a0   : > { %v3598_v37 = vpop.f32.mrf.mxu2  ;;  %v4256_v49 = vpop.f32.mrf.mxu0 }
 0x6a1   : > { %v3599_v15 = vadd.f32 %v3598_v37, %v14404_v35  ;;  %v4097_v50 = vpop.f32.mrf.mxu3  ;;  %v10013_v35 = vor.u32 %v12016_v56, %v10010_v33  ;;  %v11951_v37 = vld [vmem:[%s18015_s7 + $0x1a4] sm:$0xf] }
 0x6a2   : > { %v14697_v13 = vpop.f32.mrf.mxu1 }
 0x6a3   : > { %18119 = vst [vmem:[#allocation49_spill] sm:$0xff] %v14697_v13  ;;  %v4088_v60 = vadd.f32 %v4087_v20, %v3599_v15  ;;  %4295 = vmatmul.bf16.gmra.mxu0 %v10261_v36 }
 0x6a5   : > { %v14699_v3 = vadd.f32 %v4256_v49, %v4088_v60  ;;  %v10266_v49 = vld [vmem:[%s18015_s7 + $0x1a8] sm:$0xf0] }
 0x6a6   : > { %v10269_v60 = vor.u32 %v11951_v37, %v10266_v49  ;;  %v10018_v37 = vld [vmem:[%s18015_s7 + $0x3b8] sm:$0xf0] }
 0x6a7   : > { %18120 = vst [vmem:[#allocation50_spill] sm:$0xff] %v14699_v3  ;;  %v18203_v3 = vld [vmem:[#allocation31_spill] sm:$0xff] }
 0x6a8   : > { %v3600_v9 = vpop.f32.mrf.mxu2  ;;  %v4258_v12 = vpop.f32.mrf.mxu0 }
 0x6a9   : > { %v3601_v22 = vadd.f32 %v3600_v9, %v14421_v52  ;;  %v4099_v36 = vpop.f32.mrf.mxu3  ;;  %v10280_v52 = vld [vmem:[%s18015_s7 + $0x1c0] sm:$0xf] }
 0x6aa   : > { %v14708_v26 = vpop.f32.mrf.mxu1 }
 0x6ab   : > { %v4090_v20 = vadd.f32 %v4089_v58, %v3601_v22  ;;  %v11956_v58 = vld [vmem:[%s18015_s7 + $0x1c4] sm:$0xf0] }
 0x6ac   : > { %v10281_v56 = vor.u32 %v11956_v58, %v10280_v52 }
 0x6ad   : > { %v14716_v15 = vadd.f32 %v4258_v12, %v4090_v20  ;;  %3642 = vmatmul.bf16.gmra.mxu2 %v10013_v35  ;;  %10318 = vmatmul.msk.bf16.gmra.mxu1 %vm2618_vm1, %v13539_v14 }
 0x6ae   : > { %4141 = vmatmul.bf16.gmra.mxu3 %v10281_v56 }
 0x6af   : > { %18121 = vst [vmem:[#allocation51_spill] sm:$0xff] %v14716_v15  ;;  %v12018_v15 = vld [vmem:[%s18015_s7 + $0x3b4] sm:$0xf] }
 0x6b0   : > { %v3603_v33 = vpop.f32.mrf.mxu2  ;;  %v4261_v9 = vpop.f32.mrf.mxu0 }
 0x6b1   : > { %v3604_v12 = vadd.f32 %v3603_v33, %v14438_v6  ;;  %v4102_v20 = vpop.f32.mrf.mxu3  ;;  %v10021_v6 = vor.u32 %v12018_v15, %v10018_v37  ;;  %v11953_v33 = vld [vmem:[%s18015_s7 + $0x1b4] sm:$0xf] }
 0x6b2   : > { %v14727_v22 = vpop.f32.mrf.mxu1 }
 0x6b3   : > { %18122 = vst [vmem:[#allocation52_spill] sm:$0xff] %v14727_v22  ;;  %v4093_v35 = vadd.f32 %v4092_v40, %v3604_v12  ;;  %4300 = vmatmul.bf16.gmra.mxu0 %v10269_v60 }
 0x6b5   : > { %v14729_v13 = vadd.f32 %v4261_v9, %v4093_v35  ;;  %v10274_v9 = vld [vmem:[%s18015_s7 + $0x1b8] sm:$0xf0] }
 0x6b6   : > { %v10277_v35 = vor.u32 %v11953_v33, %v10274_v9  ;;  %v10026_v33 = vld [vmem:[%s18015_s7 + $0x3c8] sm:$0xf0] }
 0x6b7   : > { %18123 = vst [vmem:[#allocation53_spill] sm:$0xff] %v14729_v13 }
 0x6b8   : > { %v3605_v49 = vpop.f32.mrf.mxu2  ;;  %v4263_v52 = vpop.f32.mrf.mxu0 }
 0x6b9   : > { %v3606_v58 = vadd.f32 %v3605_v49, %v14455_v25  ;;  %v14740_v60 = vpop.f32.mrf.mxu3  ;;  %v10288_v25 = vld [vmem:[%s18015_s7 + $0x1d0] sm:$0xf] }
 0x6ba   : > { %v14738_v56 = vpop.f32.mrf.mxu1  ;;  %18124 = vst [vmem:[#allocation54_spill] sm:$0xff] %v14740_v60  ;;  %v12020_v60 = vld [vmem:[%s18015_s7 + $0x3c4] sm:$0xf] }
 0x6bb   : > { %v4095_v40 = vadd.f32 %v4094_v41, %v3606_v58  ;;  %v11958_v41 = vld [vmem:[%s18015_s7 + $0x1d4] sm:$0xf0] }
 0x6bc   : > { %v10289_v15 = vor.u32 %v11958_v41, %v10288_v25 }
 0x6bd   : > { %v14748_v12 = vadd.f32 %v4263_v52, %v4095_v40  ;;  %3647 = vmatmul.bf16.gmra.mxu2 %v10021_v6  ;;  %10319 = vmatmul.msk.bf16.gmra.mxu1 %vm2618_vm1, %v13550_v7 }
 0x6be   : > { %4146 = vmatmul.bf16.gmra.mxu3 %v10289_v15 }
 0x6bf   : > { %18125 = vst [vmem:[#allocation55_spill] sm:$0xff] %v14748_v12 }
 0x6c0   : > { %v3608_v37 = vpop.f32.mrf.mxu2  ;;  %v4266_v49 = vpop.f32.mrf.mxu0 }
 0x6c1   : > { %v3609_v52 = vadd.f32 %v3608_v37, %v14472_v43  ;;  %v4107_v40 = vpop.f32.mrf.mxu3  ;;  %v10029_v43 = vor.u32 %v12020_v60, %v10026_v33  ;;  %v11955_v37 = vld [vmem:[%s18015_s7 + $0x1c4] sm:$0xf] }
 0x6c2   : > { %v14759_v58 = vpop.f32.mrf.mxu1 }
 0x6c3   : > { %18126 = vst [vmem:[#allocation56_spill] sm:$0xff] %v14759_v58  ;;  %v4098_v6 = vadd.f32 %v4097_v50, %v3609_v52  ;;  %4305 = vmatmul.bf16.gmra.mxu0 %v10277_v35 }
 0x6c5   : > { %v14761_v22 = vadd.f32 %v4266_v49, %v4098_v6  ;;  %v10282_v49 = vld [vmem:[%s18015_s7 + $0x1c8] sm:$0xf0] }
 0x6c6   : > { %v10285_v6 = vor.u32 %v11955_v37, %v10282_v49  ;;  %v10034_v37 = vld [vmem:[%s18015_s7 + $0x3d8] sm:$0xf0] }
 0x6c7   : > { %18127 = vst [vmem:[#allocation57_spill] sm:$0xff] %v14761_v22 }
 0x6c8   : > { %v3610_v9 = vpop.f32.mrf.mxu2  ;;  %v4268_v25 = vpop.f32.mrf.mxu0 }
 0x6c9   : > { %v3611_v41 = vadd.f32 %v3610_v9, %v14491_v42  ;;  %v14772_v35 = vpop.f32.mrf.mxu3  ;;  %v10296_v42 = vld [vmem:[%s18015_s7 + $0x1e0] sm:$0xf] }
 0x6ca   : > { %v14770_v15 = vpop.f32.mrf.mxu1  ;;  %18128 = vst [vmem:[#allocation58_spill] sm:$0xff] %v14772_v35  ;;  %v12022_v35 = vld [vmem:[%s18015_s7 + $0x3d4] sm:$0xf] }
 0x6cb   : > { %v4100_v50 = vadd.f32 %v4099_v36, %v3611_v41  ;;  %v11960_v36 = vld [vmem:[%s18015_s7 + $0x1e4] sm:$0xf0] }
 0x6cc   : > { %v10297_v60 = vor.u32 %v11960_v36, %v10296_v42 }
 0x6cd   : > { %v14780_v52 = vadd.f32 %v4268_v25, %v4100_v50  ;;  %3652 = vmatmul.bf16.gmra.mxu2 %v10029_v43  ;;  %10320 = vmatmul.msk.bf16.gmra.mxu1 %vm2618_vm1, %v13562_v11 }
 0x6ce   : > { %4151 = vmatmul.bf16.gmra.mxu3 %v10297_v60  ;;  %v11957_v60 = vld [vmem:[%s18015_s7 + $0x1d4] sm:$0xf] }
 0x6cf   : > { %18129 = vst [vmem:[#allocation59_spill] sm:$0xff] %v14780_v52 }
 0x6d0   : > { %v3613_v33 = vpop.f32.mrf.mxu2  ;;  %v4271_v9 = vpop.f32.mrf.mxu0 }
 0x6d1   : > { %v3614_v25 = vadd.f32 %v3613_v33, %v14508_v34  ;;  %v4112_v50 = vpop.f32.mrf.mxu3  ;;  %v10037_v34 = vor.u32 %v12022_v35, %v10034_v37  ;;  %v10304_v35 = vld [vmem:[%s18015_s7 + $0x1f0] sm:$0xf]  ;;  %v11962_v33 = vld [vmem:[%s18015_s7 + $0x1f4] sm:$0xf0] }
 0x6d2   : > { %v14791_v41 = vpop.f32.mrf.mxu1 }
 0x6d3   : > { %18130 = vst [vmem:[#allocation60_spill] sm:$0xff] %v14791_v41  ;;  %v4103_v43 = vadd.f32 %v4102_v20, %v3614_v25  ;;  %4310 = vmatmul.bf16.gmra.mxu0 %v10285_v6  ;;  %v10290_v6 = vld [vmem:[%s18015_s7 + $0x1d8] sm:$0xf0] }
 0x6d4   : > { %v10293_v25 = vor.u32 %v11957_v60, %v10290_v6  ;;  %v10042_v60 = vld [vmem:[%s18015_s7 + $0x3e8] sm:$0xf0] }
 0x6d5   : > { %v14793_v58 = vadd.f32 %v4271_v9, %v4103_v43  ;;  %v10305_v9 = vor.u32 %v11962_v33, %v10304_v35 }
 0x6d7   : > { %18131 = vst [vmem:[#allocation61_spill] sm:$0xff] %v14793_v58  ;;  %v12024_v58 = vld [vmem:[%s18015_s7 + $0x3e4] sm:$0xf] }
 0x6d8   : > { %v14801_v49 = vpop.f32.mrf.mxu2  ;;  %v14803_v42 = vpop.f32.mrf.mxu0 }
 0x6d9   : > { %18132 = vst [vmem:[#allocation62_spill] sm:$0xff] %v14801_v49  ;;  %v14807_v20 = vpop.f32.mrf.mxu3 }
 0x6da   : > { %18133 = vst [vmem:[#allocation63_spill] sm:$0xff] %v14803_v42  ;;  %v14805_v36 = vpop.f32.mrf.mxu1 }
 0x6db   : > { %18134 = vst [vmem:[#allocation64_spill] sm:$0xff] %v14807_v20 }
 0x6dd   : > { %3657 = vmatmul.bf16.gmra.mxu2 %v10037_v34  ;;  %10321 = vmatmul.msk.bf16.gmra.mxu1 %vm2618_vm1, %v13574_v0 }
 0x6de   : > { %4156 = vmatmul.bf16.gmra.mxu3 %v10305_v9  ;;  %v10298_v9 = vld [vmem:[%s18015_s7 + $0x1e8] sm:$0xf0] }
 0x6e0   : > { %v3618_v43 = vpop.f32.mrf.mxu2  ;;  %v4276_v37 = vpop.f32.mrf.mxu0 }
 0x6e1   : > { %v3619_v41 = vadd.f32 %v3618_v43, %v14550_v5  ;;  %v4117_v42 = vpop.f32.mrf.mxu3  ;;  %v10045_v5 = vor.u32 %v12024_v58, %v10042_v60 }
 0x6e2   : > { %v14824_v20 = vpop.f32.mrf.mxu1 }
 0x6e3   : > { %18135 = vst [vmem:[#allocation65_spill] sm:$0xff] %v14824_v20  ;;  %v4108_v34 = vadd.f32 %v4107_v40, %v3619_v41  ;;  %4315 = vmatmul.bf16.gmra.mxu0 %v10293_v25  ;;  %v11959_v41 = vld [vmem:[%s18015_s7 + $0x1e4] sm:$0xf] }
 0x6e4   : > { %v10301_v25 = vor.u32 %v11959_v41, %v10298_v9 }
 0x6e5   : > { %v14826_v49 = vadd.f32 %v4276_v37, %v4108_v34 }
 0x6e7   : > { %18136 = vst [vmem:[#allocation66_spill] sm:$0xff] %v14826_v49 }
 0x6e8   : > { %v14834_v6 = vpop.f32.mrf.mxu2  ;;  %v14836_v35 = vpop.f32.mrf.mxu0 }
 0x6e9   : > { %18137 = vst [vmem:[#allocation67_spill] sm:$0xff] %v14834_v6  ;;  %v14840_v40 = vpop.f32.mrf.mxu3 }
 0x6ea   : > { %18138 = vst [vmem:[#allocation68_spill] sm:$0xff] %v14836_v35  ;;  %v14838_v33 = vpop.f32.mrf.mxu1  ;;  %v12026_v35 = vld [vmem:[%s18015_s7 + $0x3f4] sm:$0xf] }
 0x6eb   : > { %18139 = vst [vmem:[#allocation69_spill] sm:$0xff] %v14840_v40 }
 0x6ed   : > { %3662 = vmatmul.bf16.gmra.mxu2 %v10045_v5  ;;  %10322 = vmatmul.msk.bf16.gmra.mxu1 %vm2618_vm1, %v13586_v59  ;;  %v10050_v5 = vld [vmem:[%s18015_s7 + $0x3f8] sm:$0xf0] }
 0x6f0   : > { %v3623_v43 = vpop.f32.mrf.mxu2  ;;  %v4281_v37 = vpop.f32.mrf.mxu0 }
 0x6f1   : > { %v3624_v58 = vadd.f32 %v3623_v43, %v14585_v29  ;;  %v4122_v20 = vpop.f32.mrf.mxu3  ;;  %v10053_v29 = vor.u32 %v12026_v35, %v10050_v5 }
 0x6f2   : > { %v14851_v34 = vpop.f32.mrf.mxu1 }
 0x6f3   : > { %18140 = vst [vmem:[#allocation70_spill] sm:$0xff] %v14851_v34  ;;  %v4113_v60 = vadd.f32 %v4112_v50, %v3624_v58  ;;  %4320 = vmatmul.bf16.gmra.mxu0 %v10301_v25  ;;  %v11961_v50 = vld [vmem:[%s18015_s7 + $0x1f4] sm:$0xf]  ;;  %v10306_v25 = vld [vmem:[%s18015_s7 + $0x1f8] sm:$0xf0] }
 0x6f4   : > { %v10309_v58 = vor.u32 %v11961_v50, %v10306_v25 }
 0x6f5   : > { %v14853_v40 = vadd.f32 %v4281_v37, %v4113_v60 }
 0x6f7   : > { %18141 = vst [vmem:[#allocation71_spill] sm:$0xff] %v14853_v40 }
 0x6f8   : > { %v14861_v41 = vpop.f32.mrf.mxu2  ;;  %v14863_v9 = vpop.f32.mrf.mxu0 }
 0x6f9   : > { %18142 = vst [vmem:[#allocation72_spill] sm:$0xff] %v14861_v41  ;;  %v14875_v37 = vpop.f32.mrf.mxu3 }
 0x6fa   : > { %18143 = vst [vmem:[#allocation73_spill] sm:$0xff] %v14863_v9  ;;  %v14865_v43 = vpop.f32.mrf.mxu1 }
 0x6fb   : > { %18144 = vst [vmem:[#allocation74_spill] sm:$0xff] %v14875_v37 }
 0x6fd   : > { %3667 = vmatmul.bf16.gmra.mxu2 %v10053_v29  ;;  %10323 = vmatmul.msk.bf16.gmra.mxu1 %vm2618_vm1, %v13595_v4 }
 0x700   : > { %v3628_v60 = vpop.f32.mrf.mxu2  ;;  %v4286_v34 = vpop.f32.mrf.mxu0 }
 0x701   : > { %v3629_v35 = vadd.f32 %v3628_v60, %v14620_v27  ;;  %v4127_v6 = vpop.f32.mrf.mxu3 }
 0x702   : > { %v14878_v5 = vpop.f32.mrf.mxu1 }
 0x703   : > { %18145 = vst [vmem:[#allocation75_spill] sm:$0xff] %v14878_v5  ;;  %v4118_v9 = vadd.f32 %v4117_v42, %v3629_v35  ;;  %4325 = vmatmul.bf16.gmra.mxu0 %v10309_v58 }
 0x705   : > { %v14880_v41 = vadd.f32 %v4286_v34, %v4118_v9 }
 0x707   : > { %18146 = vst [vmem:[#allocation76_spill] sm:$0xff] %v14880_v41 }
 0x708   : > { %v14882_v40 = vpop.f32.mrf.mxu2  ;;  %v14884_v29 = vpop.f32.mrf.mxu0 }
 0x709   : > { %18147 = vst [vmem:[#allocation77_spill] sm:$0xff] %v14882_v40  ;;  %v14891_v60 = vpop.f32.mrf.mxu3 }
 0x70a   : > { %18148 = vst [vmem:[#allocation78_spill] sm:$0xff] %v14884_v29  ;;  %v14886_v49 = vpop.f32.mrf.mxu1 }
 0x70b   : > { %18149 = vst [vmem:[#allocation79_spill] sm:$0xff] %v14891_v60 }
 0x70d   : > { %10324 = vmatmul.msk.bf16.gmra.mxu1 %vm2618_vm1, %v13608_v44 }
 0x710   : > { %v3633_v50 = vpop.f32.mrf.mxu2  ;;  %v4291_v25 = vpop.f32.mrf.mxu0 }
 0x711   : > { %v3634_v27 = vadd.f32 %v3633_v50, %v14648_v17  ;;  %v4132_v17 = vpop.f32.mrf.mxu3 }
 0x712   : > { %v14893_v42 = vpop.f32.mrf.mxu1 }
 0x713   : > { %v4123_v34 = vadd.f32 %v4122_v20, %v3634_v27  ;;  %10658 = vmatmul.msk.bf16.vlgmr.msrb.gmra.mxu0 %vm2618_vm1, %v13517_v32 }
 0x715   : > { %v14899_v58 = vadd.f32 %v4291_v25, %v4123_v34 }
 0x717   : > { %18150 = vst [vmem:[#allocation80_spill] sm:$0xff] %v14899_v58 }
 0x718   : > { %v14901_v35 = vpop.f32.mrf.mxu2  ;;  %v14903_v5 = vpop.f32.mrf.mxu0 }
 0x719   : > { %18151 = vst [vmem:[#allocation81_spill] sm:$0xff] %v14901_v35  ;;  %v14918_v32 = vpop.f32.mrf.mxu3 }
 0x71a   : > { %18152 = vst [vmem:[#allocation82_spill] sm:$0xff] %v14903_v5  ;;  %v14905_v37 = vpop.f32.mrf.mxu1 }
 0x71b   : > { %18154 = vst [vmem:[#allocation84_spill] sm:$0xff] %v14918_v32 }
 0x71d   : > { %10325 = vmatmul.msk.bf16.gmra.mxu1 %vm2618_vm1, %v13629_v53 }
 0x720   : > { %v3638_v50 = vpop.f32.mrf.mxu2  ;;  %v4296_v20 = vpop.f32.mrf.mxu0 }
 0x721   : > { %v3639_v27 = vadd.f32 %v3638_v50, %v14678_v31  ;;  %v4137_v31 = vpop.f32.mrf.mxu3 }
 0x722   : > { %v14910_v9 = vpop.f32.mrf.mxu1 }
 0x723   : > { %v4128_v60 = vadd.f32 %v4127_v6, %v3639_v27  ;;  %10659 = vmatmul.msk.bf16.gmra.mxu0 %vm2618_vm1, %v13528_v48 }
 0x725   : > { %v14916_v34 = vadd.f32 %v4296_v20, %v4128_v60 }
 0x727   : > { %18153 = vst [vmem:[#allocation83_spill] sm:$0xff] %v14916_v34 }
 0x728   : > { %v14920_v5 = vpop.f32.mrf.mxu2  ;;  %v14922_v35 = vpop.f32.mrf.mxu0 }
 0x729   : > { %18155 = vst [vmem:[#allocation85_spill] sm:$0xff] %v14920_v5  ;;  %v14941_v5 = vpop.f32.mrf.mxu3 }
 0x72a   : > { %18156 = vst [vmem:[#allocation86_spill] sm:$0xff] %v14922_v35  ;;  %v14924_v29 = vpop.f32.mrf.mxu1 }
 0x72b   : > { %18160 = vst [vmem:[#allocation90_spill] sm:$0xff] %v14941_v5 }
 0x72d   : > { %10326 = vmatmul.msk.bf16.gmra.mxu1 %vm2618_vm1, %v13650_v61 }
 0x730   : > { %v3643_v6 = vpop.f32.mrf.mxu2  ;;  %v4301_v50 = vpop.f32.mrf.mxu0 }
 0x731   : > { %v3644_v27 = vadd.f32 %v3643_v6, %v14708_v26 }
 0x732   : > { %v14929_v25 = vpop.f32.mrf.mxu1 }
 0x733   : > { %v4133_v60 = vadd.f32 %v4132_v17, %v3644_v27  ;;  %10660 = vmatmul.msk.bf16.gmra.mxu0 %vm2618_vm1, %v13539_v14 }
 0x735   : > { %v14935_v48 = vadd.f32 %v4301_v50, %v4133_v60  ;;  %v4142_v60 = vpop.f32.mrf.mxu3 }
 0x737   : > { %18157 = vst [vmem:[#allocation87_spill] sm:$0xff] %v14935_v48 }
 0x738   : > { %v14937_v32 = vpop.f32.mrf.mxu2  ;;  %v14939_v35 = vpop.f32.mrf.mxu0 }
 0x739   : > { %18158 = vst [vmem:[#allocation88_spill] sm:$0xff] %v14937_v32 }
 0x73a   : > { %18159 = vst [vmem:[#allocation89_spill] sm:$0xff] %v14939_v35  ;;  %v14943_v41 = vpop.f32.mrf.mxu1 }
 0x73d   : > { %10327 = vmatmul.msk.bf16.gmra.mxu1 %vm2618_vm1, %v13671_v39 }
 0x740   : > { %v3648_v26 = vpop.f32.mrf.mxu2  ;;  %v4306_v17 = vpop.f32.mrf.mxu0 }
 0x741   : > { %v3649_v6 = vadd.f32 %v3648_v26, %v14738_v56  ;;  %v14962_v56 = vpop.f32.mrf.mxu3 }
 0x742   : > { %v14948_v27 = vpop.f32.mrf.mxu1  ;;  %18164 = vst [vmem:[#allocation94_spill] sm:$0xff] %v14962_v56 }
 0x743   : > { %v4138_v20 = vadd.f32 %v4137_v31, %v3649_v6  ;;  %10661 = vmatmul.msk.bf16.gmra.mxu0 %vm2618_vm1, %v13550_v7 }
 0x745   : > { %v14954_v14 = vadd.f32 %v4306_v17, %v4138_v20 }
 0x747   : > { %18161 = vst [vmem:[#allocation91_spill] sm:$0xff] %v14954_v14 }
 0x748   : > { %v14956_v5 = vpop.f32.mrf.mxu2  ;;  %v14958_v35 = vpop.f32.mrf.mxu0 }
 0x749   : > { %18162 = vst [vmem:[#allocation92_spill] sm:$0xff] %v14956_v5  ;;  %v4147_v17 = vpop.f32.mrf.mxu3 }
 0x74a   : > { %18163 = vst [vmem:[#allocation93_spill] sm:$0xff] %v14958_v35  ;;  %v4369_v32 = vpop.f32.mrf.mxu1 }
 0x74d   : > { %10328 = vmatmul.msk.bf16.gmra.mxu1 %vm2618_vm1, %v13692_v62 }
 0x750   : > { %v3653_v31 = vpop.f32.mrf.mxu2  ;;  %v4311_v26 = vpop.f32.mrf.mxu0 }
 0x751   : > { %v3654_v6 = vadd.f32 %v3653_v31, %v14770_v15  ;;  %v14976_v31 = vpop.f32.mrf.mxu3 }
 0x752   : > { %v4371_v50 = vpop.f32.mrf.mxu1  ;;  %18168 = vst [vmem:[#allocation98_spill] sm:$0xff] %v14976_v31 }
 0x753   : > { %v4143_v40 = vadd.f32 %v4142_v60, %v3654_v6  ;;  %10662 = vmatmul.msk.bf16.gmra.mxu0 %vm2618_vm1, %v13562_v11 }
 0x755   : > { %v14967_v20 = vadd.f32 %v4311_v26, %v4143_v40 }
 0x757   : > { %18165 = vst [vmem:[#allocation95_spill] sm:$0xff] %v14967_v20 }
 0x758   : > { %v14969_v7 = vpop.f32.mrf.mxu2  ;;  %v14971_v35 = vpop.f32.mrf.mxu0 }
 0x759   : > { %18166 = vst [vmem:[#allocation96_spill] sm:$0xff] %v14969_v7  ;;  %v4152_v11 = vpop.f32.mrf.mxu3 }
 0x75a   : > { %18167 = vst [vmem:[#allocation97_spill] sm:$0xff] %v14971_v35  ;;  %v4374_v5 = vpop.f32.mrf.mxu1 }
 0x75d   : > { %10329 = vmatmul.msk.bf16.gmra.mxu1 %vm2618_vm1, %v13707_v19 }
 0x760   : > { %v3658_v56 = vpop.f32.mrf.mxu2  ;;  %v4316_v14 = vpop.f32.mrf.mxu0 }
 0x761   : > { %v3659_v15 = vadd.f32 %v3658_v56, %v14805_v36 }
 0x762   : > { %v4376_v60 = vpop.f32.mrf.mxu1 }
 0x763   : > { %v4148_v6 = vadd.f32 %v4147_v17, %v3659_v15  ;;  %10663 = vmatmul.msk.bf16.gmra.mxu0 %vm2618_vm1, %v13574_v0  ;;  %v14993_v15 = vpop.f32.mrf.mxu3 }
 0x764   : > { %18173 = vst [vmem:[#allocation103_spill] sm:$0xff] %v14993_v15  ;;  %v4434_v15 = vpack.c.bf16 %v4376_v60, %v4374_v5 }
 0x765   : > { %v14980_v40 = vadd.f32 %v4316_v14, %v4148_v6 }
 0x767   : > { %18169 = vst [vmem:[#allocation99_spill] sm:$0xff] %v14980_v40 }
 0x768   : > { %v14982_v26 = vpop.f32.mrf.mxu2  ;;  %v14984_v35 = vpop.f32.mrf.mxu0 }
 0x769   : > { %18170 = vst [vmem:[#allocation100_spill] sm:$0xff] %v14982_v26 }
 0x76a   : > { %18171 = vst [vmem:[#allocation101_spill] sm:$0xff] %v14984_v35  ;;  %v4379_v7 = vpop.f32.mrf.mxu1 }
 0x76b   : > { %v4157_v26 = vpop.f32.mrf.mxu3 }
 0x76d   : > { %10330 = vmatmul.msk.bf16.gmra.mxu1 %vm2618_vm1, %v13716_v63 }
 0x770   : > { %v3663_v20 = vpop.f32.mrf.mxu2  ;;  %v4321_v36 = vpop.f32.mrf.mxu0 }
 0x771   : > { %v3664_v56 = vadd.f32 %v3663_v20, %v14838_v33 }
 0x772   : > { %v4381_v31 = vpop.f32.mrf.mxu1 }
 0x773   : > { %v4153_v17 = vadd.f32 %v4152_v11, %v3664_v56  ;;  %10664 = vmatmul.msk.bf16.gmra.mxu0 %vm2618_vm1, %v13586_v59 }
 0x775   : > { %v14991_v14 = vadd.f32 %v4321_v36, %v4153_v17  ;;  %v4435_v17 = vpack.c.bf16 %v4381_v31, %v4379_v7 }
 0x777   : > { %18172 = vst [vmem:[#allocation102_spill] sm:$0xff] %v14991_v14 }
 0x778   : > { %v14995_v6 = vpop.f32.mrf.mxu2  ;;  %v14997_v35 = vpop.f32.mrf.mxu0 }
 0x779   : > { %18174 = vst [vmem:[#allocation104_spill] sm:$0xff] %v14995_v6  ;;  %v4433_v6 = vpack.c.bf16 %v4371_v50, %v4369_v32  ;;  %v18179_v32 = vpack.c.bf16 %v14929_v25, %v14924_v29  ;;  %v18180_v50 = vpack.c.bf16 %v14910_v9, %v14905_v37  ;;  %v10398_v29 = vld [vmem:[%s18015_s7 + $0x400] sm:$0xf]  ;;  %v12030_v37 = vld [vmem:[%s18015_s7 + $0x404] sm:$0xf0] }
 0x77a   : > { %18175 = vst [vmem:[#allocation105_spill] sm:$0xff] %v14997_v35  ;;  %v4384_v40 = vpop.f32.mrf.mxu1  ;;  %v10399_v25 = vor.u32 %v12030_v37, %v10398_v29  ;;  %v12038_v29 = vld [vmem:[%s18015_s7 + $0x444] sm:$0xf0] }
 0x77d   : > { %10331 = vmatmul.msk.bf16.gmra.mxu1 %vm2618_vm1, %v13725_v24 }
 0x780   : > { %v3668_v0 = vpop.f32.mrf.mxu2  ;;  %v4326_v33 = vpop.f32.mrf.mxu0 }
 0x781   : > { %v3669_v11 = vadd.f32 %v3668_v0, %v14865_v43 }
 0x782   : > { %v4386_v20 = vpop.f32.mrf.mxu1 }
 0x783   : > { %v4158_v56 = vadd.f32 %v4157_v26, %v3669_v11  ;;  %v4436_v59 = vpack.c.bf16 %v4386_v20, %v4384_v40  ;;  %10665 = vmatmul.msk.bf16.gmra.mxu0 %vm2618_vm1, %v13595_v4  ;;  %v10406_v26 = vld [vmem:[%s18015_s7 + $0x410] sm:$0xf]  ;;  %v12042_v4 = vld [vmem:[%s18015_s7 + $0x464] sm:$0xf0] }
 0x785   : > { %v15004_v36 = vadd.f32 %v4326_v33, %v4158_v56  ;;  %4830 = vmatpush.bf16.msra.mxu2 %v4436_v59  ;;  %v18178_v59 = vpack.c.bf16 %v14948_v27, %v14943_v41  ;;  %v18181_v41 = vpack.c.bf16 %v14893_v42, %v14886_v49 }
 0x787   : > { %18176 = vst [vmem:[#allocation106_spill] sm:$0xff] %v15004_v36  ;;  %v10446_v36 = vld [vmem:[%s18015_s7 + $0x460] sm:$0xf] }
 0x788   : > { %v15006_v35 = vpop.f32.mrf.mxu0 }
 0x789   : > { %18177 = vst [vmem:[#allocation107_spill] sm:$0xff] %v15006_v35  ;;  %4831 = vmatpush.bf16.msra.mxu2 %v4435_v17 }
 0x78a   : > { %v15008_v14 = vpop.f32.mrf.mxu1 }
 0x78d   : > { %4832 = vmatpush.bf16.msra.mxu2 %v4434_v15  ;;  %v12032_v15 = vld [vmem:[%s18015_s7 + $0x414] sm:$0xf0] }
 0x78e   : > { %v10407_v33 = vor.u32 %v12032_v15, %v10406_v26  ;;  %v10422_v15 = vld [vmem:[%s18015_s7 + $0x430] sm:$0xf] }
 0x790   : > { %v15010_v48 = vpop.f32.mrf.mxu0 }
 0x791   : > { %4833 = vmatpush.bf16.msra.mxu2 %v4433_v6 }
 0x792   : > { %v15012_v0 = vpop.f32.mrf.mxu1 }
 0x793   : > { %10666 = vmatmul.msk.bf16.gmra.mxu0 %vm2618_vm1, %v13608_v44 }
 0x795   : > { %4834 = vmatpush.bf16.msra.mxu2 %v18178_v59  ;;  %v10414_v59 = vld [vmem:[%s18015_s7 + $0x420] sm:$0xf] }
 0x798   : > { %v15019_v7 = vpop.f32.mrf.mxu0 }
 0x799   : > { %4835 = vmatpush.bf16.msra.mxu2 %v18179_v32  ;;  %v12034_v32 = vld [vmem:[%s18015_s7 + $0x424] sm:$0xf0] }
 0x79a   : > { %v15026_v5 = vpop.f32.mrf.mxu1 }
 0x79d   : > { %4836 = vmatpush.bf16.msra.mxu2 %v18180_v50 }
 0x7a0   : > { %v15031_v31 = vpop.f32.mrf.mxu0 }
 0x7a1   : > { %4837 = vmatpush.bf16.msra.mxu2 %v18181_v41  ;;  %v10415_v41 = vor.u32 %v12034_v32, %v10414_v59 }
 0x7a2   : > { %v15036_v27 = vpop.f32.mrf.mxu1 }
 0x7a3   : > { %10667 = vmatmul.msk.bf16.gmra.mxu0 %vm2618_vm1, %v13629_v53 }
 0x7a4   : > { %4838 = vmatmul.bf16.vlgmr.msra.gmra.mxu2 %v10399_v25 }
 0x7a8   : > { %v15046_v9 = vpop.f32.mrf.mxu0 }
 0x7aa   : > { %v15050_v42 = vpop.f32.mrf.mxu1 }
 0x7b0   : > { %v15052_v60 = vpop.f32.mrf.mxu0 }
 0x7b2   : > { %v15054_v40 = vpop.f32.mrf.mxu1 }
 0x7b3   : > { %10668 = vmatmul.msk.bf16.gmra.mxu0 %vm2618_vm1, %v13650_v61 }
 0x7b4   : > { %4843 = vmatmul.bf16.gmra.mxu2 %v10407_v33  ;;  %v12036_v33 = vld [vmem:[%s18015_s7 + $0x434] sm:$0xf0] }
 0x7b5   : > { %v10423_v59 = vor.u32 %v12036_v33, %v10422_v15 }
 0x7b8   : > { %v15064_v6 = vpop.f32.mrf.mxu0 }
 0x7ba   : > { %v15068_v20 = vpop.f32.mrf.mxu1 }
 0x7c0   : > { %v15070_v56 = vpop.f32.mrf.mxu0 }
 0x7c2   : > { %v4406_v17 = vpop.f32.mrf.mxu1 }
 0x7c3   : > { %10669 = vmatmul.msk.bf16.gmra.mxu0 %vm2618_vm1, %v13671_v39  ;;  %v12040_v39 = vld [vmem:[%s18015_s7 + $0x454] sm:$0xf0] }
 0x7c4   : > { %4848 = vmatmul.bf16.gmra.mxu2 %v10415_v41  ;;  %v10430_v41 = vld [vmem:[%s18015_s7 + $0x440] sm:$0xf] }
 0x7c5   : > { %v10431_v53 = vor.u32 %v12038_v29, %v10430_v41 }
 0x7c8   : > { %v15080_v50 = vpop.f32.mrf.mxu0 }
 0x7ca   : > { %v4409_v37 = vpop.f32.mrf.mxu1 }
 0x7d0   : > { %v5270_v25 = vpop.f32.mrf.mxu0 }
 0x7d2   : > { %v4411_v26 = vpop.f32.mrf.mxu1 }
 0x7d3   : > { %10670 = vmatmul.msk.bf16.gmra.mxu0 %vm2618_vm1, %v13692_v62 }
 0x7d4   : > { %4853 = vmatmul.bf16.gmra.mxu2 %v10423_v59  ;;  %v10438_v59 = vld [vmem:[%s18015_s7 + $0x450] sm:$0xf] }
 0x7d8   : > { %v5272_v43 = vpop.f32.mrf.mxu0 }
 0x7da   : > { %v4414_v32 = vpop.f32.mrf.mxu1 }
 0x7e0   : > { %v5275_v49 = vpop.f32.mrf.mxu0 }
 0x7e2   : > { %v4416_v11 = vpop.f32.mrf.mxu1 }
 0x7e3   : > { %10671 = vmatmul.msk.bf16.gmra.mxu0 %vm2618_vm1, %v13707_v19  ;;  %v10439_v19 = vor.u32 %v12040_v39, %v10438_v59  ;;  %v10447_v39 = vor.u32 %v12042_v4, %v10446_v36  ;;  %v4439_v4 = vpack.c.bf16 %v15054_v40, %v15050_v42  ;;  %v4438_v36 = vpack.c.bf16 %v15036_v27, %v15026_v5 }
 0x7e4   : > { %4858 = vmatmul.bf16.gmra.mxu2 %v10431_v53  ;;  %v4437_v42 = vpack.c.bf16 %v15012_v0, %v15008_v14  ;;  %v18183_v40 = vpack.c.bf16 %v15064_v6, %v15052_v60  ;;  %v10462_v14 = vld [vmem:[%s18015_s7 + $0x480] sm:$0xf]  ;;  %v12046_v0 = vld [vmem:[%s18015_s7 + $0x484] sm:$0xf0] }
 0x7e5   : > { %v10463_v6 = vor.u32 %v12046_v0, %v10462_v14 }
 0x7e8   : > { %v5277_v44 = vpop.f32.mrf.mxu0 }
 0x7ea   : > { %v4419_v61 = vpop.f32.mrf.mxu1 }
 0x7f0   : > { %v5280_v15 = vpop.f32.mrf.mxu0 }
 0x7f2   : > { %v4421_v33 = vpop.f32.mrf.mxu1 }
 0x7f3   : > { %10672 = vmatmul.msk.bf16.gmra.mxu0 %vm2618_vm1, %v13716_v63  ;;  %v4443_v63 = vpack.c.bf16 %v4421_v33, %v4419_v61  ;;  %v5335_v33 = vpack.c.bf16 %v5277_v44, %v5275_v49  ;;  %v10400_v49 = vld [vmem:[%s18015_s7 + $0x408] sm:$0xf0] }
 0x7f4   : > { %4863 = vmatmul.bf16.gmra.mxu2 %v10439_v19  ;;  %v4442_v19 = vpack.c.bf16 %v4416_v11, %v4414_v32  ;;  %v18184_v11 = vpack.c.bf16 %v15046_v9, %v15031_v31  ;;  %v12031_v31 = vld [vmem:[%s18015_s7 + $0x414] sm:$0xf] }
 0x7f8   : > { %v5282_v62 = vpop.f32.mrf.mxu0 }
 0x7fa   : > { %v4424_v35 = vpop.f32.mrf.mxu1 }
 0x800   : > { %v5285_v29 = vpop.f32.mrf.mxu0 }
 0x802   : > { %v4426_v41 = vpop.f32.mrf.mxu1 }
 0x803   : > { %v4444_v53 = vpack.c.bf16 %v4426_v41, %v4424_v35  ;;  %10673 = vmatmul.msk.bf16.gmra.mxu0 %vm2618_vm1, %v13725_v24  ;;  %v5336_v35 = vpack.c.bf16 %v5282_v62, %v5280_v15  ;;  %v4441_v41 = vpack.c.bf16 %v4411_v26, %v4409_v37  ;;  %v5334_v24 = vpack.c.bf16 %v5272_v43, %v5270_v25  ;;  %v12044_v62 = vld [vmem:[%s18015_s7 + $0x474] sm:$0xf0]  ;;  %v10470_v37 = vld [vmem:[%s18015_s7 + $0x490] sm:$0xf]  ;;  %v12033_v15 = vld [vmem:[%s18015_s7 + $0x424] sm:$0xf] }
 0x804   : > { %4868 = vmatmul.bf16.gmra.mxu2 %v10447_v39  ;;  %v18182_v43 = vpack.c.bf16 %v15080_v50, %v15070_v56  ;;  %v18186_v56 = vpack.c.bf16 %v15019_v7, %v15010_v48  ;;  %v10408_v48 = vld [vmem:[%s18015_s7 + $0x418] sm:$0xf0]  ;;  %v12048_v25 = vld [vmem:[%s18015_s7 + $0x494] sm:$0xf0] }
 0x805   : > { %4999 = vmatpush.bf16.msra.mxu3 %v4444_v53  ;;  %v4440_v53 = vpack.c.bf16 %v4406_v17, %v15068_v20  ;;  %v15150_v20 = vpop.f32.mrf.mxu2  ;;  %v10411_v17 = vor.u32 %v12031_v31, %v10408_v48  ;;  %v10471_v32 = vor.u32 %v12048_v25, %v10470_v37  ;;  %v10494_v48 = vld [vmem:[%s18015_s7 + $0x4c0] sm:$0xf] }
 0x806   : > { %18185 = vst [vmem:[#allocation108_spill] sm:$0xff] %v15150_v20  ;;  %v18201_v20 = vld [vmem:[#allocation30_spill] sm:$0xff] }
 0x808   : > { %v5287_v34 = vpop.f32.mrf.mxu0 }
 0x809   : > { %v5337_v59 = vpack.c.bf16 %v5287_v34, %v5285_v29  ;;  %5000 = vmatpush.bf16.msra.mxu3 %v4443_v63  ;;  %v10454_v63 = vld [vmem:[%s18015_s7 + $0x470] sm:$0xf]  ;;  %v10416_v29 = vld [vmem:[%s18015_s7 + $0x428] sm:$0xf0] }
 0x80a   : > { %v10455_v44 = vor.u32 %v12044_v62, %v10454_v63  ;;  %v12035_v63 = vld [vmem:[%s18015_s7 + $0x434] sm:$0xf]  ;;  %v10424_v62 = vld [vmem:[%s18015_s7 + $0x438] sm:$0xf0] }
 0x80b   : > { %5731 = vmatpush.bf16.msra.mxu1 %v5337_v59 }
 0x80d   : > { %5001 = vmatpush.bf16.msra.mxu3 %v4442_v19  ;;  %v10419_v19 = vor.u32 %v12033_v15, %v10416_v29  ;;  %v10440_v15 = vld [vmem:[%s18015_s7 + $0x458] sm:$0xf0] }
 0x80f   : > { %5732 = vmatpush.bf16.msra.mxu1 %v5336_v35 }
 0x810   : > { %v15116_v61 = vpop.f32.mrf.mxu0 }
 0x811   : > { %5002 = vmatpush.bf16.msra.mxu3 %v4441_v41  ;;  %v10478_v41 = vld [vmem:[%s18015_s7 + $0x4a0] sm:$0xf] }
 0x813   : > { %5733 = vmatpush.bf16.msra.mxu1 %v5335_v33  ;;  %v12050_v33 = vld [vmem:[%s18015_s7 + $0x4a4] sm:$0xf0] }
 0x814   : > { %4873 = vmatmul.bf16.gmra.mxu2 %v10455_v44 }
 0x815   : > { %5003 = vmatpush.bf16.msra.mxu3 %v4440_v53 }
 0x817   : > { %5734 = vmatpush.bf16.msra.mxu1 %v5334_v24  ;;  %v12029_v24 = vld [vmem:[%s18015_s7 + $0x404] sm:$0xf] }
 0x818   : > { %v15127_v34 = vpop.f32.mrf.mxu0  ;;  %v10403_v27 = vor.u32 %v12029_v24, %v10400_v49  ;;  %v10486_v49 = vld [vmem:[%s18015_s7 + $0x4b0] sm:$0xf] }
 0x819   : > { %5004 = vmatpush.bf16.msra.mxu3 %v4439_v4  ;;  %v10479_v4 = vor.u32 %v12050_v33, %v10478_v41 }
 0x81b   : > { %5735 = vmatpush.bf16.msra.mxu1 %v18182_v43  ;;  %v10427_v43 = vor.u32 %v12035_v63, %v10424_v62  ;;  %v12056_v63 = vld [vmem:[%s18015_s7 + $0x4d4] sm:$0xf0] }
 0x81d   : > { %5005 = vmatpush.bf16.msra.mxu3 %v4438_v36 }
 0x81f   : > { %5736 = vmatpush.bf16.msra.mxu1 %v18183_v40 }
 0x820   : > { %v15145_v5 = vpop.f32.mrf.mxu0 }
 0x821   : > { %5006 = vmatpush.bf16.msra.mxu3 %v4437_v42  ;;  %v12052_v42 = vld [vmem:[%s18015_s7 + $0x4b4] sm:$0xf0] }
 0x823   : > { %5737 = vmatpush.bf16.msra.mxu1 %v18184_v11  ;;  %v12037_v11 = vld [vmem:[%s18015_s7 + $0x444] sm:$0xf] }
 0x824   : > { %5007 = vmatmul.bf16.vlgmr.msra.gmra.mxu3 %v10403_v27  ;;  %4878 = vmatmul.bf16.gmra.mxu2 %v10463_v6  ;;  %v10487_v27 = vor.u32 %v12052_v42, %v10486_v49  ;;  %v12041_v49 = vld [vmem:[%s18015_s7 + $0x464] sm:$0xf]  ;;  %v10448_v42 = vld [vmem:[%s18015_s7 + $0x468] sm:$0xf0] }
 0x827   : > { %5738 = vmatpush.bf16.msra.mxu1 %v18186_v56  ;;  %v15169_v7 = vpop.f32.mrf.mxu2  ;;  %v10432_v56 = vld [vmem:[%s18015_s7 + $0x448] sm:$0xf0] }
 0x828   : > { %v15161_v60 = vpop.f32.mrf.mxu0  ;;  %v10435_v6 = vor.u32 %v12037_v11, %v10432_v56  ;;  %v10451_v56 = vor.u32 %v12041_v49, %v10448_v42  ;;  %v12043_v49 = vld [vmem:[%s18015_s7 + $0x474] sm:$0xf]  ;;  %v10456_v42 = vld [vmem:[%s18015_s7 + $0x478] sm:$0xf0] }
 0x82f   : > { %v15173_v50 = vpop.f32.mrf.mxu2 }
 0x830   : > { %v15171_v9 = vpop.f32.mrf.mxu0 }
 0x834   : > { %5012 = vmatmul.bf16.gmra.mxu3 %v10411_v17  ;;  %4883 = vmatmul.bf16.gmra.mxu2 %v10471_v32  ;;  %v12054_v17 = vld [vmem:[%s18015_s7 + $0x4c4] sm:$0xf0]  ;;  %v12039_v32 = vld [vmem:[%s18015_s7 + $0x454] sm:$0xf] }
 0x835   : > { %v10495_v25 = vor.u32 %v12054_v17, %v10494_v48  ;;  %v10443_v41 = vor.u32 %v12039_v32, %v10440_v15  ;;  %v12095_v48 = vld [vmem:[%s18015_s7 + $0x604] sm:$0xf0]  ;;  %v10510_v32 = vld [vmem:[%s18015_s7 + $0x4e0] sm:$0xf] }
 0x836   : > { %v12058_v15 = vld [vmem:[%s18015_s7 + $0x4e4] sm:$0xf0] }
 0x837   : > { %v15189_v39 = vpop.f32.mrf.mxu2 }
 0x838   : > { %v15181_v26 = vpop.f32.mrf.mxu0 }
 0x83f   : > { %v15193_v35 = vpop.f32.mrf.mxu2 }
 0x840   : > { %v15191_v59 = vpop.f32.mrf.mxu0 }
 0x844   : > { %5017 = vmatmul.bf16.gmra.mxu3 %v10419_v19  ;;  %4888 = vmatmul.bf16.gmra.mxu2 %v10479_v4  ;;  %v10502_v4 = vld [vmem:[%s18015_s7 + $0x4d0] sm:$0xf] }
 0x847   : > { %v15209_v44 = vpop.f32.mrf.mxu2 }
 0x848   : > { %v15201_v53 = vpop.f32.mrf.mxu0 }
 0x84f   : > { %v15213_v24 = vpop.f32.mrf.mxu2 }
 0x850   : > { %v15211_v36 = vpop.f32.mrf.mxu0 }
 0x854   : > { %5022 = vmatmul.bf16.gmra.mxu3 %v10427_v43  ;;  %4893 = vmatmul.bf16.gmra.mxu2 %v10487_v27  ;;  %v10503_v43 = vor.u32 %v12056_v63, %v10502_v4  ;;  %v10511_v4 = vor.u32 %v12058_v15, %v10510_v32  ;;  %v10518_v15 = vld [vmem:[%s18015_s7 + $0x4f0] sm:$0xf] }
 0x857   : > { %v15227_v14 = vpop.f32.mrf.mxu2 }
 0x858   : > { %v5312_v40 = vpop.f32.mrf.mxu0 }
 0x85f   : > { %v15229_v31 = vpop.f32.mrf.mxu2 }
 0x860   : > { %v5315_v0 = vpop.f32.mrf.mxu0 }
 0x864   : > { %5027 = vmatmul.bf16.gmra.mxu3 %v10435_v6  ;;  %4898 = vmatmul.bf16.gmra.mxu2 %v10495_v25  ;;  %v10740_v6 = vld [vmem:[%s18015_s7 + $0x600] sm:$0xf] }
 0x865   : > { %v10741_v17 = vor.u32 %v12095_v48, %v10740_v6  ;;  %v10459_v6 = vor.u32 %v12043_v49, %v10456_v42  ;;  %v10748_v48 = vld [vmem:[%s18015_s7 + $0x610] sm:$0xf]  ;;  %v12094_v42 = vld [vmem:[%s18015_s7 + $0x604] sm:$0xf] }
 0x867   : > { %v15243_v29 = vpop.f32.mrf.mxu2  ;;  %5739 = vmatmul.bf16.vlgmr.msra.gmra.mxu1 %v10741_v17  ;;  %v5342_v17 = vpack.c.bf16 %v5312_v40, %v15211_v36  ;;  %v5340_v36 = vpack.c.bf16 %v15181_v26, %v15171_v9  ;;  %v12045_v40 = vld [vmem:[%s18015_s7 + $0x484] sm:$0xf]  ;;  %v12099_v9 = vld [vmem:[%s18015_s7 + $0x624] sm:$0xf0]  ;;  %v5339_v26 = vpack.c.bf16 %v15161_v60, %v15145_v5  ;;  %v10526_v5 = vld [vmem:[%s18015_s7 + $0x500] sm:$0xf] }
 0x868   : > { %v5317_v37 = vpop.f32.mrf.mxu0  ;;  %v12062_v60 = vld [vmem:[%s18015_s7 + $0x504] sm:$0xf0] }
 0x86f   : > { %v15245_v33 = vpop.f32.mrf.mxu2 }
 0x870   : > { %v5320_v19 = vpop.f32.mrf.mxu0 }
 0x874   : > { %5032 = vmatmul.bf16.gmra.mxu3 %v10443_v41  ;;  %4903 = vmatmul.bf16.gmra.mxu2 %v10503_v43 }
 0x877   : > { %v15259_v27 = vpop.f32.mrf.mxu2 }
 0x878   : > { %v5322_v62 = vpop.f32.mrf.mxu0 }
 0x879   : > { %v5344_v43 = vpack.c.bf16 %v5322_v62, %v5320_v19  ;;  %v12097_v19 = vld [vmem:[%s18015_s7 + $0x614] sm:$0xf0]  ;;  %v5343_v62 = vpack.c.bf16 %v5317_v37, %v5315_v0  ;;  %v5341_v0 = vpack.c.bf16 %v15201_v53, %v15191_v59  ;;  %v10464_v37 = vld [vmem:[%s18015_s7 + $0x488] sm:$0xf0]  ;;  %v10756_v59 = vld [vmem:[%s18015_s7 + $0x620] sm:$0xf] }
 0x87a   : > { %v10467_v49 = vor.u32 %v12045_v40, %v10464_v37  ;;  %v10757_v53 = vor.u32 %v12099_v9, %v10756_v59  ;;  %v12101_v40 = vld [vmem:[%s18015_s7 + $0x634] sm:$0xf0]  ;;  %v10750_v9 = vld [vmem:[%s18015_s7 + $0x618] sm:$0xf0] }
 0x87f   : > { %v15267_v25 = vpop.f32.mrf.mxu2 }
 0x880   : > { %v5325_v11 = vpop.f32.mrf.mxu0 }
 0x884   : > { %5037 = vmatmul.bf16.gmra.mxu3 %v10451_v56  ;;  %4908 = vmatmul.bf16.gmra.mxu2 %v10511_v4 }
 0x887   : > { %v15281_v56 = vpop.f32.mrf.mxu2 }
 0x888   : > { %v5327_v41 = vpop.f32.mrf.mxu0 }
 0x889   : > { %v5345_v63 = vpack.c.bf16 %v5327_v41, %v5325_v11  ;;  %v10749_v11 = vor.u32 %v12097_v19, %v10748_v48  ;;  %v12060_v41 = vld [vmem:[%s18015_s7 + $0x4f4] sm:$0xf0]  ;;  %v5338_v48 = vpack.c.bf16 %v15127_v34, %v15116_v61  ;;  %v18188_v34 = vld [vmem:[#allocation9_spill] sm:$0xff] }
 0x88a   : > { %v10519_v4 = vor.u32 %v12060_v41, %v10518_v15  ;;  %v10527_v15 = vor.u32 %v12062_v60, %v10526_v5  ;;  %v12047_v41 = vld [vmem:[%s18015_s7 + $0x494] sm:$0xf] }
 0x88b   : > { %5900 = vmatpush.bf16.msra.mxu0 %v5345_v63  ;;  %5744 = vmatmul.bf16.gmra.mxu1 %v10749_v11  ;;  %v18192_v60 = vld [vmem:[#allocation5_spill] sm:$0xff] }
 0x88f   : > { %5901 = vmatpush.bf16.msra.mxu0 %v5344_v43  ;;  %v15290_v32 = vpop.f32.mrf.mxu2  ;;  %v15310_v43 = vpop.f32.mrf.mxu3 }
 0x890   : > { %18187 = vst [vmem:[#allocation109_spill] sm:$0xff] %v15310_v43 }
 0x893   : > { %5902 = vmatpush.bf16.msra.mxu0 %v5343_v62 }
 0x894   : > { %5042 = vmatmul.bf16.gmra.mxu3 %v10459_v6  ;;  %4913 = vmatmul.bf16.gmra.mxu2 %v10519_v4  ;;  %v10742_v6 = vld [vmem:[%s18015_s7 + $0x608] sm:$0xf0] }
 0x895   : > { %v10745_v19 = vor.u32 %v12094_v42, %v10742_v6  ;;  %v12064_v6 = vld [vmem:[%s18015_s7 + $0x514] sm:$0xf0] }
 0x897   : > { %5903 = vmatpush.bf16.msra.mxu0 %v5342_v17  ;;  %v15308_v63 = vpop.f32.mrf.mxu2 }
 0x89b   : > { %5904 = vmatpush.bf16.msra.mxu0 %v5341_v0  ;;  %5749 = vmatmul.bf16.gmra.mxu1 %v10757_v53  ;;  %v18189_v0 = vld [vmem:[#allocation8_spill] sm:$0xff] }
 0x89f   : > { %5905 = vmatpush.bf16.msra.mxu0 %v5340_v36  ;;  %v15336_v17 = vpop.f32.mrf.mxu2 }
 0x8a3   : > { %5906 = vmatpush.bf16.msra.mxu0 %v5339_v26  ;;  %v18190_v26 = vld [vmem:[#allocation7_spill] sm:$0xff] }
 0x8a4   : > { %5047 = vmatmul.bf16.gmra.mxu3 %v10467_v49  ;;  %4918 = vmatmul.bf16.gmra.mxu2 %v10527_v15  ;;  %v12049_v15 = vld [vmem:[%s18015_s7 + $0x4a4] sm:$0xf] }
 0x8a7   : > { %v5008_v62 = vpop.f32.mrf.mxu3  ;;  %5907 = vmatpush.bf16.msra.mxu0 %v5338_v48  ;;  %v15359_v59 = vpop.f32.mrf.mxu2 }
 0x8a8   : > { %v5009_v11 = vadd.f32 %v5008_v62, %v15169_v7  ;;  %v10472_v7 = vld [vmem:[%s18015_s7 + $0x498] sm:$0xf0] }
 0x8a9   : > { %v10475_v36 = vor.u32 %v12047_v41, %v10472_v7  ;;  %v18193_v7 = vld [vmem:[#allocation4_spill] sm:$0xff] }
 0x8aa   : > { %v15339_v61 = vadd.f32 %v5009_v11, %v14117_v28  ;;  %5908 = vmatmul.bf16.vlgmr.msra.gmra.mxu0 %v10745_v19  ;;  %v10764_v28 = vld [vmem:[%s18015_s7 + $0x630] sm:$0xf]  ;;  %v18191_v19 = vld [vmem:[#allocation6_spill] sm:$0xff] }
 0x8ab   : > { %7773 = vmatpush.bf16.msrb.mxu0 %v13024_v45  ;;  %v10765_v37 = vor.u32 %v12101_v40, %v10764_v28  ;;  %v12098_v28 = vld [vmem:[%s18015_s7 + $0x624] sm:$0xf] }
 0x8ac   : > { %v18194_v40 = vld [vmem:[#allocation3_spill] sm:$0xff] }
 0x8ad   : > { %5754 = vmatmul.bf16.gmra.mxu1 %v10765_v37 }
 0x8af   : > { %7774 = vmatpush.bf16.msrb.mxu0 %v18188_v34  ;;  %v5010_v4 = vpop.f32.mrf.mxu3  ;;  %v15380_v11 = vpop.f32.mrf.mxu2 }
 0x8b0   : > { %v5011_v45 = vadd.f32 %v5010_v4, %v15173_v50  ;;  %v12096_v50 = vld [vmem:[%s18015_s7 + $0x614] sm:$0xf]  ;;  %v10772_v4 = vld [vmem:[%s18015_s7 + $0x640] sm:$0xf] }
 0x8b1   : > { %v10753_v53 = vor.u32 %v12096_v50, %v10750_v9 }
 0x8b2   : > { %v15357_v49 = vadd.f32 %v5011_v45, %v14140_v57  ;;  %v10534_v57 = vld [vmem:[%s18015_s7 + $0x510] sm:$0xf]  ;;  %v12103_v45 = vld [vmem:[%s18015_s7 + $0x644] sm:$0xf0] }
 0x8b3   : > { %7775 = vmatpush.bf16.msrb.mxu0 %v18189_v0  ;;  %v10535_v62 = vor.u32 %v12064_v6, %v10534_v57  ;;  %v10773_v0 = vor.u32 %v12103_v45, %v10772_v4  ;;  %v12051_v6 = vld [vmem:[%s18015_s7 + $0x4b4] sm:$0xf]  ;;  %v10550_v4 = vld [vmem:[%s18015_s7 + $0x530] sm:$0xf] }
 0x8b4   : > { %5052 = vmatmul.bf16.gmra.mxu3 %v10475_v36 }
 0x8b5   : > { %4923 = vmatmul.bf16.gmra.mxu2 %v10535_v62 }
 0x8b7   : > { %7776 = vmatpush.bf16.msrb.mxu0 %v18190_v26  ;;  %v5013_v42 = vpop.f32.mrf.mxu3  ;;  %v15406_v50 = vpop.f32.mrf.mxu2  ;;  %v12066_v26 = vld [vmem:[%s18015_s7 + $0x524] sm:$0xf0] }
 0x8b8   : > { %v5014_v48 = vadd.f32 %v5013_v42, %v15189_v39  ;;  %v10480_v39 = vld [vmem:[%s18015_s7 + $0x4a8] sm:$0xf0] }
 0x8ba   : > { %v15377_v5 = vadd.f32 %v5014_v48, %v14151_v23  ;;  %5913 = vmatmul.bf16.gmra.mxu0 %v10753_v53  ;;  %v10483_v23 = vor.u32 %v12049_v15, %v10480_v39  ;;  %v10488_v48 = vld [vmem:[%s18015_s7 + $0x4b8] sm:$0xf0] }
 0x8bb   : > { %7777 = vmatpush.bf16.msrb.mxu0 %v18191_v19 }
 0x8bd   : > { %5759 = vmatmul.bf16.gmra.mxu1 %v10773_v0 }
 0x8bf   : > { %7778 = vmatpush.bf16.msrb.mxu0 %v18192_v60  ;;  %v5015_v34 = vpop.f32.mrf.mxu3  ;;  %v10491_v60 = vor.u32 %v12051_v6, %v10488_v48  ;;  %v15425_v15 = vpop.f32.mrf.mxu2  ;;  %v12102_v6 = vld [vmem:[%s18015_s7 + $0x644] sm:$0xf] }
 0x8c0   : > { %v5016_v41 = vadd.f32 %v5015_v34, %v15193_v35  ;;  %v10758_v35 = vld [vmem:[%s18015_s7 + $0x628] sm:$0xf0] }
 0x8c1   : > { %v10761_v37 = vor.u32 %v12098_v28, %v10758_v35 }
 0x8c2   : > { %v15397_v36 = vadd.f32 %v5016_v41, %v14174_v16  ;;  %v10542_v16 = vld [vmem:[%s18015_s7 + $0x520] sm:$0xf]  ;;  %v12100_v41 = vld [vmem:[%s18015_s7 + $0x634] sm:$0xf] }
 0x8c3   : > { %7779 = vmatpush.bf16.msrb.mxu0 %v18193_v7  ;;  %v10543_v42 = vor.u32 %v12066_v26, %v10542_v16  ;;  %v12107_v26 = vld [vmem:[%s18015_s7 + $0x664] sm:$0xf0] }
 0x8c4   : > { %5057 = vmatmul.bf16.gmra.mxu3 %v10483_v23 }
 0x8c5   : > { %4928 = vmatmul.bf16.gmra.mxu2 %v10543_v42 }
 0x8c7   : > { %7780 = vmatpush.bf16.msrb.mxu0 %v18194_v40  ;;  %v5018_v9 = vpop.f32.mrf.mxu3  ;;  %v15452_v35 = vpop.f32.mrf.mxu2  ;;  %v12053_v40 = vld [vmem:[%s18015_s7 + $0x4c4] sm:$0xf] }
 0x8c8   : > { %v5019_v53 = vadd.f32 %v5018_v9, %v15209_v44  ;;  %v12105_v44 = vld [vmem:[%s18015_s7 + $0x654] sm:$0xf0] }
 0x8ca   : > { %v15416_v57 = vadd.f32 %v5019_v53, %v14185_v21  ;;  %5918 = vmatmul.bf16.gmra.mxu0 %v10761_v37  ;;  %v10780_v21 = vld [vmem:[%s18015_s7 + $0x650] sm:$0xf]  ;;  %v10496_v37 = vld [vmem:[%s18015_s7 + $0x4c8] sm:$0xf0] }
 0x8cb   : > { %v10781_v39 = vor.u32 %v12105_v44, %v10780_v21 }
 0x8cd   : > { %5764 = vmatmul.bf16.gmra.mxu1 %v10781_v39 }
 0x8cf   : > { %v5020_v19 = vpop.f32.mrf.mxu3  ;;  %v15476_v48 = vpop.f32.mrf.mxu2 }
 0x8d0   : > { %v5021_v62 = vadd.f32 %v5020_v19, %v15213_v24  ;;  %v10766_v24 = vld [vmem:[%s18015_s7 + $0x638] sm:$0xf0] }
 0x8d1   : > { %v10769_v7 = vor.u32 %v12100_v41, %v10766_v24  ;;  %v12055_v41 = vld [vmem:[%s18015_s7 + $0x4d4] sm:$0xf]  ;;  %v10504_v24 = vld [vmem:[%s18015_s7 + $0x4d8] sm:$0xf0] }
 0x8d2   : > { %v15434_v34 = vadd.f32 %v5021_v62, %v14208_v47  ;;  %v12068_v47 = vld [vmem:[%s18015_s7 + $0x534] sm:$0xf0] }
 0x8d3   : > { %v10551_v0 = vor.u32 %v12068_v47, %v10550_v4  ;;  %v12109_v47 = vld [vmem:[%s18015_s7 + $0x674] sm:$0xf0] }
 0x8d4   : > { %5062 = vmatmul.bf16.gmra.mxu3 %v10491_v60  ;;  %v10558_v60 = vld [vmem:[%s18015_s7 + $0x540] sm:$0xf] }
 0x8d5   : > { %4933 = vmatmul.bf16.gmra.mxu2 %v10551_v0 }
 0x8d7   : > { %v5023_v23 = vpop.f32.mrf.mxu3 }
 0x8d8   : > { %v5024_v45 = vadd.f32 %v5023_v23, %v15227_v14  ;;  %v10499_v14 = vor.u32 %v12053_v40, %v10496_v37  ;;  %v12104_v40 = vld [vmem:[%s18015_s7 + $0x654] sm:$0xf] }
 0x8da   : > { %v15450_v28 = vadd.f32 %v5024_v45, %v14219_v46  ;;  %5923 = vmatmul.bf16.gmra.mxu0 %v10769_v7  ;;  %v10788_v46 = vld [vmem:[%s18015_s7 + $0x660] sm:$0xf]  ;;  %v15494_v7 = vpop.f32.mrf.mxu2 }
 0x8db   : > { %v10789_v53 = vor.u32 %v12107_v26, %v10788_v46 }
 0x8dd   : > { %5769 = vmatmul.bf16.gmra.mxu1 %v10789_v53 }
 0x8df   : > { %v5025_v9 = vpop.f32.mrf.mxu3 }
 0x8e0   : > { %v5026_v16 = vadd.f32 %v5025_v9, %v15229_v31  ;;  %v10774_v31 = vld [vmem:[%s18015_s7 + $0x648] sm:$0xf0] }
 0x8e1   : > { %v10777_v19 = vor.u32 %v12102_v6, %v10774_v31  ;;  %v12057_v6 = vld [vmem:[%s18015_s7 + $0x4e4] sm:$0xf]  ;;  %v10512_v31 = vld [vmem:[%s18015_s7 + $0x4e8] sm:$0xf0] }
 0x8e2   : > { %v15468_v42 = vadd.f32 %v5026_v16, %v14242_v1  ;;  %v12070_v1 = vld [vmem:[%s18015_s7 + $0x544] sm:$0xf0]  ;;  %v10566_v16 = vld [vmem:[%s18015_s7 + $0x550] sm:$0xf]  ;;  %v15519_v46 = vpop.f32.mrf.mxu2 }
 0x8e3   : > { %v10559_v44 = vor.u32 %v12070_v1, %v10558_v60  ;;  %v12111_v1 = vld [vmem:[%s18015_s7 + $0x684] sm:$0xf0] }
 0x8e4   : > { %5067 = vmatmul.bf16.gmra.mxu3 %v10499_v14  ;;  %v15531_v60 = vpop.f32.mrf.mxu1 }
 0x8e5   : > { %4938 = vmatmul.bf16.gmra.mxu2 %v10559_v44 }
 0x8e7   : > { %v5028_v62 = vpop.f32.mrf.mxu3 }
 0x8e8   : > { %v5029_v21 = vadd.f32 %v5028_v62, %v15243_v29  ;;  %v10507_v29 = vor.u32 %v12055_v41, %v10504_v24  ;;  %v18196_v41 = vld [vmem:[#allocation26_spill] sm:$0xff] }
 0x8ea   : > { %v15486_v39 = vadd.f32 %v5029_v21, %v14253_v55  ;;  %5928 = vmatmul.bf16.gmra.mxu0 %v10777_v19  ;;  %v10796_v55 = vld [vmem:[%s18015_s7 + $0x670] sm:$0xf]  ;;  %v15539_v21 = vpop.permute.xlu0 %6269 }
 0x8eb   : > { %v10797_v45 = vor.u32 %v12109_v47, %v10796_v55  ;;  %18195 = vst [vmem:[#allocation9_spill] sm:$0xff] %v15539_v21 }
 0x8ed   : > { %5774 = vmatmul.bf16.gmra.mxu1 %v10797_v45  ;;  %v10574_v45 = vld [vmem:[%s18015_s7 + $0x560] sm:$0xf] }
 0x8ef   : > { %v5030_v23 = vpop.f32.mrf.mxu3 }
 0x8f0   : > { %v5031_v4 = vadd.f32 %v5030_v23, %v15245_v33  ;;  %v10782_v33 = vld [vmem:[%s18015_s7 + $0x658] sm:$0xf0]  ;;  %v15544_v23 = vpop.f32.mrf.mxu2 }
 0x8f1   : > { %v10785_v37 = vor.u32 %v12104_v40, %v10782_v33  ;;  %v12074_v40 = vld [vmem:[%s18015_s7 + $0x564] sm:$0xf0]  ;;  %v15560_v33 = vpop.permute.xlu2 %6259 }
 0x8f2   : > { %v15504_v0 = vadd.f32 %v5031_v4, %v14276_v10  ;;  %v12072_v10 = vld [vmem:[%s18015_s7 + $0x554] sm:$0xf0]  ;;  %v10790_v4 = vld [vmem:[%s18015_s7 + $0x668] sm:$0xf0] }
 0x8f3   : > { %v10567_v26 = vor.u32 %v12072_v10, %v10566_v16  ;;  %v15563_v16 = vpop.f32.mrf.mxu1  ;;  %v18198_v10 = vld [vmem:[#allocation27_spill] sm:$0xff] }
 0x8f4   : > { %5072 = vmatmul.bf16.gmra.mxu3 %v10507_v29  ;;  %v15552_v29 = vpop.permute.xlu1 %6274 }
 0x8f5   : > { %4943 = vmatmul.bf16.gmra.mxu2 %v10567_v26  ;;  %18197 = vst [vmem:[#allocation8_spill] sm:$0xff] %v15552_v29  ;;  %v15568_v26 = vpop.permute.xlu0 %6264  ;;  %v12063_v29 = vld [vmem:[%s18015_s7 + $0x514] sm:$0xf] }
 0x8f7   : > { %v5033_v9 = vpop.f32.mrf.mxu3 }
 0x8f8   : > { %v5034_v14 = vadd.f32 %v5033_v9, %v15259_v27  ;;  %v10515_v27 = vor.u32 %v12057_v6, %v10512_v31  ;;  %v10575_v9 = vor.u32 %v12074_v40, %v10574_v45  ;;  %v15570_v6 = vpop.f32.mrf.mxu2  ;;  %v12059_v31 = vld [vmem:[%s18015_s7 + $0x4f4] sm:$0xf]  ;;  %v10798_v45 = vld [vmem:[%s18015_s7 + $0x678] sm:$0xf0] }
 0x8fa   : > { %v15522_v53 = vadd.f32 %v5034_v14, %v14287_v2  ;;  %5933 = vmatmul.bf16.gmra.mxu0 %v10785_v37  ;;  %v10804_v2 = vld [vmem:[%s18015_s7 + $0x680] sm:$0xf] }
 0x8fb   : > { %v10805_v44 = vor.u32 %v12111_v1, %v10804_v2 }
 0x8fd   : > { %5779 = vmatmul.bf16.gmra.mxu1 %v10805_v44  ;;  %v10812_v44 = vld [vmem:[%s18015_s7 + $0x690] sm:$0xf]  ;;  %v15600_v40 = vpop.permute.xlu0 %6239 }
 0x8ff   : > { %v5035_v19 = vpop.f32.mrf.mxu3 }
 0x900   : > { %v5036_v62 = vadd.f32 %v5035_v19, %v15267_v25  ;;  %v12106_v25 = vld [vmem:[%s18015_s7 + $0x664] sm:$0xf] }
 0x901   : > { %v10793_v55 = vor.u32 %v12106_v25, %v10790_v4  ;;  %v15589_v4 = vpop.permute.xlu2 %6254 }
 0x902   : > { %v15542_v24 = vadd.f32 %v5036_v62, %v18196_v41  ;;  %v15578_v62 = vpop.permute.xlu1 %6249  ;;  %v12113_v41 = vld [vmem:[%s18015_s7 + $0x694] sm:$0xf0] }
 0x903   : > { %v10813_v25 = vor.u32 %v12113_v41, %v10812_v44  ;;  %v18200_v41 = vld [vmem:[#allocation29_spill] sm:$0xff] }
 0x904   : > { %5077 = vmatmul.bf16.gmra.mxu3 %v10515_v27 }
 0x905   : > { %4948 = vmatmul.bf16.gmra.mxu2 %v10575_v9  ;;  %v15602_v9 = vpop.f32.mrf.mxu2 }
 0x907   : > { %v5038_v47 = vpop.f32.mrf.mxu3 }
 0x908   : > { %v5039_v37 = vadd.f32 %v5038_v47, %v15281_v56  ;;  %v10520_v56 = vld [vmem:[%s18015_s7 + $0x4f8] sm:$0xf0]  ;;  %v15581_v1 = vpop.f32.mrf.mxu1 }
 0x909   : > { %v10523_v2 = vor.u32 %v12059_v31, %v10520_v56  ;;  %v10582_v31 = vld [vmem:[%s18015_s7 + $0x570] sm:$0xf]  ;;  %v12076_v56 = vld [vmem:[%s18015_s7 + $0x574] sm:$0xf0] }
 0x90a   : > { %v15566_v14 = vadd.f32 %v5039_v37, %v18198_v10  ;;  %5938 = vmatmul.bf16.gmra.mxu0 %v10793_v55  ;;  %v18199_v55 = vld [vmem:[#allocation28_spill] sm:$0xff] }
 0x90d   : > { %5784 = vmatmul.bf16.gmra.mxu1 %v10813_v25 }
 0x90f   : > { %v5040_v19 = vpop.f32.mrf.mxu3 }
 0x910   : > { %v5041_v27 = vadd.f32 %v5040_v19, %v15290_v32  ;;  %v12108_v32 = vld [vmem:[%s18015_s7 + $0x674] sm:$0xf]  ;;  %v15611_v44 = vpop.f32.mrf.mxu1 }
 0x911   : > { %v10801_v37 = vor.u32 %v12108_v32, %v10798_v45  ;;  %v12061_v32 = vld [vmem:[%s18015_s7 + $0x504] sm:$0xf]  ;;  %v15626_v45 = vpop.permute.xlu0 %6234 }
 0x912   : > { %v15592_v47 = vadd.f32 %v5041_v27, %v18199_v55  ;;  %v10583_v27 = vor.u32 %v12076_v56, %v10582_v31  ;;  %v15618_v55 = vpop.permute.xlu2 %6229  ;;  %v15629_v56 = vpop.f32.mrf.mxu2 }
 0x914   : > { %5082 = vmatmul.bf16.gmra.mxu3 %v10523_v2  ;;  %v15613_v2 = vpop.permute.xlu1 %6244 }
 0x915   : > { %4953 = vmatmul.bf16.gmra.mxu2 %v10583_v27  ;;  %v10820_v27 = vld [vmem:[%s18015_s7 + $0x6a0] sm:$0xf] }
 0x917   : > { %v5043_v10 = vpop.f32.mrf.mxu3 }
 0x918   : > { %v5044_v19 = vadd.f32 %v5043_v10, %v15308_v63  ;;  %v10528_v63 = vld [vmem:[%s18015_s7 + $0x508] sm:$0xf0] }
 0x91a   : > { %v15616_v25 = vadd.f32 %v5044_v19, %v18200_v41  ;;  %5943 = vmatmul.bf16.gmra.mxu0 %v10801_v37  ;;  %v10531_v19 = vor.u32 %v12061_v32, %v10528_v63  ;;  %v15631_v37 = vpop.f32.mrf.mxu1  ;;  %v12115_v41 = vld [vmem:[%s18015_s7 + $0x6a4] sm:$0xf0]  ;;  %v10806_v32 = vld [vmem:[%s18015_s7 + $0x688] sm:$0xf0]  ;;  %v15666_v51 = vpop.f32.mrf.mxu2 }
 0x91b   : > { %v10821_v43 = vor.u32 %v12115_v41, %v10820_v27 }
 0x91c   : > { %v15648_v63 = vpop.permute.xlu1 %6219 }
 0x91d   : > { %5789 = vmatmul.bf16.gmra.mxu1 %v10821_v43 }
 0x91f   : > { %v5045_v10 = vpop.f32.mrf.mxu3 }
 0x920   : > { %v5046_v31 = vadd.f32 %v5045_v10, %v15336_v17  ;;  %v12110_v17 = vld [vmem:[%s18015_s7 + $0x684] sm:$0xf]  ;;  %v15650_v10 = vpop.permute.xlu2 %6224 }
 0x921   : > { %v10809_v52 = vor.u32 %v12110_v17, %v10806_v32 }
 0x922   : > { %v15640_v58 = vadd.f32 %v5046_v31, %v18201_v20  ;;  %v10590_v20 = vld [vmem:[%s18015_s7 + $0x580] sm:$0xf]  ;;  %v12078_v31 = vld [vmem:[%s18015_s7 + $0x584] sm:$0xf0]  ;;  %v15660_v13 = vpop.f32.mrf.mxu1 }
 0x923   : > { %v10591_v12 = vor.u32 %v12078_v31, %v10590_v20 }
 0x924   : > { %18202 = vst [vmem:[#allocation7_spill] sm:$0xff] %v15640_v58  ;;  %5087 = vmatmul.bf16.gmra.mxu3 %v10531_v19  ;;  %v6210_v19 = vpop.permute.xlu0 %6209  ;;  %v18205_v58 = vld [vmem:[#allocation32_spill] sm:$0xff] }
 0x925   : > { %4958 = vmatmul.bf16.gmra.mxu2 %v10591_v12  ;;  %v10828_v12 = vld [vmem:[%s18015_s7 + $0x6b0] sm:$0xf] }
 0x927   : > { %v5048_v22 = vpop.f32.mrf.mxu3  ;;  %v5909_v27 = vpop.f32.mrf.mxu0 }
 0x928   : > { %v5049_v41 = vadd.f32 %v5048_v22, %v15359_v59  ;;  %v5910_v43 = vadd.f32 %v5909_v27, %v15531_v60  ;;  %v10536_v22 = vld [vmem:[%s18015_s7 + $0x518] sm:$0xf0]  ;;  %v6215_v59 = vpop.permute.xlu1 %6214  ;;  %v6200_v20 = vpop.permute.xlu2 %6199 }
 0x92a   : > { %v15663_v17 = vadd.f32 %v5049_v41, %v18203_v3  ;;  %v6069_v32 = vadd.f32 %v5910_v43, %v15339_v61  ;;  %5948 = vmatmul.bf16.gmra.mxu0 %v10809_v52  ;;  %v10539_v52 = vor.u32 %v12063_v29, %v10536_v22  ;;  %v15676_v31 = vpop.f32.mrf.mxu1  ;;  %v12117_v41 = vld [vmem:[%s18015_s7 + $0x6b4] sm:$0xf0]  ;;  %v12112_v29 = vld [vmem:[%s18015_s7 + $0x694] sm:$0xf] }
 0x92b   : > { %v10829_v43 = vor.u32 %v12117_v41, %v10828_v12 }
 0x92c   : > { %18204 = vst [vmem:[#allocation6_spill] sm:$0xff] %v15663_v17  ;;  %v6517_v17 = vadd.f32 %v6200_v20, %v6069_v32 }
 0x92d   : > { %5794 = vmatmul.bf16.gmra.mxu1 %v10829_v43 }
 0x92e   : > { %v6581_v32 = vmax.f32 %v6517_v17, 0.0 }
 0x92f   : > { %v5050_v60 = vpop.f32.mrf.mxu3  ;;  %v5911_v27 = vpop.f32.mrf.mxu0 }
 0x930   : > { %v5051_v3 = vadd.f32 %v5050_v60, %v15380_v11  ;;  %v5912_v61 = vadd.f32 %v5911_v27, %v15563_v16  ;;  %v6205_v60 = vpop.permute.xlu0 %6204  ;;  %v10814_v16 = vld [vmem:[%s18015_s7 + $0x698] sm:$0xf0]  ;;  %v15694_v27 = vpop.f32.mrf.mxu2 }
 0x931   : > { %v10817_v20 = vor.u32 %v12112_v29, %v10814_v16  ;;  %v15702_v41 = vpop.permute.xlu1 %6349  ;;  %v15710_v29 = vpop.permute.xlu2 %6354  ;;  %v18209_v16 = vld [vmem:[#allocation33_spill] sm:$0xff] }
 0x932   : > { %v15685_v21 = vadd.f32 %v5051_v3, %v18205_v58  ;;  %v6070_v11 = vadd.f32 %v5912_v61, %v15357_v49  ;;  %v10598_v49 = vld [vmem:[%s18015_s7 + $0x590] sm:$0xf]  ;;  %v12080_v61 = vld [vmem:[%s18015_s7 + $0x594] sm:$0xf0]  ;;  %18207 = vst [vmem:[#allocation4_spill] sm:$0xff] %v15702_v41  ;;  %v15706_v17 = vpop.f32.mrf.mxu1 }
 0x933   : > { %18208 = vst [vmem:[#allocation3_spill] sm:$0xff] %v15710_v29  ;;  %v18210_v29 = vld [vmem:[#allocation34_spill] sm:$0xff] }
 0x934   : > { %18206 = vst [vmem:[#allocation5_spill] sm:$0xff] %v15685_v21  ;;  %v6518_v22 = vadd.f32 %v6205_v60, %v6070_v11  ;;  %5092 = vmatmul.bf16.gmra.mxu3 %v10539_v52  ;;  %v10599_v52 = vor.u32 %v12080_v61, %v10598_v49 }
 0x936   : > { %v6582_v58 = vmax.f32 %v6518_v22, 0.0  ;;  %4963 = vmatmul.bf16.gmra.mxu2 %v10599_v52 }
 0x937   : > { %v5053_v3 = vpop.f32.mrf.mxu3  ;;  %v5914_v12 = vpop.f32.mrf.mxu0 }
 0x938   : > { %v5054_v43 = vadd.f32 %v5053_v3, %v15406_v50  ;;  %v5915_v11 = vadd.f32 %v5914_v12, %v15581_v1  ;;  %v15708_v60 = vpack.c.bf16 %v6582_v58, %v6581_v32  ;;  %v12065_v50 = vld [vmem:[%s18015_s7 + $0x524] sm:$0xf]  ;;  %v10544_v1 = vld [vmem:[%s18015_s7 + $0x528] sm:$0xf0]  ;;  %v15722_v3 = vpop.f32.mrf.mxu2 }
 0x939   : > { %v10547_v61 = vor.u32 %v12065_v50, %v10544_v1  ;;  %v15734_v52 = vpop.permute.xlu1 %6344  ;;  %v10822_v50 = vld [vmem:[%s18015_s7 + $0x6a8] sm:$0xf0]  ;;  %v15746_v1 = vpop.permute.xlu2 %6509 }
 0x93a   : > { %v15713_v22 = vadd.f32 %v5054_v43, %v18209_v16  ;;  %v6071_v21 = vadd.f32 %v5915_v11, %v15377_v5  ;;  %5953 = vmatmul.bf16.gmra.mxu0 %v10817_v20  ;;  %v15726_v5 = vpop.f32.mrf.mxu1  ;;  %v10836_v20 = vld [vmem:[%s18015_s7 + $0x6c0] sm:$0xf]  ;;  %v12119_v43 = vld [vmem:[%s18015_s7 + $0x6c4] sm:$0xf0]  ;;  %18211 = vst [vmem:[#allocation26_spill] sm:$0xff] %v15746_v1 }
 0x93b   : > { %v10837_v11 = vor.u32 %v12119_v43, %v10836_v20  ;;  %v18213_v1 = vld [vmem:[#allocation36_spill] sm:$0xff] }
 0x93c   : > { %v6519_v16 = vadd.f32 %v6210_v19, %v6071_v21 }
 0x93d   : > { %5799 = vmatmul.bf16.gmra.mxu1 %v10837_v11 }
 0x93f   : > { %v5055_v32 = vpop.f32.mrf.mxu3  ;;  %v5916_v58 = vpop.f32.mrf.mxu0 }
 0x940   : > { %v5056_v12 = vadd.f32 %v5055_v32, %v15425_v15  ;;  %v5917_v49 = vadd.f32 %v5916_v58, %v15611_v44  ;;  %v12114_v44 = vld [vmem:[%s18015_s7 + $0x6a4] sm:$0xf]  ;;  %v6583_v58 = vmax.f32 %v6519_v16, 0.0  ;;  %v15754_v20 = vpop.f32.mrf.mxu2 }
 0x941   : > { %v10825_v21 = vor.u32 %v12114_v44, %v10822_v50 }
 0x942   : > { %v15737_v41 = vadd.f32 %v5056_v12, %v18210_v29  ;;  %v6072_v15 = vadd.f32 %v5917_v49, %v15397_v36  ;;  %v10606_v36 = vld [vmem:[%s18015_s7 + $0x5a0] sm:$0xf]  ;;  %v12082_v49 = vld [vmem:[%s18015_s7 + $0x5a4] sm:$0xf0]  ;;  %v15758_v11 = vpop.f32.mrf.mxu1 }
 0x944   : > { %v6520_v32 = vadd.f32 %v6215_v59, %v6072_v15  ;;  %5097 = vmatmul.bf16.gmra.mxu3 %v10547_v61  ;;  %v10607_v61 = vor.u32 %v12082_v49, %v10606_v36  ;;  %v18212_v15 = vld [vmem:[#allocation35_spill] sm:$0xff]  ;;  %v10844_v49 = vld [vmem:[%s18015_s7 + $0x6d0] sm:$0xf] }
 0x946   : > { %v6584_v19 = vmax.f32 %v6520_v32, 0.0  ;;  %4968 = vmatmul.bf16.gmra.mxu2 %v10607_v61  ;;  %v15766_v32 = vpop.permute.xlu1 %6329 }
 0x947   : > { %v5058_v29 = vpop.f32.mrf.mxu3  ;;  %v5919_v12 = vpop.f32.mrf.mxu0 }
 0x948   : > { %v5059_v43 = vadd.f32 %v5058_v29, %v15452_v35  ;;  %v5920_v59 = vadd.f32 %v5919_v12, %v15631_v37  ;;  %v15760_v16 = vpack.c.bf16 %v6584_v19, %v6583_v58  ;;  %v12067_v35 = vld [vmem:[%s18015_s7 + $0x534] sm:$0xf]  ;;  %v10552_v37 = vld [vmem:[%s18015_s7 + $0x538] sm:$0xf0]  ;;  %v15774_v29 = vpop.permute.xlu2 %6334 }
 0x94a   : > { %v15763_v44 = vadd.f32 %v5059_v43, %v18212_v15  ;;  %v6073_v50 = vadd.f32 %v5920_v59, %v15416_v57  ;;  %5958 = vmatmul.bf16.gmra.mxu0 %v10825_v21  ;;  %v10555_v21 = vor.u32 %v12067_v35, %v10552_v37  ;;  %v15778_v36 = vpop.f32.mrf.mxu1  ;;  %v12121_v43 = vld [vmem:[%s18015_s7 + $0x6d4] sm:$0xf0]  ;;  %v15787_v15 = vpop.f32.mrf.mxu2  ;;  %v12116_v35 = vld [vmem:[%s18015_s7 + $0x6b4] sm:$0xf]  ;;  %v10830_v37 = vld [vmem:[%s18015_s7 + $0x6b8] sm:$0xf0] }
 0x94b   : > { %v10845_v59 = vor.u32 %v12121_v43, %v10844_v49 }
 0x94c   : > { %v6521_v61 = vadd.f32 %v15648_v63, %v6073_v50 }
 0x94d   : > { %5804 = vmatmul.bf16.gmra.mxu1 %v10845_v59 }
 0x94e   : > { %v15800_v63 = vpop.permute.xlu1 %6434  ;;  %v6585_v50 = vmax.f32 %v6521_v61, 0.0 }
 0x94f   : > { %v5060_v58 = vpop.f32.mrf.mxu3  ;;  %v5921_v19 = vpop.f32.mrf.mxu0  ;;  %18214 = vst [vmem:[#allocation27_spill] sm:$0xff] %v15800_v63 }
 0x950   : > { %v5061_v12 = vadd.f32 %v5060_v58, %v15476_v48  ;;  %v5922_v57 = vadd.f32 %v5921_v19, %v15660_v13  ;;  %v10833_v19 = vor.u32 %v12116_v35, %v10830_v37  ;;  %v15808_v43 = vpop.permute.xlu2 %6499  ;;  %v18216_v35 = vld [vmem:[#allocation37_spill] sm:$0xff] }
 0x951   : > { %18215 = vst [vmem:[#allocation28_spill] sm:$0xff] %v15808_v43  ;;  %v18217_v43 = vld [vmem:[#allocation38_spill] sm:$0xff] }
 0x952   : > { %v15790_v48 = vadd.f32 %v5061_v12, %v18213_v1  ;;  %v6074_v13 = vadd.f32 %v5922_v57, %v15434_v34  ;;  %v10614_v34 = vld [vmem:[%s18015_s7 + $0x5b0] sm:$0xf]  ;;  %v12084_v57 = vld [vmem:[%s18015_s7 + $0x5b4] sm:$0xf0]  ;;  %v15812_v61 = vpop.f32.mrf.mxu1  ;;  %v15820_v63 = vpop.f32.mrf.mxu2 }
 0x953   : > { %v10615_v59 = vor.u32 %v12084_v57, %v10614_v34  ;;  %v10852_v57 = vld [vmem:[%s18015_s7 + $0x6e0] sm:$0xf] }
 0x954   : > { %v6522_v58 = vadd.f32 %v15650_v10, %v6074_v13  ;;  %5102 = vmatmul.bf16.gmra.mxu3 %v10555_v21 }
 0x956   : > { %v6586_v1 = vmax.f32 %v6522_v58, 0.0  ;;  %4973 = vmatmul.bf16.gmra.mxu2 %v10615_v59 }
 0x957   : > { %v5063_v12 = vpop.f32.mrf.mxu3  ;;  %v5924_v49 = vpop.f32.mrf.mxu0 }
 0x958   : > { %v5064_v10 = vadd.f32 %v5063_v12, %v15494_v7  ;;  %v5925_v21 = vadd.f32 %v5924_v49, %v15676_v31  ;;  %v15814_v13 = vpack.c.bf16 %v6586_v1, %v6585_v50  ;;  %v12069_v7 = vld [vmem:[%s18015_s7 + $0x544] sm:$0xf]  ;;  %v10560_v31 = vld [vmem:[%s18015_s7 + $0x548] sm:$0xf0]  ;;  %v15828_v1 = vpop.permute.xlu1 %6319  ;;  %v15840_v59 = vpop.permute.xlu2 %6324 }
 0x95a   : > { %v15817_v37 = vadd.f32 %v5064_v10, %v18216_v35  ;;  %v6075_v58 = vadd.f32 %v5925_v21, %v15450_v28  ;;  %5963 = vmatmul.bf16.gmra.mxu0 %v10833_v19  ;;  %v10563_v19 = vor.u32 %v12069_v7, %v10560_v31  ;;  %v15832_v34 = vpop.f32.mrf.mxu1  ;;  %v12123_v10 = vld [vmem:[%s18015_s7 + $0x6e4] sm:$0xf0]  ;;  %v12118_v7 = vld [vmem:[%s18015_s7 + $0x6c4] sm:$0xf]  ;;  %v10838_v31 = vld [vmem:[%s18015_s7 + $0x6c8] sm:$0xf0] }
 0x95b   : > { %v10853_v21 = vor.u32 %v12123_v10, %v10852_v57  ;;  %v15854_v57 = vpop.f32.mrf.mxu2 }
 0x95c   : > { %v6523_v35 = vadd.f32 %v15618_v55, %v6075_v58  ;;  %v10841_v55 = vor.u32 %v12118_v7, %v10838_v31 }
 0x95d   : > { %5809 = vmatmul.bf16.gmra.mxu1 %v10853_v21 }
 0x95f   : > { %v5065_v12 = vpop.f32.mrf.mxu3  ;;  %v5926_v50 = vpop.f32.mrf.mxu0 }
 0x960   : > { %v5066_v49 = vadd.f32 %v5065_v12, %v15519_v46  ;;  %v5927_v28 = vadd.f32 %v5926_v50, %v15706_v17  ;;  %v6587_v50 = vmax.f32 %v6523_v35, 0.0 }
 0x962   : > { %v15844_v46 = vadd.f32 %v5066_v49, %v18217_v43  ;;  %v6076_v17 = vadd.f32 %v5927_v28, %v15468_v42  ;;  %v10622_v42 = vld [vmem:[%s18015_s7 + $0x5c0] sm:$0xf]  ;;  %v12086_v28 = vld [vmem:[%s18015_s7 + $0x5c4] sm:$0xf0]  ;;  %v15864_v21 = vpop.f32.mrf.mxu1 }
 0x964   : > { %v6524_v12 = vadd.f32 %v15626_v45, %v6076_v17  ;;  %5107 = vmatmul.bf16.gmra.mxu3 %v10563_v19  ;;  %v10623_v19 = vor.u32 %v12086_v28, %v10622_v42  ;;  %v15868_v17 = vpop.permute.xlu1 %6424  ;;  %v10860_v42 = vld [vmem:[%s18015_s7 + $0x6f0] sm:$0xf]  ;;  %v12125_v28 = vld [vmem:[%s18015_s7 + $0x6f4] sm:$0xf0] }
 0x965   : > { %18218 = vst [vmem:[#allocation29_spill] sm:$0xff] %v15868_v17  ;;  %v18228_v17 = vld [vmem:[#allocation45_spill] sm:$0xff] }
 0x966   : > { %v6588_v43 = vmax.f32 %v6524_v12, 0.0  ;;  %4978 = vmatmul.bf16.gmra.mxu2 %v10623_v19  ;;  %v15874_v12 = vpop.permute.xlu2 %6489 }
 0x967   : > { %v5068_v58 = vpop.f32.mrf.mxu3  ;;  %v5929_v49 = vpop.f32.mrf.mxu0  ;;  %18219 = vst [vmem:[#allocation30_spill] sm:$0xff] %v15874_v12 }
 0x968   : > { %v5069_v10 = vadd.f32 %v5068_v58, %v15544_v23  ;;  %v5930_v45 = vadd.f32 %v5929_v49, %v15726_v5  ;;  %v15866_v35 = vpack.c.bf16 %v6588_v43, %v6587_v50  ;;  %v12071_v23 = vld [vmem:[%s18015_s7 + $0x554] sm:$0xf]  ;;  %v10568_v5 = vld [vmem:[%s18015_s7 + $0x558] sm:$0xf0]  ;;  %v15882_v58 = vpop.f32.mrf.mxu2 }
 0x96a   : > { %v15871_v7 = vadd.f32 %v5069_v10, %v14532_v54  ;;  %v6077_v31 = vadd.f32 %v5930_v45, %v15486_v39  ;;  %5968 = vmatmul.bf16.gmra.mxu0 %v10841_v55  ;;  %v10571_v55 = vor.u32 %v12071_v23, %v10568_v5  ;;  %v15886_v49 = vpop.f32.mrf.mxu1  ;;  %v10861_v10 = vor.u32 %v12125_v28, %v10860_v42  ;;  %v10846_v23 = vld [vmem:[%s18015_s7 + $0x6d8] sm:$0xf0]  ;;  %v12088_v42 = vld [vmem:[%s18015_s7 + $0x5d4] sm:$0xf0] }
 0x96c   : > { %v6525_v45 = vadd.f32 %v15600_v40, %v6077_v31  ;;  %v15905_v5 = vpop.permute.xlu1 %6309 }
 0x96d   : > { %5814 = vmatmul.bf16.gmra.mxu1 %v10861_v10 }
 0x96e   : > { %v15908_v40 = vpop.permute.xlu2 %6314 }
 0x96f   : > { %v5070_v50 = vpop.f32.mrf.mxu3  ;;  %v5931_v43 = vpop.f32.mrf.mxu0 }
 0x970   : > { %v5071_v54 = vadd.f32 %v5070_v50, %v15570_v6  ;;  %v5932_v39 = vadd.f32 %v5931_v43, %v15758_v11  ;;  %v12120_v11 = vld [vmem:[%s18015_s7 + $0x6d4] sm:$0xf] }
 0x971   : > { %v10849_v31 = vor.u32 %v12120_v11, %v10846_v23 }
 0x972   : > { %v15896_v19 = vadd.f32 %v5071_v54, %v14559_v30  ;;  %v6078_v6 = vadd.f32 %v5932_v39, %v15504_v0  ;;  %v6589_v30 = vmax.f32 %v6525_v45, 0.0  ;;  %v10630_v39 = vld [vmem:[%s18015_s7 + $0x5d0] sm:$0xf]  ;;  %v15921_v45 = vpop.f32.mrf.mxu2 }
 0x973   : > { %v10631_v10 = vor.u32 %v12088_v42, %v10630_v39 }
 0x974   : > { %v6526_v50 = vadd.f32 %v15613_v2, %v6078_v6  ;;  %5112 = vmatmul.bf16.gmra.mxu3 %v10571_v55  ;;  %v15917_v2 = vpop.f32.mrf.mxu1  ;;  %v18220_v6 = vld [vmem:[#allocation41_spill] sm:$0xff] }
 0x976   : > { %v6590_v43 = vmax.f32 %v6526_v50, 0.0  ;;  %4983 = vmatmul.bf16.gmra.mxu2 %v10631_v10  ;;  %v12073_v50 = vld [vmem:[%s18015_s7 + $0x564] sm:$0xf]  ;;  %v15936_v42 = vpop.permute.xlu2 %6479  ;;  %v10868_v10 = vld [vmem:[%s18015_s7 + $0x700] sm:$0xf] }
 0x977   : > { %v5073_v0 = vpop.f32.mrf.mxu3  ;;  %v5934_v54 = vpop.f32.mrf.mxu0  ;;  %18222 = vst [vmem:[#allocation32_spill] sm:$0xff] %v15936_v42 }
 0x978   : > { %v5074_v28 = vadd.f32 %v5073_v0, %v15602_v9  ;;  %v15919_v55 = vpack.c.bf16 %v6590_v43, %v6589_v30  ;;  %v5935_v23 = vadd.f32 %v5934_v54, %v15778_v36  ;;  %v10576_v9 = vld [vmem:[%s18015_s7 + $0x568] sm:$0xf0]  ;;  %v15933_v0 = vpop.permute.xlu1 %6414 }
 0x979   : > { %18221 = vst [vmem:[#allocation31_spill] sm:$0xff] %v15933_v0  ;;  %v10579_v54 = vor.u32 %v12073_v50, %v10576_v9  ;;  %v10854_v50 = vld [vmem:[%s18015_s7 + $0x6e8] sm:$0xf0] }
 0x97a   : > { %v15924_v11 = vadd.f32 %v5074_v28, %v18220_v6  ;;  %5973 = vmatmul.bf16.gmra.mxu0 %v10849_v31  ;;  %v6079_v30 = vadd.f32 %v5935_v23, %v15522_v53  ;;  %v12127_v6 = vld [vmem:[%s18015_s7 + $0x704] sm:$0xf0]  ;;  %v15959_v9 = vpop.f32.mrf.mxu2 }
 0x97b   : > { %v10869_v53 = vor.u32 %v12127_v6, %v10868_v10 }
 0x97c   : > { %v15940_v28 = vpop.f32.mrf.mxu1  ;;  %v6527_v23 = vadd.f32 %v15578_v62, %v6079_v30 }
 0x97d   : > { %5819 = vmatmul.bf16.gmra.mxu1 %v10869_v53 }
 0x97e   : > { %v6591_v62 = vmax.f32 %v6527_v23, 0.0  ;;  %v15975_v23 = vpop.permute.xlu2 %6304 }
 0x97f   : > { %v5075_v43 = vpop.f32.mrf.mxu3  ;;  %v5936_v39 = vpop.f32.mrf.mxu0 }
 0x980   : > { %v5076_v36 = vadd.f32 %v5075_v43, %v15629_v56  ;;  %v5937_v31 = vadd.f32 %v5936_v39, %v15812_v61  ;;  %v12122_v61 = vld [vmem:[%s18015_s7 + $0x6e4] sm:$0xf]  ;;  %v15968_v10 = vpop.permute.xlu1 %6299 }
 0x981   : > { %v10857_v30 = vor.u32 %v12122_v61, %v10854_v50 }
 0x982   : > { %v15950_v12 = vadd.f32 %v5076_v36, %v14594_v38  ;;  %v6080_v56 = vadd.f32 %v5937_v31, %v15542_v24  ;;  %v10638_v24 = vld [vmem:[%s18015_s7 + $0x5e0] sm:$0xf]  ;;  %v12090_v31 = vld [vmem:[%s18015_s7 + $0x5e4] sm:$0xf0] }
 0x983   : > { %v10639_v53 = vor.u32 %v12090_v31, %v10638_v24 }
 0x984   : > { %v6528_v43 = vadd.f32 %v15589_v4, %v6080_v56  ;;  %5117 = vmatmul.bf16.gmra.mxu3 %v10579_v54  ;;  %v15971_v4 = vpop.f32.mrf.mxu1  ;;  %v18223_v56 = vld [vmem:[#allocation43_spill] sm:$0xff] }
 0x986   : > { %v6592_v38 = vmax.f32 %v6528_v43, 0.0  ;;  %4988 = vmatmul.bf16.gmra.mxu2 %v10639_v53  ;;  %v12075_v43 = vld [vmem:[%s18015_s7 + $0x574] sm:$0xf]  ;;  %v12129_v53 = vld [vmem:[%s18015_s7 + $0x714] sm:$0xf0] }
 0x987   : > { %v5078_v39 = vpop.f32.mrf.mxu3  ;;  %v5939_v36 = vpop.f32.mrf.mxu0 }
 0x988   : > { %v5079_v6 = vadd.f32 %v5078_v39, %v15666_v51  ;;  %v15973_v54 = vpack.c.bf16 %v6592_v38, %v6591_v62  ;;  %v5940_v50 = vadd.f32 %v5939_v36, %v15832_v34  ;;  %v10584_v51 = vld [vmem:[%s18015_s7 + $0x578] sm:$0xf0]  ;;  %v15987_v39 = vpop.f32.mrf.mxu2  ;;  %v16000_v42 = vpop.permute.xlu1 %6404 }
 0x989   : > { %18224 = vst [vmem:[#allocation33_spill] sm:$0xff] %v16000_v42 }
 0x98a   : > { %v15978_v61 = vadd.f32 %v5079_v6, %v18223_v56  ;;  %5978 = vmatmul.bf16.gmra.mxu0 %v10857_v30  ;;  %v6081_v62 = vadd.f32 %v5940_v50, %v15566_v14  ;;  %v10587_v30 = vor.u32 %v12075_v43, %v10584_v51  ;;  %v10876_v6 = vld [vmem:[%s18015_s7 + $0x710] sm:$0xf]  ;;  %v12124_v50 = vld [vmem:[%s18015_s7 + $0x6f4] sm:$0xf]  ;;  %v10862_v43 = vld [vmem:[%s18015_s7 + $0x6f8] sm:$0xf0]  ;;  %v16013_v51 = vpop.permute.xlu2 %6469 }
 0x98b   : > { %v10877_v56 = vor.u32 %v12129_v53, %v10876_v6  ;;  %18225 = vst [vmem:[#allocation34_spill] sm:$0xff] %v16013_v51 }
 0x98c   : > { %v15992_v36 = vpop.f32.mrf.mxu1  ;;  %v6529_v14 = vadd.f32 %v15560_v33, %v6081_v62  ;;  %v10865_v62 = vor.u32 %v12124_v50, %v10862_v43  ;;  %v16031_v50 = vpop.permute.xlu0 %6339 }
 0x98d   : > { %5824 = vmatmul.bf16.gmra.mxu1 %v10877_v56 }
 0x98e   : > { %v6593_v33 = vmax.f32 %v6529_v14, 0.0 }
 0x98f   : > { %v5080_v38 = vpop.f32.mrf.mxu3  ;;  %v5941_v24 = vpop.f32.mrf.mxu0 }
 0x990   : > { %v5081_v31 = vadd.f32 %v5080_v38, %v15694_v27  ;;  %v5942_v34 = vadd.f32 %v5941_v24, %v15864_v21  ;;  %v16022_v6 = vpop.f32.mrf.mxu2  ;;  %v16033_v43 = vpop.permute.xlu1 %6289 }
 0x992   : > { %v16004_v27 = vadd.f32 %v5081_v31, %v14628_v8  ;;  %v6082_v21 = vadd.f32 %v5942_v34, %v15592_v47  ;;  %v10646_v47 = vld [vmem:[%s18015_s7 + $0x5f0] sm:$0xf]  ;;  %v12092_v34 = vld [vmem:[%s18015_s7 + $0x5f4] sm:$0xf0] }
 0x994   : > { %v6530_v38 = vadd.f32 %v15568_v26, %v6082_v21  ;;  %5122 = vmatmul.bf16.gmra.mxu3 %v10587_v30  ;;  %v10647_v26 = vor.u32 %v12092_v34, %v10646_v47  ;;  %v16025_v30 = vpop.f32.mrf.mxu1  ;;  %v10884_v34 = vld [vmem:[%s18015_s7 + $0x720] sm:$0xf] }
 0x996   : > { %v6594_v8 = vmax.f32 %v6530_v38, 0.0  ;;  %4993 = vmatmul.bf16.gmra.mxu2 %v10647_v26  ;;  %v12077_v38 = vld [vmem:[%s18015_s7 + $0x584] sm:$0xf] }
 0x997   : > { %v5083_v24 = vpop.f32.mrf.mxu3  ;;  %v5944_v31 = vpop.f32.mrf.mxu0 }
 0x998   : > { %v5084_v53 = vadd.f32 %v5083_v24, %v15722_v3  ;;  %v6651_v56 = vpack.c.bf16 %v6594_v8, %v6593_v33  ;;  %v5945_v21 = vadd.f32 %v5944_v31, %v15886_v49  ;;  %v10592_v3 = vld [vmem:[%s18015_s7 + $0x588] sm:$0xf0]  ;;  %v16041_v33 = vpop.permute.xlu2 %6294  ;;  %v16054_v51 = vpop.f32.mrf.mxu2 }
 0x999   : > { %v10595_v31 = vor.u32 %v12077_v38, %v10592_v3  ;;  %v12126_v3 = vld [vmem:[%s18015_s7 + $0x704] sm:$0xf] }
 0x99a   : > { %v16028_v14 = vadd.f32 %v5084_v53, %v14639_v18  ;;  %5983 = vmatmul.bf16.gmra.mxu0 %v10865_v62  ;;  %v6083_v18 = vadd.f32 %v5945_v21, %v15616_v25  ;;  %v12131_v53 = vld [vmem:[%s18015_s7 + $0x724] sm:$0xf0]  ;;  %v18227_v25 = vld [vmem:[#allocation9_spill] sm:$0xff] }
 0x99b   : > { %v10885_v26 = vor.u32 %v12131_v53, %v10884_v34  ;;  %v16068_v53 = vpop.permute.xlu0 %6514 }
 0x99c   : > { %18226 = vst [vmem:[#allocation35_spill] sm:$0xff] %v16028_v14  ;;  %v16046_v47 = vpop.f32.mrf.mxu1  ;;  %v6531_v21 = vadd.f32 %v18227_v25, %v6083_v18  ;;  %v16070_v18 = vpop.permute.xlu1 %6394 }
 0x99d   : > { %5829 = vmatmul.bf16.gmra.mxu1 %v10885_v26  ;;  %18232 = vst [vmem:[#allocation37_spill] sm:$0xff] %v16068_v53 }
 0x99f   : > { %v5085_v8 = vpop.f32.mrf.mxu3  ;;  %v5946_v49 = vpop.f32.mrf.mxu0 }
 0x9a0   : > { %v5086_v62 = vadd.f32 %v5085_v8, %v15754_v20  ;;  %v5947_v24 = vadd.f32 %v5946_v49, %v15917_v2  ;;  %v18230_v2 = vld [vmem:[#allocation7_spill] sm:$0xff]  ;;  %v10870_v8 = vld [vmem:[%s18015_s7 + $0x708] sm:$0xf0]  ;;  %v16076_v26 = vpop.permute.xlu2 %6459 }
 0x9a1   : > { %v18231_v49 = vld [vmem:[#allocation8_spill] sm:$0xff]  ;;  %v10873_v25 = vor.u32 %v12126_v3, %v10870_v8  ;;  %18233 = vst [vmem:[#allocation38_spill] sm:$0xff] %v16076_v26 }
 0x9a2   : > { %v16058_v20 = vadd.f32 %v5086_v62, %v18228_v17  ;;  %v6084_v38 = vadd.f32 %v5947_v24, %v18230_v2  ;;  %v6595_v17 = vmax.f32 %v6531_v21, 0.0  ;;  %v16082_v21 = vpop.f32.mrf.mxu2 }
 0x9a4   : > { %18229 = vst [vmem:[#allocation36_spill] sm:$0xff] %v16058_v20  ;;  %v6532_v34 = vadd.f32 %v18231_v49, %v6084_v38  ;;  %5127 = vmatmul.bf16.gmra.mxu3 %v10595_v31  ;;  %v16074_v14 = vpop.f32.mrf.mxu1  ;;  %v18234_v38 = vld [vmem:[#allocation47_spill] sm:$0xff]  ;;  %v18235_v49 = vld [vmem:[#allocation6_spill] sm:$0xff] }
 0x9a6   : > { %v6596_v62 = vmax.f32 %v6532_v34, 0.0  ;;  %v16090_v34 = vpop.permute.xlu0 %6429 }
 0x9a7   : > { %v5088_v24 = vpop.f32.mrf.mxu3  ;;  %v5949_v2 = vpop.f32.mrf.mxu0 }
 0x9a8   : > { %v5089_v0 = vadd.f32 %v5088_v24, %v15787_v15  ;;  %v5950_v42 = vadd.f32 %v5949_v2, %v15940_v28  ;;  %v6652_v20 = vpack.c.bf16 %v6596_v62, %v6595_v17  ;;  %v12079_v15 = vld [vmem:[%s18015_s7 + $0x594] sm:$0xf]  ;;  %v10600_v28 = vld [vmem:[%s18015_s7 + $0x598] sm:$0xf0]  ;;  %v10892_v62 = vld [vmem:[%s18015_s7 + $0x730] sm:$0xf] }
 0x9aa   : > { %v16079_v31 = vadd.f32 %v5089_v0, %v18234_v38  ;;  %v6085_v53 = vadd.f32 %v5950_v42, %v18235_v49  ;;  %5988 = vmatmul.bf16.gmra.mxu0 %v10873_v25  ;;  %6965 = vmatpush.bf16.msrb.mxu2 %v6652_v20  ;;  %v10603_v20 = vor.u32 %v12079_v15, %v10600_v28  ;;  %v12133_v25 = vld [vmem:[%s18015_s7 + $0x734] sm:$0xf0]  ;;  %v18236_v38 = vld [vmem:[#allocation48_spill] sm:$0xff]  ;;  %v12128_v15 = vld [vmem:[%s18015_s7 + $0x714] sm:$0xf] }
 0x9ab   : > { %v10893_v24 = vor.u32 %v12133_v25, %v10892_v62  ;;  %v10878_v28 = vld [vmem:[%s18015_s7 + $0x718] sm:$0xf0] }
 0x9ac   : > { %v16094_v17 = vpop.f32.mrf.mxu1 }
 0x9ad   : > { %5834 = vmatmul.bf16.gmra.mxu1 %v10893_v24 }
 0x9ae   : > { %6966 = vmatpush.bf16.msrb.mxu2 %v6651_v56  ;;  %v6280_v56 = vpop.permute.xlu1 %6279  ;;  %v16122_v24 = vpop.permute.xlu0 %6504 }
 0x9af   : > { %v5090_v3 = vpop.f32.mrf.mxu3  ;;  %v5951_v8 = vpop.f32.mrf.mxu0  ;;  %v6533_v2 = vadd.f32 %v6280_v56, %v6085_v53  ;;  %18238 = vst [vmem:[#allocation41_spill] sm:$0xff] %v16122_v24 }
 0x9b0   : > { %v5091_v0 = vadd.f32 %v5090_v3, %v15820_v63  ;;  %v5952_v42 = vadd.f32 %v5951_v8, %v15971_v4  ;;  %v18237_v63 = vld [vmem:[#allocation5_spill] sm:$0xff]  ;;  %v6285_v4 = vpop.permute.xlu2 %6284  ;;  %v16113_v53 = vpop.f32.mrf.mxu2 }
 0x9b2   : > { %v16103_v49 = vadd.f32 %v5091_v0, %v18236_v38  ;;  %v6086_v3 = vadd.f32 %v5952_v42, %v18237_v63  ;;  %6967 = vmatpush.bf16.msrb.mxu2 %v15973_v54  ;;  %v6597_v0 = vmax.f32 %v6533_v2, 0.0  ;;  %v10881_v42 = vor.u32 %v12128_v15, %v10878_v28 }
 0x9b4   : > { %v6534_v8 = vadd.f32 %v6285_v4, %v6086_v3  ;;  %5132 = vmatmul.bf16.gmra.mxu3 %v10603_v20  ;;  %v16118_v63 = vpop.f32.mrf.mxu1  ;;  %v18239_v20 = vld [vmem:[#allocation50_spill] sm:$0xff] }
 0x9b6   : > { %6968 = vmatpush.bf16.msrb.mxu2 %v15919_v55  ;;  %v6598_v62 = vmax.f32 %v6534_v8, 0.0  ;;  %v10608_v55 = vld [vmem:[%s18015_s7 + $0x5a8] sm:$0xf0] }
 0x9b7   : > { %v5093_v54 = vpop.f32.mrf.mxu3  ;;  %v5954_v25 = vpop.f32.mrf.mxu0 }
 0x9b8   : > { %v5094_v56 = vadd.f32 %v5093_v54, %v15854_v57  ;;  %v5955_v38 = vadd.f32 %v5954_v25, %v15992_v36  ;;  %v16120_v26 = vpack.c.bf16 %v6598_v62, %v6597_v0  ;;  %v12081_v57 = vld [vmem:[%s18015_s7 + $0x5a4] sm:$0xf]  ;;  %v16136_v15 = vpop.f32.mrf.mxu2  ;;  %v10900_v0 = vld [vmem:[%s18015_s7 + $0x740] sm:$0xf] }
 0x9b9   : > { %v10611_v8 = vor.u32 %v12081_v57, %v10608_v55  ;;  %v18240_v54 = vld [vmem:[#allocation51_spill] sm:$0xff] }
 0x9ba   : > { %v16125_v3 = vadd.f32 %v5094_v56, %v18239_v20  ;;  %v6087_v2 = vadd.f32 %v5955_v38, %v15713_v22  ;;  %5993 = vmatmul.bf16.gmra.mxu0 %v10881_v42  ;;  %6969 = vmatpush.bf16.msrb.mxu2 %v15866_v35  ;;  %v12135_v42 = vld [vmem:[%s18015_s7 + $0x744] sm:$0xf0]  ;;  %v12160_v56 = vld [vmem:[%s18017_s9 + $0xc] sm:$0xf0]  ;;  %v12130_v38 = vld [vmem:[%s18015_s7 + $0x724] sm:$0xf] }
 0x9bc   : > { %v16140_v35 = vpop.f32.mrf.mxu1  ;;  %v6535_v62 = vadd.f32 %v16033_v43, %v6087_v2  ;;  %v10886_v43 = vld [vmem:[%s18015_s7 + $0x728] sm:$0xf0] }
 0x9bd   : > { %v10889_v57 = vor.u32 %v12130_v38, %v10886_v43 }
 0x9be   : > { %6970 = vmatpush.bf16.msrb.mxu2 %v15814_v13  ;;  %v10901_v13 = vor.u32 %v12135_v42, %v10900_v0  ;;  %v6599_v2 = vmax.f32 %v6535_v62, 0.0  ;;  %v12083_v62 = vld [vmem:[%s18015_s7 + $0x5b4] sm:$0xf] }
 0x9bf   : > { %v5095_v36 = vpop.f32.mrf.mxu3  ;;  %v5956_v4 = vpop.f32.mrf.mxu0 }
 0x9c0   : > { %v5096_v28 = vadd.f32 %v5095_v36, %v15882_v58  ;;  %v5957_v22 = vadd.f32 %v5956_v4, %v16025_v30  ;;  %v10996_v30 = vld [vmem:[%s18017_s9] sm:$0xf]  ;;  %5839 = vmatmul.bf16.gmra.mxu1 %v10901_v13  ;;  %v16176_v13 = vpop.f32.mrf.mxu2 }
 0x9c1   : > { %v10997_v20 = vor.u32 %v12160_v56, %v10996_v30 }
 0x9c2   : > { %v16150_v25 = vadd.f32 %v5096_v28, %v18240_v54  ;;  %v6088_v58 = vadd.f32 %v5957_v22, %v15737_v41  ;;  %6971 = vmatpush.bf16.msrb.mxu2 %v15760_v16  ;;  %v16166_v41 = vpop.permute.xlu0 %6419 }
 0x9c4   : > { %v6536_v16 = vadd.f32 %v16041_v33, %v6088_v58  ;;  %5137 = vmatmul.bf16.gmra.mxu3 %v10611_v8  ;;  %v16172_v0 = vpop.f32.mrf.mxu1  ;;  %v18241_v33 = vld [vmem:[#allocation53_spill] sm:$0xff] }
 0x9c6   : > { %6972 = vmatpush.bf16.msrb.mxu2 %v15708_v60  ;;  %v6600_v55 = vmax.f32 %v6536_v16, 0.0  ;;  %v12137_v16 = vld [vmem:[%s18015_s7 + $0x754] sm:$0xf0] }
 0x9c7   : > { %v5098_v36 = vpop.f32.mrf.mxu3  ;;  %v5959_v4 = vpop.f32.mrf.mxu0 }
 0x9c8   : > { %v5099_v28 = vadd.f32 %v5098_v36, %v15921_v45  ;;  %v5960_v22 = vadd.f32 %v5959_v4, %v16046_v47  ;;  %v16174_v42 = vpack.c.bf16 %v6600_v55, %v6599_v2  ;;  %v10616_v45 = vld [vmem:[%s18015_s7 + $0x5b8] sm:$0xf0]  ;;  %v12164_v36 = vld [vmem:[%s18017_s9 + $0x2c] sm:$0xf0]  ;;  %v12132_v4 = vld [vmem:[%s18015_s7 + $0x734] sm:$0xf] }
 0x9c9   : > { %6973 = vmatmul.bf16.vlgmr.msrb.gmra.mxu2 %v10997_v20  ;;  %v10619_v38 = vor.u32 %v12083_v62, %v10616_v45 }
 0x9ca   : > { %v16179_v8 = vadd.f32 %v5099_v28, %v18241_v33  ;;  %v6089_v60 = vadd.f32 %v5960_v22, %v15763_v44  ;;  %5998 = vmatmul.bf16.gmra.mxu0 %v10889_v57  ;;  %v16188_v47 = vpop.permute.xlu0 %6494  ;;  %v10908_v44 = vld [vmem:[%s18015_s7 + $0x750] sm:$0xf]  ;;  %v18243_v57 = vld [vmem:[#allocation55_spill] sm:$0xff]  ;;  %v16217_v28 = vpop.f32.mrf.mxu2 }
 0x9cb   : > { %18242 = vst [vmem:[#allocation43_spill] sm:$0xff] %v16188_v47  ;;  %v10909_v20 = vor.u32 %v12137_v16, %v10908_v44 }
 0x9cc   : > { %v16192_v43 = vpop.f32.mrf.mxu1  ;;  %v6537_v2 = vadd.f32 %v15968_v10, %v6089_v60  ;;  %v10894_v10 = vld [vmem:[%s18015_s7 + $0x738] sm:$0xf0] }
 0x9cd   : > { %v10897_v60 = vor.u32 %v12132_v4, %v10894_v10 }
 0x9ce   : > { %v6601_v33 = vmax.f32 %v6537_v2, 0.0  ;;  %v12085_v2 = vld [vmem:[%s18015_s7 + $0x5c4] sm:$0xf] }
 0x9cf   : > { %v5100_v54 = vpop.f32.mrf.mxu3  ;;  %v5961_v58 = vpop.f32.mrf.mxu0 }
 0x9d0   : > { %v5101_v30 = vadd.f32 %v5100_v54, %v15959_v9  ;;  %v5962_v56 = vadd.f32 %v5961_v58, %v16074_v14  ;;  %v11012_v14 = vld [vmem:[%s18017_s9 + $0x20] sm:$0xf]  ;;  %5844 = vmatmul.bf16.gmra.mxu1 %v10909_v20  ;;  %v18244_v20 = vld [vmem:[#allocation57_spill] sm:$0xff] }
 0x9d1   : > { %v11013_v22 = vor.u32 %v12164_v36, %v11012_v14 }
 0x9d2   : > { %v16202_v55 = vadd.f32 %v5101_v30, %v18243_v57  ;;  %v6090_v9 = vadd.f32 %v5962_v56, %v15790_v48  ;;  %v16220_v58 = vpop.permute.xlu0 %6409 }
 0x9d4   : > { %v6538_v48 = vadd.f32 %v15975_v23, %v6090_v9  ;;  %5142 = vmatmul.bf16.gmra.mxu3 %v10619_v38  ;;  %v16224_v44 = vpop.f32.mrf.mxu1 }
 0x9d6   : > { %v6602_v62 = vmax.f32 %v6538_v48, 0.0  ;;  %v12139_v48 = vld [vmem:[%s18015_s7 + $0x764] sm:$0xf0] }
 0x9d7   : > { %v5103_v45 = vpop.f32.mrf.mxu3  ;;  %v5964_v54 = vpop.f32.mrf.mxu0 }
 0x9d8   : > { %v5104_v30 = vadd.f32 %v5103_v45, %v15987_v39  ;;  %v5965_v56 = vadd.f32 %v5964_v54, %v16094_v17  ;;  %v16226_v16 = vpack.c.bf16 %v6602_v62, %v6601_v33  ;;  %v10624_v39 = vld [vmem:[%s18015_s7 + $0x5c8] sm:$0xf0]  ;;  %v16238_v17 = vpop.f32.mrf.mxu2  ;;  %v18246_v62 = vld [vmem:[#allocation59_spill] sm:$0xff]  ;;  %v12168_v54 = vld [vmem:[%s18017_s9 + $0x4c] sm:$0xf0] }
 0x9d9   : > { %6978 = vmatmul.bf16.gmra.mxu2 %v11013_v22  ;;  %v10627_v4 = vor.u32 %v12085_v2, %v10624_v39  ;;  %v11028_v45 = vld [vmem:[%s18017_s9 + $0x40] sm:$0xf] }
 0x9da   : > { %v16229_v23 = vadd.f32 %v5104_v30, %v18244_v20  ;;  %v6091_v38 = vadd.f32 %v5965_v56, %v15817_v37  ;;  %6003 = vmatmul.bf16.gmra.mxu0 %v10897_v60  ;;  %v10916_v37 = vld [vmem:[%s18015_s7 + $0x760] sm:$0xf]  ;;  %v16250_v33 = vpop.permute.xlu0 %6484  ;;  %v12134_v30 = vld [vmem:[%s18015_s7 + $0x744] sm:$0xf] }
 0x9db   : > { %v10917_v22 = vor.u32 %v12139_v48, %v10916_v37  ;;  %18245 = vst [vmem:[#allocation9_spill] sm:$0xff] %v16250_v33 }
 0x9dc   : > { %v16242_v10 = vpop.f32.mrf.mxu1  ;;  %v6539_v60 = vadd.f32 %v15905_v5, %v6091_v38  ;;  %v10902_v5 = vld [vmem:[%s18015_s7 + $0x748] sm:$0xf0] }
 0x9dd   : > { %v10905_v38 = vor.u32 %v12134_v30, %v10902_v5  ;;  %v12141_v5 = vld [vmem:[%s18015_s7 + $0x774] sm:$0xf0] }
 0x9de   : > { %v6603_v20 = vmax.f32 %v6539_v60, 0.0 }
 0x9df   : > { %v5105_v57 = vpop.f32.mrf.mxu3  ;;  %v5966_v9 = vpop.f32.mrf.mxu0 }
 0x9e0   : > { %v5106_v14 = vadd.f32 %v5105_v57, %v16022_v6  ;;  %v5967_v36 = vadd.f32 %v5966_v9, %v16118_v63  ;;  %5849 = vmatmul.bf16.gmra.mxu1 %v10917_v22  ;;  %v16270_v9 = vpop.f32.mrf.mxu2  ;;  %v18247_v22 = vld [vmem:[#allocation61_spill] sm:$0xff] }
 0x9e2   : > { %v16254_v6 = vadd.f32 %v5106_v14, %v18246_v62  ;;  %v6092_v63 = vadd.f32 %v5967_v36, %v15844_v46  ;;  %v11029_v46 = vor.u32 %v12168_v54, %v11028_v45  ;;  %v16282_v60 = vpop.permute.xlu0 %6399  ;;  %v12087_v62 = vld [vmem:[%s18015_s7 + $0x5d4] sm:$0xf] }
 0x9e4   : > { %v6540_v56 = vadd.f32 %v15908_v40, %v6092_v63  ;;  %5147 = vmatmul.bf16.gmra.mxu3 %v10627_v4  ;;  %v16274_v37 = vpop.f32.mrf.mxu1 }
 0x9e6   : > { %v6604_v2 = vmax.f32 %v6540_v56, 0.0 }
 0x9e7   : > { %v5108_v39 = vpop.f32.mrf.mxu3  ;;  %v5969_v57 = vpop.f32.mrf.mxu0 }
 0x9e8   : > { %v5109_v14 = vadd.f32 %v5108_v39, %v16054_v51  ;;  %v5970_v36 = vadd.f32 %v5969_v57, %v16140_v35  ;;  %v16276_v48 = vpack.c.bf16 %v6604_v2, %v6603_v20  ;;  %v10632_v51 = vld [vmem:[%s18015_s7 + $0x5d8] sm:$0xf0]  ;;  %v12172_v2 = vld [vmem:[%s18017_s9 + $0x6c] sm:$0xf0]  ;;  %v12136_v39 = vld [vmem:[%s18015_s7 + $0x754] sm:$0xf] }
 0x9e9   : > { %6983 = vmatmul.bf16.gmra.mxu2 %v11029_v46  ;;  %v10635_v54 = vor.u32 %v12087_v62, %v10632_v51  ;;  %v16301_v46 = vpop.f32.mrf.mxu2  ;;  %v10910_v57 = vld [vmem:[%s18015_s7 + $0x758] sm:$0xf0] }
 0x9ea   : > { %v16279_v40 = vadd.f32 %v5109_v14, %v18247_v22  ;;  %v6093_v4 = vadd.f32 %v5970_v36, %v15871_v7  ;;  %6008 = vmatmul.bf16.gmra.mxu0 %v10905_v38  ;;  %v10924_v7 = vld [vmem:[%s18015_s7 + $0x770] sm:$0xf]  ;;  %v16318_v14 = vpop.permute.xlu0 %6474  ;;  %v10913_v22 = vor.u32 %v12136_v39, %v10910_v57 }
 0x9eb   : > { %v10925_v56 = vor.u32 %v12141_v5, %v10924_v7  ;;  %18248 = vst [vmem:[#allocation45_spill] sm:$0xff] %v16318_v14  ;;  %v18249_v5 = vld [vmem:[#allocation66_spill] sm:$0xff] }
 0x9ec   : > { %v16293_v30 = vpop.f32.mrf.mxu1  ;;  %v6541_v20 = vadd.f32 %v15828_v1, %v6093_v4 }
 0x9ee   : > { %v6605_v36 = vmax.f32 %v6541_v20, 0.0  ;;  %v12089_v20 = vld [vmem:[%s18015_s7 + $0x5e4] sm:$0xf] }
 0x9ef   : > { %v16290_v35 = vpop.f32.mrf.mxu3  ;;  %v5971_v63 = vpop.f32.mrf.mxu0 }
 0x9f0   : > { %v5972_v45 = vadd.f32 %v5971_v63, %v16172_v0  ;;  %v11044_v0 = vld [vmem:[%s18017_s9 + $0x60] sm:$0xf]  ;;  %5854 = vmatmul.bf16.gmra.mxu1 %v10925_v56 }
 0x9f2   : > { %v6094_v38 = vadd.f32 %v5972_v45, %v15896_v19  ;;  %v11045_v19 = vor.u32 %v12172_v2, %v11044_v0  ;;  %v16340_v39 = vpop.permute.xlu0 %6389 }
 0x9f4   : > { %v6542_v1 = vadd.f32 %v15840_v59, %v6094_v38  ;;  %5152 = vmatmul.bf16.gmra.mxu3 %v10635_v54  ;;  %v16321_v45 = vpop.f32.mrf.mxu1  ;;  %v16329_v54 = vpop.f32.mrf.mxu2 }
 0x9f5   : > { %18250 = vst [vmem:[#allocation7_spill] sm:$0xff] %v16329_v54 }
 0x9f6   : > { %v6606_v4 = vmax.f32 %v6542_v1, 0.0 }
 0x9f7   : > { %v5113_v62 = vpop.f32.mrf.mxu3  ;;  %v5974_v51 = vpop.f32.mrf.mxu0 }
 0x9f8   : > { %v5114_v63 = vadd.f32 %v5113_v62, %v16113_v53  ;;  %v16323_v7 = vpack.c.bf16 %v6606_v4, %v6605_v36  ;;  %v5975_v59 = vadd.f32 %v5974_v51, %v16192_v43  ;;  %v10640_v53 = vld [vmem:[%s18015_s7 + $0x5e8] sm:$0xf0]  ;;  %v12143_v36 = vld [vmem:[%s18015_s7 + $0x784] sm:$0xf0]  ;;  %v12176_v62 = vld [vmem:[%s18017_s9 + $0x8c] sm:$0xf0] }
 0x9f9   : > { %6988 = vmatmul.bf16.gmra.mxu2 %v11045_v19  ;;  %v10643_v57 = vor.u32 %v12089_v20, %v10640_v53  ;;  %v10932_v19 = vld [vmem:[%s18015_s7 + $0x780] sm:$0xf]  ;;  %v12138_v51 = vld [vmem:[%s18015_s7 + $0x764] sm:$0xf] }
 0x9fa   : > { %v16326_v56 = vadd.f32 %v5114_v63, %v18249_v5  ;;  %6013 = vmatmul.bf16.gmra.mxu0 %v10913_v22  ;;  %v6095_v38 = vadd.f32 %v5975_v59, %v15924_v11  ;;  %v10933_v22 = vor.u32 %v12143_v36, %v10932_v19  ;;  %v10918_v63 = vld [vmem:[%s18015_s7 + $0x768] sm:$0xf0]  ;;  %v16373_v24 = vpop.permute.xlu0 %6464 }
 0x9fb   : > { %v10921_v20 = vor.u32 %v12138_v51, %v10918_v63  ;;  %18251 = vst [vmem:[#allocation8_spill] sm:$0xff] %v16373_v24 }
 0x9fc   : > { %v16343_v1 = vpop.f32.mrf.mxu1  ;;  %v6543_v11 = vadd.f32 %v15766_v32, %v6095_v38  ;;  %v16366_v5 = vpop.f32.mrf.mxu2 }
 0x9fe   : > { %v6607_v59 = vmax.f32 %v6543_v11, 0.0  ;;  %v12091_v11 = vld [vmem:[%s18015_s7 + $0x5f4] sm:$0xf] }
 0x9ff   : > { %v16338_v0 = vpop.f32.mrf.mxu3  ;;  %v5976_v2 = vpop.f32.mrf.mxu0 }
 0xa00   : > { %v5977_v43 = vadd.f32 %v5976_v2, %v16224_v44  ;;  %v11060_v44 = vld [vmem:[%s18017_s9 + $0x80] sm:$0xf]  ;;  %5859 = vmatmul.bf16.gmra.mxu1 %v10933_v22 }
 0xa01   : > { %v18252_v22 = vld [vmem:[#allocation71_spill] sm:$0xff] }
 0xa02   : > { %v6096_v4 = vadd.f32 %v5977_v43, %v15950_v12  ;;  %v11061_v12 = vor.u32 %v12176_v62, %v11060_v44 }
 0xa04   : > { %v6544_v32 = vadd.f32 %v15774_v29, %v6096_v4  ;;  %5157 = vmatmul.bf16.gmra.mxu3 %v10643_v57  ;;  %v16369_v19 = vpop.f32.mrf.mxu1  ;;  %v16388_v51 = vpop.f32.mrf.mxu2 }
 0xa05   : > { %18253 = vst [vmem:[#allocation47_spill] sm:$0xff] %v16388_v51 }
 0xa06   : > { %v6608_v53 = vmax.f32 %v6544_v32, 0.0 }
 0xa07   : > { %v5118_v38 = vpop.f32.mrf.mxu3  ;;  %v5979_v2 = vpop.f32.mrf.mxu0 }
 0xa08   : > { %v5119_v43 = vadd.f32 %v5118_v38, %v16176_v13  ;;  %v16371_v36 = vpack.c.bf16 %v6608_v53, %v6607_v59  ;;  %v5980_v57 = vadd.f32 %v5979_v2, %v16242_v10  ;;  %v10648_v13 = vld [vmem:[%s18015_s7 + $0x5f8] sm:$0xf0]  ;;  %v12145_v59 = vld [vmem:[%s18015_s7 + $0x794] sm:$0xf0]  ;;  %v12180_v38 = vld [vmem:[%s18017_s9 + $0xac] sm:$0xf0] }
 0xa09   : > { %6993 = vmatmul.bf16.gmra.mxu2 %v11061_v12  ;;  %v10651_v32 = vor.u32 %v12091_v11, %v10648_v13  ;;  %v10940_v12 = vld [vmem:[%s18015_s7 + $0x790] sm:$0xf]  ;;  %v12140_v2 = vld [vmem:[%s18015_s7 + $0x774] sm:$0xf] }
 0xa0a   : > { %v16376_v29 = vadd.f32 %v5119_v43, %v18252_v22  ;;  %6018 = vmatmul.bf16.gmra.mxu0 %v10921_v20  ;;  %v6097_v4 = vadd.f32 %v5980_v57, %v15978_v61  ;;  %v10941_v20 = vor.u32 %v12145_v59, %v10940_v12  ;;  %v10926_v43 = vld [vmem:[%s18015_s7 + $0x778] sm:$0xf0] }
 0xa0b   : > { %v10929_v11 = vor.u32 %v12140_v2, %v10926_v43  ;;  %v10948_v43 = vld [vmem:[%s18015_s7 + $0x7a0] sm:$0xf] }
 0xa0c   : > { %v16391_v10 = vpop.f32.mrf.mxu1  ;;  %v6545_v61 = vadd.f32 %v16031_v50, %v6097_v4  ;;  %v16413_v50 = vpop.permute.xlu0 %6379 }
 0xa0d   : > { %v16421_v47 = vpop.f32.mrf.mxu2 }
 0xa0e   : > { %v6609_v57 = vmax.f32 %v6545_v61, 0.0 }
 0xa0f   : > { %v16386_v44 = vpop.f32.mrf.mxu3  ;;  %v5981_v62 = vpop.f32.mrf.mxu0 }
 0xa10   : > { %v5982_v63 = vadd.f32 %v5981_v62, %v16274_v37  ;;  %v11076_v37 = vld [vmem:[%s18017_s9 + $0xa0] sm:$0xf]  ;;  %5864 = vmatmul.bf16.gmra.mxu1 %v10941_v20 }
 0xa11   : > { %v11077_v22 = vor.u32 %v12180_v38, %v11076_v37  ;;  %v18254_v20 = vld [vmem:[#allocation35_spill] sm:$0xff] }
 0xa12   : > { %v6098_v53 = vadd.f32 %v5982_v63, %v16004_v27 }
 0xa14   : > { %v6546_v27 = vadd.f32 %v15734_v52, %v6098_v53  ;;  %5162 = vmatmul.bf16.gmra.mxu3 %v10651_v32  ;;  %v16419_v59 = vpop.f32.mrf.mxu1  ;;  %v16424_v52 = vpop.permute.xlu2 %6449  ;;  %v18256_v32 = vld [vmem:[#allocation4_spill] sm:$0xff] }
 0xa15   : > { %18255 = vst [vmem:[#allocation6_spill] sm:$0xff] %v16424_v52  ;;  %v16427_v53 = vpop.permute.xlu0 %6454 }
 0xa16   : > { %v6610_v13 = vmax.f32 %v6546_v27, 0.0  ;;  %18257 = vst [vmem:[#allocation48_spill] sm:$0xff] %v16427_v53  ;;  %v12147_v27 = vld [vmem:[%s18015_s7 + $0x7a4] sm:$0xf0] }
 0xa17   : > { %v16416_v4 = vpop.f32.mrf.mxu3  ;;  %v5984_v62 = vpop.f32.mrf.mxu0 }
 0xa18   : > { %v5985_v63 = vadd.f32 %v5984_v62, %v16293_v30  ;;  %v6659_v12 = vpack.c.bf16 %v6610_v13, %v6609_v57  ;;  %v18258_v57 = vld [vmem:[#allocation36_spill] sm:$0xff]  ;;  %v12142_v13 = vld [vmem:[%s18015_s7 + $0x784] sm:$0xf] }
 0xa19   : > { %6998 = vmatmul.bf16.gmra.mxu2 %v11077_v22  ;;  %v10949_v22 = vor.u32 %v12147_v27, %v10948_v43  ;;  %v10934_v62 = vld [vmem:[%s18015_s7 + $0x788] sm:$0xf0] }
 0xa1a   : > { %v6099_v33 = vadd.f32 %v5985_v63, %v18254_v20  ;;  %6023 = vmatmul.bf16.gmra.mxu0 %v10929_v11  ;;  %v11092_v11 = vld [vmem:[%s18017_s9 + $0xc0] sm:$0xf]  ;;  %v16453_v63 = vpop.f32.mrf.mxu2 }
 0xa1b   : > { %18259 = vst [vmem:[#allocation5_spill] sm:$0xff] %v16453_v63  ;;  %v18260_v20 = vld [vmem:[#allocation3_spill] sm:$0xff]  ;;  %v18261_v63 = vld [vmem:[#allocation80_spill] sm:$0xff] }
 0xa1c   : > { %v6547_v61 = vadd.f32 %v18256_v32, %v6099_v33  ;;  %v16432_v2 = vpop.f32.mrf.mxu1 }
 0xa1e   : > { %v6611_v43 = vmax.f32 %v6547_v61, 0.0 }
 0xa1f   : > { %v16429_v37 = vpop.f32.mrf.mxu3  ;;  %v5986_v38 = vpop.f32.mrf.mxu0 }
 0xa20   : > { %v5987_v30 = vadd.f32 %v5986_v38, %v16321_v45  ;;  %v12184_v45 = vld [vmem:[%s18017_s9 + $0xcc] sm:$0xf0]  ;;  %5869 = vmatmul.bf16.gmra.mxu1 %v10949_v22  ;;  %v16462_v22 = vpop.permute.xlu0 %6439 }
 0xa21   : > { %v11093_v38 = vor.u32 %v12184_v45, %v11092_v11 }
 0xa22   : > { %v6100_v33 = vadd.f32 %v5987_v30, %v18258_v57  ;;  %v16456_v30 = vpop.permute.xlu2 %6374  ;;  %v10937_v57 = vor.u32 %v12142_v13, %v10934_v62  ;;  %v16468_v61 = vpop.f32.mrf.mxu2  ;;  %v12188_v13 = vld [vmem:[%s18017_s9 + $0xec] sm:$0xf0] }
 0xa24   : > { %v6548_v32 = vadd.f32 %v18260_v20, %v6100_v33  ;;  %v16460_v54 = vpop.f32.mrf.mxu1  ;;  %v10942_v20 = vld [vmem:[%s18015_s7 + $0x798] sm:$0xf0] }
 0xa26   : > { %v6612_v27 = vmax.f32 %v6548_v32, 0.0  ;;  %v16495_v32 = vpop.permute.xlu1 %6384 }
 0xa27   : > { %v5128_v14 = vpop.f32.mrf.mxu3  ;;  %v5989_v24 = vpop.f32.mrf.mxu0 }
 0xa28   : > { %v5129_v53 = vadd.f32 %v5128_v14, %v16301_v46  ;;  %v5990_v52 = vadd.f32 %v5989_v24, %v16343_v1  ;;  %v6660_v51 = vpack.c.bf16 %v6612_v27, %v6611_v43  ;;  %v10956_v1 = vld [vmem:[%s18015_s7 + $0x7b0] sm:$0xf]  ;;  %v6365_v62 = vpop.permute.xlu0 %6364 }
 0xa29   : > { %7003 = vmatmul.bf16.gmra.mxu2 %v11093_v38 }
 0xa2a   : > { %v16465_v33 = vadd.f32 %v5129_v53, %v18261_v63  ;;  %v6101_v11 = vadd.f32 %v5990_v52, %v16079_v31  ;;  %6028 = vmatmul.bf16.gmra.mxu0 %v10937_v57  ;;  %7014 = vmatpush.bf16.msrb.mxu3 %v6660_v51  ;;  %v12149_v31 = vld [vmem:[%s18015_s7 + $0x7b4] sm:$0xf0]  ;;  %v6360_v52 = vpop.permute.xlu2 %6359  ;;  %v12144_v63 = vld [vmem:[%s18015_s7 + $0x794] sm:$0xf] }
 0xa2b   : > { %v10957_v51 = vor.u32 %v12149_v31, %v10956_v1  ;;  %v10945_v43 = vor.u32 %v12144_v63, %v10942_v20  ;;  %v10998_v20 = vld [vmem:[%s18017_s9 + $0x10] sm:$0xf0] }
 0xa2c   : > { %v16473_v14 = vpop.f32.mrf.mxu1  ;;  %v6549_v53 = vadd.f32 %v6360_v52, %v6101_v11  ;;  %v16504_v52 = vpop.f32.mrf.mxu2 }
 0xa2e   : > { %7015 = vmatpush.bf16.msrb.mxu3 %v6659_v12  ;;  %v6613_v38 = vmax.f32 %v6549_v53, 0.0 }
 0xa2f   : > { %v16470_v45 = vpop.f32.mrf.mxu3  ;;  %v5991_v46 = vpop.f32.mrf.mxu0 }
 0xa30   : > { %v5992_v24 = vadd.f32 %v5991_v46, %v16369_v19  ;;  %v11108_v19 = vld [vmem:[%s18017_s9 + $0xe0] sm:$0xf]  ;;  %5874 = vmatmul.bf16.gmra.mxu1 %v10957_v51 }
 0xa31   : > { %v18262_v51 = vld [vmem:[#allocation83_spill] sm:$0xff] }
 0xa32   : > { %v6102_v12 = vadd.f32 %v5992_v24, %v16103_v49  ;;  %7016 = vmatpush.bf16.msrb.mxu3 %v16371_v36  ;;  %v11109_v36 = vor.u32 %v12188_v13, %v11108_v19  ;;  %v10964_v13 = vld [vmem:[%s18015_s7 + $0x7c0] sm:$0xf] }
 0xa34   : > { %v6550_v49 = vadd.f32 %v6365_v62, %v6102_v12  ;;  %v16500_v1 = vpop.f32.mrf.mxu1  ;;  %v6370_v62 = vpop.permute.xlu1 %6369 }
 0xa36   : > { %7017 = vmatpush.bf16.msrb.mxu3 %v16323_v7  ;;  %v6614_v27 = vmax.f32 %v6550_v49, 0.0  ;;  %v12146_v49 = vld [vmem:[%s18015_s7 + $0x7a4] sm:$0xf] }
 0xa37   : > { %v5133_v57 = vpop.f32.mrf.mxu3  ;;  %v5994_v11 = vpop.f32.mrf.mxu0 }
 0xa38   : > { %v5134_v46 = vadd.f32 %v5133_v57, %v16366_v5  ;;  %v5995_v24 = vadd.f32 %v5994_v11, %v16391_v10  ;;  %v16502_v31 = vpack.c.bf16 %v6614_v27, %v6613_v38 }
 0xa39   : > { %7008 = vmatmul.bf16.gmra.mxu2 %v11109_v36  ;;  %v10950_v36 = vld [vmem:[%s18015_s7 + $0x7a8] sm:$0xf0] }
 0xa3a   : > { %v16507_v12 = vadd.f32 %v5134_v46, %v18262_v51  ;;  %v6103_v7 = vadd.f32 %v5995_v24, %v16125_v3  ;;  %6033 = vmatmul.bf16.gmra.mxu0 %v10945_v43  ;;  %7018 = vmatpush.bf16.msrb.mxu3 %v16276_v48  ;;  %v12151_v3 = vld [vmem:[%s18015_s7 + $0x7c4] sm:$0xf0]  ;;  %v10953_v43 = vor.u32 %v12146_v49, %v10950_v36 }
 0xa3b   : > { %v10965_v63 = vor.u32 %v12151_v3, %v10964_v13 }
 0xa3c   : > { %v6551_v48 = vadd.f32 %v6370_v62, %v6103_v7 }
 0xa3d   : > { %v16515_v19 = vpop.f32.mrf.mxu1 }
 0xa3e   : > { %7019 = vmatpush.bf16.msrb.mxu3 %v16226_v16  ;;  %v6615_v38 = vmax.f32 %v6551_v48, 0.0 }
 0xa3f   : > { %v16512_v5 = vpop.f32.mrf.mxu3  ;;  %v5996_v10 = vpop.f32.mrf.mxu0 }
 0xa40   : > { %v5997_v53 = vadd.f32 %v5996_v10, %v16419_v59  ;;  %v12158_v59 = vld [vmem:[%s18017_s9 + $0x4] sm:$0xf]  ;;  %5879 = vmatmul.bf16.gmra.mxu1 %v10965_v63 }
 0xa41   : > { %v18263_v10 = vld [vmem:[#allocation87_spill] sm:$0xff] }
 0xa42   : > { %v6104_v16 = vadd.f32 %v5997_v53, %v16150_v25  ;;  %7020 = vmatpush.bf16.msrb.mxu3 %v16174_v42  ;;  %v11001_v42 = vor.u32 %v12158_v59, %v10998_v20  ;;  %v12148_v59 = vld [vmem:[%s18015_s7 + $0x7b4] sm:$0xf]  ;;  %v10958_v20 = vld [vmem:[%s18015_s7 + $0x7b8] sm:$0xf0] }
 0xa43   : > { %v10961_v36 = vor.u32 %v12148_v59, %v10958_v20  ;;  %v4979_v20 = vpop.f32.mrf.mxu2 }
 0xa44   : > { %v6552_v25 = vadd.f32 %v16456_v30, %v6104_v16  ;;  %v12162_v16 = vld [vmem:[%s18017_s9 + $0x24] sm:$0xf] }
 0xa45   : > { %v16541_v51 = vpop.f32.mrf.mxu1 }
 0xa46   : > { %7021 = vmatpush.bf16.msrb.mxu3 %v16120_v26  ;;  %v6616_v27 = vmax.f32 %v6552_v25, 0.0 }
 0xa47   : > { %v5138_v57 = vpop.f32.mrf.mxu3  ;;  %v5999_v11 = vpop.f32.mrf.mxu0 }
 0xa48   : > { %v5139_v46 = vadd.f32 %v5138_v57, %v16421_v47  ;;  %v6000_v24 = vadd.f32 %v5999_v11, %v16432_v2  ;;  %v16543_v7 = vpack.c.bf16 %v6616_v27, %v6615_v38  ;;  %v10972_v47 = vld [vmem:[%s18015_s7 + $0x7d0] sm:$0xf]  ;;  %v12153_v2 = vld [vmem:[%s18015_s7 + $0x7d4] sm:$0xf0] }
 0xa49   : > { %7022 = vmatmul.bf16.vlgmr.msrb.gmra.mxu3 %v11001_v42  ;;  %v10973_v63 = vor.u32 %v12153_v2, %v10972_v47 }
 0xa4a   : > { %v16546_v53 = vadd.f32 %v5139_v46, %v18263_v10  ;;  %v6105_v30 = vadd.f32 %v6000_v24, %v16179_v8  ;;  %6038 = vmatmul.bf16.gmra.mxu0 %v10953_v43  ;;  %v18264_v46 = vld [vmem:[#allocation91_spill] sm:$0xff] }
 0xa4c   : > { %v6553_v48 = vadd.f32 %v16413_v50, %v6105_v30 }
 0xa4d   : > { %v16552_v62 = vpop.f32.mrf.mxu1 }
 0xa4e   : > { %v6617_v49 = vmax.f32 %v6553_v48, 0.0  ;;  %v12150_v48 = vld [vmem:[%s18015_s7 + $0x7c4] sm:$0xf] }
 0xa4f   : > { %v16549_v26 = vpop.f32.mrf.mxu3  ;;  %v6001_v13 = vpop.f32.mrf.mxu0 }
 0xa50   : > { %v6002_v3 = vadd.f32 %v6001_v13, %v16460_v54  ;;  %v11014_v54 = vld [vmem:[%s18017_s9 + $0x30] sm:$0xf0]  ;;  %5884 = vmatmul.bf16.gmra.mxu1 %v10973_v63  ;;  %v12166_v63 = vld [vmem:[%s18017_s9 + $0x44] sm:$0xf] }
 0xa52   : > { %v6106_v8 = vadd.f32 %v6002_v3, %v16202_v55  ;;  %v11017_v55 = vor.u32 %v12162_v16, %v11014_v54  ;;  %v18265_v16 = vld [vmem:[#allocation39_spill] sm:$0xff]  ;;  %v18266_v54 = vld [vmem:[#allocation62_spill] sm:$0xff] }
 0xa53   : > { %v3616_v59 = vadd.f32 %v18266_v54, %v18265_v16 }
 0xa54   : > { %v6554_v50 = vadd.f32 %v16495_v32, %v6106_v8  ;;  %v10966_v8 = vld [vmem:[%s18015_s7 + $0x7c8] sm:$0xf0] }
 0xa55   : > { %v16577_v57 = vpop.f32.mrf.mxu1 }
 0xa56   : > { %v6618_v25 = vmax.f32 %v6554_v50, 0.0 }
 0xa57   : > { %v5143_v42 = vpop.f32.mrf.mxu3  ;;  %v6004_v38 = vpop.f32.mrf.mxu0 }
 0xa58   : > { %v5144_v43 = vadd.f32 %v5143_v42, %v16468_v61  ;;  %v6005_v27 = vadd.f32 %v6004_v38, %v16473_v14  ;;  %v16579_v11 = vpack.c.bf16 %v6618_v25, %v6617_v49  ;;  %v10980_v61 = vld [vmem:[%s18015_s7 + $0x7e0] sm:$0xf]  ;;  %v12155_v14 = vld [vmem:[%s18015_s7 + $0x7e4] sm:$0xf0] }
 0xa59   : > { %7027 = vmatmul.bf16.gmra.mxu3 %v11017_v55  ;;  %v10981_v47 = vor.u32 %v12155_v14, %v10980_v61  ;;  %v10969_v55 = vor.u32 %v12150_v48, %v10966_v8  ;;  %v5111_v61 = vadd.f32 %v16290_v35, %v16082_v21  ;;  %v18269_v14 = vld [vmem:[#allocation63_spill] sm:$0xff]  ;;  %v11046_v35 = vld [vmem:[%s18017_s9 + $0x70] sm:$0xf0] }
 0xa5a   : > { %v16582_v24 = vadd.f32 %v5144_v43, %v18264_v46  ;;  %v6107_v32 = vadd.f32 %v6005_v27, %v16229_v23  ;;  %6043 = vmatmul.bf16.gmra.mxu0 %v10961_v36  ;;  %v18267_v27 = vld [vmem:[#allocation54_spill] sm:$0xff]  ;;  %v12170_v21 = vld [vmem:[%s18017_s9 + $0x64] sm:$0xf] }
 0xa5b   : > { %v4105_v46 = vadd.f32 %v18267_v27, %v3616_v59  ;;  %v11049_v16 = vor.u32 %v12170_v21, %v11046_v35  ;;  %v18271_v59 = vld [vmem:[#allocation40_spill] sm:$0xff] }
 0xa5c   : > { %v6555_v2 = vadd.f32 %v16340_v39, %v6107_v32  ;;  %v18268_v32 = vld [vmem:[#allocation95_spill] sm:$0xff] }
 0xa5d   : > { %v16594_v3 = vpop.f32.mrf.mxu1 }
 0xa5e   : > { %v6619_v50 = vmax.f32 %v6555_v2, 0.0 }
 0xa5f   : > { %v16585_v10 = vpop.f32.mrf.mxu3  ;;  %v6006_v30 = vpop.f32.mrf.mxu0 }
 0xa60   : > { %v6007_v13 = vadd.f32 %v6006_v30, %v16500_v1  ;;  %v11030_v1 = vld [vmem:[%s18017_s9 + $0x50] sm:$0xf0]  ;;  %5889 = vmatmul.bf16.gmra.mxu1 %v10981_v47  ;;  %v4274_v47 = vadd.f32 %v18269_v14, %v4105_v46 }
 0xa62   : > { %v6108_v23 = vadd.f32 %v6007_v13, %v16254_v6  ;;  %v11033_v6 = vor.u32 %v12166_v63, %v11030_v1  ;;  %v10988_v63 = vld [vmem:[%s18015_s7 + $0x7f0] sm:$0xf]  ;;  %v12157_v1 = vld [vmem:[%s18015_s7 + $0x7f4] sm:$0xf0] }
 0xa64   : > { %v6556_v39 = vadd.f32 %v16070_v18, %v6108_v23  ;;  %v5209_v23 = vadd.f32 %v5111_v61, %v4274_v47 }
 0xa65   : > { %v5852_v13 = vpop.f32.mrf.mxu1 }
 0xa66   : > { %v6620_v49 = vmax.f32 %v6556_v39, 0.0  ;;  %v10974_v39 = vld [vmem:[%s18015_s7 + $0x7d8] sm:$0xf0] }
 0xa67   : > { %v5148_v36 = vpop.f32.mrf.mxu3  ;;  %v6009_v25 = vpop.f32.mrf.mxu0 }
 0xa68   : > { %v5149_v42 = vadd.f32 %v5148_v36, %v4979_v20  ;;  %v6010_v38 = vadd.f32 %v6009_v25, %v16515_v19  ;;  %v16614_v43 = vpack.c.bf16 %v6620_v49, %v6619_v50  ;;  %v18272_v20 = vld [vmem:[#allocation67_spill] sm:$0xff] }
 0xa69   : > { %7032 = vmatmul.bf16.gmra.mxu3 %v11033_v6  ;;  %v18270_v6 = vld [vmem:[#allocation33_spill] sm:$0xff]  ;;  %v3621_v50 = vadd.f32 %v18272_v20, %v18271_v59  ;;  %v18278_v20 = vld [vmem:[#allocation64_spill] sm:$0xff] }
 0xa6a   : > { %v16618_v18 = vadd.f32 %v5149_v42, %v18268_v32  ;;  %v6109_v30 = vadd.f32 %v6010_v38, %v16279_v40  ;;  %6048 = vmatmul.bf16.gmra.mxu0 %v10969_v55  ;;  %v10989_v40 = vor.u32 %v12157_v1, %v10988_v63  ;;  %v18273_v38 = vld [vmem:[#allocation58_spill] sm:$0xff]  ;;  %v5116_v32 = vadd.f32 %v16338_v0, %v16136_v15  ;;  %v11062_v15 = vld [vmem:[%s18017_s9 + $0x90] sm:$0xf0]  ;;  %v10982_v0 = vld [vmem:[%s18015_s7 + $0x7e8] sm:$0xf0] }
 0xa6b   : > { %v4110_v27 = vadd.f32 %v18273_v38, %v3621_v50 }
 0xa6c   : > { %v6557_v48 = vadd.f32 %v16282_v60, %v6109_v30  ;;  %v18274_v30 = vld [vmem:[#allocation68_spill] sm:$0xff] }
 0xa6d   : > { %v5855_v54 = vpop.f32.mrf.mxu1  ;;  %v4279_v61 = vadd.f32 %v18274_v30, %v4110_v27  ;;  %v12178_v30 = vld [vmem:[%s18017_s9 + $0xa4] sm:$0xf] }
 0xa6e   : > { %v6621_v55 = vmax.f32 %v6557_v48, 0.0  ;;  %v18276_v48 = vld [vmem:[#allocation42_spill] sm:$0xff] }
 0xa6f   : > { %v6011_v2 = vpop.f32.mrf.mxu0 }
 0xa70   : > { %v6012_v19 = vadd.f32 %v6011_v2, %v16541_v51  ;;  %v12152_v51 = vld [vmem:[%s18015_s7 + $0x7d4] sm:$0xf]  ;;  %5894 = vmatmul.bf16.gmra.mxu1 %v10989_v40 }
 0xa71   : > { %v10977_v49 = vor.u32 %v12152_v51, %v10974_v39 }
 0xa72   : > { %v6110_v8 = vadd.f32 %v6012_v19, %v5209_v23  ;;  %v5211_v23 = vadd.f32 %v5116_v32, %v4279_v61  ;;  %v18280_v61 = vld [vmem:[#allocation29_spill] sm:$0xff] }
 0xa74   : > { %v6558_v60 = vadd.f32 %v18270_v6, %v6110_v8  ;;  %v18277_v8 = vld [vmem:[#allocation72_spill] sm:$0xff] }
 0xa75   : > { %v5857_v2 = vpop.f32.mrf.mxu1  ;;  %v3626_v21 = vadd.f32 %v18277_v8, %v18276_v48  ;;  %v18284_v48 = vld [vmem:[#allocation76_spill] sm:$0xff] }
 0xa76   : > { %v6622_v36 = vmax.f32 %v6558_v60, 0.0 }
 0xa77   : > { %v6014_v25 = vpop.f32.mrf.mxu0  ;;  %v4115_v50 = vadd.f32 %v18278_v20, %v3626_v21  ;;  %v5126_v21 = vadd.f32 %v16429_v37, %v16270_v9 }
 0xa78   : > { %v16647_v42 = vpack.c.bf16 %v6622_v36, %v6621_v55  ;;  %v6015_v46 = vadd.f32 %v6014_v25, %v16552_v62  ;;  %v12174_v62 = vld [vmem:[%s18017_s9 + $0x84] sm:$0xf]  ;;  %v18279_v25 = vld [vmem:[#allocation73_spill] sm:$0xff] }
 0xa79   : > { %7037 = vmatmul.bf16.gmra.mxu3 %v11049_v16  ;;  %v4284_v38 = vadd.f32 %v18279_v25, %v4115_v50  ;;  %v18288_v25 = vld [vmem:[#allocation81_spill] sm:$0xff] }
 0xa7a   : > { %6053 = vmatmul.bf16.gmra.mxu0 %v10977_v49  ;;  %v6111_v14 = vadd.f32 %v6015_v46, %v16326_v56  ;;  %v12154_v56 = vld [vmem:[%s18015_s7 + $0x7e4] sm:$0xf]  ;;  %v5121_v49 = vadd.f32 %v16386_v44, %v16217_v28  ;;  %v12156_v28 = vld [vmem:[%s18015_s7 + $0x7f4] sm:$0xf] }
 0xa7b   : > { %v10985_v51 = vor.u32 %v12154_v56, %v10982_v0  ;;  %v5124_v56 = vadd.f32 %v16416_v4, %v16238_v17 }
 0xa7c   : > { %v6559_v63 = vadd.f32 %v16220_v58, %v6111_v14  ;;  %v11065_v58 = vor.u32 %v12174_v62, %v11062_v15  ;;  %v5213_v46 = vadd.f32 %v5121_v49, %v4284_v38  ;;  %v18286_v49 = vld [vmem:[#allocation27_spill] sm:$0xff] }
 0xa7d   : > { %v5860_v59 = vpop.f32.mrf.mxu1  ;;  %v5214_v8 = vadd.f32 %v5124_v56, %v18284_v48 }
 0xa7e   : > { %v6623_v35 = vmax.f32 %v6559_v63, 0.0 }
 0xa7f   : > { %v6016_v47 = vpop.f32.mrf.mxu0 }
 0xa80   : > { %v6017_v19 = vadd.f32 %v6016_v47, %v16577_v57  ;;  %v18275_v57 = vld [vmem:[#allocation31_spill] sm:$0xff]  ;;  %v18281_v47 = vld [vmem:[#allocation44_spill] sm:$0xff] }
 0xa82   : > { %v6112_v1 = vadd.f32 %v6017_v19, %v5211_v23  ;;  %v18282_v23 = vld [vmem:[#allocation77_spill] sm:$0xff] }
 0xa83   : > { %v3631_v19 = vadd.f32 %v18282_v23, %v18281_v47 }
 0xa84   : > { %v6560_v40 = vadd.f32 %v18275_v57, %v6112_v1  ;;  %v18283_v57 = vld [vmem:[#allocation69_spill] sm:$0xff] }
 0xa85   : > { %v5862_v44 = vpop.f32.mrf.mxu1 }
 0xa86   : > { %v6624_v39 = vmax.f32 %v6560_v40, 0.0  ;;  %v4120_v40 = vadd.f32 %v18283_v57, %v3631_v19  ;;  %v18292_v57 = vld [vmem:[#allocation49_spill] sm:$0xff] }
 0xa87   : > { %v6019_v6 = vpop.f32.mrf.mxu0 }
 0xa88   : > { %v6020_v60 = vadd.f32 %v6019_v6, %v16594_v3  ;;  %v16673_v16 = vpack.c.bf16 %v6624_v39, %v6623_v35 }
 0xa89   : > { %7042 = vmatmul.bf16.gmra.mxu3 %v11065_v58 }
 0xa8a   : > { %v6113_v55 = vadd.f32 %v6020_v60, %v16376_v29  ;;  %6058 = vmatmul.bf16.gmra.mxu0 %v10985_v51  ;;  %v11078_v29 = vld [vmem:[%s18017_s9 + $0xb0] sm:$0xf0]  ;;  %v18285_v51 = vld [vmem:[#allocation78_spill] sm:$0xff] }
 0xa8b   : > { %v11081_v14 = vor.u32 %v12178_v30, %v11078_v29  ;;  %v4289_v39 = vadd.f32 %v18285_v51, %v4120_v40  ;;  %v18289_v29 = vld [vmem:[#allocation74_spill] sm:$0xff]  ;;  %v18293_v40 = vld [vmem:[#allocation85_spill] sm:$0xff] }
 0xa8c   : > { %v6561_v36 = vadd.f32 %v16166_v41, %v6113_v55  ;;  %v10990_v41 = vld [vmem:[%s18015_s7 + $0x7f8] sm:$0xf0]  ;;  %v11094_v55 = vld [vmem:[%s18017_s9 + $0xd0] sm:$0xf0] }
 0xa8d   : > { %v10993_v1 = vor.u32 %v12156_v28, %v10990_v41  ;;  %v5865_v35 = vpop.f32.mrf.mxu1  ;;  %v5215_v20 = vadd.f32 %v5126_v21, %v4289_v39  ;;  %v18294_v21 = vld [vmem:[#allocation79_spill] sm:$0xff] }
 0xa8e   : > { %v6625_v63 = vmax.f32 %v6561_v36, 0.0  ;;  %v18287_v36 = vld [vmem:[#allocation46_spill] sm:$0xff] }
 0xa8f   : > { %v6021_v27 = vpop.f32.mrf.mxu0  ;;  %v3636_v38 = vadd.f32 %v18288_v25, %v18287_v36  ;;  %v18299_v36 = vld [vmem:[#allocation52_spill] sm:$0xff] }
 0xa90   : > { %v6022_v32 = vadd.f32 %v6021_v27, %v5852_v13  ;;  %v18300_v25 = vld [vmem:[#allocation88_spill] sm:$0xff] }
 0xa91   : > { %v4125_v28 = vadd.f32 %v18289_v29, %v3636_v38  ;;  %v3646_v38 = vadd.f32 %v18300_v25, %v18299_v36 }
 0xa92   : > { %v6114_v3 = vadd.f32 %v6022_v32, %v5213_v46 }
 0xa94   : > { %v6562_v13 = vadd.f32 %v18280_v61, %v6114_v3  ;;  %v18290_v61 = vld [vmem:[#allocation7_spill] sm:$0xff] }
 0xa95   : > { %v5867_v32 = vpop.f32.mrf.mxu1 }
 0xa96   : > { %v6626_v62 = vmax.f32 %v6562_v13, 0.0  ;;  %v5131_v13 = vadd.f32 %v16470_v45, %v18290_v61  ;;  %v11110_v45 = vld [vmem:[%s18017_s9 + $0xf0] sm:$0xf0] }
 0xa97   : > { %v6024_v15 = vpop.f32.mrf.mxu0 }
 0xa98   : > { %v6667_v0 = vpack.c.bf16 %v6626_v62, %v6625_v63  ;;  %v6025_v58 = vadd.f32 %v6024_v15, %v5855_v54  ;;  %v12182_v54 = vld [vmem:[%s18017_s9 + $0xc4] sm:$0xf]  ;;  %v6445_v15 = vpop.permute.xlu1 %6444 }
 0xa99   : > { %7047 = vmatmul.bf16.gmra.mxu3 %v11081_v14  ;;  %v11097_v37 = vor.u32 %v12182_v54, %v11094_v55  ;;  %v18291_v14 = vld [vmem:[#allocation82_spill] sm:$0xff] }
 0xa9a   : > { %6063 = vmatmul.bf16.gmra.mxu0 %v10993_v1  ;;  %v6115_v6 = vadd.f32 %v6025_v58, %v5214_v8  ;;  %v4294_v47 = vadd.f32 %v18291_v14, %v4125_v28  ;;  %v18297_v54 = vld [vmem:[#allocation6_spill] sm:$0xff]  ;;  %v18303_v28 = vld [vmem:[#allocation16_spill] sm:$0xff] }
 0xa9c   : > { %v6563_v17 = vadd.f32 %v16090_v34, %v6115_v6  ;;  %v12207_v34 = vld [vmem:[%s18021_s13] sm:$0xff]  ;;  %v5217_v19 = vadd.f32 %v5131_v13, %v4294_v47  ;;  %v18305_v13 = vld [vmem:[#allocation89_spill] sm:$0xff] }
 0xa9d   : > { %v5870_v1 = vpop.f32.mrf.mxu1  ;;  %v18306_v47 = vld [vmem:[#allocation15_spill] sm:$0xff] }
 0xa9e   : > { %v6627_v27 = vmax.f32 %v6563_v17, 0.0 }
 0xa9f   : > { %v6026_v60 = vpop.f32.mrf.mxu0 }
 0xaa0   : > { %v6027_v50 = vadd.f32 %v6026_v60, %v5857_v2  ;;  %v18295_v60 = vld [vmem:[#allocation47_spill] sm:$0xff] }
 0xaa2   : > { %v6116_v4 = vadd.f32 %v6027_v50, %v5215_v20  ;;  %v5136_v20 = vadd.f32 %v16512_v5, %v18295_v60  ;;  %v18296_v50 = vld [vmem:[#allocation86_spill] sm:$0xff] }
 0xaa3   : > { %v12161_v5 = vld [vmem:[%s18017_s9 + $0x14] sm:$0xf0] }
 0xaa4   : > { %v6564_v9 = vadd.f32 %v18286_v49, %v6116_v4 }
 0xaa5   : > { %v5872_v6 = vpop.f32.mrf.mxu1 }
 0xaa6   : > { %v6628_v46 = vmax.f32 %v6564_v9, 0.0 }
 0xaa7   : > { %v6029_v2 = vpop.f32.mrf.mxu0 }
 0xaa8   : > { %v6030_v3 = vadd.f32 %v6029_v2, %v5860_v59  ;;  %v6668_v30 = vpack.c.bf16 %v6628_v46, %v6627_v27 }
 0xaa9   : > { %7052 = vmatmul.bf16.gmra.mxu3 %v11097_v37 }
 0xaaa   : > { %v6117_v41 = vadd.f32 %v6030_v3, %v16465_v33  ;;  %7063 = vmatpush.bf16.msrb.mxu1 %v6668_v30  ;;  %7781 = vmatmul.bf16.vlgmr.msrb.gmra.mxu0 %v12207_v34  ;;  %v12186_v33 = vld [vmem:[%s18017_s9 + $0xe4] sm:$0xf]  ;;  %v18301_v34 = vld [vmem:[#allocation17_spill] sm:$0xff]  ;;  %v18302_v3 = vld [vmem:[#allocation84_spill] sm:$0xff] }
 0xaab   : > { %v4135_v30 = vadd.f32 %v18302_v3, %v3646_v38  ;;  %v18320_v38 = vld [vmem:[#allocation60_spill] sm:$0xff] }
 0xaac   : > { %v6565_v59 = vadd.f32 %v16462_v22, %v6117_v41  ;;  %v18304_v41 = vld [vmem:[#allocation5_spill] sm:$0xff] }
 0xaad   : > { %v5141_v61 = vadd.f32 %v16549_v26, %v18304_v41  ;;  %v4304_v14 = vadd.f32 %v18305_v13, %v4135_v30  ;;  %v18308_v26 = vld [vmem:[#allocation14_spill] sm:$0xff] }
 0xaae   : > { %7064 = vmatpush.bf16.msrb.mxu1 %v6667_v0  ;;  %v11113_v0 = vor.u32 %v12186_v33, %v11110_v45  ;;  %v6629_v58 = vmax.f32 %v6565_v59, 0.0  ;;  %v12165_v33 = vld [vmem:[%s18017_s9 + $0x34] sm:$0xf0]  ;;  %v18309_v45 = vld [vmem:[#allocation8_spill] sm:$0xff] }
 0xaaf   : > { %v6031_v23 = vpop.f32.mrf.mxu0  ;;  %v18322_v41 = vld [vmem:[#allocation94_spill] sm:$0xff] }
 0xab0   : > { %v6032_v63 = vadd.f32 %v6031_v23, %v5862_v44  ;;  %v3641_v44 = vadd.f32 %v18293_v40, %v18292_v57  ;;  %v18311_v57 = vld [vmem:[#allocation92_spill] sm:$0xff] }
 0xab2   : > { %v6118_v62 = vadd.f32 %v6032_v63, %v5217_v19  ;;  %7065 = vmatpush.bf16.msrb.mxu1 %v16673_v16  ;;  %v4130_v51 = vadd.f32 %v18294_v21, %v3641_v44  ;;  %v5221_v19 = vadd.f32 %v5141_v61, %v4304_v14 }
 0xab4   : > { %v6566_v56 = vadd.f32 %v6445_v15, %v6118_v62  ;;  %v4299_v17 = vadd.f32 %v18296_v50, %v4130_v51  ;;  %v5146_v50 = vadd.f32 %v16585_v10, %v16504_v52  ;;  %v12169_v52 = vld [vmem:[%s18017_s9 + $0x54] sm:$0xf0] }
 0xab5   : > { %v18318_v10 = vld [vmem:[#allocation10_spill] sm:$0xff] }
 0xab6   : > { %7066 = vmatpush.bf16.msrb.mxu1 %v16647_v42  ;;  %v6630_v22 = vmax.f32 %v6566_v56, 0.0  ;;  %v5219_v4 = vadd.f32 %v5136_v20, %v4299_v17  ;;  %v18314_v20 = vld [vmem:[#allocation12_spill] sm:$0xff]  ;;  %v5150_v17 = vpop.f32.mrf.mxu3 }
 0xab7   : > { %v6034_v48 = vpop.f32.mrf.mxu0 }
 0xab8   : > { %v6035_v16 = vadd.f32 %v6034_v48, %v5865_v35  ;;  %v16732_v8 = vpack.c.bf16 %v6630_v22, %v6629_v58  ;;  %v18312_v48 = vld [vmem:[#allocation13_spill] sm:$0xff] }
 0xab9   : > { %7057 = vmatmul.bf16.gmra.mxu3 %v11113_v0  ;;  %v18310_v0 = vld [vmem:[#allocation56_spill] sm:$0xff] }
 0xaba   : > { %v6119_v39 = vadd.f32 %v6035_v16, %v16507_v12  ;;  %7067 = vmatpush.bf16.msrb.mxu1 %v16614_v43  ;;  %v11004_v12 = vld [vmem:[%s18017_s9 + $0x8] sm:$0xf]  ;;  %v3651_v40 = vadd.f32 %v18311_v57, %v18310_v0  ;;  %v18326_v57 = vld [vmem:[#allocation65_spill] sm:$0xff] }
 0xabb   : > { %v18298_v43 = vld [vmem:[#allocation48_spill] sm:$0xff]  ;;  %v11005_v37 = vor.u32 %v12161_v5, %v11004_v12  ;;  %v18317_v5 = vld [vmem:[#allocation34_spill] sm:$0xff] }
 0xabc   : > { %v6567_v55 = vadd.f32 %v18297_v54, %v6119_v39  ;;  %v18313_v39 = vld [vmem:[#allocation90_spill] sm:$0xff] }
 0xabe   : > { %7068 = vmatpush.bf16.msrb.mxu1 %v16579_v11  ;;  %v5875_v11 = vpop.f32.mrf.mxu1  ;;  %v6631_v27 = vmax.f32 %v6567_v55, 0.0  ;;  %v18316_v55 = vld [vmem:[#allocation11_spill] sm:$0xff] }
 0xabf   : > { %v6036_v42 = vpop.f32.mrf.mxu0 }
 0xac0   : > { %v6037_v35 = vadd.f32 %v6036_v42, %v5867_v32  ;;  %v18315_v42 = vld [vmem:[#allocation93_spill] sm:$0xff] }
 0xac2   : > { %v6120_v49 = vadd.f32 %v6037_v35, %v5219_v4  ;;  %7069 = vmatpush.bf16.msrb.mxu1 %v16543_v7  ;;  %v4981_v35 = vpop.f32.mrf.mxu2 }
 0xac3   : > { %v5151_v14 = vadd.f32 %v5150_v17, %v4981_v35  ;;  %v18329_v17 = vld [vmem:[#allocation99_spill] sm:$0xff] }
 0xac4   : > { %v6568_v9 = vadd.f32 %v18298_v43, %v6120_v49 }
 0xac6   : > { %7070 = vmatpush.bf16.msrb.mxu1 %v16502_v31  ;;  %v6632_v46 = vmax.f32 %v6568_v9, 0.0  ;;  %v5877_v23 = vpop.f32.mrf.mxu1 }
 0xac7   : > { %v6039_v7 = vpop.f32.mrf.mxu0 }
 0xac8   : > { %v6040_v2 = vadd.f32 %v6039_v7, %v5870_v1  ;;  %v16754_v32 = vpack.c.bf16 %v6632_v46, %v6631_v27  ;;  %v18307_v1 = vld [vmem:[#allocation38_spill] sm:$0xff]  ;;  %v18321_v27 = vld [vmem:[#allocation96_spill] sm:$0xff] }
 0xac9   : > { %7071 = vmatmul.bf16.vlgmr.msrb.gmra.mxu1 %v11005_v37  ;;  %v3656_v46 = vadd.f32 %v18321_v27, %v18320_v38 }
 0xaca   : > { %7440 = vmatpush.bf16.msra.mxu1 %v18301_v34  ;;  %v6121_v29 = vadd.f32 %v6040_v2, %v16546_v53  ;;  %v11020_v53 = vld [vmem:[%s18017_s9 + $0x28] sm:$0xf]  ;;  %v5153_v2 = vpop.f32.mrf.mxu3 }
 0xacb   : > { %v11021_v56 = vor.u32 %v12165_v33, %v11020_v53  ;;  %v4145_v61 = vadd.f32 %v18322_v41, %v3656_v46  ;;  %v18333_v46 = vld [vmem:[#allocation70_spill] sm:$0xff] }
 0xacc   : > { %v6569_v59 = vadd.f32 %v18307_v1, %v6121_v29 }
 0xace   : > { %7441 = vmatpush.bf16.msra.mxu1 %v18303_v28  ;;  %v6633_v44 = vmax.f32 %v6569_v59, 0.0  ;;  %v5880_v51 = vpop.f32.mrf.mxu1  ;;  %v4984_v28 = vpop.f32.mrf.mxu2 }
 0xacf   : > { %v6041_v31 = vpop.f32.mrf.mxu0 }
 0xad0   : > { %v6042_v63 = vadd.f32 %v6041_v31, %v5872_v6  ;;  %v4140_v6 = vadd.f32 %v18313_v39, %v3651_v40  ;;  %v18327_v40 = vld [vmem:[#allocation100_spill] sm:$0xff] }
 0xad2   : > { %7442 = vmatpush.bf16.msra.mxu1 %v18306_v47  ;;  %v6122_v62 = vadd.f32 %v6042_v63, %v5221_v19  ;;  %v4309_v4 = vadd.f32 %v18315_v42, %v4140_v6  ;;  %v18323_v47 = vld [vmem:[#allocation97_spill] sm:$0xff]  ;;  %v5155_v59 = vpop.f32.mrf.mxu3  ;;  %v18328_v6 = vld [vmem:[#allocation98_spill] sm:$0xff] }
 0xad4   : > { %v6570_v15 = vadd.f32 %v18309_v45, %v6122_v62  ;;  %v5223_v49 = vadd.f32 %v5146_v50, %v4309_v4  ;;  %v18324_v62 = vld [vmem:[#allocation32_spill] sm:$0xff]  ;;  %v12173_v45 = vld [vmem:[%s18017_s9 + $0x74] sm:$0xf0] }
 0xad6   : > { %7443 = vmatpush.bf16.msra.mxu1 %v18308_v26  ;;  %v6634_v58 = vmax.f32 %v6570_v15, 0.0  ;;  %v5882_v37 = vpop.f32.mrf.mxu1  ;;  %v11052_v26 = vld [vmem:[%s18017_s9 + $0x68] sm:$0xf]  ;;  %v18325_v15 = vld [vmem:[#allocation9_spill] sm:$0xff] }
 0xad7   : > { %v6044_v22 = vpop.f32.mrf.mxu0  ;;  %v11053_v0 = vor.u32 %v12173_v45, %v11052_v26 }
 0xad8   : > { %v6045_v16 = vadd.f32 %v6044_v22, %v5875_v11  ;;  %v16775_v21 = vpack.c.bf16 %v6634_v58, %v6633_v44  ;;  %v18319_v11 = vld [vmem:[#allocation45_spill] sm:$0xff]  ;;  %v3661_v44 = vadd.f32 %v18327_v40, %v18326_v57  ;;  %v11084_v57 = vld [vmem:[%s18017_s9 + $0xa8] sm:$0xf]  ;;  %v12181_v40 = vld [vmem:[%s18017_s9 + $0xb4] sm:$0xf0] }
 0xad9   : > { %7076 = vmatmul.bf16.gmra.mxu1 %v11021_v56 }
 0xada   : > { %7444 = vmatpush.bf16.msra.mxu1 %v18312_v48  ;;  %v6123_v60 = vadd.f32 %v6045_v16, %v16582_v24  ;;  %v11036_v24 = vld [vmem:[%s18017_s9 + $0x48] sm:$0xf]  ;;  %v5158_v50 = vpop.f32.mrf.mxu3 }
 0xadb   : > { %v11037_v25 = vor.u32 %v12169_v52, %v11036_v24  ;;  %v18331_v24 = vld [vmem:[#allocation30_spill] sm:$0xff] }
 0xadc   : > { %v6571_v43 = vadd.f32 %v18317_v5, %v6123_v60  ;;  %v4150_v60 = vadd.f32 %v18328_v6, %v3661_v44  ;;  %v18339_v44 = vld [vmem:[#allocation41_spill] sm:$0xff] }
 0xade   : > { %7445 = vmatpush.bf16.msra.mxu1 %v18314_v20  ;;  %v6635_v7 = vmax.f32 %v6571_v43, 0.0  ;;  %v5885_v31 = vpop.f32.mrf.mxu1 }
 0xadf   : > { %v6046_v54 = vpop.f32.mrf.mxu0 }
 0xae0   : > { %v6047_v12 = vadd.f32 %v6046_v54, %v5877_v23  ;;  %v4314_v23 = vadd.f32 %v18323_v47, %v4145_v61  ;;  %v18330_v54 = vld [vmem:[#allocation101_spill] sm:$0xff] }
 0xae2   : > { %7446 = vmatpush.bf16.msra.mxu1 %v18316_v55  ;;  %v6124_v9 = vadd.f32 %v6047_v12, %v5223_v49  ;;  %v5225_v63 = vadd.f32 %v5151_v14, %v4314_v23  ;;  %v4319_v55 = vadd.f32 %v18330_v54, %v4150_v60  ;;  %v5160_v38 = vpop.f32.mrf.mxu3  ;;  %v18336_v23 = vld [vmem:[#allocation102_spill] sm:$0xff] }
 0xae4   : > { %v6572_v36 = vadd.f32 %v18319_v11, %v6124_v9  ;;  %v12177_v11 = vld [vmem:[%s18017_s9 + $0x94] sm:$0xf0] }
 0xae6   : > { %7447 = vmatpush.bf16.msra.mxu1 %v18318_v10  ;;  %v6636_v34 = vmax.f32 %v6572_v36, 0.0  ;;  %v5887_v16 = vpop.f32.mrf.mxu1  ;;  %v18332_v36 = vld [vmem:[#allocation43_spill] sm:$0xff] }
 0xae7   : > { %v6049_v3 = vpop.f32.mrf.mxu0 }
 0xae8   : > { %v6050_v30 = vadd.f32 %v6049_v3, %v5880_v51  ;;  %v16795_v29 = vpack.c.bf16 %v6636_v34, %v6635_v7  ;;  %v5154_v51 = vadd.f32 %v5153_v2, %v4984_v28  ;;  %v18334_v7 = vld [vmem:[#allocation104_spill] sm:$0xff] }
 0xae9   : > { %7081 = vmatmul.bf16.gmra.mxu1 %v11037_v25  ;;  %v3666_v34 = vadd.f32 %v18334_v7, %v18333_v46  ;;  %v11100_v46 = vld [vmem:[%s18017_s9 + $0xc8] sm:$0xf]  ;;  %v12185_v7 = vld [vmem:[%s18017_s9 + $0xd4] sm:$0xf0] }
 0xaea   : > { %v6125_v13 = vadd.f32 %v6050_v30, %v16618_v18  ;;  %v4986_v18 = vpop.f32.mrf.mxu2  ;;  %v5226_v42 = vadd.f32 %v5154_v51, %v18329_v17  ;;  %v18341_v51 = vld [vmem:[#allocation108_spill] sm:$0xff] }
 0xaeb   : > { %v5156_v4 = vadd.f32 %v5155_v59, %v4986_v18 }
 0xaec   : > { %v6573_v53 = vadd.f32 %v18324_v62, %v6125_v13  ;;  %v18335_v13 = vld [vmem:[#allocation103_spill] sm:$0xff] }
 0xaed   : > { %v5227_v5 = vadd.f32 %v5156_v4, %v4319_v55  ;;  %v4155_v14 = vadd.f32 %v18335_v13, %v3666_v34  ;;  %v18346_v34 = vld [vmem:[#allocation37_spill] sm:$0xff] }
 0xaee   : > { %v6637_v58 = vmax.f32 %v6573_v53, 0.0  ;;  %v5890_v9 = vpop.f32.mrf.mxu1  ;;  %v5163_v53 = vpop.f32.mrf.mxu3 }
 0xaef   : > { %v6051_v19 = vpop.f32.mrf.mxu0 }
 0xaf0   : > { %v6052_v1 = vadd.f32 %v6051_v19, %v5882_v37  ;;  %v11068_v37 = vld [vmem:[%s18017_s9 + $0x88] sm:$0xf] }
 0xaf1   : > { %v11069_v27 = vor.u32 %v12177_v11, %v11068_v37 }
 0xaf2   : > { %v6126_v33 = vadd.f32 %v6052_v1, %v5225_v63  ;;  %v4989_v35 = vpop.f32.mrf.mxu2  ;;  %v18337_v1 = vld [vmem:[#allocation105_spill] sm:$0xff] }
 0xaf3   : > { %v5159_v41 = vadd.f32 %v5158_v50, %v4989_v35  ;;  %v4324_v59 = vadd.f32 %v18337_v1, %v4155_v14  ;;  %v18342_v35 = vld [vmem:[#allocation109_spill] sm:$0xff] }
 0xaf4   : > { %v6574_v56 = vadd.f32 %v18325_v15, %v6126_v33  ;;  %v18338_v15 = vld [vmem:[#allocation28_spill] sm:$0xff] }
 0xaf5   : > { %v5228_v19 = vadd.f32 %v5159_v41, %v18336_v23  ;;  %v12189_v23 = vld [vmem:[%s18017_s9 + $0xf4] sm:$0xf0] }
 0xaf6   : > { %v6638_v22 = vmax.f32 %v6574_v56, 0.0  ;;  %v5892_v47 = vpop.f32.mrf.mxu1  ;;  %v5165_v4 = vpop.f32.mrf.mxu3 }
 0xaf7   : > { %v6054_v48 = vpop.f32.mrf.mxu0 }
 0xaf8   : > { %v16810_v39 = vpack.c.bf16 %v6638_v22, %v6637_v58  ;;  %v6055_v20 = vadd.f32 %v6054_v48, %v5885_v31  ;;  %v11085_v48 = vor.u32 %v12181_v40, %v11084_v57  ;;  %v18348_v57 = vld [vmem:[#allocation24_spill] sm:$0xff] }
 0xaf9   : > { %7086 = vmatmul.bf16.gmra.mxu1 %v11053_v0 }
 0xafa   : > { %v6127_v49 = vadd.f32 %v6055_v20, %v5226_v42  ;;  %v4991_v30 = vpop.f32.mrf.mxu2 }
 0xafb   : > { %v5161_v63 = vadd.f32 %v5160_v38, %v4991_v30 }
 0xafc   : > { %v6575_v52 = vadd.f32 %v18331_v24, %v6127_v49 }
 0xafd   : > { %v5229_v26 = vadd.f32 %v5161_v63, %v4324_v59  ;;  %v12159_v59 = vld [vmem:[%s18017_s9 + $0xc] sm:$0xf] }
 0xafe   : > { %v6639_v2 = vmax.f32 %v6575_v52, 0.0  ;;  %v5895_v22 = vpop.f32.mrf.mxu1  ;;  %v7023_v63 = vpop.f32.mrf.mxu3 }
 0xaff   : > { %v6056_v12 = vpop.f32.mrf.mxu0 }
 0xb00   : > { %v6057_v43 = vadd.f32 %v6056_v12, %v5887_v16  ;;  %v18340_v16 = vld [vmem:[#allocation75_spill] sm:$0xff]  ;;  %v18343_v12 = vld [vmem:[#allocation106_spill] sm:$0xff] }
 0xb01   : > { %v3671_v6 = vadd.f32 %v18341_v51, %v18340_v16  ;;  %v11140_v16 = vld [vmem:[%s18019_s11 + $0x10] sm:$0xf]  ;;  %v12193_v51 = vld [vmem:[%s18019_s11 + $0x14] sm:$0xf0] }
 0xb02   : > { %v6128_v10 = vadd.f32 %v6057_v43, %v5227_v5  ;;  %v4994_v18 = vpop.f32.mrf.mxu2 }
 0xb03   : > { %v5164_v17 = vadd.f32 %v5163_v53, %v4994_v18  ;;  %v4160_v54 = vadd.f32 %v18342_v35, %v3671_v6 }
 0xb04   : > { %v6576_v25 = vadd.f32 %v18332_v36, %v6128_v10 }
 0xb05   : > { %v5230_v5 = vadd.f32 %v5164_v17, %v18343_v12  ;;  %v18352_v12 = vld [vmem:[#allocation20_spill] sm:$0xff] }
 0xb06   : > { %v6640_v3 = vmax.f32 %v6576_v25, 0.0  ;;  %v5897_v10 = vpop.f32.mrf.mxu1  ;;  %v18345_v25 = vld [vmem:[#allocation26_spill] sm:$0xff] }
 0xb07   : > { %v6059_v28 = vpop.f32.mrf.mxu0 }
 0xb08   : > { %v6674_v61 = vpack.c.bf16 %v6640_v3, %v6639_v2  ;;  %v6060_v31 = vadd.f32 %v6059_v28, %v5890_v9  ;;  %v18344_v9 = vld [vmem:[#allocation107_spill] sm:$0xff]  ;;  %v11101_v3 = vor.u32 %v12185_v7, %v11100_v46 }
 0xb09   : > { %7091 = vmatmul.bf16.gmra.mxu1 %v11069_v27  ;;  %v4329_v24 = vadd.f32 %v18344_v9, %v4160_v54  ;;  %v18353_v9 = vld [vmem:[#allocation19_spill] sm:$0xff] }
 0xb0a   : > { %v6129_v62 = vadd.f32 %v6060_v31, %v5228_v19  ;;  %v4996_v49 = vpop.f32.mrf.mxu2 }
 0xb0b   : > { %v5166_v43 = vadd.f32 %v5165_v4, %v4996_v49  ;;  %v16905_v49 = vpop.permute.xlu2 %6732 }
 0xb0c   : > { %v6577_v56 = vadd.f32 %v18338_v15, %v6129_v62  ;;  %v6728_v62 = vpop.permute.xlu1 %6727 }
 0xb0d   : > { %v5231_v11 = vadd.f32 %v5166_v43, %v4329_v24 }
 0xb0e   : > { %v6641_v60 = vmax.f32 %v6577_v56, 0.0  ;;  %v18347_v56 = vld [vmem:[#allocation25_spill] sm:$0xff] }
 0xb0f   : > { %v6061_v33 = vpop.f32.mrf.mxu0 }
 0xb10   : > { %v6062_v45 = vadd.f32 %v6061_v33, %v5892_v47  ;;  %v11116_v47 = vld [vmem:[%s18017_s9 + $0xe8] sm:$0xf] }
 0xb11   : > { %v11117_v19 = vor.u32 %v12189_v23, %v11116_v47  ;;  %v11054_v23 = vld [vmem:[%s18017_s9 + $0x78] sm:$0xf0] }
 0xb12   : > { %v6130_v0 = vadd.f32 %v6062_v45, %v5229_v26  ;;  %v6974_v14 = vpop.f32.mrf.mxu2 }
 0xb13   : > { %v6975_v33 = vadd.f32 %v6974_v14, %v6728_v62  ;;  %v12171_v14 = vld [vmem:[%s18017_s9 + $0x6c] sm:$0xf] }
 0xb14   : > { %v6578_v58 = vadd.f32 %v18339_v44, %v6130_v0 }
 0xb15   : > { %v7024_v26 = vadd.f32 %v7023_v63, %v6975_v33  ;;  %v12197_v63 = vld [vmem:[%s18019_s11 + $0x34] sm:$0xf0] }
 0xb16   : > { %v6642_v20 = vmax.f32 %v6578_v58, 0.0  ;;  %v18349_v58 = vld [vmem:[#allocation23_spill] sm:$0xff] }
 0xb17   : > { %v6064_v50 = vpop.f32.mrf.mxu0 }
 0xb18   : > { %v6675_v42 = vpack.c.bf16 %v6642_v20, %v6641_v60  ;;  %v6065_v55 = vadd.f32 %v6064_v50, %v5895_v22  ;;  %v12163_v22 = vld [vmem:[%s18017_s9 + $0x2c] sm:$0xf]  ;;  %v18350_v60 = vld [vmem:[#allocation22_spill] sm:$0xff] }
 0xb19   : > { %7096 = vmatmul.bf16.gmra.mxu1 %v11085_v48  ;;  %v11022_v48 = vld [vmem:[%s18017_s9 + $0x38] sm:$0xf0] }
 0xb1a   : > { %v6131_v52 = vadd.f32 %v6065_v55, %v5230_v5  ;;  %v16858_v1 = vpop.f32.mrf.mxu2  ;;  %v11025_v17 = vor.u32 %v12163_v22, %v11022_v48  ;;  %v18351_v55 = vld [vmem:[#allocation21_spill] sm:$0xff]  ;;  %v12179_v22 = vld [vmem:[%s18017_s9 + $0xac] sm:$0xf]  ;;  %v11086_v48 = vld [vmem:[%s18017_s9 + $0xb8] sm:$0xf0] }
 0xb1c   : > { %v6579_v38 = vadd.f32 %v18345_v25, %v6131_v52  ;;  %v12167_v52 = vld [vmem:[%s18017_s9 + $0x4c] sm:$0xf] }
 0xb1e   : > { %v6643_v30 = vmax.f32 %v6579_v38, 0.0  ;;  %v18354_v38 = vld [vmem:[#allocation18_spill] sm:$0xff] }
 0xb1f   : > { %v6066_v37 = vpop.f32.mrf.mxu0 }
 0xb20   : > { %v6067_v36 = vadd.f32 %v6066_v37, %v5897_v10  ;;  %v6748_v10 = vpop.permute.xlu2 %6747  ;;  %v11038_v37 = vld [vmem:[%s18017_s9 + $0x58] sm:$0xf0] }
 0xb21   : > { %v11041_v46 = vor.u32 %v12167_v52, %v11038_v37  ;;  %v12187_v52 = vld [vmem:[%s18017_s9 + $0xec] sm:$0xf]  ;;  %v11188_v37 = vld [vmem:[%s18019_s11 + $0x70] sm:$0xf] }
 0xb22   : > { %v6132_v27 = vadd.f32 %v6067_v36, %v5231_v11  ;;  %v6979_v53 = vpop.f32.mrf.mxu2  ;;  %v11148_v11 = vld [vmem:[%s18019_s11 + $0x20] sm:$0xf]  ;;  %v12195_v36 = vld [vmem:[%s18019_s11 + $0x24] sm:$0xf0] }
 0xb23   : > { %v11149_v7 = vor.u32 %v12195_v36, %v11148_v11  ;;  %v12205_v11 = vld [vmem:[%s18019_s11 + $0x74] sm:$0xf0] }
 0xb24   : > { %v6580_v2 = vadd.f32 %v18346_v34, %v6132_v27 }
 0xb26   : > { %v6644_v28 = vmax.f32 %v6580_v2, 0.0 }
 0xb27   : > { %v16849_v41 = vpop.f32.mrf.mxu0 }
 0xb28   : > { %v6676_v13 = vpack.c.bf16 %v6644_v28, %v6643_v30 }
 0xb29   : > { %7101 = vmatmul.bf16.gmra.mxu1 %v11101_v3  ;;  %v16928_v3 = vpop.permute.xlu1 %6742 }
 0xb2a   : > { %7112 = vmatpush.bf16.msra.mxu2 %v6676_v13  ;;  %v16882_v40 = vpop.f32.mrf.mxu2 }
 0xb2e   : > { %7113 = vmatpush.bf16.msra.mxu2 %v6675_v42  ;;  %v11141_v42 = vor.u32 %v12193_v51, %v11140_v16  ;;  %v11172_v16 = vld [vmem:[%s18019_s11 + $0x50] sm:$0xf]  ;;  %v12201_v51 = vld [vmem:[%s18019_s11 + $0x54] sm:$0xf0] }
 0xb2f   : > { %v7784_v31 = vpop.f32.mrf.mxu0 }
 0xb31   : > { %v6758_v31 = vpop.permute.xlu1 %6757 }
 0xb32   : > { %7114 = vmatpush.bf16.msra.mxu2 %v6674_v61  ;;  %v16862_v61 = vpop.f32.mrf.mxu3  ;;  %v6984_v4 = vpop.f32.mrf.mxu2 }
 0xb33   : > { %v6985_v25 = vadd.f32 %v6984_v4, %v6748_v10  ;;  %v11180_v4 = vld [vmem:[%s18019_s11 + $0x60] sm:$0xf]  ;;  %v11118_v10 = vld [vmem:[%s18017_s9 + $0xf8] sm:$0xf0] }
 0xb34   : > { %v11121_v36 = vor.u32 %v12187_v52, %v11118_v10  ;;  %v6763_v10 = vpop.permute.xlu2 %6762 }
 0xb36   : > { %7115 = vmatpush.bf16.msra.mxu2 %v16810_v39  ;;  %v11006_v39 = vld [vmem:[%s18017_s9 + $0x18] sm:$0xf0] }
 0xb37   : > { %v11009_v45 = vor.u32 %v12159_v59, %v11006_v39  ;;  %v11057_v39 = vor.u32 %v12171_v14, %v11054_v23  ;;  %v6977_v23 = vadd.f32 %v16858_v1, %v16905_v49 }
 0xb39   : > { %7106 = vmatmul.bf16.gmra.mxu1 %v11117_v19  ;;  %v11156_v19 = vld [vmem:[%s18019_s11 + $0x30] sm:$0xf] }
 0xb3a   : > { %7116 = vmatpush.bf16.msra.mxu2 %v16795_v29  ;;  %v11132_v29 = vld [vmem:[%s18019_s11] sm:$0xf]  ;;  %v7028_v0 = vpop.f32.mrf.mxu3  ;;  %v16911_v24 = vpop.f32.mrf.mxu2 }
 0xb3e   : > { %7117 = vmatpush.bf16.msra.mxu2 %v16775_v21  ;;  %v12191_v21 = vld [vmem:[%s18019_s11 + $0x4] sm:$0xf0] }
 0xb3f   : > { %v11133_v18 = vor.u32 %v12191_v21, %v11132_v29  ;;  %v11157_v29 = vor.u32 %v12197_v63, %v11156_v19  ;;  %v7026_v19 = vadd.f32 %v16862_v61, %v6977_v23  ;;  %v12192_v63 = vld [vmem:[%s18019_s11 + $0x14] sm:$0xf]  ;;  %v6982_v61 = vadd.f32 %v16882_v40, %v16928_v3 }
 0xb42   : > { %7118 = vmatpush.bf16.msra.mxu2 %v16754_v32  ;;  %v16900_v20 = vpop.f32.mrf.mxu3  ;;  %v6989_v28 = vpop.f32.mrf.mxu2 }
 0xb43   : > { %v6990_v59 = vadd.f32 %v6989_v28, %v6758_v31  ;;  %v11134_v28 = vld [vmem:[%s18019_s11 + $0x8] sm:$0xf0]  ;;  %v7031_v49 = vadd.f32 %v16900_v20, %v6982_v61 }
 0xb46   : > { %v7072_v15 = vpop.f32.mrf.mxu1  ;;  %7119 = vmatpush.bf16.msra.mxu2 %v16732_v8  ;;  %v6738_v8 = vpop.permute.xlu0 %6737 }
 0xb47   : > { %v16878_v32 = vadd.f32 %v7072_v15, %v7024_v26  ;;  %v6980_v6 = vadd.f32 %v6979_v53, %v6738_v8  ;;  %v11164_v15 = vld [vmem:[%s18019_s11 + $0x40] sm:$0xf] }
 0xb49   : > { %7120 = vmatmul.bf16.vlgmr.msra.gmra.mxu2 %v11009_v45  ;;  %7448 = vmatmul.bf16.vlgmr.msra.gmra.mxu1 %v11133_v18  ;;  %v7029_v50 = vadd.f32 %v7028_v0, %v6980_v6  ;;  %v12175_v45 = vld [vmem:[%s18017_s9 + $0x8c] sm:$0xf]  ;;  %v11070_v18 = vld [vmem:[%s18017_s9 + $0x98] sm:$0xf0]  ;;  %v11089_v6 = vor.u32 %v12179_v22, %v11086_v48 }
 0xb4a   : > { %7489 = vmatpush.bf16.msrb.mxu2 %v18347_v56  ;;  %v7033_v5 = vpop.f32.mrf.mxu3  ;;  %v16946_v62 = vpop.f32.mrf.mxu2  ;;  %v12199_v56 = vld [vmem:[%s18019_s11 + $0x44] sm:$0xf0]  ;;  %v11073_v0 = vor.u32 %v12175_v45, %v11070_v18 }
 0xb4b   : > { %v7034_v27 = vadd.f32 %v7033_v5, %v6985_v25  ;;  %v11189_v25 = vor.u32 %v12205_v11, %v11188_v37  ;;  %v6992_v37 = vadd.f32 %v16946_v62, %v6763_v10 }
 0xb4e   : > { %7490 = vmatpush.bf16.msrb.mxu2 %v18348_v57  ;;  %v16884_v44 = vpop.f32.mrf.mxu1  ;;  %v11165_v57 = vor.u32 %v12199_v56, %v11164_v15  ;;  %v6753_v20 = vpop.permute.xlu0 %6752 }
 0xb52   : > { %7491 = vmatpush.bf16.msrb.mxu2 %v18349_v58  ;;  %v16930_v30 = vpop.f32.mrf.mxu3  ;;  %v16950_v26 = vpop.f32.mrf.mxu2 }
 0xb56   : > { %7492 = vmatpush.bf16.msrb.mxu2 %v18350_v60  ;;  %v7077_v35 = vpop.f32.mrf.mxu1  ;;  %v11173_v60 = vor.u32 %v12201_v51, %v11172_v16  ;;  %v6987_v51 = vadd.f32 %v16911_v24, %v6753_v20  ;;  %v12202_v20 = vld [vmem:[%s18019_s11 + $0x64] sm:$0xf] }
 0xb57   : > { %v16902_v54 = vadd.f32 %v7077_v35, %v7029_v50  ;;  %v12203_v35 = vld [vmem:[%s18019_s11 + $0x64] sm:$0xf0] }
 0xb59   : > { %7125 = vmatmul.bf16.gmra.mxu2 %v11025_v17  ;;  %7453 = vmatmul.bf16.gmra.mxu1 %v11141_v42  ;;  %v12183_v17 = vld [vmem:[%s18017_s9 + $0xcc] sm:$0xf]  ;;  %v11102_v42 = vld [vmem:[%s18017_s9 + $0xd8] sm:$0xf0] }
 0xb5a   : > { %7493 = vmatpush.bf16.msrb.mxu2 %v18351_v55  ;;  %v7038_v47 = vpop.f32.mrf.mxu3  ;;  %v16964_v58 = vpop.f32.mrf.mxu2  ;;  %v11105_v55 = vor.u32 %v12183_v17, %v11102_v42 }
 0xb5b   : > { %v7039_v53 = vadd.f32 %v7038_v47, %v6990_v59  ;;  %v11142_v59 = vld [vmem:[%s18019_s11 + $0x18] sm:$0xf0] }
 0xb5c   : > { %v11145_v45 = vor.u32 %v12192_v63, %v11142_v59  ;;  %v6768_v63 = vpop.permute.xlu0 %6767 }
 0xb5d   : > { %v6995_v59 = vadd.f32 %v16950_v26, %v6768_v63 }
 0xb5e   : > { %7494 = vmatpush.bf16.msrb.mxu2 %v18352_v12  ;;  %v16908_v43 = vpop.f32.mrf.mxu1  ;;  %v11181_v12 = vor.u32 %v12203_v35, %v11180_v4 }
 0xb5f   : > { %v7080_v15 = vadd.f32 %v16908_v43, %v7031_v49  ;;  %v12196_v43 = vld [vmem:[%s18019_s11 + $0x34] sm:$0xf] }
 0xb62   : > { %7495 = vmatpush.bf16.msrb.mxu2 %v18353_v9  ;;  %v16969_v8 = vpop.f32.mrf.mxu2  ;;  %v7040_v3 = vpop.f32.mrf.mxu3 }
 0xb63   : > { %v7041_v11 = vadd.f32 %v7040_v3, %v6992_v37  ;;  %v11182_v3 = vld [vmem:[%s18019_s11 + $0x68] sm:$0xf0]  ;;  %v12204_v37 = vld [vmem:[%s18019_s11 + $0x74] sm:$0xf] }
 0xb66   : > { %7496 = vmatpush.bf16.msrb.mxu2 %v18354_v38  ;;  %v7082_v34 = vpop.f32.mrf.mxu1  ;;  %v7169_v38 = vld [vmem:[%s18023_s15] sm:$0xf] }
 0xb67   : > { %v16926_v2 = vadd.f32 %v7082_v34, %v7034_v27  ;;  %v7197_v27 = vsel %vm7195_vm2, %v7169_v38, 0  ;;  %v12190_v34 = vld [vmem:[%s18019_s11 + $0x4] sm:$0xf] }
 0xb68   : > { %7206 = vmatpush.bf16.msra.mxu3 %v7197_v27  ;;  %v11137_v31 = vor.u32 %v12190_v34, %v11134_v28 }
 0xb69   : > { %7130 = vmatmul.bf16.gmra.mxu2 %v11041_v46  ;;  %7458 = vmatmul.bf16.gmra.mxu1 %v11149_v7 }
 0xb6a   : > { %v16980_v50 = vpop.f32.mrf.mxu2  ;;  %v7043_v24 = vpop.f32.mrf.mxu3 }
 0xb6e   : > { %v16932_v13 = vpop.f32.mrf.mxu1 }
 0xb72   : > { %v16994_v5 = vpop.f32.mrf.mxu2 }
 0xb76   : > { %v7087_v21 = vpop.f32.mrf.mxu1 }
 0xb77   : > { %v16948_v33 = vadd.f32 %v7087_v21, %v7039_v53  ;;  %v7075_v53 = vadd.f32 %v16884_v44, %v7026_v19  ;;  %v12194_v44 = vld [vmem:[%s18019_s11 + $0x24] sm:$0xf]  ;;  %v6773_v19 = vpop.permute.xlu1 %6772 }
 0xb79   : > { %7135 = vmatmul.bf16.gmra.mxu2 %v11057_v39  ;;  %7463 = vmatmul.bf16.gmra.mxu1 %v11157_v29 }
 0xb7a   : > { %v16996_v9 = vpop.f32.mrf.mxu2 }
 0xb7e   : > { %v7089_v46 = vpop.f32.mrf.mxu1 }
 0xb82   : > { %v17013_v7 = vpop.f32.mrf.mxu2 }
 0xb86   : > { %v7092_v48 = vpop.f32.mrf.mxu1 }
 0xb89   : > { %7140 = vmatmul.bf16.gmra.mxu2 %v11073_v0  ;;  %7468 = vmatmul.bf16.gmra.mxu1 %v11165_v57 }
 0xb8a   : > { %v17021_v14 = vpop.f32.mrf.mxu2 }
 0xb99   : > { %7145 = vmatmul.bf16.gmra.mxu2 %v11089_v6  ;;  %7473 = vmatmul.bf16.gmra.mxu1 %v11173_v60  ;;  %v7036_v6 = vadd.f32 %v16930_v30, %v6987_v51  ;;  %v7094_v60 = vpop.f32.mrf.mxu1 }
 0xb9b   : > { %v7085_v17 = vadd.f32 %v16932_v13, %v7036_v6  ;;  %v12198_v13 = vld [vmem:[%s18019_s11 + $0x44] sm:$0xf] }
 0xba1   : > { %v7097_v30 = vpop.f32.mrf.mxu1 }
 0xba9   : > { %7150 = vmatmul.bf16.gmra.mxu2 %v11105_v55  ;;  %7478 = vmatmul.bf16.gmra.mxu1 %v11181_v12  ;;  %v7099_v27 = vpop.f32.mrf.mxu1 }
 0xbb9   : > { %7155 = vmatmul.bf16.gmra.mxu2 %v11121_v36  ;;  %7483 = vmatmul.bf16.gmra.mxu1 %v11189_v25  ;;  %v7045_v36 = vpop.f32.mrf.mxu3  ;;  %v7090_v25 = vadd.f32 %v7089_v46, %v7041_v11  ;;  %v7044_v46 = vadd.f32 %v7043_v24, %v6995_v59  ;;  %v11190_v11 = vld [vmem:[%s18019_s11 + $0x78] sm:$0xf0] }
 0xbc1   : > { %v7048_v62 = vpop.f32.mrf.mxu3 }
 0xbc9   : > { %7497 = vmatmul.bf16.vlgmr.msrb.gmra.mxu2 %v11137_v31  ;;  %v7050_v26 = vpop.f32.mrf.mxu3 }
 0xbcc   : > { %v7121_v47 = vpop.f32.mrf.mxu2 }
 0xbcd   : > { %v7122_v29 = vadd.f32 %v7121_v47, %v16878_v32  ;;  %v11150_v32 = vld [vmem:[%s18019_s11 + $0x28] sm:$0xf0] }
 0xbce   : > { %v11153_v22 = vor.u32 %v12194_v44, %v11150_v32 }
 0xbd4   : > { %v7123_v39 = vpop.f32.mrf.mxu2 }
 0xbd5   : > { %v7124_v21 = vadd.f32 %v7123_v39, %v7075_v53  ;;  %v6997_v53 = vadd.f32 %v16964_v58, %v6773_v19  ;;  %v7102_v39 = vpop.f32.mrf.mxu1 }
 0xbd7   : > { %v7161_v18 = vpack.c.bf16 %v7124_v21, %v7122_v29  ;;  %v7046_v29 = vadd.f32 %v7045_v36, %v6997_v53  ;;  %v11174_v21 = vld [vmem:[%s18019_s11 + $0x58] sm:$0xf0] }
 0xbd9   : > { %11122 = vmatmul.msk.bf16.vlgmr.msra.gmra.mxu3 %vm7170_vm3, %v7161_v18  ;;  %7502 = vmatmul.bf16.gmra.mxu2 %v11145_v45  ;;  %v7093_v45 = vadd.f32 %v7092_v48, %v7044_v46  ;;  %v7095_v18 = vadd.f32 %v7094_v60, %v7046_v29 }
 0xbdc   : > { %v7126_v1 = vpop.f32.mrf.mxu2 }
 0xbdd   : > { %v7127_v0 = vadd.f32 %v7126_v1, %v16902_v54  ;;  %v11158_v54 = vld [vmem:[%s18019_s11 + $0x38] sm:$0xf0]  ;;  %v7104_v58 = vpop.f32.mrf.mxu1 }
 0xbde   : > { %v11161_v55 = vor.u32 %v12196_v43, %v11158_v54 }
 0xbe4   : > { %v7128_v56 = vpop.f32.mrf.mxu2 }
 0xbe5   : > { %v7129_v57 = vadd.f32 %v7128_v56, %v7080_v15  ;;  %v6778_v56 = vpop.permute.xlu2 %6777  ;;  %v7107_v60 = vpop.f32.mrf.mxu1 }
 0xbe7   : > { %v7162_v16 = vpack.c.bf16 %v7129_v57, %v7127_v0  ;;  %v6783_v0 = vpop.permute.xlu0 %6782  ;;  %v7000_v57 = vadd.f32 %v16969_v8, %v6778_v56  ;;  %v11185_v8 = vor.u32 %v12202_v20, %v11182_v3 }
 0xbe9   : > { %11123 = vmatmul.msk.bf16.gmra.mxu3 %vm7170_vm3, %v7162_v16  ;;  %7507 = vmatmul.bf16.gmra.mxu2 %v11153_v22  ;;  %v7002_v22 = vadd.f32 %v16980_v50, %v6783_v0  ;;  %v7053_v16 = vpop.f32.mrf.mxu3  ;;  %v7049_v48 = vadd.f32 %v7048_v62, %v7000_v57 }
 0xbeb   : > { %v7098_v51 = vadd.f32 %v7097_v30, %v7049_v48 }
 0xbec   : > { %v7131_v40 = vpop.f32.mrf.mxu2 }
 0xbed   : > { %v7132_v4 = vadd.f32 %v7131_v40, %v16926_v2  ;;  %v11166_v2 = vld [vmem:[%s18019_s11 + $0x48] sm:$0xf0]  ;;  %v7051_v40 = vadd.f32 %v7050_v26, %v7002_v22 }
 0xbee   : > { %v11169_v31 = vor.u32 %v12198_v13, %v11166_v2  ;;  %v12208_v26 = vld [vmem:[%s18021_s13 + $0x8] sm:$0xff] }
 0xbef   : > { %v7100_v6 = vadd.f32 %v7099_v27, %v7051_v40  ;;  %7785 = vmatmul.bf16.gmra.mxu0 %v12208_v26  ;;  %v12212_v26 = vld [vmem:[%s18021_s13 + $0x28] sm:$0xff] }
 0xbf1   : > { %v7055_v50 = vpop.f32.mrf.mxu3 }
 0xbf4   : > { %v7133_v42 = vpop.f32.mrf.mxu2 }
 0xbf5   : > { %v7134_v35 = vadd.f32 %v7133_v42, %v7085_v17 }
 0xbf7   : > { %v7163_v12 = vpack.c.bf16 %v7134_v35, %v7132_v4  ;;  %v7109_v35 = vpop.f32.mrf.mxu1 }
 0xbf9   : > { %11124 = vmatmul.msk.bf16.gmra.mxu3 %vm7170_vm3, %v7163_v12  ;;  %7512 = vmatmul.bf16.gmra.mxu2 %v11161_v55  ;;  %v6793_v55 = vpop.permute.xlu2 %6792  ;;  %v6788_v12 = vpop.permute.xlu1 %6787 }
 0xbfa   : > { %v7005_v24 = vadd.f32 %v16994_v5, %v6788_v12  ;;  %v7058_v2 = vpop.f32.mrf.mxu3 }
 0xbfc   : > { %v7136_v52 = vpop.f32.mrf.mxu2  ;;  %v7054_v30 = vadd.f32 %v7053_v16, %v7005_v24 }
 0xbfd   : > { %v7137_v34 = vadd.f32 %v7136_v52, %v16948_v33  ;;  %v12200_v33 = vld [vmem:[%s18019_s11 + $0x54] sm:$0xf]  ;;  %v7007_v52 = vadd.f32 %v16996_v9, %v6793_v55 }
 0xbfe   : > { %v11177_v44 = vor.u32 %v12200_v33, %v11174_v21  ;;  %v7103_v36 = vadd.f32 %v7102_v39, %v7054_v30 }
 0xbff   : > { %v7056_v10 = vadd.f32 %v7055_v50, %v7007_v52  ;;  %v7449_v5 = vpop.f32.mrf.mxu1 }
 0xc01   : > { %v7105_v13 = vadd.f32 %v7104_v58, %v7056_v10  ;;  %v7283_v58 = vpop.permute.xlu2 %7282 }
 0xc02   : > { %v7060_v62 = vpop.f32.mrf.mxu3  ;;  %v7450_v56 = vadd.f32 %v7449_v5, %v7283_v58 }
 0xc04   : > { %v7138_v38 = vpop.f32.mrf.mxu2 }
 0xc05   : > { %v7139_v28 = vadd.f32 %v7138_v38, %v7090_v25 }
 0xc07   : > { %v7164_v47 = vpack.c.bf16 %v7139_v28, %v7137_v34  ;;  %v11193_v34 = vor.u32 %v12204_v37, %v11190_v11  ;;  %v7451_v53 = vpop.f32.mrf.mxu1 }
 0xc09   : > { %11125 = vmatmul.msk.bf16.gmra.mxu3 %vm7170_vm3, %v7164_v47  ;;  %7517 = vmatmul.bf16.gmra.mxu2 %v11169_v31  ;;  %v6803_v31 = vpop.permute.xlu1 %6802  ;;  %v6798_v47 = vpop.permute.xlu0 %6797 }
 0xc0a   : > { %v7012_v19 = vadd.f32 %v17021_v14, %v6803_v31 }
 0xc0c   : > { %v7141_v23 = vpop.f32.mrf.mxu2  ;;  %v7061_v59 = vadd.f32 %v7060_v62, %v7012_v19 }
 0xc0d   : > { %v7142_v61 = vadd.f32 %v7141_v23, %v7093_v45  ;;  %v7010_v23 = vadd.f32 %v17013_v7, %v6798_v47  ;;  %v12206_v45 = vld [vmem:[%s18024_s16] sm:$0xff] }
 0xc0e   : > { %v7110_v46 = vadd.f32 %v7109_v35, %v7061_v59  ;;  %7601 = vmatpush.bf16.msrb.mxu3 %v12206_v45  ;;  %v12211_v59 = vld [vmem:[%s18021_s13 + $0x20] sm:$0xff] }
 0xc0f   : > { %v7059_v63 = vadd.f32 %v7058_v2, %v7010_v23 }
 0xc11   : > { %v7108_v39 = vadd.f32 %v7107_v60, %v7059_v63  ;;  %v17107_v30 = vpop.permute.xlu1 %7662 }
 0xc14   : > { %v7143_v1 = vpop.f32.mrf.mxu2 }
 0xc15   : > { %v7144_v49 = vadd.f32 %v7143_v1, %v7095_v18  ;;  %v7454_v1 = vpop.f32.mrf.mxu1 }
 0xc17   : > { %v7165_v32 = vpack.c.bf16 %v7144_v49, %v7142_v61 }
 0xc19   : > { %11126 = vmatmul.msk.bf16.gmra.mxu3 %vm7170_vm3, %v7165_v32  ;;  %7522 = vmatmul.bf16.gmra.mxu2 %v11177_v44 }
 0xc1c   : > { %v7146_v15 = vpop.f32.mrf.mxu2 }
 0xc1d   : > { %v7147_v54 = vadd.f32 %v7146_v15, %v7098_v51  ;;  %v7456_v14 = vpop.f32.mrf.mxu1  ;;  %v7288_v15 = vpop.permute.xlu0 %7287 }
 0xc1e   : > { %v7452_v0 = vadd.f32 %v7451_v53, %v7288_v15 }
 0xc24   : > { %v7148_v43 = vpop.f32.mrf.mxu2 }
 0xc25   : > { %v7149_v17 = vadd.f32 %v7148_v43, %v7100_v6  ;;  %v7459_v32 = vpop.f32.mrf.mxu1  ;;  %v12209_v43 = vld [vmem:[%s18021_s13 + $0x10] sm:$0xff] }
 0xc26   : > { %7788 = vmatmul.bf16.gmra.mxu0 %v12209_v43 }
 0xc27   : > { %v7166_v42 = vpack.c.bf16 %v7149_v17, %v7147_v54  ;;  %v7293_v54 = vpop.permute.xlu2 %7292  ;;  %v7298_v17 = vpop.permute.xlu0 %7297 }
 0xc29   : > { %11127 = vmatmul.msk.bf16.gmra.mxu3 %vm7170_vm3, %v7166_v42  ;;  %7527 = vmatmul.bf16.gmra.mxu2 %v11185_v8  ;;  %v7455_v8 = vadd.f32 %v7454_v1, %v7293_v54  ;;  %v7457_v42 = vadd.f32 %v7456_v14, %v7298_v17 }
 0xc2c   : > { %v7151_v4 = vpop.f32.mrf.mxu2 }
 0xc2d   : > { %v7152_v38 = vadd.f32 %v7151_v4, %v7103_v36  ;;  %v7461_v51 = vpop.f32.mrf.mxu1  ;;  %v12210_v36 = vld [vmem:[%s18021_s13 + $0x18] sm:$0xff] }
 0xc2f   : > { %v7308_v2 = vpop.permute.xlu2 %7307 }
 0xc34   : > { %v7153_v25 = vpop.f32.mrf.mxu2 }
 0xc35   : > { %v7154_v27 = vadd.f32 %v7153_v25, %v7105_v13  ;;  %v7464_v50 = vpop.f32.mrf.mxu1  ;;  %v7303_v25 = vpop.permute.xlu1 %7302 }
 0xc36   : > { %7791 = vmatmul.bf16.gmra.mxu0 %v12210_v36 }
 0xc37   : > { %v7167_v28 = vpack.c.bf16 %v7154_v27, %v7152_v38  ;;  %v7460_v38 = vadd.f32 %v7459_v32, %v7303_v25  ;;  %v7462_v27 = vadd.f32 %v7461_v51, %v7308_v2  ;;  %v7323_v58 = vpop.permute.xlu2 %7322  ;;  %v11656_v2 = vld [vmem:[%s18025_s17 + $0x320] sm:$0xf] }
 0xc38   : > { %v12331_v25 = vld [vmem:[%s18025_s17 + $0x39c] sm:$0xf0] }
 0xc39   : > { %11128 = vmatmul.msk.bf16.gmra.mxu3 %vm7170_vm3, %v7167_v28  ;;  %7532 = vmatmul.bf16.gmra.mxu2 %v11193_v34 }
 0xc3c   : > { %v7156_v9 = vpop.f32.mrf.mxu2 }
 0xc3d   : > { %v7157_v33 = vadd.f32 %v7156_v9, %v7108_v39  ;;  %v7466_v13 = vpop.f32.mrf.mxu1  ;;  %v7318_v53 = vpop.permute.xlu1 %7317 }
 0xc3e   : > { %v7313_v39 = vpop.permute.xlu0 %7312 }
 0xc3f   : > { %v7338_v43 = vpop.permute.xlu2 %7337 }
 0xc44   : > { %v7158_v29 = vpop.f32.mrf.mxu2 }
 0xc45   : > { %v7159_v21 = vadd.f32 %v7158_v29, %v7110_v46  ;;  %v7469_v23 = vpop.f32.mrf.mxu1  ;;  %v7465_v46 = vadd.f32 %v7464_v50, %v7313_v39  ;;  %v7467_v29 = vadd.f32 %v7466_v13, %v7318_v53  ;;  %v7333_v54 = vpop.permute.xlu1 %7332  ;;  %v12299_v53 = vld [vmem:[%s18025_s17 + $0x29c] sm:$0xf0]  ;;  %v12283_v39 = vld [vmem:[%s18025_s17 + $0x224] sm:$0xf] }
 0xc46   : > { %7794 = vmatmul.bf16.gmra.mxu0 %v12211_v59  ;;  %v7328_v15 = vpop.permute.xlu0 %7327 }
 0xc47   : > { %v7168_v18 = vpack.c.bf16 %v7159_v21, %v7157_v33 }
 0xc49   : > { %11129 = vmatmul.msk.bf16.gmra.mxu3 %vm7170_vm3, %v7168_v18 }
 0xc4c   : > { %v7498_v7 = vpop.f32.mrf.mxu2 }
 0xc4d   : > { %v7499_v57 = vadd.f32 %v7498_v7, %v7450_v56  ;;  %v7471_v33 = vpop.f32.mrf.mxu1  ;;  %v7470_v56 = vadd.f32 %v7469_v23, %v7323_v58  ;;  %v11496_v23 = vld [vmem:[%s18025_s17 + $0x200] sm:$0xf]  ;;  %v11402_v58 = vld [vmem:[%s18025_s17 + $0x1a0] sm:$0xf0] }
 0xc54   : > { %v7500_v61 = vpop.f32.mrf.mxu2 }
 0xc55   : > { %v7501_v22 = vadd.f32 %v7500_v61, %v7452_v0  ;;  %v7472_v0 = vadd.f32 %v7471_v33, %v7328_v15  ;;  %v11408_v15 = vld [vmem:[%s18025_s17 + $0x128] sm:$0xf] }
 0xc56   : > { %7797 = vmatmul.bf16.gmra.mxu0 %v12212_v26 }
 0xc5c   : > { %v7208_v49 = vpop.f32.mrf.mxu3  ;;  %v7503_v44 = vpop.f32.mrf.mxu2 }
 0xc5d   : > { %v7538_v40 = vadd.f32 %v7499_v57, %v7208_v49  ;;  %v7504_v4 = vadd.f32 %v7503_v44, %v7455_v8  ;;  %v7474_v49 = vpop.f32.mrf.mxu1 }
 0xc5e   : > { %v7475_v8 = vadd.f32 %v7474_v49, %v7333_v54  ;;  %v7348_v49 = vpop.permute.xlu1 %7347 }
 0xc64   : > { %v7210_v16 = vpop.f32.mrf.mxu3  ;;  %v7505_v48 = vpop.f32.mrf.mxu2 }
 0xc65   : > { %v7539_v20 = vadd.f32 %v7501_v22, %v7210_v16  ;;  %v7506_v35 = vadd.f32 %v7505_v48, %v7457_v42 }
 0xc67   : > { %v7554_v3 = vpack.c.bf16 %v7539_v20, %v7538_v40  ;;  %v7476_v20 = vpop.f32.mrf.mxu1 }
 0xc68   : > { %v7477_v42 = vadd.f32 %v7476_v20, %v7338_v43 }
 0xc69   : > { %11198 = vmatmul.msk.bf16.vlgmr.msrb.gmra.mxu3 %vm2618_vm1, %v7554_v3 }
 0xc6c   : > { %v7213_v6 = vpop.f32.mrf.mxu3  ;;  %v7508_v60 = vpop.f32.mrf.mxu2 }
 0xc6d   : > { %v7540_v24 = vadd.f32 %v7504_v4, %v7213_v6  ;;  %v7509_v34 = vadd.f32 %v7508_v60, %v7460_v38  ;;  %v12213_v60 = vld [vmem:[%s18021_s13 + $0x30] sm:$0xff]  ;;  %v12315_v38 = vld [vmem:[%s18025_s17 + $0x324] sm:$0xf] }
 0xc6e   : > { %7800 = vmatmul.bf16.gmra.mxu0 %v12213_v60 }
 0xc6f   : > { %v7479_v17 = vpop.f32.mrf.mxu1 }
 0xc74   : > { %v7215_v55 = vpop.f32.mrf.mxu3  ;;  %v7510_v12 = vpop.f32.mrf.mxu2 }
 0xc75   : > { %v7541_v52 = vadd.f32 %v7506_v35, %v7215_v55  ;;  %v7511_v5 = vadd.f32 %v7510_v12, %v7462_v27  ;;  %v11657_v27 = vor.u32 %v12331_v25, %v11656_v2 }
 0xc77   : > { %v7555_v10 = vpack.c.bf16 %v7541_v52, %v7540_v24  ;;  %v7481_v36 = vpop.f32.mrf.mxu1  ;;  %8688 = vmatpush.bf16.msra.mxu2 %v11657_v27  ;;  %v11626_v27 = vld [vmem:[%s18025_s17 + $0x380] sm:$0xf0] }
 0xc79   : > { %11199 = vmatmul.msk.bf16.gmra.mxu3 %vm2618_vm1, %v7555_v10  ;;  %v12214_v10 = vld [vmem:[%s18021_s13 + $0x38] sm:$0xff] }
 0xc7c   : > { %v7218_v37 = vpop.f32.mrf.mxu3  ;;  %v7513_v11 = vpop.f32.mrf.mxu2 }
 0xc7d   : > { %v7542_v31 = vadd.f32 %v7509_v34, %v7218_v37  ;;  %v7514_v21 = vadd.f32 %v7513_v11, %v7465_v46  ;;  %v11624_v37 = vld [vmem:[%s18025_s17 + $0x300] sm:$0xf]  ;;  %v11658_v34 = vld [vmem:[%s18025_s17 + $0x3a0] sm:$0xf0] }
 0xc7e   : > { %v12327_v11 = vld [vmem:[%s18025_s17 + $0x37c] sm:$0xf0]  ;;  %v11530_v46 = vld [vmem:[%s18025_s17 + $0x2a0] sm:$0xf0]  ;;  %7803 = vmatmul.bf16.gmra.mxu0 %v12214_v10 }
 0xc7f   : > { %v11625_v13 = vor.u32 %v12327_v11, %v11624_v37  ;;  %v11533_v33 = vor.u32 %v12283_v39, %v11530_v46  ;;  %v11280_v37 = vld [vmem:[%s18025_s17 + $0x28] sm:$0xf] }
 0xc80   : > { %v12236_v11 = vld [vmem:[%s18025_s17 + $0xa4] sm:$0xf0] }
 0xc81   : > { %8584 = vmatpush.bf16.msrb.mxu1 %v11625_v13  ;;  %v11281_v13 = vor.u32 %v12236_v11, %v11280_v37 }
 0xc84   : > { %v7220_v28 = vpop.f32.mrf.mxu3  ;;  %v7515_v9 = vpop.f32.mrf.mxu2 }
 0xc85   : > { %v7543_v47 = vadd.f32 %v7511_v5, %v7220_v28  ;;  %v7516_v45 = vadd.f32 %v7515_v9, %v7467_v29  ;;  %v11664_v5 = vld [vmem:[%s18025_s17 + $0x328] sm:$0xf] }
 0xc86   : > { %v12332_v28 = vld [vmem:[%s18025_s17 + $0x3a4] sm:$0xf0] }
 0xc87   : > { %v7556_v62 = vpack.c.bf16 %v7543_v47, %v7542_v31  ;;  %v11661_v47 = vor.u32 %v12315_v38, %v11658_v34  ;;  %v12311_v38 = vld [vmem:[%s18025_s17 + $0x304] sm:$0xf]  ;;  %v11672_v34 = vld [vmem:[%s18025_s17 + $0x330] sm:$0xf] }
 0xc89   : > { %11200 = vmatmul.msk.bf16.gmra.mxu3 %vm2618_vm1, %v7556_v62  ;;  %v11665_v62 = vor.u32 %v12332_v28, %v11664_v5 }
 0xc8a   : > { %8701 = vmatpush.bf16.msra.mxu3 %v11661_v47  ;;  %v12317_v47 = vld [vmem:[%s18025_s17 + $0x334] sm:$0xf] }
 0xc8b   : > { %8714 = vmatpush.bf16.msra.mxu0 %v11665_v62  ;;  %v11674_v62 = vld [vmem:[%s18025_s17 + $0x3b0] sm:$0xf0] }
 0xc8c   : > { %v7223_v19 = vpop.f32.mrf.mxu3  ;;  %v7518_v63 = vpop.f32.mrf.mxu2 }
 0xc8d   : > { %v7544_v7 = vadd.f32 %v7514_v21, %v7223_v19  ;;  %v7519_v57 = vadd.f32 %v7518_v63, %v7470_v56  ;;  %v12295_v19 = vld [vmem:[%s18025_s17 + $0x27c] sm:$0xf0]  ;;  %v11536_v21 = vld [vmem:[%s18025_s17 + $0x228] sm:$0xf] }
 0xc8e   : > { %v11528_v63 = vld [vmem:[%s18025_s17 + $0x220] sm:$0xf]  ;;  %v11497_v59 = vor.u32 %v12295_v19, %v11496_v23  ;;  %8702 = vmatpush.bf16.msra.mxu3 %v11533_v33  ;;  %v11677_v19 = vor.u32 %v12317_v47, %v11674_v62  ;;  %v12279_v33 = vld [vmem:[%s18025_s17 + $0x204] sm:$0xf] }
 0xc8f   : > { %v11529_v29 = vor.u32 %v12299_v53, %v11528_v63  ;;  %v11680_v63 = vld [vmem:[%s18025_s17 + $0x338] sm:$0xf] }
 0xc90   : > { %8585 = vmatpush.bf16.msrb.mxu1 %v11497_v59  ;;  %v12334_v59 = vld [vmem:[%s18025_s17 + $0x3b4] sm:$0xf0] }
 0xc91   : > { %8689 = vmatpush.bf16.msra.mxu2 %v11529_v29  ;;  %v11681_v46 = vor.u32 %v12334_v59, %v11680_v63 }
 0xc94   : > { %v7225_v18 = vpop.f32.mrf.mxu3  ;;  %v7520_v1 = vpop.f32.mrf.mxu2 }
 0xc95   : > { %v7545_v61 = vadd.f32 %v7516_v45, %v7225_v18  ;;  %v7521_v22 = vadd.f32 %v7520_v1, %v7472_v0  ;;  %v12300_v45 = vld [vmem:[%s18025_s17 + $0x2a4] sm:$0xf0]  ;;  %v11368_v18 = vld [vmem:[%s18025_s17 + $0x100] sm:$0xf]  ;;  %v7482_v0 = vadd.f32 %v7481_v36, %v7348_v49  ;;  %v7353_v36 = vpop.permute.xlu2 %7352  ;;  %v11546_v49 = vld [vmem:[%s18025_s17 + $0x2b0] sm:$0xf0] }
 0xc96   : > { %v11537_v1 = vor.u32 %v12300_v45, %v11536_v21  ;;  %v11498_v21 = vld [vmem:[%s18025_s17 + $0x280] sm:$0xf0]  ;;  %v11544_v45 = vld [vmem:[%s18025_s17 + $0x230] sm:$0xf] }
 0xc97   : > { %v7557_v14 = vpack.c.bf16 %v7545_v61, %v7544_v7  ;;  %v12263_v7 = vld [vmem:[%s18025_s17 + $0x17c] sm:$0xf0] }
 0xc98   : > { %v11400_v61 = vld [vmem:[%s18025_s17 + $0x120] sm:$0xf]  ;;  %v11369_v26 = vor.u32 %v12263_v7, %v11368_v18  ;;  %8715 = vmatpush.bf16.msra.mxu0 %v11537_v1  ;;  %v11501_v7 = vor.u32 %v12279_v33, %v11498_v21  ;;  %v11568_v33 = vld [vmem:[%s18025_s17 + $0x248] sm:$0xf] }
 0xc99   : > { %11201 = vmatmul.msk.bf16.gmra.mxu3 %vm2618_vm1, %v7557_v14  ;;  %v12267_v14 = vld [vmem:[%s18025_s17 + $0x19c] sm:$0xf0]  ;;  %v12304_v21 = vld [vmem:[%s18025_s17 + $0x2c4] sm:$0xf0] }
 0xc9a   : > { %8586 = vmatpush.bf16.msrb.mxu1 %v11369_v26 }
 0xc9c   : > { %v7228_v44 = vpop.f32.mrf.mxu3  ;;  %v7523_v32 = vpop.f32.mrf.mxu2 }
 0xc9d   : > { %v7546_v48 = vadd.f32 %v7519_v57, %v7228_v44  ;;  %v7524_v4 = vadd.f32 %v7523_v32, %v7475_v8  ;;  %v7343_v44 = vpop.permute.xlu0 %7342  ;;  %v12251_v32 = vld [vmem:[%s18025_s17 + $0x124] sm:$0xf]  ;;  %v11401_v57 = vor.u32 %v12267_v14, %v11400_v61  ;;  %v11240_v8 = vld [vmem:[%s18025_s17] sm:$0xf]  ;;  %v12301_v61 = vld [vmem:[%s18025_s17 + $0x2ac] sm:$0xf0] }
 0xc9e   : > { %v7480_v56 = vadd.f32 %v7479_v17, %v7343_v44  ;;  %v12285_v14 = vld [vmem:[%s18025_s17 + $0x234] sm:$0xf]  ;;  %v11545_v44 = vor.u32 %v12301_v61, %v11544_v45 }
 0xc9f   : > { %8690 = vmatpush.bf16.msra.mxu2 %v11401_v57  ;;  %v11549_v26 = vor.u32 %v12285_v14, %v11546_v49  ;;  %v11370_v57 = vld [vmem:[%s18025_s17 + $0x180] sm:$0xf0]  ;;  %v11569_v49 = vor.u32 %v12304_v21, %v11568_v33  ;;  %v12257_v33 = vld [vmem:[%s18025_s17 + $0x154] sm:$0xf] }
 0xca4   : > { %v7230_v16 = vpop.f32.mrf.mxu3  ;;  %v7525_v51 = vpop.f32.mrf.mxu2 }
 0xca5   : > { %v7547_v40 = vadd.f32 %v7521_v22, %v7230_v16  ;;  %v7526_v35 = vadd.f32 %v7525_v51, %v7477_v42  ;;  %v12268_v22 = vld [vmem:[%s18025_s17 + $0x1a4] sm:$0xf0]  ;;  %v11405_v16 = vor.u32 %v12251_v32, %v11402_v58  ;;  %v12231_v42 = vld [vmem:[%s18025_s17 + $0x7c] sm:$0xf0]  ;;  %v7358_v2 = vpop.permute.xlu0 %7357  ;;  %v11552_v32 = vld [vmem:[%s18025_s17 + $0x238] sm:$0xf] }
 0xca6   : > { %v12302_v58 = vld [vmem:[%s18025_s17 + $0x2b4] sm:$0xf0] }
 0xca7   : > { %v7558_v3 = vpack.c.bf16 %v7547_v40, %v7546_v48  ;;  %v11409_v48 = vor.u32 %v12268_v22, %v11408_v15  ;;  %8703 = vmatpush.bf16.msra.mxu3 %v11405_v16  ;;  %v12247_v15 = vld [vmem:[%s18025_s17 + $0x104] sm:$0xf]  ;;  %v11416_v22 = vld [vmem:[%s18025_s17 + $0x130] sm:$0xf] }
 0xca8   : > { %v12269_v16 = vld [vmem:[%s18025_s17 + $0x1ac] sm:$0xf0] }
 0xca9   : > { %11202 = vmatmul.msk.bf16.gmra.mxu3 %vm2618_vm1, %v7558_v3  ;;  %v7484_v3 = vpop.f32.mrf.mxu1  ;;  %8716 = vmatpush.bf16.msra.mxu0 %v11409_v48  ;;  %v11373_v48 = vor.u32 %v12247_v15, %v11370_v57  ;;  %v11434_v15 = vld [vmem:[%s18025_s17 + $0x1c0] sm:$0xf0] }
 0xcaa   : > { %v7485_v5 = vadd.f32 %v7484_v3, %v7353_v36  ;;  %v11418_v3 = vld [vmem:[%s18025_s17 + $0x1b0] sm:$0xf0]  ;;  %v7783_v36 = vadd.f32 %v16849_v41, %v17107_v30  ;;  %v12319_v41 = vld [vmem:[%s18025_s17 + $0x344] sm:$0xf] }
 0xcac   : > { %v7233_v6 = vpop.f32.mrf.mxu3  ;;  %v7528_v50 = vpop.f32.mrf.mxu2 }
 0xcad   : > { %v7548_v12 = vadd.f32 %v7524_v4, %v7233_v6  ;;  %v7529_v40 = vadd.f32 %v7528_v50, %v7480_v56  ;;  %v11272_v50 = vld [vmem:[%s18025_s17 + $0x20] sm:$0xf]  ;;  %v11241_v4 = vor.u32 %v12231_v42, %v11240_v8  ;;  %8717 = vmatpush.bf16.msra.mxu0 %v11281_v13  ;;  %v11242_v8 = vld [vmem:[%s18025_s17 + $0x80] sm:$0xf0]  ;;  %v11288_v42 = vld [vmem:[%s18025_s17 + $0x30] sm:$0xf] }
 0xcae   : > { %v11632_v13 = vld [vmem:[%s18025_s17 + $0x308] sm:$0xf] }
 0xcaf   : > { %8587 = vmatpush.bf16.msrb.mxu1 %v11241_v4  ;;  %v12237_v4 = vld [vmem:[%s18025_s17 + $0xac] sm:$0xf0] }
 0xcb1   : > { %8766 = vmatpush.bf16.msrb.mxu0 %v11681_v46  ;;  %v12287_v46 = vld [vmem:[%s18025_s17 + $0x244] sm:$0xf] }
 0xcb4   : > { %v7235_v55 = vpop.f32.mrf.mxu3  ;;  %v7530_v9 = vpop.f32.mrf.mxu2 }
 0xcb5   : > { %v7549_v24 = vadd.f32 %v7526_v35, %v7235_v55  ;;  %v7531_v20 = vadd.f32 %v7530_v9, %v7482_v0  ;;  %v12235_v35 = vld [vmem:[%s18025_s17 + $0x9c] sm:$0xf0]  ;;  %v12219_v55 = vld [vmem:[%s18025_s17 + $0x24] sm:$0xf]  ;;  %v11629_v9 = vor.u32 %v12311_v38, %v11626_v27  ;;  %v11553_v0 = vor.u32 %v12302_v58, %v11552_v32 }
 0xcb6   : > { %v11688_v38 = vld [vmem:[%s18025_s17 + $0x340] sm:$0xf]  ;;  %v12255_v32 = vld [vmem:[%s18025_s17 + $0x144] sm:$0xf] }
 0xcb7   : > { %v7559_v52 = vpack.c.bf16 %v7549_v24, %v7548_v12  ;;  %v11274_v12 = vld [vmem:[%s18025_s17 + $0xa0] sm:$0xf0]  ;;  %v7486_v24 = vpop.f32.mrf.mxu1  ;;  %8597 = vmatpush.bf16.msra.mxu1 %v11629_v9  ;;  %8767 = vmatpush.bf16.msrb.mxu0 %v11553_v0  ;;  %v12335_v27 = vld [vmem:[%s18025_s17 + $0x3bc] sm:$0xf0]  ;;  %v12336_v9 = vld [vmem:[%s18025_s17 + $0x3c4] sm:$0xf0] }
 0xcb8   : > { %v11277_v10 = vor.u32 %v12219_v55, %v11274_v12  ;;  %v7487_v28 = vadd.f32 %v7486_v24, %v7358_v2  ;;  %v11290_v55 = vld [vmem:[%s18025_s17 + $0xb0] sm:$0xf0]  ;;  %v11289_v12 = vor.u32 %v12237_v4, %v11288_v42  ;;  %v12328_v2 = vld [vmem:[%s18025_s17 + $0x384] sm:$0xf0]  ;;  %v11689_v62 = vor.u32 %v12335_v27, %v11688_v38  ;;  %v12312_v42 = vld [vmem:[%s18025_s17 + $0x30c] sm:$0xf] }
 0xcb9   : > { %11203 = vmatmul.msk.bf16.gmra.mxu3 %vm2618_vm1, %v7559_v52  ;;  %v11273_v52 = vor.u32 %v12235_v35, %v11272_v50  ;;  %v12221_v35 = vld [vmem:[%s18025_s17 + $0x34] sm:$0xf]  ;;  %v11633_v47 = vor.u32 %v12328_v2, %v11632_v13  ;;  %v12272_v0 = vld [vmem:[%s18025_s17 + $0x1c4] sm:$0xf0]  ;;  %v11506_v38 = vld [vmem:[%s18025_s17 + $0x288] sm:$0xf0] }
 0xcba   : > { %8704 = vmatpush.bf16.msra.mxu3 %v11277_v10  ;;  %v11293_v24 = vor.u32 %v12221_v35, %v11290_v55  ;;  %v12238_v10 = vld [vmem:[%s18025_s17 + $0xb4] sm:$0xf0] }
 0xcbb   : > { %8691 = vmatpush.bf16.msra.mxu2 %v11273_v52  ;;  %8598 = vmatpush.bf16.msra.mxu1 %v11501_v7  ;;  %v11296_v52 = vld [vmem:[%s18025_s17 + $0x38] sm:$0xf]  ;;  %v12264_v7 = vld [vmem:[%s18025_s17 + $0x184] sm:$0xf0] }
 0xcbc   : > { %v7238_v31 = vpop.f32.mrf.mxu3  ;;  %v7533_v43 = vpop.f32.mrf.mxu2  ;;  %v11297_v37 = vor.u32 %v12238_v10, %v11296_v52  ;;  %v12321_v52 = vld [vmem:[%s18025_s17 + $0x354] sm:$0xf] }
 0xcbd   : > { %v7550_v6 = vadd.f32 %v7529_v40, %v7238_v31  ;;  %v12333_v31 = vld [vmem:[%s18025_s17 + $0x3ac] sm:$0xf0]  ;;  %v7534_v53 = vadd.f32 %v7533_v43, %v7485_v5  ;;  %v11417_v40 = vor.u32 %v12269_v16, %v11416_v22  ;;  %v11690_v5 = vld [vmem:[%s18025_s17 + $0x3c0] sm:$0xf0]  ;;  %v11248_v16 = vld [vmem:[%s18025_s17 + $0x8] sm:$0xf] }
 0xcbe   : > { %v11673_v23 = vor.u32 %v12333_v31, %v11672_v34  ;;  %8753 = vmatpush.bf16.msrb.mxu3 %v11677_v19  ;;  %v12296_v19 = vld [vmem:[%s18025_s17 + $0x284] sm:$0xf0]  ;;  %v11693_v63 = vor.u32 %v12319_v41, %v11690_v5  ;;  %v12289_v5 = vld [vmem:[%s18025_s17 + $0x254] sm:$0xf] }
 0xcbf   : > { %8599 = vmatpush.bf16.msra.mxu1 %v11373_v48  ;;  %v12232_v48 = vld [vmem:[%s18025_s17 + $0x84] sm:$0xf0] }
 0xcc0   : > { %8740 = vmatpush.bf16.msrb.mxu2 %v11673_v23  ;;  %v11504_v23 = vld [vmem:[%s18025_s17 + $0x208] sm:$0xf] }
 0xcc1   : > { %v11505_v45 = vor.u32 %v12296_v19, %v11504_v23  ;;  %v12248_v19 = vld [vmem:[%s18025_s17 + $0x10c] sm:$0xf] }
 0xcc2   : > { %8754 = vmatpush.bf16.msrb.mxu3 %v11549_v26  ;;  %v12271_v26 = vld [vmem:[%s18025_s17 + $0x1bc] sm:$0xf0] }
 0xcc4   : > { %v7240_v51 = vpop.f32.mrf.mxu3  ;;  %v7535_v25 = vpop.f32.mrf.mxu2  ;;  %8741 = vmatpush.bf16.msrb.mxu2 %v11545_v44  ;;  %v11432_v44 = vld [vmem:[%s18025_s17 + $0x140] sm:$0xf] }
 0xcc5   : > { %v7551_v60 = vadd.f32 %v7531_v20, %v7240_v51  ;;  %v7536_v39 = vadd.f32 %v7535_v25, %v7487_v28  ;;  %v12253_v20 = vld [vmem:[%s18025_s17 + $0x134] sm:$0xf]  ;;  %v11424_v51 = vld [vmem:[%s18025_s17 + $0x138] sm:$0xf]  ;;  %v11696_v28 = vld [vmem:[%s18025_s17 + $0x348] sm:$0xf]  ;;  %v11433_v22 = vor.u32 %v12271_v26, %v11432_v44 }
 0xcc6   : > { %v11697_v59 = vor.u32 %v12336_v9, %v11696_v28  ;;  %v11578_v28 = vld [vmem:[%s18025_s17 + $0x2d0] sm:$0xf0]  ;;  %v11584_v9 = vld [vmem:[%s18025_s17 + $0x258] sm:$0xf] }
 0xcc7   : > { %v7560_v54 = vpack.c.bf16 %v7551_v60, %v7550_v6  ;;  %v11421_v6 = vor.u32 %v12253_v20, %v11418_v3  ;;  %v12270_v60 = vld [vmem:[%s18025_s17 + $0x1b4] sm:$0xf0]  ;;  %v11304_v3 = vld [vmem:[%s18025_s17 + $0x40] sm:$0xf] }
 0xcc8   : > { %v11425_v43 = vor.u32 %v12270_v60, %v11424_v51  ;;  %8742 = vmatpush.bf16.msrb.mxu2 %v11417_v40  ;;  %v11437_v40 = vor.u32 %v12255_v32, %v11434_v15  ;;  %v12239_v51 = vld [vmem:[%s18025_s17 + $0xbc] sm:$0xf0]  ;;  %v11306_v60 = vld [vmem:[%s18025_s17 + $0xc0] sm:$0xf0]  ;;  %v11320_v32 = vld [vmem:[%s18025_s17 + $0x50] sm:$0xf] }
 0xcc9   : > { %11204 = vmatmul.msk.bf16.gmra.mxu3 %vm2618_vm1, %v7560_v54  ;;  %v7786_v54 = vpop.f32.mrf.mxu0  ;;  %v12225_v15 = vld [vmem:[%s18025_s17 + $0x54] sm:$0xf] }
 0xcca   : > { %8755 = vmatpush.bf16.msrb.mxu3 %v11421_v6  ;;  %8768 = vmatpush.bf16.msrb.mxu0 %v11425_v43  ;;  %v12223_v6 = vld [vmem:[%s18025_s17 + $0x44] sm:$0xf]  ;;  %v11312_v43 = vld [vmem:[%s18025_s17 + $0x48] sm:$0xf] }
 0xccb   : > { %v12240_v54 = vld [vmem:[%s18025_s17 + $0xc4] sm:$0xf0]  ;;  %v11309_v35 = vor.u32 %v12223_v6, %v11306_v60  ;;  %v11720_v6 = vld [vmem:[%s18025_s17 + $0x360] sm:$0xf] }
 0xccc   : > { %v7243_v17 = vpop.f32.mrf.mxu3  ;;  %8743 = vmatpush.bf16.msrb.mxu2 %v11289_v12  ;;  %v11313_v55 = vor.u32 %v12240_v54, %v11312_v43  ;;  %v11704_v12 = vld [vmem:[%s18025_s17 + $0x350] sm:$0xf]  ;;  %v12339_v60 = vld [vmem:[%s18025_s17 + $0x3dc] sm:$0xf0]  ;;  %v12323_v43 = vld [vmem:[%s18025_s17 + $0x364] sm:$0xf] }
 0xccd   : > { %v7552_v18 = vadd.f32 %v7534_v53, %v7243_v17  ;;  %v12215_v17 = vld [vmem:[%s18025_s17 + $0x4] sm:$0xf]  ;;  %v11560_v53 = vld [vmem:[%s18025_s17 + $0x240] sm:$0xf] }
 0xcce   : > { %v11245_v50 = vor.u32 %v12215_v17, %v11242_v8  ;;  %8756 = vmatpush.bf16.msrb.mxu3 %v11293_v24  ;;  %8769 = vmatpush.bf16.msrb.mxu0 %v11297_v37  ;;  %v11249_v17 = vor.u32 %v12232_v48, %v11248_v16  ;;  %v11305_v8 = vor.u32 %v12239_v51, %v11304_v3  ;;  %v12337_v24 = vld [vmem:[%s18025_s17 + $0x3cc] sm:$0xf0]  ;;  %v11706_v37 = vld [vmem:[%s18025_s17 + $0x3d0] sm:$0xf0] }
 0xccf   : > { %v11705_v2 = vor.u32 %v12337_v24, %v11704_v12  ;;  %v11709_v27 = vor.u32 %v12321_v52, %v11706_v37  ;;  %v11640_v48 = vld [vmem:[%s18025_s17 + $0x310] sm:$0xf]  ;;  %v11592_v52 = vld [vmem:[%s18025_s17 + $0x260] sm:$0xf]  ;;  %v12291_v37 = vld [vmem:[%s18025_s17 + $0x264] sm:$0xf] }
 0xcd0   : > { %8600 = vmatpush.bf16.msra.mxu1 %v11245_v50  ;;  %v11634_v50 = vld [vmem:[%s18025_s17 + $0x388] sm:$0xf0] }
 0xcd1   : > { %v7787_v11 = vpop.f32.mrf.mxu0  ;;  %v11637_v13 = vor.u32 %v12312_v42, %v11634_v50  ;;  %v12340_v42 = vld [vmem:[%s18025_s17 + $0x3e4] sm:$0xf0] }
 0xcd2   : > { %v11712_v11 = vld [vmem:[%s18025_s17 + $0x358] sm:$0xf] }
 0xcd4   : > { %v7245_v29 = vpop.f32.mrf.mxu3 }
 0xcd5   : > { %v7553_v1 = vadd.f32 %v7536_v39, %v7245_v29  ;;  %v12303_v39 = vld [vmem:[%s18025_s17 + $0x2bc] sm:$0xf0]  ;;  %v11562_v29 = vld [vmem:[%s18025_s17 + $0x2c0] sm:$0xf0] }
 0xcd6   : > { %v11565_v14 = vor.u32 %v12287_v46, %v11562_v29  ;;  %v11448_v46 = vld [vmem:[%s18025_s17 + $0x150] sm:$0xf] }
 0xcd7   : > { %v7561_v56 = vpack.c.bf16 %v7553_v1, %v7552_v18  ;;  %v11561_v18 = vor.u32 %v12303_v39, %v11560_v53  ;;  %v11376_v1 = vld [vmem:[%s18025_s17 + $0x108] sm:$0xf]  ;;  %v11581_v53 = vor.u32 %v12289_v5, %v11578_v28  ;;  %v12273_v29 = vld [vmem:[%s18025_s17 + $0x1cc] sm:$0xf0]  ;;  %v11464_v5 = vld [vmem:[%s18025_s17 + $0x160] sm:$0xf] }
 0xcd8   : > { %v11377_v57 = vor.u32 %v12264_v7, %v11376_v1  ;;  %v12274_v1 = vld [vmem:[%s18025_s17 + $0x1d4] sm:$0xf0]  ;;  %v12275_v28 = vld [vmem:[%s18025_s17 + $0x1dc] sm:$0xf0] }
 0xcd9   : > { %11205 = vmatmul.msk.bf16.gmra.mxu3 %vm2618_vm1, %v7561_v56  ;;  %v7789_v30 = vpop.f32.mrf.mxu0  ;;  %v11440_v56 = vld [vmem:[%s18025_s17 + $0x148] sm:$0xf] }
 0xcda   : > { %v11441_v20 = vor.u32 %v12272_v0, %v11440_v56  ;;  %v11576_v30 = vld [vmem:[%s18025_s17 + $0x250] sm:$0xf]  ;;  %v11322_v56 = vld [vmem:[%s18025_s17 + $0xd0] sm:$0xf0]  ;;  %v11328_v0 = vld [vmem:[%s18025_s17 + $0x58] sm:$0xf] }
 0xcdb   : > { %v11325_v3 = vor.u32 %v12225_v15, %v11322_v56  ;;  %v11736_v15 = vld [vmem:[%s18025_s17 + $0x370] sm:$0xf] }
 0xcdc   : > { %v12341_v56 = vld [vmem:[%s18025_s17 + $0x3ec] sm:$0xf0] }
 0xce1   : > { %v7790_v58 = vpop.f32.mrf.mxu0 }
 0xce2   : > { %v12241_v58 = vld [vmem:[%s18025_s17 + $0xcc] sm:$0xf0] }
 0xce3   : > { %v11321_v16 = vor.u32 %v12241_v58, %v11320_v32 }
 0xce9   : > { %v7792_v10 = vpop.f32.mrf.mxu0 }
 0xcea   : > { %v12307_v10 = vld [vmem:[%s18025_s17 + $0x2dc] sm:$0xf0] }
 0xcec   : > { %v7603_v25 = vpop.f32.mrf.mxu3 }
 0xced   : > { %v7807_v34 = vadd.f32 %v7783_v36, %v7603_v25  ;;  %v12338_v36 = vld [vmem:[%s18025_s17 + $0x3d4] sm:$0xf0]  ;;  %v12280_v25 = vld [vmem:[%s18025_s17 + $0x20c] sm:$0xf] }
 0xcee   : > { %v11713_v41 = vor.u32 %v12338_v36, %v11712_v11  ;;  %v11594_v11 = vld [vmem:[%s18025_s17 + $0x2e0] sm:$0xf0]  ;;  %v11600_v36 = vld [vmem:[%s18025_s17 + $0x268] sm:$0xf] }
 0xcef   : > { %v17349_v31 = vpack.c.bf16 %v7807_v34, %v7807_v34  ;;  %v12305_v34 = vld [vmem:[%s18025_s17 + $0x2cc] sm:$0xf0] }
 0xcf0   : > { %v11577_v23 = vor.u32 %v12305_v34, %v11576_v30  ;;  %v11597_v30 = vor.u32 %v12291_v37, %v11594_v11  ;;  %v11480_v37 = vld [vmem:[%s18025_s17 + $0x170] sm:$0xf] }
 0xcf1   : > { %11750 = vmatmul.msk.bf16.vlgmr.msrb.gmra.mxu1 %vm1051_vm0, %v17349_v31  ;;  %11758 = vmatmul.msk.bf16.vlgmr.msra.gmra.mxu2 %vm1051_vm0, %v17349_v31  ;;  %v7793_v21 = vpop.f32.mrf.mxu0  ;;  %v12277_v11 = vld [vmem:[%s18025_s17 + $0x1ec] sm:$0xf0] }
 0xcf2   : > { %11759 = vmatmul.msk.bf16.vlgmr.msra.gmra.mxu3 %vm1051_vm0, %v17349_v31  ;;  %11760 = vmatmul.msk.bf16.vlgmr.msra.gmra.mxu0 %vm1051_vm0, %v17349_v31  ;;  %v12243_v21 = vld [vmem:[%s18025_s17 + $0xdc] sm:$0xf0] }
 0xcf3   : > { %8610 = vmatpush.bf16.msrb.mxu1 %v11633_v47  ;;  %8792 = vmatpush.bf16.msra.mxu2 %v11689_v62  ;;  %v12306_v47 = vld [vmem:[%s18025_s17 + $0x2d4] sm:$0xf0]  ;;  %v11509_v62 = vor.u32 %v12280_v25, %v11506_v38  ;;  %v11593_v25 = vor.u32 %v12307_v10, %v11592_v52  ;;  %v11384_v38 = vld [vmem:[%s18025_s17 + $0x110] sm:$0xf] }
 0xcf4   : > { %v7605_v61 = vpop.f32.mrf.mxu3  ;;  %8805 = vmatpush.bf16.msra.mxu3 %v11693_v63  ;;  %8818 = vmatpush.bf16.msra.mxu0 %v11697_v59  ;;  %v11378_v63 = vld [vmem:[%s18025_s17 + $0x188] sm:$0xf0]  ;;  %v11585_v39 = vor.u32 %v12306_v47, %v11584_v9  ;;  %v12259_v9 = vld [vmem:[%s18025_s17 + $0x164] sm:$0xf] }
 0xcf5   : > { %v11381_v7 = vor.u32 %v12248_v19, %v11378_v63  ;;  %v11449_v61 = vor.u32 %v12273_v29, %v11448_v46  ;;  %v12276_v19 = vld [vmem:[%s18025_s17 + $0x1e4] sm:$0xf0] }
 0xcf7   : > { %8611 = vmatpush.bf16.msrb.mxu1 %v11505_v45  ;;  %8793 = vmatpush.bf16.msra.mxu2 %v11561_v18  ;;  %v11450_v45 = vld [vmem:[%s18025_s17 + $0x1d0] sm:$0xf0]  ;;  %v11456_v18 = vld [vmem:[%s18025_s17 + $0x158] sm:$0xf] }
 0xcf8   : > { %8806 = vmatpush.bf16.msra.mxu3 %v11565_v14  ;;  %8819 = vmatpush.bf16.msra.mxu0 %v11569_v49  ;;  %v12216_v14 = vld [vmem:[%s18025_s17 + $0xc] sm:$0xf]  ;;  %v11453_v44 = vor.u32 %v12257_v33, %v11450_v45  ;;  %v11457_v26 = vor.u32 %v12274_v1, %v11456_v18  ;;  %v11336_v33 = vld [vmem:[%s18025_s17 + $0x60] sm:$0xf]  ;;  %v12227_v45 = vld [vmem:[%s18025_s17 + $0x64] sm:$0xf] }
 0xcf9   : > { %v11250_v49 = vld [vmem:[%s18025_s17 + $0x88] sm:$0xf0]  ;;  %v7795_v54 = vpop.f32.mrf.mxu0  ;;  %v11338_v18 = vld [vmem:[%s18025_s17 + $0xe0] sm:$0xf0]  ;;  %v11344_v1 = vld [vmem:[%s18025_s17 + $0x68] sm:$0xf] }
 0xcfa   : > { %v11341_v32 = vor.u32 %v12227_v45, %v11338_v18  ;;  %v12309_v54 = vld [vmem:[%s18025_s17 + $0x2ec] sm:$0xf0] }
 0xcfb   : > { %8612 = vmatpush.bf16.msrb.mxu1 %v11377_v57  ;;  %8794 = vmatpush.bf16.msra.mxu2 %v11433_v22  ;;  %v12242_v57 = vld [vmem:[%s18025_s17 + $0xd4] sm:$0xf0]  ;;  %v11253_v22 = vor.u32 %v12216_v14, %v11250_v49  ;;  %v11337_v14 = vor.u32 %v12243_v21, %v11336_v33  ;;  %v12313_v49 = vld [vmem:[%s18025_s17 + $0x314] sm:$0xf] }
 0xcfc   : > { %v7607_v4 = vpop.f32.mrf.mxu3  ;;  %8807 = vmatpush.bf16.msra.mxu3 %v11437_v40  ;;  %8820 = vmatpush.bf16.msra.mxu0 %v11441_v20  ;;  %v12329_v40 = vld [vmem:[%s18025_s17 + $0x38c] sm:$0xf0]  ;;  %v11329_v51 = vor.u32 %v12242_v57, %v11328_v0  ;;  %v12325_v0 = vld [vmem:[%s18025_s17 + $0x374] sm:$0xf]  ;;  %v11648_v33 = vld [vmem:[%s18025_s17 + $0x318] sm:$0xf] }
 0xcfd   : > { %v11641_v50 = vor.u32 %v12329_v40, %v11640_v48  ;;  %v11721_v4 = vor.u32 %v12339_v60, %v11720_v6  ;;  %v12342_v48 = vld [vmem:[%s18025_s17 + $0x3f4] sm:$0xf0] }
 0xcfe   : > { %v12330_v21 = vld [vmem:[%s18025_s17 + $0x394] sm:$0xf0] }
 0xcff   : > { %8613 = vmatpush.bf16.msrb.mxu1 %v11249_v17  ;;  %8795 = vmatpush.bf16.msra.mxu2 %v11305_v8  ;;  %v11722_v17 = vld [vmem:[%s18025_s17 + $0x3e0] sm:$0xf0]  ;;  %v11728_v8 = vld [vmem:[%s18025_s17 + $0x368] sm:$0xf]  ;;  %v11649_v18 = vor.u32 %v12330_v21, %v11648_v33  ;;  %v12288_v21 = vld [vmem:[%s18025_s17 + $0x24c] sm:$0xf] }
 0xd00   : > { %8808 = vmatpush.bf16.msra.mxu3 %v11309_v35  ;;  %8821 = vmatpush.bf16.msra.mxu0 %v11313_v55  ;;  %v11512_v35 = vld [vmem:[%s18025_s17 + $0x210] sm:$0xf]  ;;  %v11725_v12 = vor.u32 %v12323_v43, %v11722_v17  ;;  %v11729_v24 = vor.u32 %v12340_v42, %v11728_v8  ;;  %v12293_v17 = vld [vmem:[%s18025_s17 + $0x274] sm:$0xf]  ;;  %v11616_v42 = vld [vmem:[%s18025_s17 + $0x278] sm:$0xf] }
 0xd01   : > { %11751 = vmatmul.msk.bf16.vlgmr.msra.gmra.mxu1 %vm1051_vm0, %v17349_v31  ;;  %11762 = vmatmul.msk.bf16.vlgmr.msrb.gmra.mxu2 %vm1051_vm0, %v17349_v31  ;;  %v12297_v55 = vld [vmem:[%s18025_s17 + $0x28c] sm:$0xf0]  ;;  %v7796_v47 = vpop.f32.mrf.mxu0  ;;  %v11610_v8 = vld [vmem:[%s18025_s17 + $0x2f0] sm:$0xf0] }
 0xd02   : > { %11763 = vmatmul.msk.bf16.vlgmr.msrb.gmra.mxu3 %vm1051_vm0, %v17349_v31  ;;  %11764 = vmatmul.msk.bf16.vlgmr.msrb.gmra.mxu0 %vm1051_vm0, %v17349_v31  ;;  %v11608_v43 = vld [vmem:[%s18025_s17 + $0x270] sm:$0xf]  ;;  %v11613_v52 = vor.u32 %v12293_v17, %v11610_v8  ;;  %v12218_v17 = vld [vmem:[%s18025_s17 + $0x1c] sm:$0xf] }
 0xd03   : > { %8623 = vmatpush.bf16.msra.mxu1 %v11637_v13  ;;  %8844 = vmatpush.bf16.msrb.mxu2 %v11705_v2  ;;  %v12308_v13 = vld [vmem:[%s18025_s17 + $0x2e4] sm:$0xf0]  ;;  %v11513_v2 = vor.u32 %v12297_v55, %v11512_v35  ;;  %v11609_v35 = vor.u32 %v12309_v54, %v11608_v43  ;;  %v12249_v55 = vld [vmem:[%s18025_s17 + $0x114] sm:$0xf]  ;;  %v12245_v47 = vld [vmem:[%s18025_s17 + $0xec] sm:$0xf0] }
 0xd04   : > { %v7608_v59 = vpop.f32.mrf.mxu3  ;;  %8857 = vmatpush.bf16.msrb.mxu3 %v11709_v27  ;;  %8870 = vmatpush.bf16.msrb.mxu0 %v11713_v41  ;;  %v12265_v27 = vld [vmem:[%s18025_s17 + $0x18c] sm:$0xf0]  ;;  %v11601_v34 = vor.u32 %v12308_v13, %v11600_v36  ;;  %v12261_v36 = vld [vmem:[%s18025_s17 + $0x174] sm:$0xf]  ;;  %v11266_v8 = vld [vmem:[%s18025_s17 + $0x98] sm:$0xf0] }
 0xd05   : > { %v11385_v63 = vor.u32 %v12265_v27, %v11384_v38  ;;  %v11465_v59 = vor.u32 %v12275_v28, %v11464_v5  ;;  %v12278_v38 = vld [vmem:[%s18025_s17 + $0x1f4] sm:$0xf0] }
 0xd07   : > { %8624 = vmatpush.bf16.msra.mxu1 %v11509_v62  ;;  %8845 = vmatpush.bf16.msrb.mxu2 %v11577_v23  ;;  %v11466_v62 = vld [vmem:[%s18025_s17 + $0x1e0] sm:$0xf0]  ;;  %v11472_v23 = vld [vmem:[%s18025_s17 + $0x168] sm:$0xf] }
 0xd08   : > { %8858 = vmatpush.bf16.msrb.mxu3 %v11581_v53  ;;  %8871 = vmatpush.bf16.msrb.mxu0 %v11585_v39  ;;  %v11256_v53 = vld [vmem:[%s18025_s17 + $0x10] sm:$0xf]  ;;  %v11469_v46 = vor.u32 %v12259_v9, %v11466_v62  ;;  %v11473_v29 = vor.u32 %v12276_v19, %v11472_v23  ;;  %v12229_v62 = vld [vmem:[%s18025_s17 + $0x74] sm:$0xf]  ;;  %v11360_v19 = vld [vmem:[%s18025_s17 + $0x78] sm:$0xf] }
 0xd09   : > { %v12233_v39 = vld [vmem:[%s18025_s17 + $0x8c] sm:$0xf0]  ;;  %v7798_v57 = vpop.f32.mrf.mxu0  ;;  %v11354_v23 = vld [vmem:[%s18025_s17 + $0xf0] sm:$0xf0] }
 0xd0a   : > { %v11352_v9 = vld [vmem:[%s18025_s17 + $0x70] sm:$0xf]  ;;  %v12314_v57 = vld [vmem:[%s18025_s17 + $0x31c] sm:$0xf] }
 0xd0b   : > { %8625 = vmatpush.bf16.msra.mxu1 %v11381_v7  ;;  %8846 = vmatpush.bf16.msrb.mxu2 %v11449_v61  ;;  %v12244_v7 = vld [vmem:[%s18025_s17 + $0xe4] sm:$0xf0]  ;;  %v11257_v61 = vor.u32 %v12233_v39, %v11256_v53  ;;  %v11353_v53 = vor.u32 %v12245_v47, %v11352_v9  ;;  %v12254_v9 = vld [vmem:[%s18025_s17 + $0x13c] sm:$0xf] }
 0xd0c   : > { %v7610_v20 = vpop.f32.mrf.mxu3  ;;  %8859 = vmatpush.bf16.msrb.mxu3 %v11453_v44  ;;  %8872 = vmatpush.bf16.msrb.mxu0 %v11457_v26  ;;  %v11642_v44 = vld [vmem:[%s18025_s17 + $0x390] sm:$0xf0]  ;;  %v11345_v58 = vor.u32 %v12244_v7, %v11344_v1  ;;  %v11520_v1 = vld [vmem:[%s18025_s17 + $0x218] sm:$0xf]  ;;  %v11426_v47 = vld [vmem:[%s18025_s17 + $0x1b8] sm:$0xf0] }
 0xd0d   : > { %v11645_v40 = vor.u32 %v12313_v49, %v11642_v44  ;;  %v11737_v20 = vor.u32 %v12341_v56, %v11736_v15  ;;  %v12298_v7 = vld [vmem:[%s18025_s17 + $0x294] sm:$0xf0] }
 0xd0e   : > { %v11392_v49 = vld [vmem:[%s18025_s17 + $0x118] sm:$0xf] }
 0xd0f   : > { %8626 = vmatpush.bf16.msra.mxu1 %v11253_v22  ;;  %8847 = vmatpush.bf16.msrb.mxu2 %v11321_v16  ;;  %v11738_v22 = vld [vmem:[%s18025_s17 + $0x3f0] sm:$0xf0]  ;;  %v11744_v16 = vld [vmem:[%s18025_s17 + $0x378] sm:$0xf] }
 0xd10   : > { %8860 = vmatpush.bf16.msrb.mxu3 %v11325_v3  ;;  %8873 = vmatpush.bf16.msrb.mxu0 %v11329_v51  ;;  %v12281_v3 = vld [vmem:[%s18025_s17 + $0x214] sm:$0xf]  ;;  %v11741_v6 = vor.u32 %v12325_v0, %v11738_v22  ;;  %v11745_v60 = vor.u32 %v12342_v48, %v11744_v16  ;;  %v12266_v44 = vld [vmem:[%s18025_s17 + $0x194] sm:$0xf0]  ;;  %v11650_v22 = vld [vmem:[%s18025_s17 + $0x398] sm:$0xf0] }
 0xd11   : > { %11752 = vmatmul.msk.bf16.vlgmr.msrb.gmra.mxu1 %vm1051_vm0, %v17349_v31  ;;  %11766 = vmatmul.msk.bf16.vlgmr.msra.gmra.mxu2 %vm1051_vm0, %v17349_v31  ;;  %v11514_v51 = vld [vmem:[%s18025_s17 + $0x290] sm:$0xf0]  ;;  %v7799_v13 = vpop.f32.mrf.mxu0  ;;  %v12234_v15 = vld [vmem:[%s18025_s17 + $0x94] sm:$0xf0]  ;;  %v11653_v48 = vor.u32 %v12314_v57, %v11650_v22 }
 0xd12   : > { %11767 = vmatmul.msk.bf16.vlgmr.msra.gmra.mxu3 %vm1051_vm0, %v17349_v31  ;;  %11768 = vmatmul.msk.bf16.vlgmr.msra.gmra.mxu0 %vm1051_vm0, %v17349_v31  ;;  %v12220_v13 = vld [vmem:[%s18025_s17 + $0x2c] sm:$0xf] }
 0xd13   : > { %8636 = vmatpush.bf16.msrb.mxu1 %v11641_v50  ;;  %8896 = vmatpush.bf16.msra.mxu2 %v11721_v4  ;;  %v12310_v50 = vld [vmem:[%s18025_s17 + $0x2f4] sm:$0xf0]  ;;  %v11517_v4 = vor.u32 %v12281_v3, %v11514_v51 }
 0xd14   : > { %v7611_v41 = vpop.f32.mrf.mxu3  ;;  %8909 = vmatpush.bf16.msra.mxu3 %v11725_v12  ;;  %8922 = vmatpush.bf16.msra.mxu0 %v11729_v24  ;;  %v11386_v12 = vld [vmem:[%s18025_s17 + $0x190] sm:$0xf0]  ;;  %v11617_v10 = vor.u32 %v12310_v50, %v11616_v42  ;;  %v11269_v42 = vor.u32 %v12218_v17, %v11266_v8  ;;  %v12316_v50 = vld [vmem:[%s18025_s17 + $0x32c] sm:$0xf] }
 0xd15   : > { %v11389_v27 = vor.u32 %v12249_v55, %v11386_v12  ;;  %v11481_v41 = vor.u32 %v12277_v11, %v11480_v37  ;;  %v12284_v12 = vld [vmem:[%s18025_s17 + $0x22c] sm:$0xf] }
 0xd16   : > { %v11410_v37 = vld [vmem:[%s18025_s17 + $0x1a8] sm:$0xf0] }
 0xd17   : > { %8637 = vmatpush.bf16.msrb.mxu1 %v11513_v2  ;;  %8897 = vmatpush.bf16.msra.mxu2 %v11593_v25  ;;  %v11482_v2 = vld [vmem:[%s18025_s17 + $0x1f0] sm:$0xf0]  ;;  %v11488_v25 = vld [vmem:[%s18025_s17 + $0x178] sm:$0xf] }
 0xd18   : > { %8910 = vmatpush.bf16.msra.mxu3 %v11597_v30  ;;  %8923 = vmatpush.bf16.msra.mxu0 %v11601_v34  ;;  %v12217_v30 = vld [vmem:[%s18025_s17 + $0x14] sm:$0xf]  ;;  %v11485_v5 = vor.u32 %v12261_v36, %v11482_v2  ;;  %v11489_v28 = vor.u32 %v12278_v38, %v11488_v25  ;;  %v11282_v2 = vld [vmem:[%s18025_s17 + $0xa8] sm:$0xf0]  ;;  %v12318_v38 = vld [vmem:[%s18025_s17 + $0x33c] sm:$0xf] }
 0xd19   : > { %v11258_v34 = vld [vmem:[%s18025_s17 + $0x90] sm:$0xf0]  ;;  %v7801_v45 = vpop.f32.mrf.mxu0  ;;  %v11285_v25 = vor.u32 %v12220_v13, %v11282_v2  ;;  %v11602_v13 = vld [vmem:[%s18025_s17 + $0x2e8] sm:$0xf0] }
 0xd1a   : > { %v11570_v45 = vld [vmem:[%s18025_s17 + $0x2c8] sm:$0xf0] }
 0xd1b   : > { %8638 = vmatpush.bf16.msrb.mxu1 %v11385_v63  ;;  %8898 = vmatpush.bf16.msra.mxu2 %v11465_v59  ;;  %v12246_v63 = vld [vmem:[%s18025_s17 + $0xf4] sm:$0xf0]  ;;  %v11261_v59 = vor.u32 %v12217_v30, %v11258_v34  ;;  %v12286_v34 = vld [vmem:[%s18025_s17 + $0x23c] sm:$0xf] }
 0xd1c   : > { %v7613_v26 = vpop.f32.mrf.mxu3  ;;  %8911 = vmatpush.bf16.msra.mxu3 %v11469_v46  ;;  %8924 = vmatpush.bf16.msra.mxu0 %v11473_v29  ;;  %v11357_v46 = vor.u32 %v12229_v62, %v11354_v23  ;;  %v11361_v29 = vor.u32 %v12246_v63, %v11360_v19  ;;  %v11429_v23 = vor.u32 %v12254_v9, %v11426_v47  ;;  %v12222_v19 = vld [vmem:[%s18025_s17 + $0x3c] sm:$0xf]  ;;  %v11346_v9 = vld [vmem:[%s18025_s17 + $0xe8] sm:$0xf0] }
 0xd1d   : > { %v11298_v63 = vld [vmem:[%s18025_s17 + $0xb8] sm:$0xf0] }
 0xd1f   : > { %8639 = vmatpush.bf16.msrb.mxu1 %v11257_v61  ;;  %8899 = vmatpush.bf16.msra.mxu2 %v11337_v14  ;;  %v11521_v61 = vor.u32 %v12298_v7, %v11520_v1  ;;  %v12256_v1 = vld [vmem:[%s18025_s17 + $0x14c] sm:$0xf] }
 0xd20   : > { %8912 = vmatpush.bf16.msra.mxu3 %v11341_v32  ;;  %8925 = vmatpush.bf16.msra.mxu0 %v11345_v58  ;;  %v11393_v32 = vor.u32 %v12266_v44, %v11392_v49  ;;  %v11264_v58 = vld [vmem:[%s18025_s17 + $0x18] sm:$0xf]  ;;  %v11442_v7 = vld [vmem:[%s18025_s17 + $0x1c8] sm:$0xf0] }
 0xd21   : > { %11753 = vmatmul.msk.bf16.vlgmr.msra.gmra.mxu1 %vm1051_vm0, %v17349_v31  ;;  %11770 = vmatmul.msk.bf16.vlgmr.msrb.gmra.mxu2 %vm1051_vm0, %v17349_v31  ;;  %v7802_v26 = vpop.f32.mrf.mxu0  ;;  %v11265_v56 = vor.u32 %v12234_v15, %v11264_v58  ;;  %v11445_v44 = vor.u32 %v12256_v1, %v11442_v7  ;;  %v11314_v58 = vld [vmem:[%s18025_s17 + $0xc8] sm:$0xf0] }
 0xd22   : > { %11771 = vmatmul.msk.bf16.vlgmr.msrb.gmra.mxu3 %vm1051_vm0, %v17349_v31  ;;  %11772 = vmatmul.msk.bf16.vlgmr.msrb.gmra.mxu0 %vm1051_vm0, %v17349_v31 }
 0xd23   : > { %8649 = vmatpush.bf16.msra.mxu1 %v11645_v40  ;;  %8948 = vmatpush.bf16.msrb.mxu2 %v11737_v20  ;;  %v12282_v40 = vld [vmem:[%s18025_s17 + $0x21c] sm:$0xf] }
 0xd24   : > { %v7614_v24 = vpop.f32.mrf.mxu3  ;;  %8961 = vmatpush.bf16.msrb.mxu3 %v11741_v6  ;;  %8974 = vmatpush.bf16.msrb.mxu0 %v11745_v60  ;;  %v11522_v20 = vld [vmem:[%s18025_s17 + $0x298] sm:$0xf0] }
 0xd25   : > { %v11525_v3 = vor.u32 %v12282_v40, %v11522_v20  ;;  %v12250_v6 = vld [vmem:[%s18025_s17 + $0x11c] sm:$0xf]  ;;  %v11538_v24 = vld [vmem:[%s18025_s17 + $0x2a8] sm:$0xf0] }
 0xd26   : > { %v11394_v60 = vld [vmem:[%s18025_s17 + $0x198] sm:$0xf0] }
 0xd27   : > { %8650 = vmatpush.bf16.msra.mxu1 %v11517_v4  ;;  %8949 = vmatpush.bf16.msrb.mxu2 %v11609_v35  ;;  %v11397_v54 = vor.u32 %v12250_v6, %v11394_v60  ;;  %v11666_v4 = vld [vmem:[%s18025_s17 + $0x3a8] sm:$0xf0]  ;;  %v12290_v20 = vld [vmem:[%s18025_s17 + $0x25c] sm:$0xf] }
 0xd28   : > { %8962 = vmatpush.bf16.msrb.mxu3 %v11613_v52  ;;  %8975 = vmatpush.bf16.msrb.mxu0 %v11617_v10  ;;  %v11669_v55 = vor.u32 %v12316_v50, %v11666_v4  ;;  %v11541_v52 = vor.u32 %v12284_v12, %v11538_v24  ;;  %v12252_v10 = vld [vmem:[%s18025_s17 + $0x12c] sm:$0xf]  ;;  %v12258_v6 = vld [vmem:[%s18025_s17 + $0x15c] sm:$0xf] }
 0xd29   : > { %v7804_v16 = vpop.f32.mrf.mxu0  ;;  %v11413_v36 = vor.u32 %v12252_v10, %v11410_v37  ;;  %v11458_v60 = vld [vmem:[%s18025_s17 + $0x1d8] sm:$0xf0]  ;;  %v11730_v12 = vld [vmem:[%s18025_s17 + $0x3e8] sm:$0xf0] }
 0xd2a   : > { %v11461_v8 = vor.u32 %v12258_v6, %v11458_v60  ;;  %v12226_v50 = vld [vmem:[%s18025_s17 + $0x5c] sm:$0xf] }
 0xd2b   : > { %8651 = vmatpush.bf16.msra.mxu1 %v11389_v27  ;;  %8950 = vmatpush.bf16.msrb.mxu2 %v11481_v41  ;;  %v11682_v27 = vld [vmem:[%s18025_s17 + $0x3b8] sm:$0xf0] }
 0xd2c   : > { %v7616_v39 = vpop.f32.mrf.mxu3  ;;  %8963 = vmatpush.bf16.msrb.mxu3 %v11485_v5  ;;  %8976 = vmatpush.bf16.msrb.mxu0 %v11489_v28  ;;  %v11685_v30 = vor.u32 %v12318_v38, %v11682_v27  ;;  %v11554_v5 = vld [vmem:[%s18025_s17 + $0x2b8] sm:$0xf0]  ;;  %v11474_v38 = vld [vmem:[%s18025_s17 + $0x1e8] sm:$0xf0] }
 0xd2d   : > { %v11557_v28 = vor.u32 %v12286_v34, %v11554_v5  ;;  %v11698_v39 = vld [vmem:[%s18025_s17 + $0x3c8] sm:$0xf0]  ;;  %v11330_v4 = vld [vmem:[%s18025_s17 + $0xd8] sm:$0xf0] }
 0xd2f   : > { %8652 = vmatpush.bf16.msra.mxu1 %v11261_v59  ;;  %8951 = vmatpush.bf16.msrb.mxu2 %v11353_v53  ;;  %v11301_v59 = vor.u32 %v12222_v19, %v11298_v63  ;;  %v12320_v53 = vld [vmem:[%s18025_s17 + $0x34c] sm:$0xf] }
 0xd30   : > { %8964 = vmatpush.bf16.msrb.mxu3 %v11357_v46  ;;  %8977 = vmatpush.bf16.msrb.mxu0 %v11361_v29  ;;  %v11701_v29 = vor.u32 %v12320_v53, %v11698_v39 }
 0xd31   : > { %11754 = vmatmul.msk.bf16.vlgmr.msrb.gmra.mxu1 %vm1051_vm0, %v17349_v31  ;;  %11774 = vmatmul.msk.bf16.vlgmr.msra.gmra.mxu2 %vm1051_vm0, %v17349_v31  ;;  %v7805_v43 = vpop.f32.mrf.mxu0 }
 0xd32   : > { %11775 = vmatmul.msk.bf16.vlgmr.msra.gmra.mxu3 %vm1051_vm0, %v17349_v31  ;;  %11776 = vmatmul.msk.bf16.vlgmr.msra.gmra.mxu0 %vm1051_vm0, %v17349_v31 }
 0xd33   : > { %8662 = vmatpush.bf16.msrb.mxu1 %v11649_v18  ;;  %v11573_v18 = vor.u32 %v12288_v21, %v11570_v45  ;;  %v12262_v21 = vld [vmem:[%s18025_s17 + $0x17c] sm:$0xf] }
 0xd34   : > { %v7617_v14 = vpop.f32.mrf.mxu3  ;;  %v11490_v45 = vld [vmem:[%s18025_s17 + $0x1f8] sm:$0xf0] }
 0xd37   : > { %8663 = vmatpush.bf16.msrb.mxu1 %v11521_v61 }
 0xd3b   : > { %8664 = vmatpush.bf16.msrb.mxu1 %v11393_v32  ;;  %v12224_v32 = vld [vmem:[%s18025_s17 + $0x4c] sm:$0xf] }
 0xd3c   : > { %v7619_v0 = vpop.f32.mrf.mxu3  ;;  %v11317_v15 = vor.u32 %v12224_v32, %v11314_v58 }
 0xd3d   : > { %v11714_v0 = vld [vmem:[%s18025_s17 + $0x3d8] sm:$0xf0] }
 0xd3f   : > { %8665 = vmatpush.bf16.msrb.mxu1 %v11265_v56  ;;  %v12322_v56 = vld [vmem:[%s18025_s17 + $0x35c] sm:$0xf] }
 0xd41   : > { %11755 = vmatmul.msk.bf16.vlgmr.msra.gmra.mxu1 %vm1051_vm0, %v17349_v31  ;;  %11778 = vmatmul.msk.bf16.vlgmr.msrb.gmra.mxu2 %vm1051_vm0, %v17349_v31 }
 0xd42   : > { %11779 = vmatmul.msk.bf16.vlgmr.msrb.gmra.mxu3 %vm1051_vm0, %v17349_v31  ;;  %11780 = vmatmul.msk.bf16.vlgmr.msrb.gmra.mxu0 %vm1051_vm0, %v17349_v31 }
 0xd43   : > { %8675 = vmatpush.bf16.msra.mxu1 %v11653_v48  ;;  %v11717_v48 = vor.u32 %v12322_v56, %v11714_v0 }
 0xd44   : > { %v7620_v51 = vpop.f32.mrf.mxu3 }
 0xd47   : > { %8676 = vmatpush.bf16.msra.mxu1 %v11525_v3  ;;  %v11586_v3 = vld [vmem:[%s18025_s17 + $0x2d8] sm:$0xf0] }
 0xd48   : > { %v11589_v51 = vor.u32 %v12290_v20, %v11586_v3 }
 0xd4b   : > { %8677 = vmatpush.bf16.msra.mxu1 %v11397_v54 }
 0xd4c   : > { %v7622_v35 = vpop.f32.mrf.mxu3 }
 0xd4d   : > { %v11333_v35 = vor.u32 %v12226_v50, %v11330_v4 }
 0xd4f   : > { %8678 = vmatpush.bf16.msra.mxu1 %v11269_v42 }
 0xd51   : > { %11756 = vmatmul.msk.bf16.vlgmr.msrb.gmra.mxu1 %vm1051_vm0, %v17349_v31 }
 0xd53   : > { %8727 = vmatpush.bf16.msrb.mxu1 %v11669_v55  ;;  %v12324_v55 = vld [vmem:[%s18025_s17 + $0x36c] sm:$0xf] }
 0xd54   : > { %v7623_v11 = vpop.f32.mrf.mxu3  ;;  %v11733_v37 = vor.u32 %v12324_v55, %v11730_v12 }
 0xd57   : > { %8728 = vmatpush.bf16.msrb.mxu1 %v11541_v52 }
 0xd5b   : > { %8729 = vmatpush.bf16.msrb.mxu1 %v11413_v36  ;;  %v12292_v36 = vld [vmem:[%s18025_s17 + $0x26c] sm:$0xf] }
 0xd5c   : > { %v7625_v41 = vpop.f32.mrf.mxu3  ;;  %v11605_v2 = vor.u32 %v12292_v36, %v11602_v13 }
 0xd5f   : > { %8730 = vmatpush.bf16.msrb.mxu1 %v11285_v25  ;;  %v12260_v25 = vld [vmem:[%s18025_s17 + $0x16c] sm:$0xf] }
 0xd60   : > { %v11477_v34 = vor.u32 %v12260_v25, %v11474_v38 }
 0xd61   : > { %11757 = vmatmul.msk.bf16.vlgmr.msra.gmra.mxu1 %vm1051_vm0, %v17349_v31 }
 0xd63   : > { %8779 = vmatpush.bf16.msra.mxu1 %v11685_v30 }
 0xd64   : > { %v7626_v62 = vpop.f32.mrf.mxu3 }
 0xd65   : > { %v12326_v62 = vld [vmem:[%s18025_s17 + $0x37c] sm:$0xf] }
 0xd67   : > { %8780 = vmatpush.bf16.msra.mxu1 %v11557_v28  ;;  %v12228_v28 = vld [vmem:[%s18025_s17 + $0x6c] sm:$0xf] }
 0xd68   : > { %v11349_v47 = vor.u32 %v12228_v28, %v11346_v9 }
 0xd6b   : > { %8781 = vmatpush.bf16.msra.mxu1 %v11429_v23  ;;  %v11746_v23 = vld [vmem:[%s18025_s17 + $0x3f8] sm:$0xf0] }
 0xd6c   : > { %v11749_v53 = vor.u32 %v12326_v62, %v11746_v23 }
 0xd6e   : > { %v8589_v46 = vpop.f32.mrf.mxu1 }
 0xd6f   : > { %8782 = vmatpush.bf16.msra.mxu1 %v11301_v59  ;;  %8996 = vst [vmem:[%s17869_s26] sm:$0xff] %v8589_v46  ;;  %v8719_v33 = vpop.f32.mrf.mxu0  ;;  %v12294_v46 = vld [vmem:[%s18025_s17 + $0x27c] sm:$0xf] }
 0xd70   : > { %9006 = vst [vmem:[%s17869_s26 + $0x50] sm:$0xff] %v8719_v33 }
 0xd71   : > { %11761 = vmatmul.msk.bf16.vlgmr.msrb.gmra.mxu1 %vm1051_vm0, %v17349_v31 }
 0xd73   : > { %8831 = vmatpush.bf16.msrb.mxu1 %v11701_v29  ;;  %v11618_v29 = vld [vmem:[%s18025_s17 + $0x2f8] sm:$0xf0] }
 0xd74   : > { %v8693_v61 = vpop.f32.mrf.mxu2  ;;  %v11621_v33 = vor.u32 %v12294_v46, %v11618_v29 }
 0xd75   : > { %9004 = vst [vmem:[%s17869_s26 + $0x40] sm:$0xff] %v8693_v61  ;;  %v8706_v14 = vpop.f32.mrf.mxu3  ;;  %v11493_v61 = vor.u32 %v12262_v21, %v11490_v45 }
 0xd76   : > { %9005 = vst [vmem:[%s17869_s26 + $0x48] sm:$0xff] %v8706_v14  ;;  %v8591_v49 = vpop.f32.mrf.mxu1 }
 0xd77   : > { %8832 = vmatpush.bf16.msrb.mxu1 %v11573_v18  ;;  %v8721_v26 = vpop.f32.mrf.mxu0  ;;  %v12230_v49 = vld [vmem:[%s18025_s17 + $0x7c] sm:$0xf] }
 0xd7b   : > { %8833 = vmatpush.bf16.msrb.mxu1 %v11445_v44  ;;  %v11362_v44 = vld [vmem:[%s18025_s17 + $0xf8] sm:$0xf0] }
 0xd7c   : > { %v8695_v57 = vpop.f32.mrf.mxu2  ;;  %v11365_v26 = vor.u32 %v12230_v49, %v11362_v44 }
 0xd7d   : > { %v8708_v22 = vpop.f32.mrf.mxu3 }
 0xd7e   : > { %v8602_v16 = vpop.f32.mrf.mxu1 }
 0xd7f   : > { %8834 = vmatpush.bf16.msrb.mxu1 %v11317_v15  ;;  %8997 = vst [vmem:[%s17869_s26 + $0x8] sm:$0xff] %v8602_v16  ;;  %v8771_v40 = vpop.f32.mrf.mxu0 }
 0xd80   : > { %9010 = vst [vmem:[%s17869_s26 + $0x70] sm:$0xff] %v8771_v40 }
 0xd81   : > { %11765 = vmatmul.msk.bf16.vlgmr.msra.gmra.mxu1 %vm1051_vm0, %v17349_v31 }
 0xd83   : > { %8883 = vmatpush.bf16.msra.mxu1 %v11717_v48 }
 0xd84   : > { %v8745_v43 = vpop.f32.mrf.mxu2 }
 0xd85   : > { %9008 = vst [vmem:[%s17869_s26 + $0x60] sm:$0xff] %v8745_v43  ;;  %v8758_v54 = vpop.f32.mrf.mxu3 }
 0xd86   : > { %9009 = vst [vmem:[%s17869_s26 + $0x68] sm:$0xff] %v8758_v54  ;;  %v8604_v17 = vpop.f32.mrf.mxu1 }
 0xd87   : > { %8884 = vmatpush.bf16.msra.mxu1 %v11589_v51  ;;  %v8773_v42 = vpop.f32.mrf.mxu0 }
 0xd8b   : > { %8885 = vmatpush.bf16.msra.mxu1 %v11461_v8 }
 0xd8c   : > { %v8747_v24 = vpop.f32.mrf.mxu2 }
 0xd8d   : > { %v8760_v52 = vpop.f32.mrf.mxu3 }
 0xd8e   : > { %v8615_v10 = vpop.f32.mrf.mxu1 }
 0xd8f   : > { %8886 = vmatpush.bf16.msra.mxu1 %v11333_v35  ;;  %8998 = vst [vmem:[%s17869_s26 + $0x10] sm:$0xff] %v8615_v10  ;;  %v8823_v11 = vpop.f32.mrf.mxu0 }
 0xd90   : > { %9014 = vst [vmem:[%s17869_s26 + $0x90] sm:$0xff] %v8823_v11 }
 0xd91   : > { %11769 = vmatmul.msk.bf16.vlgmr.msrb.gmra.mxu1 %vm1051_vm0, %v17349_v31 }
 0xd93   : > { %8935 = vmatpush.bf16.msrb.mxu1 %v11733_v37 }
 0xd94   : > { %v8797_v27 = vpop.f32.mrf.mxu2 }
 0xd95   : > { %9012 = vst [vmem:[%s17869_s26 + $0x80] sm:$0xff] %v8797_v27  ;;  %v8810_v41 = vpop.f32.mrf.mxu3 }
 0xd96   : > { %9013 = vst [vmem:[%s17869_s26 + $0x88] sm:$0xff] %v8810_v41  ;;  %v8617_v30 = vpop.f32.mrf.mxu1 }
 0xd97   : > { %8936 = vmatpush.bf16.msrb.mxu1 %v11605_v2  ;;  %v8825_v5 = vpop.f32.mrf.mxu0 }
 0xd9b   : > { %8937 = vmatpush.bf16.msrb.mxu1 %v11477_v34 }
 0xd9c   : > { %v8799_v19 = vpop.f32.mrf.mxu2 }
 0xd9d   : > { %v8812_v63 = vpop.f32.mrf.mxu3 }
 0xd9e   : > { %v8628_v59 = vpop.f32.mrf.mxu1 }
 0xd9f   : > { %8938 = vmatpush.bf16.msrb.mxu1 %v11349_v47  ;;  %8999 = vst [vmem:[%s17869_s26 + $0x18] sm:$0xff] %v8628_v59  ;;  %v8875_v39 = vpop.f32.mrf.mxu0 }
 0xda0   : > { %9018 = vst [vmem:[%s17869_s26 + $0xb0] sm:$0xff] %v8875_v39 }
 0xda1   : > { %11773 = vmatmul.msk.bf16.vlgmr.msra.gmra.mxu1 %vm1051_vm0, %v17349_v31 }
 0xda3   : > { %8987 = vmatpush.bf16.msra.mxu1 %v11749_v53 }
 0xda4   : > { %v8849_v18 = vpop.f32.mrf.mxu2 }
 0xda5   : > { %9016 = vst [vmem:[%s17869_s26 + $0xa0] sm:$0xff] %v8849_v18  ;;  %v8862_v1 = vpop.f32.mrf.mxu3 }
 0xda6   : > { %9017 = vst [vmem:[%s17869_s26 + $0xa8] sm:$0xff] %v8862_v1  ;;  %v8630_v7 = vpop.f32.mrf.mxu1 }
 0xda7   : > { %8988 = vmatpush.bf16.msra.mxu1 %v11621_v33  ;;  %v8877_v14 = vpop.f32.mrf.mxu0 }
 0xdab   : > { %8989 = vmatpush.bf16.msra.mxu1 %v11493_v61 }
 0xdac   : > { %v8851_v32 = vpop.f32.mrf.mxu2 }
 0xdad   : > { %v8864_v58 = vpop.f32.mrf.mxu3 }
 0xdae   : > { %v8641_v15 = vpop.f32.mrf.mxu1 }
 0xdaf   : > { %8990 = vmatpush.bf16.msra.mxu1 %v11365_v26  ;;  %9000 = vst [vmem:[%s17869_s26 + $0x20] sm:$0xff] %v8641_v15  ;;  %v8927_v56 = vpop.f32.mrf.mxu0 }
 0xdb0   : > { %9022 = vst [vmem:[%s17869_s26 + $0xd0] sm:$0xff] %v8927_v56 }
 0xdb1   : > { %11777 = vmatmul.msk.bf16.vlgmr.msrb.gmra.mxu1 %vm1051_vm0, %v17349_v31 }
 0xdb4   : > { %v8901_v0 = vpop.f32.mrf.mxu2 }
 0xdb5   : > { %9020 = vst [vmem:[%s17869_s26 + $0xc0] sm:$0xff] %v8901_v0  ;;  %v8914_v57 = vpop.f32.mrf.mxu3 }
 0xdb6   : > { %9021 = vst [vmem:[%s17869_s26 + $0xc8] sm:$0xff] %v8914_v57  ;;  %v8643_v22 = vpop.f32.mrf.mxu1 }
 0xdb7   : > { %v8929_v16 = vpop.f32.mrf.mxu0 }
 0xdbc   : > { %v8903_v48 = vpop.f32.mrf.mxu2 }
 0xdbd   : > { %v8916_v40 = vpop.f32.mrf.mxu3 }
 0xdbe   : > { %v8654_v20 = vpop.f32.mrf.mxu1 }
 0xdbf   : > { %9001 = vst [vmem:[%s17869_s26 + $0x28] sm:$0xff] %v8654_v20  ;;  %v8979_v3 = vpop.f32.mrf.mxu0 }
 0xdc0   : > { %9026 = vst [vmem:[%s17869_s26 + $0xf0] sm:$0xff] %v8979_v3 }
 0xdc1   : > { %11781 = vmatmul.msk.bf16.vlgmr.msra.gmra.mxu1 %vm1051_vm0, %v17349_v31 }
 0xdc4   : > { %v8953_v51 = vpop.f32.mrf.mxu2 }
 0xdc5   : > { %9024 = vst [vmem:[%s17869_s26 + $0xe0] sm:$0xff] %v8953_v51  ;;  %v8966_v6 = vpop.f32.mrf.mxu3 }
 0xdc6   : > { %9025 = vst [vmem:[%s17869_s26 + $0xe8] sm:$0xff] %v8966_v6  ;;  %v8656_v60 = vpop.f32.mrf.mxu1 }
 0xdc7   : > { %v8981_v43 = vpop.f32.mrf.mxu0 }
 0xdcc   : > { %v8955_v54 = vpop.f32.mrf.mxu2 }
 0xdcd   : > { %v8968_v17 = vpop.f32.mrf.mxu3 }
 0xdce   : > { %v8667_v8 = vpop.f32.mrf.mxu1 }
 0xdcf   : > { %9002 = vst [vmem:[%s17869_s26 + $0x30] sm:$0xff] %v8667_v8 }
 0xdd6   : > { %v8669_v42 = vpop.f32.mrf.mxu1 }
 0xdde   : > { %v8680_v50 = vpop.f32.mrf.mxu1 }
 0xddf   : > { %9003 = vst [vmem:[%s17869_s26 + $0x38] sm:$0xff] %v8680_v50 }
 0xde6   : > { %v8682_v4 = vpop.f32.mrf.mxu1 }
 0xdee   : > { %v8732_v31 = vpop.f32.mrf.mxu1 }
 0xdef   : > { %9007 = vst [vmem:[%s17869_s26 + $0x58] sm:$0xff] %v8732_v31 }
 0xdf6   : > { %v8734_v35 = vpop.f32.mrf.mxu1 }
 0xdfe   : > { %v8784_v55 = vpop.f32.mrf.mxu1 }
 0xdff   : > { %9011 = vst [vmem:[%s17869_s26 + $0x78] sm:$0xff] %v8784_v55 }
 0xe06   : > { %v8786_v12 = vpop.f32.mrf.mxu1 }
 0xe0e   : > { %v8836_v24 = vpop.f32.mrf.mxu1 }
 0xe0f   : > { %9015 = vst [vmem:[%s17869_s26 + $0x98] sm:$0xff] %v8836_v24 }
 0xe16   : > { %v8838_v52 = vpop.f32.mrf.mxu1 }
 0xe1e   : > { %v8888_v10 = vpop.f32.mrf.mxu1 }
 0xe1f   : > { %9019 = vst [vmem:[%s17869_s26 + $0xb8] sm:$0xff] %v8888_v10 }
 0xe26   : > { %v8890_v37 = vpop.f32.mrf.mxu1 }
 0xe2e   : > { %v8940_v11 = vpop.f32.mrf.mxu1 }
 0xe2f   : > { %9023 = vst [vmem:[%s17869_s26 + $0xd8] sm:$0xff] %v8940_v11 }
 0xe36   : > { %v8942_v36 = vpop.f32.mrf.mxu1 }
 0xe3e   : > { %v8992_v13 = vpop.f32.mrf.mxu1 }
 0xe3f   : > { %9027 = vst [vmem:[%s17869_s26 + $0xf8] sm:$0xff] %v8992_v13 }
 0xe46   : > { %v8994_v2 = vpop.f32.mrf.mxu1 }
 0xe47 PF: > { %s18356_s23 = sld [smem:[#allocation2_spill]] }
 0xe4d   : > { %s28_s27 = sadd.s32 1, %s18356_s23  }
 0xe4e   : > { %p25_p4 = scmp.ge.s32.totalorder %s28_s27, 4  }
 0xe50   :  { %27 = sbr.rel (!%p25_p4) target bundleno = 5 (0x5), region = 134 }

</bundles_post_ra>
